<compile_context>
chip_gen: v7x
topology: tpu7x:2x2x1
jax: 0.10.0
libtpu: 0.0.40
codegen_flags: <defaults>
</compile_context>

<pallas_src>
import functools

import jax
import jax.numpy as jnp
from jax.experimental import pallas as pl
from jax.experimental.pallas import tpu as pltpu

BN_EPS = 1e-5

# CNN2D hyper-parameters (module defaults; small demo spatial size).
CH1, CH2 = 32, 48            # conv1 / conv2 out channels
K1, K2 = 5, 3                # conv kernel sizes
STRIDE = 2
FC_HIDDEN1, FC_HIDDEN2 = 256, 128
NUM_CLASSES = 1
IMG_X, IMG_Y = 32, 32        # demo resolution (module default is 90x120)

BATCH_TILE = 8               # frames per grid step in the conv kernel (even)
HEAD_OUT_PAD = 128           # lane-dense fc3 output width (sliced to NUM_CLASSES)


def _conv_out(n, k, s):
    return (n - k) // s + 1


# ---------------------------------------------------------------------------
# Kernel A: fused conv1 (+bn1+relu) -> conv2 (+bn2+relu), BATCH_TILE frames
#           per grid step, all conv activations kept in VMEM.
# ---------------------------------------------------------------------------
def _conv_stack_kernel(pat_ref, w1_ref, b1_ref, w2_ref, b2_ref, out_ref,
                       *, B, P1, Wh, Ho2, Wo2):
    # pat_ref: (B*4*P1, 25) bf16   conv1 im2col patches; per frame the 4*P1 rows
    #          are ordered (phase = p*2+q, a*Wh + b) with (p,q) the parity of the
    #          conv1 output position.
    # w1_ref : (25, CH1)        bf16  BN1-folded conv1 weight
    # b1_ref : (1, CH1)         f32
    # w2_ref : (9*CH1, CH2)     bf16  BN2-folded conv2 weight, rows = (tap, cin)
    # b2_ref : (1, CH2)         f32
    # out_ref: (B*HWp, CH2)     bf16  conv2 activations, HWp = Ho2*Wh rows/frame
    ch1 = w1_ref.shape[1]
    L = (Ho2 - 1) * Wh + Wo2        # conv2 rows computed per frame (full-width)
    HWp = Ho2 * Wh                  # output rows allotted per frame (>= L)

    # conv1 (+ folded BN1 + ReLU) for all B frames: a single MXU matmul.
    a1 = jnp.dot(pat_ref[...], w1_ref[...], preferred_element_type=jnp.float32)
    act1 = jnp.maximum(a1 + b1_ref[...], 0.0).astype(jnp.bfloat16)  # (B*4*P1, CH1)

    tail = jnp.zeros((HWp - L, out_ref.shape[1]), out_ref.dtype)
    for f in range(B):
        base = f * 4 * P1
        # conv2 im2col entirely in VMEM: thanks to the parity split, every tap
        # is one contiguous static slice of act1.  Concatenating the 9 taps
        # along lanes gives a (L, 9*CH1) patch matrix -> one K=288 MXU matmul.
        pieces = []
        for di in range(K2):
            ro, p = di // 2, di % 2
            for dj in range(K2):
                co, q = dj // 2, dj % 2
                start = base + (p * 2 + q) * P1 + ro * Wh + co
                pieces.append(act1[start:start + L, :])
        p2 = jnp.concatenate(pieces, axis=-1)                       # (L, 9*CH1)
        acc = jnp.dot(p2, w2_ref[...], preferred_element_type=jnp.float32)
        y = jnp.maximum(acc + b2_ref[...], 0.0).astype(out_ref.dtype)
        out_ref[f * HWp:f * HWp + L, :] = y
        out_ref[f * HWp + L:(f + 1) * HWp, :] = tail


def conv_stack(x, w1, b1, w2, b2):
    """x: (N, 1, H, W) f32 -> conv2 activations (N, Ho2, Wo2, CH2) bf16."""
    N, _, H, W = x.shape
    Ho1, Wo1 = _conv_out(H, K1, STRIDE), _conv_out(W, K1, STRIDE)
    assert Ho1 % 2 == 0 and Wo1 % 2 == 0, "demo requires even conv1 output dims"
    Hh, Wh = Ho1 // 2, Wo1 // 2
    Ho2, Wo2 = _conv_out(Ho1, K2, STRIDE), _conv_out(Wo1, K2, STRIDE)
    P1, KK1 = Hh * Wh, K1 * K1
    HWp = Ho2 * Wh

    # conv1 im2col (pure data movement on the tiny 1-channel input, done by XLA),
    # pre-split by conv1 output-position parity so the stride-2 conv2 inside the
    # kernel only needs contiguous static slices.
    xp = x[:, 0]                                               # (N, H, W)
    taps = []
    for di in range(K1):
        for dj in range(K1):
            taps.append(xp[:, di:di + STRIDE * Ho1:STRIDE,
                           dj:dj + STRIDE * Wo1:STRIDE])       # (N, Ho1, Wo1)
    pat = jnp.stack(taps, axis=-1)                             # (N, Ho1, Wo1, 25)
    pat = pat.reshape(N, Hh, 2, Wh, 2, KK1)
    pat = pat.transpose(0, 2, 4, 1, 3, 5)                      # (N, 2, 2, Hh, Wh, 25)
    pat = pat.reshape(N * 4 * P1, KK1).astype(jnp.bfloat16)

    B = BATCH_TILE
    npad = pl.cdiv(N, B) * B
    if npad != N:
        pat = jnp.pad(pat, ((0, (npad - N) * 4 * P1), (0, 0)))

    kern = functools.partial(_conv_stack_kernel,
                             B=B, P1=P1, Wh=Wh, Ho2=Ho2, Wo2=Wo2)
    out = pl.pallas_call(
        kern,
        out_shape=jax.ShapeDtypeStruct((npad * HWp, CH2), jnp.bfloat16),
        grid=(npad // B,),
        in_specs=[
            pl.BlockSpec((B * 4 * P1, KK1), lambda i: (i, 0)),
            pl.BlockSpec((KK1, CH1), lambda i: (0, 0)),
            pl.BlockSpec((1, CH1), lambda i: (0, 0)),
            pl.BlockSpec((K2 * K2 * CH1, CH2), lambda i: (0, 0)),
            pl.BlockSpec((1, CH2), lambda i: (0, 0)),
        ],
        out_specs=pl.BlockSpec((B * HWp, CH2), lambda i: (i, 0)),
        compiler_params=pltpu.CompilerParams(
            dimension_semantics=("parallel",)),
    )(pat, w1, b1, w2, b2)

    # Drop the full-width padding column / tail rows; keep valid (Ho2, Wo2).
    out = out.reshape(npad, Ho2, Wh, CH2)[:N, :, :Wo2, :]
    return out


# ---------------------------------------------------------------------------
# Kernel B: fc1 -> relu -> fc2 -> relu -> dropout (identity) -> fc3,
#           row-tiled over the batch, weights resident.
# ---------------------------------------------------------------------------
def _head_kernel(x_ref, w1_ref, b1_ref, w2_ref, b2_ref, w3_ref, b3_ref, o_ref):
    h = jnp.dot(x_ref[...], w1_ref[...], preferred_element_type=jnp.float32)
    h = jnp.maximum(h + b1_ref[...], 0.0).astype(jnp.bfloat16)
    h = jnp.dot(h, w2_ref[...], preferred_element_type=jnp.float32)
    h = jnp.maximum(h + b2_ref[...], 0.0).astype(jnp.bfloat16)
    # TODO(synk): training-mode F.dropout (Bernoulli mask) not applied; identity at inference.
    o_ref[...] = (jnp.dot(h, w3_ref[...], preferred_element_type=jnp.float32)
                  + b3_ref[...])


def mlp_head(feats, w1, b1, w2, b2, w3, b3):
    N, F = feats.shape
    D1, D2, DO = w1.shape[1], w2.shape[1], w3.shape[1]
    tm = min(128, pl.cdiv(N, 8) * 8)
    npad = pl.cdiv(N, tm) * tm
    if npad != N:
        feats = jnp.pad(feats, ((0, npad - N), (0, 0)))
    out = pl.pallas_call(
        _head_kernel,
        out_shape=jax.ShapeDtypeStruct((npad, DO), jnp.float32),
        grid=(npad // tm,),
        in_specs=[
            pl.BlockSpec((tm, F), lambda i: (i, 0)),
            pl.BlockSpec((F, D1), lambda i: (0, 0)),
            pl.BlockSpec((1, D1), lambda i: (0, 0)),
            pl.BlockSpec((D1, D2), lambda i: (0, 0)),
            pl.BlockSpec((1, D2), lambda i: (0, 0)),
            pl.BlockSpec((D2, DO), lambda i: (0, 0)),
            pl.BlockSpec((1, DO), lambda i: (0, 0)),
        ],
        out_specs=pl.BlockSpec((tm, DO), lambda i: (i, 0)),
        compiler_params=pltpu.CompilerParams(
            dimension_semantics=("parallel",)),
    )(feats, w1, b1, w2, b2, w3, b3)
    return out[:N]


# ---------------------------------------------------------------------------
# Full forward pass (matches CNN2D.forward, eval mode)
# ---------------------------------------------------------------------------
def cnn2d_forward(x, params):
    """x: (N, 1, H, W) float32 -> (N, NUM_CLASSES) float32."""
    N = x.shape[0]

    # ---- fold eval-mode BatchNorm into the conv weights / biases ----
    s1 = params["bn1_gamma"] * jax.lax.rsqrt(params["bn1_var"] + BN_EPS)
    w1 = (params["conv1_w"].reshape(CH1, K1 * K1).T
          * s1[None, :]).astype(jnp.bfloat16)                          # (25, 32)
    b1 = ((params["conv1_b"] - params["bn1_mean"]) * s1
          + params["bn1_beta"]).reshape(1, CH1).astype(jnp.float32)

    s2 = params["bn2_gamma"] * jax.lax.rsqrt(params["bn2_var"] + BN_EPS)
    w2 = (params["conv2_w"].transpose(2, 3, 1, 0).reshape(K2 * K2 * CH1, CH2)
          * s2[None, :]).astype(jnp.bfloat16)                          # (288, 48)
    b2 = ((params["conv2_b"] - params["bn2_mean"]) * s2
          + params["bn2_beta"]).reshape(1, CH2).astype(jnp.float32)

    # ---- fused conv stack (Pallas kernel A) ----
    conv_feats = conv_stack(x, w1, b1, w2, b2)          # (N, Ho2, Wo2, CH2) bf16
    _, Ho2, Wo2, _ = conv_feats.shape
    S = Ho2 * Wo2
    feats = conv_feats.reshape(N, S * CH2)              # rows ordered (s, c)

    # ---- fc head (Pallas kernel B) ----
    # PyTorch's x.view(N, -1) flattens channel-major (c*S + s); the conv kernel
    # emits (s*CH2 + c), so permute fc1's input rows accordingly (pure constant
    # reshuffle in the wrapper -> identical math).
    w1fc = (params["fc1_w"].reshape(FC_HIDDEN1, CH2, S).transpose(2, 1, 0)
            .reshape(S * CH2, FC_HIDDEN1)).astype(jnp.bfloat16)
    b1fc = params["fc1_b"].reshape(1, FC_HIDDEN1)
    w2fc = params["fc2_w"].T.astype(jnp.bfloat16)
    b2fc = params["fc2_b"].reshape(1, FC_HIDDEN2)
    # fc3 padded to a lane-dense 128-wide output (zero cols, sliced off below).
    w3fc = jnp.zeros((FC_HIDDEN2, HEAD_OUT_PAD), jnp.bfloat16)
    w3fc = w3fc.at[:, :NUM_CLASSES].set(params["fc3_w"].T.astype(jnp.bfloat16))
    b3fc = jnp.zeros((1, HEAD_OUT_PAD), jnp.float32)
    b3fc = b3fc.at[:, :NUM_CLASSES].set(params["fc3_b"].reshape(1, NUM_CLASSES))

    logits = mlp_head(feats, w1fc, b1fc, w2fc, b2fc, w3fc, b3fc)
    return logits[:, :NUM_CLASSES]


def init_params(key, img_x=IMG_X, img_y=IMG_Y):
    Ho1, Wo1 = _conv_out(img_x, K1, STRIDE), _conv_out(img_y, K1, STRIDE)
    Ho2, Wo2 = _conv_out(Ho1, K2, STRIDE), _conv_out(Wo1, K2, STRIDE)
    flat = CH2 * Ho2 * Wo2
    ks = jax.random.split(key, 13)

    def lin(k, shape, fan_in):
        return jax.random.normal(k, shape, jnp.float32) / jnp.sqrt(fan_in)

    def bn(km, kv, dim, prefix):
        return {
            f"{prefix}_gamma": jnp.ones((dim,), jnp.float32),
            f"{prefix}_beta": jnp.zeros((dim,), jnp.float32),
            f"{prefix}_mean": 0.1 * jax.random.normal(km, (dim,), jnp.float32),
            f"{prefix}_var": 1.0 + 0.05 * jax.random.uniform(kv, (dim,), jnp.float32),
        }

    p = {
        "conv1_w": lin(ks[0], (CH1, 1, K1, K1), K1 * K1),
        "conv1_b": 0.01 * jax.random.normal(ks[1], (CH1,), jnp.float32),
        "conv2_w": lin(ks[2], (CH2, CH1, K2, K2), K2 * K2 * CH1),
        "conv2_b": 0.01 * jax.random.normal(ks[3], (CH2,), jnp.float32),
        "fc1_w": lin(ks[4], (FC_HIDDEN1, flat), flat),
        "fc1_b": 0.01 * jax.random.normal(ks[5], (FC_HIDDEN1,), jnp.float32),
        "fc2_w": lin(ks[6], (FC_HIDDEN2, FC_HIDDEN1), FC_HIDDEN1),
        "fc2_b": 0.01 * jax.random.normal(ks[7], (FC_HIDDEN2,), jnp.float32),
        "fc3_w": lin(ks[8], (NUM_CLASSES, FC_HIDDEN2), FC_HIDDEN2),
        "fc3_b": jnp.zeros((NUM_CLASSES,), jnp.float32),
    }
    p.update(bn(ks[9], ks[10], CH1, "bn1"))
    p.update(bn(ks[11], ks[12], CH2, "bn2"))
    return p


if __name__ == "__main__":
    key = jax.random.PRNGKey(0)
    kx, kp = jax.random.split(key)

    N = 16
    x = jax.random.normal(kx, (N, 1, IMG_X, IMG_Y), jnp.float32)
    params = init_params(kp)

    fwd = jax.jit(cnn2d_forward)
    out = fwd(x, params)
    out = jax.block_until_ready(out)

    assert out.shape == (N, NUM_CLASSES), out.shape
    assert out.dtype == jnp.float32
    assert bool(jnp.all(jnp.isfinite(out)))
    print("KERNEL_OK")
</pallas_src>

<mosaic_0001>
module attributes {stable_mosaic.version = 11 : i64} {
  func.func @_conv_stack_kernel(%arg0: i32, %arg1: memref<1568x25xbf16, #tpu.memory_space<vmem>>, %arg2: memref<25x32xbf16, #tpu.memory_space<vmem>>, %arg3: memref<1x32xf32, #tpu.memory_space<vmem>>, %arg4: memref<288x48xbf16, #tpu.memory_space<vmem>>, %arg5: memref<1x48xf32, #tpu.memory_space<vmem>>, %arg6: memref<336x48xbf16, #tpu.memory_space<vmem>>) attributes {dimension_semantics = [#tpu.dimension_semantics<parallel>], iteration_bounds = array<i64: 2>, scalar_prefetch = 0 : i64, scratch_operands = 0 : i64, tpu.core_type = #tpu.core_type<tc>, window_params = [{transform_indices = @transform_0, window_bounds = array<i64: 1568, 25>}, {pipeline_mode = #tpu.pipeline_mode<synchronous>, transform_indices = @transform_1, window_bounds = array<i64: 25, 32>}, {pipeline_mode = #tpu.pipeline_mode<synchronous>, transform_indices = @transform_2, window_bounds = array<i64: 1, 32>}, {pipeline_mode = #tpu.pipeline_mode<synchronous>, transform_indices = @transform_3, window_bounds = array<i64: 288, 48>}, {pipeline_mode = #tpu.pipeline_mode<synchronous>, transform_indices = @transform_4, window_bounds = array<i64: 1, 48>}, {transform_indices = @transform_5, window_bounds = array<i64: 336, 48>}]} {
    %c0 = arith.constant 0 : index
    %c0_0 = arith.constant 0 : index
    %0 = vector.load %arg1[%c0, %c0_0] : memref<1568x25xbf16, #tpu.memory_space<vmem>>, vector<1568x25xbf16>
    %c0_1 = arith.constant 0 : index
    %c0_2 = arith.constant 0 : index
    %1 = vector.load %arg2[%c0_1, %c0_2] : memref<25x32xbf16, #tpu.memory_space<vmem>>, vector<25x32xbf16>
    %cst = arith.constant dense<0.000000e+00> : vector<1568x32xf32>
    %2 = tpu.matmul %0, %1, %cst {dimension_numbers = #tpu.dot_dimension_numbers<[1], [0], [0], [1], [0, 0, 1, 1], [], []>} : vector<1568x25xbf16>, vector<25x32xbf16>, vector<1568x32xf32> -> vector<1568x32xf32>
    %c0_3 = arith.constant 0 : index
    %c0_4 = arith.constant 0 : index
    %3 = vector.load %arg3[%c0_3, %c0_4] : memref<1x32xf32, #tpu.memory_space<vmem>>, vector<1x32xf32>
    %4 = vector.broadcast %3 : vector<1x32xf32> to vector<1568x32xf32>
    %5 = arith.addf %2, %4 : vector<1568x32xf32>
    %cst_5 = arith.constant 0.000000e+00 : f32
    %6 = vector.broadcast %cst_5 : f32 to vector<1568x32xf32>
    %7 = arith.maximumf %5, %6 : vector<1568x32xf32>
    %8 = arith.truncf %7 : vector<1568x32xf32> to vector<1568x32xbf16>
    %cst_6 = arith.constant 0.000000e+00 : bf16
    %9 = vector.broadcast %cst_6 : bf16 to vector<1x48xbf16>
    %10 = vector.extract_strided_slice %8 {offsets = [0, 0], sizes = [41, 32], strides = [1, 1]} : vector<1568x32xbf16> to vector<41x32xbf16>
    %11 = vector.extract_strided_slice %8 {offsets = [49, 0], sizes = [41, 32], strides = [1, 1]} : vector<1568x32xbf16> to vector<41x32xbf16>
    %12 = vector.extract_strided_slice %8 {offsets = [1, 0], sizes = [41, 32], strides = [1, 1]} : vector<1568x32xbf16> to vector<41x32xbf16>
    %13 = vector.extract_strided_slice %8 {offsets = [98, 0], sizes = [41, 32], strides = [1, 1]} : vector<1568x32xbf16> to vector<41x32xbf16>
    %14 = vector.extract_strided_slice %8 {offsets = [147, 0], sizes = [41, 32], strides = [1, 1]} : vector<1568x32xbf16> to vector<41x32xbf16>
    %15 = vector.extract_strided_slice %8 {offsets = [99, 0], sizes = [41, 32], strides = [1, 1]} : vector<1568x32xbf16> to vector<41x32xbf16>
    %16 = vector.extract_strided_slice %8 {offsets = [7, 0], sizes = [41, 32], strides = [1, 1]} : vector<1568x32xbf16> to vector<41x32xbf16>
    %17 = vector.extract_strided_slice %8 {offsets = [56, 0], sizes = [41, 32], strides = [1, 1]} : vector<1568x32xbf16> to vector<41x32xbf16>
    %18 = vector.extract_strided_slice %8 {offsets = [8, 0], sizes = [41, 32], strides = [1, 1]} : vector<1568x32xbf16> to vector<41x32xbf16>
    %19 = tpu.concatenate %10, %11, %12, %13, %14, %15, %16, %17, %18 in 1 : vector<41x32xbf16>, vector<41x32xbf16>, vector<41x32xbf16>, vector<41x32xbf16>, vector<41x32xbf16>, vector<41x32xbf16>, vector<41x32xbf16>, vector<41x32xbf16>, vector<41x32xbf16> -> vector<41x288xbf16>
    %c0_7 = arith.constant 0 : index
    %c0_8 = arith.constant 0 : index
    %20 = vector.load %arg4[%c0_7, %c0_8] : memref<288x48xbf16, #tpu.memory_space<vmem>>, vector<288x48xbf16>
    %cst_9 = arith.constant dense<0.000000e+00> : vector<41x48xf32>
    %21 = tpu.matmul %19, %20, %cst_9 {dimension_numbers = #tpu.dot_dimension_numbers<[1], [0], [0], [1], [0, 0, 1, 1], [], []>} : vector<41x288xbf16>, vector<288x48xbf16>, vector<41x48xf32> -> vector<41x48xf32>
    %c0_10 = arith.constant 0 : index
    %c0_11 = arith.constant 0 : index
    %22 = vector.load %arg5[%c0_10, %c0_11] : memref<1x48xf32, #tpu.memory_space<vmem>>, vector<1x48xf32>
    %23 = vector.broadcast %22 : vector<1x48xf32> to vector<41x48xf32>
    %24 = arith.addf %21, %23 : vector<41x48xf32>
    %cst_12 = arith.constant 0.000000e+00 : f32
    %25 = vector.broadcast %cst_12 : f32 to vector<41x48xf32>
    %26 = arith.maximumf %24, %25 : vector<41x48xf32>
    %27 = arith.truncf %26 : vector<41x48xf32> to vector<41x48xbf16>
    %c0_13 = arith.constant 0 : index
    %c0_14 = arith.constant 0 : index
    %28 = vector.load %arg6[%c0_13, %c0_14] : memref<336x48xbf16, #tpu.memory_space<vmem>>, vector<41x48xbf16>
    tpu.vector_store %arg6[%c0_13, %c0_14], %27 {strides = array<i32>} : memref<336x48xbf16, #tpu.memory_space<vmem>>, vector<41x48xbf16>,
    %c41 = arith.constant 41 : index
    %c0_15 = arith.constant 0 : index
    %29 = vector.load %arg6[%c41, %c0_15] : memref<336x48xbf16, #tpu.memory_space<vmem>>, vector<1x48xbf16>
    tpu.vector_store %arg6[%c41, %c0_15], %9 {strides = array<i32>} : memref<336x48xbf16, #tpu.memory_space<vmem>>, vector<1x48xbf16>,
    %30 = vector.extract_strided_slice %8 {offsets = [196, 0], sizes = [41, 32], strides = [1, 1]} : vector<1568x32xbf16> to vector<41x32xbf16>
    %31 = vector.extract_strided_slice %8 {offsets = [245, 0], sizes = [41, 32], strides = [1, 1]} : vector<1568x32xbf16> to vector<41x32xbf16>
    %32 = vector.extract_strided_slice %8 {offsets = [197, 0], sizes = [41, 32], strides = [1, 1]} : vector<1568x32xbf16> to vector<41x32xbf16>
    %33 = vector.extract_strided_slice %8 {offsets = [294, 0], sizes = [41, 32], strides = [1, 1]} : vector<1568x32xbf16> to vector<41x32xbf16>
    %34 = vector.extract_strided_slice %8 {offsets = [343, 0], sizes = [41, 32], strides = [1, 1]} : vector<1568x32xbf16> to vector<41x32xbf16>
    %35 = vector.extract_strided_slice %8 {offsets = [295, 0], sizes = [41, 32], strides = [1, 1]} : vector<1568x32xbf16> to vector<41x32xbf16>
    %36 = vector.extract_strided_slice %8 {offsets = [203, 0], sizes = [41, 32], strides = [1, 1]} : vector<1568x32xbf16> to vector<41x32xbf16>
    %37 = vector.extract_strided_slice %8 {offsets = [252, 0], sizes = [41, 32], strides = [1, 1]} : vector<1568x32xbf16> to vector<41x32xbf16>
    %38 = vector.extract_strided_slice %8 {offsets = [204, 0], sizes = [41, 32], strides = [1, 1]} : vector<1568x32xbf16> to vector<41x32xbf16>
    %39 = tpu.concatenate %30, %31, %32, %33, %34, %35, %36, %37, %38 in 1 : vector<41x32xbf16>, vector<41x32xbf16>, vector<41x32xbf16>, vector<41x32xbf16>, vector<41x32xbf16>, vector<41x32xbf16>, vector<41x32xbf16>, vector<41x32xbf16>, vector<41x32xbf16> -> vector<41x288xbf16>
    %c0_16 = arith.constant 0 : index
    %c0_17 = arith.constant 0 : index
    %40 = vector.load %arg4[%c0_16, %c0_17] : memref<288x48xbf16, #tpu.memory_space<vmem>>, vector<288x48xbf16>
    %cst_18 = arith.constant dense<0.000000e+00> : vector<41x48xf32>
    %41 = tpu.matmul %39, %40, %cst_18 {dimension_numbers = #tpu.dot_dimension_numbers<[1], [0], [0], [1], [0, 0, 1, 1], [], []>} : vector<41x288xbf16>, vector<288x48xbf16>, vector<41x48xf32> -> vector<41x48xf32>
    %c0_19 = arith.constant 0 : index
    %c0_20 = arith.constant 0 : index
    %42 = vector.load %arg5[%c0_19, %c0_20] : memref<1x48xf32, #tpu.memory_space<vmem>>, vector<1x48xf32>
    %43 = vector.broadcast %42 : vector<1x48xf32> to vector<41x48xf32>
    %44 = arith.addf %41, %43 : vector<41x48xf32>
    %cst_21 = arith.constant 0.000000e+00 : f32
    %45 = vector.broadcast %cst_21 : f32 to vector<41x48xf32>
    %46 = arith.maximumf %44, %45 : vector<41x48xf32>
    %47 = arith.truncf %46 : vector<41x48xf32> to vector<41x48xbf16>
    %c42 = arith.constant 42 : index
    %c0_22 = arith.constant 0 : index
    %48 = vector.load %arg6[%c42, %c0_22] : memref<336x48xbf16, #tpu.memory_space<vmem>>, vector<41x48xbf16>
    tpu.vector_store %arg6[%c42, %c0_22], %47 {strides = array<i32>} : memref<336x48xbf16, #tpu.memory_space<vmem>>, vector<41x48xbf16>,
    %c83 = arith.constant 83 : index
    %c0_23 = arith.constant 0 : index
    %49 = vector.load %arg6[%c83, %c0_23] : memref<336x48xbf16, #tpu.memory_space<vmem>>, vector<1x48xbf16>
    tpu.vector_store %arg6[%c83, %c0_23], %9 {strides = array<i32>} : memref<336x48xbf16, #tpu.memory_space<vmem>>, vector<1x48xbf16>,
    %50 = vector.extract_strided_slice %8 {offsets = [392, 0], sizes = [41, 32], strides = [1, 1]} : vector<1568x32xbf16> to vector<41x32xbf16>
    %51 = vector.extract_strided_slice %8 {offsets = [441, 0], sizes = [41, 32], strides = [1, 1]} : vector<1568x32xbf16> to vector<41x32xbf16>
    %52 = vector.extract_strided_slice %8 {offsets = [393, 0], sizes = [41, 32], strides = [1, 1]} : vector<1568x32xbf16> to vector<41x32xbf16>
    %53 = vector.extract_strided_slice %8 {offsets = [490, 0], sizes = [41, 32], strides = [1, 1]} : vector<1568x32xbf16> to vector<41x32xbf16>
    %54 = vector.extract_strided_slice %8 {offsets = [539, 0], sizes = [41, 32], strides = [1, 1]} : vector<1568x32xbf16> to vector<41x32xbf16>
    %55 = vector.extract_strided_slice %8 {offsets = [491, 0], sizes = [41, 32], strides = [1, 1]} : vector<1568x32xbf16> to vector<41x32xbf16>
    %56 = vector.extract_strided_slice %8 {offsets = [399, 0], sizes = [41, 32], strides = [1, 1]} : vector<1568x32xbf16> to vector<41x32xbf16>
    %57 = vector.extract_strided_slice %8 {offsets = [448, 0], sizes = [41, 32], strides = [1, 1]} : vector<1568x32xbf16> to vector<41x32xbf16>
    %58 = vector.extract_strided_slice %8 {offsets = [400, 0], sizes = [41, 32], strides = [1, 1]} : vector<1568x32xbf16> to vector<41x32xbf16>
    %59 = tpu.concatenate %50, %51, %52, %53, %54, %55, %56, %57, %58 in 1 : vector<41x32xbf16>, vector<41x32xbf16>, vector<41x32xbf16>, vector<41x32xbf16>, vector<41x32xbf16>, vector<41x32xbf16>, vector<41x32xbf16>, vector<41x32xbf16>, vector<41x32xbf16> -> vector<41x288xbf16>
    %c0_24 = arith.constant 0 : index
    %c0_25 = arith.constant 0 : index
    %60 = vector.load %arg4[%c0_24, %c0_25] : memref<288x48xbf16, #tpu.memory_space<vmem>>, vector<288x48xbf16>
    %cst_26 = arith.constant dense<0.000000e+00> : vector<41x48xf32>
    %61 = tpu.matmul %59, %60, %cst_26 {dimension_numbers = #tpu.dot_dimension_numbers<[1], [0], [0], [1], [0, 0, 1, 1], [], []>} : vector<41x288xbf16>, vector<288x48xbf16>, vector<41x48xf32> -> vector<41x48xf32>
    %c0_27 = arith.constant 0 : index
    %c0_28 = arith.constant 0 : index
    %62 = vector.load %arg5[%c0_27, %c0_28] : memref<1x48xf32, #tpu.memory_space<vmem>>, vector<1x48xf32>
    %63 = vector.broadcast %62 : vector<1x48xf32> to vector<41x48xf32>
    %64 = arith.addf %61, %63 : vector<41x48xf32>
    %cst_29 = arith.constant 0.000000e+00 : f32
    %65 = vector.broadcast %cst_29 : f32 to vector<41x48xf32>
    %66 = arith.maximumf %64, %65 : vector<41x48xf32>
    %67 = arith.truncf %66 : vector<41x48xf32> to vector<41x48xbf16>
    %c84 = arith.constant 84 : index
    %c0_30 = arith.constant 0 : index
    %68 = vector.load %arg6[%c84, %c0_30] : memref<336x48xbf16, #tpu.memory_space<vmem>>, vector<41x48xbf16>
    tpu.vector_store %arg6[%c84, %c0_30], %67 {strides = array<i32>} : memref<336x48xbf16, #tpu.memory_space<vmem>>, vector<41x48xbf16>,
    %c125 = arith.constant 125 : index
    %c0_31 = arith.constant 0 : index
    %69 = vector.load %arg6[%c125, %c0_31] : memref<336x48xbf16, #tpu.memory_space<vmem>>, vector<1x48xbf16>
    tpu.vector_store %arg6[%c125, %c0_31], %9 {strides = array<i32>} : memref<336x48xbf16, #tpu.memory_space<vmem>>, vector<1x48xbf16>,
    %70 = vector.extract_strided_slice %8 {offsets = [588, 0], sizes = [41, 32], strides = [1, 1]} : vector<1568x32xbf16> to vector<41x32xbf16>
    %71 = vector.extract_strided_slice %8 {offsets = [637, 0], sizes = [41, 32], strides = [1, 1]} : vector<1568x32xbf16> to vector<41x32xbf16>
    %72 = vector.extract_strided_slice %8 {offsets = [589, 0], sizes = [41, 32], strides = [1, 1]} : vector<1568x32xbf16> to vector<41x32xbf16>
    %73 = vector.extract_strided_slice %8 {offsets = [686, 0], sizes = [41, 32], strides = [1, 1]} : vector<1568x32xbf16> to vector<41x32xbf16>
    %74 = vector.extract_strided_slice %8 {offsets = [735, 0], sizes = [41, 32], strides = [1, 1]} : vector<1568x32xbf16> to vector<41x32xbf16>
    %75 = vector.extract_strided_slice %8 {offsets = [687, 0], sizes = [41, 32], strides = [1, 1]} : vector<1568x32xbf16> to vector<41x32xbf16>
    %76 = vector.extract_strided_slice %8 {offsets = [595, 0], sizes = [41, 32], strides = [1, 1]} : vector<1568x32xbf16> to vector<41x32xbf16>
    %77 = vector.extract_strided_slice %8 {offsets = [644, 0], sizes = [41, 32], strides = [1, 1]} : vector<1568x32xbf16> to vector<41x32xbf16>
    %78 = vector.extract_strided_slice %8 {offsets = [596, 0], sizes = [41, 32], strides = [1, 1]} : vector<1568x32xbf16> to vector<41x32xbf16>
    %79 = tpu.concatenate %70, %71, %72, %73, %74, %75, %76, %77, %78 in 1 : vector<41x32xbf16>, vector<41x32xbf16>, vector<41x32xbf16>, vector<41x32xbf16>, vector<41x32xbf16>, vector<41x32xbf16>, vector<41x32xbf16>, vector<41x32xbf16>, vector<41x32xbf16> -> vector<41x288xbf16>
    %c0_32 = arith.constant 0 : index
    %c0_33 = arith.constant 0 : index
    %80 = vector.load %arg4[%c0_32, %c0_33] : memref<288x48xbf16, #tpu.memory_space<vmem>>, vector<288x48xbf16>
    %cst_34 = arith.constant dense<0.000000e+00> : vector<41x48xf32>
    %81 = tpu.matmul %79, %80, %cst_34 {dimension_numbers = #tpu.dot_dimension_numbers<[1], [0], [0], [1], [0, 0, 1, 1], [], []>} : vector<41x288xbf16>, vector<288x48xbf16>, vector<41x48xf32> -> vector<41x48xf32>
    %c0_35 = arith.constant 0 : index
    %c0_36 = arith.constant 0 : index
    %82 = vector.load %arg5[%c0_35, %c0_36] : memref<1x48xf32, #tpu.memory_space<vmem>>, vector<1x48xf32>
    %83 = vector.broadcast %82 : vector<1x48xf32> to vector<41x48xf32>
    %84 = arith.addf %81, %83 : vector<41x48xf32>
    %cst_37 = arith.constant 0.000000e+00 : f32
    %85 = vector.broadcast %cst_37 : f32 to vector<41x48xf32>
    %86 = arith.maximumf %84, %85 : vector<41x48xf32>
    %87 = arith.truncf %86 : vector<41x48xf32> to vector<41x48xbf16>
    %c126 = arith.constant 126 : index
    %c0_38 = arith.constant 0 : index
    %88 = vector.load %arg6[%c126, %c0_38] : memref<336x48xbf16, #tpu.memory_space<vmem>>, vector<41x48xbf16>
    tpu.vector_store %arg6[%c126, %c0_38], %87 {strides = array<i32>} : memref<336x48xbf16, #tpu.memory_space<vmem>>, vector<41x48xbf16>,
    %c167 = arith.constant 167 : index
    %c0_39 = arith.constant 0 : index
    %89 = vector.load %arg6[%c167, %c0_39] : memref<336x48xbf16, #tpu.memory_space<vmem>>, vector<1x48xbf16>
    tpu.vector_store %arg6[%c167, %c0_39], %9 {strides = array<i32>} : memref<336x48xbf16, #tpu.memory_space<vmem>>, vector<1x48xbf16>,
    %90 = vector.extract_strided_slice %8 {offsets = [784, 0], sizes = [41, 32], strides = [1, 1]} : vector<1568x32xbf16> to vector<41x32xbf16>
    %91 = vector.extract_strided_slice %8 {offsets = [833, 0], sizes = [41, 32], strides = [1, 1]} : vector<1568x32xbf16> to vector<41x32xbf16>
    %92 = vector.extract_strided_slice %8 {offsets = [785, 0], sizes = [41, 32], strides = [1, 1]} : vector<1568x32xbf16> to vector<41x32xbf16>
    %93 = vector.extract_strided_slice %8 {offsets = [882, 0], sizes = [41, 32], strides = [1, 1]} : vector<1568x32xbf16> to vector<41x32xbf16>
    %94 = vector.extract_strided_slice %8 {offsets = [931, 0], sizes = [41, 32], strides = [1, 1]} : vector<1568x32xbf16> to vector<41x32xbf16>
    %95 = vector.extract_strided_slice %8 {offsets = [883, 0], sizes = [41, 32], strides = [1, 1]} : vector<1568x32xbf16> to vector<41x32xbf16>
    %96 = vector.extract_strided_slice %8 {offsets = [791, 0], sizes = [41, 32], strides = [1, 1]} : vector<1568x32xbf16> to vector<41x32xbf16>
    %97 = vector.extract_strided_slice %8 {offsets = [840, 0], sizes = [41, 32], strides = [1, 1]} : vector<1568x32xbf16> to vector<41x32xbf16>
    %98 = vector.extract_strided_slice %8 {offsets = [792, 0], sizes = [41, 32], strides = [1, 1]} : vector<1568x32xbf16> to vector<41x32xbf16>
    %99 = tpu.concatenate %90, %91, %92, %93, %94, %95, %96, %97, %98 in 1 : vector<41x32xbf16>, vector<41x32xbf16>, vector<41x32xbf16>, vector<41x32xbf16>, vector<41x32xbf16>, vector<41x32xbf16>, vector<41x32xbf16>, vector<41x32xbf16>, vector<41x32xbf16> -> vector<41x288xbf16>
    %c0_40 = arith.constant 0 : index
    %c0_41 = arith.constant 0 : index
    %100 = vector.load %arg4[%c0_40, %c0_41] : memref<288x48xbf16, #tpu.memory_space<vmem>>, vector<288x48xbf16>
    %cst_42 = arith.constant dense<0.000000e+00> : vector<41x48xf32>
    %101 = tpu.matmul %99, %100, %cst_42 {dimension_numbers = #tpu.dot_dimension_numbers<[1], [0], [0], [1], [0, 0, 1, 1], [], []>} : vector<41x288xbf16>, vector<288x48xbf16>, vector<41x48xf32> -> vector<41x48xf32>
    %c0_43 = arith.constant 0 : index
    %c0_44 = arith.constant 0 : index
    %102 = vector.load %arg5[%c0_43, %c0_44] : memref<1x48xf32, #tpu.memory_space<vmem>>, vector<1x48xf32>
    %103 = vector.broadcast %102 : vector<1x48xf32> to vector<41x48xf32>
    %104 = arith.addf %101, %103 : vector<41x48xf32>
    %cst_45 = arith.constant 0.000000e+00 : f32
    %105 = vector.broadcast %cst_45 : f32 to vector<41x48xf32>
    %106 = arith.maximumf %104, %105 : vector<41x48xf32>
    %107 = arith.truncf %106 : vector<41x48xf32> to vector<41x48xbf16>
    %c168 = arith.constant 168 : index
    %c0_46 = arith.constant 0 : index
    %108 = vector.load %arg6[%c168, %c0_46] : memref<336x48xbf16, #tpu.memory_space<vmem>>, vector<41x48xbf16>
    tpu.vector_store %arg6[%c168, %c0_46], %107 {strides = array<i32>} : memref<336x48xbf16, #tpu.memory_space<vmem>>, vector<41x48xbf16>,
    %c209 = arith.constant 209 : index
    %c0_47 = arith.constant 0 : index
    %109 = vector.load %arg6[%c209, %c0_47] : memref<336x48xbf16, #tpu.memory_space<vmem>>, vector<1x48xbf16>
    tpu.vector_store %arg6[%c209, %c0_47], %9 {strides = array<i32>} : memref<336x48xbf16, #tpu.memory_space<vmem>>, vector<1x48xbf16>,
    %110 = vector.extract_strided_slice %8 {offsets = [980, 0], sizes = [41, 32], strides = [1, 1]} : vector<1568x32xbf16> to vector<41x32xbf16>
    %111 = vector.extract_strided_slice %8 {offsets = [1029, 0], sizes = [41, 32], strides = [1, 1]} : vector<1568x32xbf16> to vector<41x32xbf16>
    %112 = vector.extract_strided_slice %8 {offsets = [981, 0], sizes = [41, 32], strides = [1, 1]} : vector<1568x32xbf16> to vector<41x32xbf16>
    %113 = vector.extract_strided_slice %8 {offsets = [1078, 0], sizes = [41, 32], strides = [1, 1]} : vector<1568x32xbf16> to vector<41x32xbf16>
    %114 = vector.extract_strided_slice %8 {offsets = [1127, 0], sizes = [41, 32], strides = [1, 1]} : vector<1568x32xbf16> to vector<41x32xbf16>
    %115 = vector.extract_strided_slice %8 {offsets = [1079, 0], sizes = [41, 32], strides = [1, 1]} : vector<1568x32xbf16> to vector<41x32xbf16>
    %116 = vector.extract_strided_slice %8 {offsets = [987, 0], sizes = [41, 32], strides = [1, 1]} : vector<1568x32xbf16> to vector<41x32xbf16>
    %117 = vector.extract_strided_slice %8 {offsets = [1036, 0], sizes = [41, 32], strides = [1, 1]} : vector<1568x32xbf16> to vector<41x32xbf16>
    %118 = vector.extract_strided_slice %8 {offsets = [988, 0], sizes = [41, 32], strides = [1, 1]} : vector<1568x32xbf16> to vector<41x32xbf16>
    %119 = tpu.concatenate %110, %111, %112, %113, %114, %115, %116, %117, %118 in 1 : vector<41x32xbf16>, vector<41x32xbf16>, vector<41x32xbf16>, vector<41x32xbf16>, vector<41x32xbf16>, vector<41x32xbf16>, vector<41x32xbf16>, vector<41x32xbf16>, vector<41x32xbf16> -> vector<41x288xbf16>
    %c0_48 = arith.constant 0 : index
    %c0_49 = arith.constant 0 : index
    %120 = vector.load %arg4[%c0_48, %c0_49] : memref<288x48xbf16, #tpu.memory_space<vmem>>, vector<288x48xbf16>
    %cst_50 = arith.constant dense<0.000000e+00> : vector<41x48xf32>
    %121 = tpu.matmul %119, %120, %cst_50 {dimension_numbers = #tpu.dot_dimension_numbers<[1], [0], [0], [1], [0, 0, 1, 1], [], []>} : vector<41x288xbf16>, vector<288x48xbf16>, vector<41x48xf32> -> vector<41x48xf32>
    %c0_51 = arith.constant 0 : index
    %c0_52 = arith.constant 0 : index
    %122 = vector.load %arg5[%c0_51, %c0_52] : memref<1x48xf32, #tpu.memory_space<vmem>>, vector<1x48xf32>
    %123 = vector.broadcast %122 : vector<1x48xf32> to vector<41x48xf32>
    %124 = arith.addf %121, %123 : vector<41x48xf32>
    %cst_53 = arith.constant 0.000000e+00 : f32
    %125 = vector.broadcast %cst_53 : f32 to vector<41x48xf32>
    %126 = arith.maximumf %124, %125 : vector<41x48xf32>
    %127 = arith.truncf %126 : vector<41x48xf32> to vector<41x48xbf16>
    %c210 = arith.constant 210 : index
    %c0_54 = arith.constant 0 : index
    %128 = vector.load %arg6[%c210, %c0_54] : memref<336x48xbf16, #tpu.memory_space<vmem>>, vector<41x48xbf16>
    tpu.vector_store %arg6[%c210, %c0_54], %127 {strides = array<i32>} : memref<336x48xbf16, #tpu.memory_space<vmem>>, vector<41x48xbf16>,
    %c251 = arith.constant 251 : index
    %c0_55 = arith.constant 0 : index
    %129 = vector.load %arg6[%c251, %c0_55] : memref<336x48xbf16, #tpu.memory_space<vmem>>, vector<1x48xbf16>
    tpu.vector_store %arg6[%c251, %c0_55], %9 {strides = array<i32>} : memref<336x48xbf16, #tpu.memory_space<vmem>>, vector<1x48xbf16>,
    %130 = vector.extract_strided_slice %8 {offsets = [1176, 0], sizes = [41, 32], strides = [1, 1]} : vector<1568x32xbf16> to vector<41x32xbf16>
    %131 = vector.extract_strided_slice %8 {offsets = [1225, 0], sizes = [41, 32], strides = [1, 1]} : vector<1568x32xbf16> to vector<41x32xbf16>
    %132 = vector.extract_strided_slice %8 {offsets = [1177, 0], sizes = [41, 32], strides = [1, 1]} : vector<1568x32xbf16> to vector<41x32xbf16>
    %133 = vector.extract_strided_slice %8 {offsets = [1274, 0], sizes = [41, 32], strides = [1, 1]} : vector<1568x32xbf16> to vector<41x32xbf16>
    %134 = vector.extract_strided_slice %8 {offsets = [1323, 0], sizes = [41, 32], strides = [1, 1]} : vector<1568x32xbf16> to vector<41x32xbf16>
    %135 = vector.extract_strided_slice %8 {offsets = [1275, 0], sizes = [41, 32], strides = [1, 1]} : vector<1568x32xbf16> to vector<41x32xbf16>
    %136 = vector.extract_strided_slice %8 {offsets = [1183, 0], sizes = [41, 32], strides = [1, 1]} : vector<1568x32xbf16> to vector<41x32xbf16>
    %137 = vector.extract_strided_slice %8 {offsets = [1232, 0], sizes = [41, 32], strides = [1, 1]} : vector<1568x32xbf16> to vector<41x32xbf16>
    %138 = vector.extract_strided_slice %8 {offsets = [1184, 0], sizes = [41, 32], strides = [1, 1]} : vector<1568x32xbf16> to vector<41x32xbf16>
    %139 = tpu.concatenate %130, %131, %132, %133, %134, %135, %136, %137, %138 in 1 : vector<41x32xbf16>, vector<41x32xbf16>, vector<41x32xbf16>, vector<41x32xbf16>, vector<41x32xbf16>, vector<41x32xbf16>, vector<41x32xbf16>, vector<41x32xbf16>, vector<41x32xbf16> -> vector<41x288xbf16>
    %c0_56 = arith.constant 0 : index
    %c0_57 = arith.constant 0 : index
    %140 = vector.load %arg4[%c0_56, %c0_57] : memref<288x48xbf16, #tpu.memory_space<vmem>>, vector<288x48xbf16>
    %cst_58 = arith.constant dense<0.000000e+00> : vector<41x48xf32>
    %141 = tpu.matmul %139, %140, %cst_58 {dimension_numbers = #tpu.dot_dimension_numbers<[1], [0], [0], [1], [0, 0, 1, 1], [], []>} : vector<41x288xbf16>, vector<288x48xbf16>, vector<41x48xf32> -> vector<41x48xf32>
    %c0_59 = arith.constant 0 : index
    %c0_60 = arith.constant 0 : index
    %142 = vector.load %arg5[%c0_59, %c0_60] : memref<1x48xf32, #tpu.memory_space<vmem>>, vector<1x48xf32>
    %143 = vector.broadcast %142 : vector<1x48xf32> to vector<41x48xf32>
    %144 = arith.addf %141, %143 : vector<41x48xf32>
    %cst_61 = arith.constant 0.000000e+00 : f32
    %145 = vector.broadcast %cst_61 : f32 to vector<41x48xf32>
    %146 = arith.maximumf %144, %145 : vector<41x48xf32>
    %147 = arith.truncf %146 : vector<41x48xf32> to vector<41x48xbf16>
    %c252 = arith.constant 252 : index
    %c0_62 = arith.constant 0 : index
    %148 = vector.load %arg6[%c252, %c0_62] : memref<336x48xbf16, #tpu.memory_space<vmem>>, vector<41x48xbf16>
    tpu.vector_store %arg6[%c252, %c0_62], %147 {strides = array<i32>} : memref<336x48xbf16, #tpu.memory_space<vmem>>, vector<41x48xbf16>,
    %c293 = arith.constant 293 : index
    %c0_63 = arith.constant 0 : index
    %149 = vector.load %arg6[%c293, %c0_63] : memref<336x48xbf16, #tpu.memory_space<vmem>>, vector<1x48xbf16>
    tpu.vector_store %arg6[%c293, %c0_63], %9 {strides = array<i32>} : memref<336x48xbf16, #tpu.memory_space<vmem>>, vector<1x48xbf16>,
    %150 = vector.extract_strided_slice %8 {offsets = [1372, 0], sizes = [41, 32], strides = [1, 1]} : vector<1568x32xbf16> to vector<41x32xbf16>
    %151 = vector.extract_strided_slice %8 {offsets = [1421, 0], sizes = [41, 32], strides = [1, 1]} : vector<1568x32xbf16> to vector<41x32xbf16>
    %152 = vector.extract_strided_slice %8 {offsets = [1373, 0], sizes = [41, 32], strides = [1, 1]} : vector<1568x32xbf16> to vector<41x32xbf16>
    %153 = vector.extract_strided_slice %8 {offsets = [1470, 0], sizes = [41, 32], strides = [1, 1]} : vector<1568x32xbf16> to vector<41x32xbf16>
    %154 = vector.extract_strided_slice %8 {offsets = [1519, 0], sizes = [41, 32], strides = [1, 1]} : vector<1568x32xbf16> to vector<41x32xbf16>
    %155 = vector.extract_strided_slice %8 {offsets = [1471, 0], sizes = [41, 32], strides = [1, 1]} : vector<1568x32xbf16> to vector<41x32xbf16>
    %156 = vector.extract_strided_slice %8 {offsets = [1379, 0], sizes = [41, 32], strides = [1, 1]} : vector<1568x32xbf16> to vector<41x32xbf16>
    %157 = vector.extract_strided_slice %8 {offsets = [1428, 0], sizes = [41, 32], strides = [1, 1]} : vector<1568x32xbf16> to vector<41x32xbf16>
    %158 = vector.extract_strided_slice %8 {offsets = [1380, 0], sizes = [41, 32], strides = [1, 1]} : vector<1568x32xbf16> to vector<41x32xbf16>
    %159 = tpu.concatenate %150, %151, %152, %153, %154, %155, %156, %157, %158 in 1 : vector<41x32xbf16>, vector<41x32xbf16>, vector<41x32xbf16>, vector<41x32xbf16>, vector<41x32xbf16>, vector<41x32xbf16>, vector<41x32xbf16>, vector<41x32xbf16>, vector<41x32xbf16> -> vector<41x288xbf16>
    %c0_64 = arith.constant 0 : index
    %c0_65 = arith.constant 0 : index
    %160 = vector.load %arg4[%c0_64, %c0_65] : memref<288x48xbf16, #tpu.memory_space<vmem>>, vector<288x48xbf16>
    %cst_66 = arith.constant dense<0.000000e+00> : vector<41x48xf32>
    %161 = tpu.matmul %159, %160, %cst_66 {dimension_numbers = #tpu.dot_dimension_numbers<[1], [0], [0], [1], [0, 0, 1, 1], [], []>} : vector<41x288xbf16>, vector<288x48xbf16>, vector<41x48xf32> -> vector<41x48xf32>
    %c0_67 = arith.constant 0 : index
    %c0_68 = arith.constant 0 : index
    %162 = vector.load %arg5[%c0_67, %c0_68] : memref<1x48xf32, #tpu.memory_space<vmem>>, vector<1x48xf32>
    %163 = vector.broadcast %162 : vector<1x48xf32> to vector<41x48xf32>
    %164 = arith.addf %161, %163 : vector<41x48xf32>
    %cst_69 = arith.constant 0.000000e+00 : f32
    %165 = vector.broadcast %cst_69 : f32 to vector<41x48xf32>
    %166 = arith.maximumf %164, %165 : vector<41x48xf32>
    %167 = arith.truncf %166 : vector<41x48xf32> to vector<41x48xbf16>
    %c294 = arith.constant 294 : index
    %c0_70 = arith.constant 0 : index
    %168 = vector.load %arg6[%c294, %c0_70] : memref<336x48xbf16, #tpu.memory_space<vmem>>, vector<41x48xbf16>
    tpu.vector_store %arg6[%c294, %c0_70], %167 {strides = array<i32>} : memref<336x48xbf16, #tpu.memory_space<vmem>>, vector<41x48xbf16>,
    %c335 = arith.constant 335 : index
    %c0_71 = arith.constant 0 : index
    %169 = vector.load %arg6[%c335, %c0_71] : memref<336x48xbf16, #tpu.memory_space<vmem>>, vector<1x48xbf16>
    tpu.vector_store %arg6[%c335, %c0_71], %9 {strides = array<i32>} : memref<336x48xbf16, #tpu.memory_space<vmem>>, vector<1x48xbf16>,
    return
  }
  func.func @transform_0(%arg0: i32) -> (i32, i32) {
    %c0_i32 = arith.constant 0 : i32
    %c0_i32_0 = arith.constant 0 : i32
    return %arg0, %c0_i32 : i32, i32
  }
  func.func @transform_1(%arg0: i32) -> (i32, i32) {
    %c0_i32 = arith.constant 0 : i32
    %c0_i32_0 = arith.constant 0 : i32
    %c0_i32_1 = arith.constant 0 : i32
    return %c0_i32, %c0_i32_0 : i32, i32
  }
  func.func @transform_2(%arg0: i32) -> (i32, i32) {
    %c0_i32 = arith.constant 0 : i32
    %c0_i32_0 = arith.constant 0 : i32
    %c0_i32_1 = arith.constant 0 : i32
    return %c0_i32, %c0_i32_0 : i32, i32
  }
  func.func @transform_3(%arg0: i32) -> (i32, i32) {
    %c0_i32 = arith.constant 0 : i32
    %c0_i32_0 = arith.constant 0 : i32
    %c0_i32_1 = arith.constant 0 : i32
    return %c0_i32, %c0_i32_0 : i32, i32
  }
  func.func @transform_4(%arg0: i32) -> (i32, i32) {
    %c0_i32 = arith.constant 0 : i32
    %c0_i32_0 = arith.constant 0 : i32
    %c0_i32_1 = arith.constant 0 : i32
    return %c0_i32, %c0_i32_0 : i32, i32
  }
  func.func @transform_5(%arg0: i32) -> (i32, i32) {
    %c0_i32 = arith.constant 0 : i32
    %c0_i32_0 = arith.constant 0 : i32
    return %arg0, %c0_i32 : i32, i32
  }
}

module attributes {stable_mosaic.version = 11 : i64} {
  func.func @_head_kernel(%arg0: i32, %arg1: memref<16x1728xbf16, #tpu.memory_space<vmem>>, %arg2: memref<1728x256xbf16, #tpu.memory_space<vmem>>, %arg3: memref<1x256xf32, #tpu.memory_space<vmem>>, %arg4: memref<256x128xbf16, #tpu.memory_space<vmem>>, %arg5: memref<1x128xf32, #tpu.memory_space<vmem>>, %arg6: memref<128x128xbf16, #tpu.memory_space<vmem>>, %arg7: memref<1x128xf32, #tpu.memory_space<vmem>>, %arg8: memref<16x128xf32, #tpu.memory_space<vmem>>) attributes {dimension_semantics = [#tpu.dimension_semantics<parallel>], iteration_bounds = array<i64: 1>, scalar_prefetch = 0 : i64, scratch_operands = 0 : i64, tpu.core_type = #tpu.core_type<tc>, window_params = [{transform_indices = @transform_0, window_bounds = array<i64: 16, 1728>}, {pipeline_mode = #tpu.pipeline_mode<synchronous>, transform_indices = @transform_1, window_bounds = array<i64: 1728, 256>}, {pipeline_mode = #tpu.pipeline_mode<synchronous>, transform_indices = @transform_2, window_bounds = array<i64: 1, 256>}, {pipeline_mode = #tpu.pipeline_mode<synchronous>, transform_indices = @transform_3, window_bounds = array<i64: 256, 128>}, {pipeline_mode = #tpu.pipeline_mode<synchronous>, transform_indices = @transform_4, window_bounds = array<i64: 1, 128>}, {pipeline_mode = #tpu.pipeline_mode<synchronous>, transform_indices = @transform_5, window_bounds = array<i64: 128, 128>}, {pipeline_mode = #tpu.pipeline_mode<synchronous>, transform_indices = @transform_6, window_bounds = array<i64: 1, 128>}, {transform_indices = @transform_7, window_bounds = array<i64: 16, 128>}]} {
    %c0 = arith.constant 0 : index
    %c0_0 = arith.constant 0 : index
    %0 = vector.load %arg1[%c0, %c0_0] : memref<16x1728xbf16, #tpu.memory_space<vmem>>, vector<16x1728xbf16>
    %c0_1 = arith.constant 0 : index
    %c0_2 = arith.constant 0 : index
    %1 = vector.load %arg2[%c0_1, %c0_2] : memref<1728x256xbf16, #tpu.memory_space<vmem>>, vector<1728x256xbf16>
    %cst = arith.constant dense<0.000000e+00> : vector<16x256xf32>
    %2 = tpu.matmul %0, %1, %cst {dimension_numbers = #tpu.dot_dimension_numbers<[1], [0], [0], [1], [0, 0, 1, 1], [], []>} : vector<16x1728xbf16>, vector<1728x256xbf16>, vector<16x256xf32> -> vector<16x256xf32>
    %c0_3 = arith.constant 0 : index
    %c0_4 = arith.constant 0 : index
    %3 = vector.load %arg3[%c0_3, %c0_4] : memref<1x256xf32, #tpu.memory_space<vmem>>, vector<1x256xf32>
    %4 = vector.broadcast %3 : vector<1x256xf32> to vector<16x256xf32>
    %5 = arith.addf %2, %4 : vector<16x256xf32>
    %cst_5 = arith.constant 0.000000e+00 : f32
    %6 = vector.broadcast %cst_5 : f32 to vector<16x256xf32>
    %7 = arith.maximumf %5, %6 : vector<16x256xf32>
    %8 = arith.truncf %7 : vector<16x256xf32> to vector<16x256xbf16>
    %c0_6 = arith.constant 0 : index
    %c0_7 = arith.constant 0 : index
    %9 = vector.load %arg4[%c0_6, %c0_7] : memref<256x128xbf16, #tpu.memory_space<vmem>>, vector<256x128xbf16>
    %cst_8 = arith.constant dense<0.000000e+00> : vector<16x128xf32>
    %10 = tpu.matmul %8, %9, %cst_8 {dimension_numbers = #tpu.dot_dimension_numbers<[1], [0], [0], [1], [0, 0, 1, 1], [], []>} : vector<16x256xbf16>, vector<256x128xbf16>, vector<16x128xf32> -> vector<16x128xf32>
    %c0_9 = arith.constant 0 : index
    %c0_10 = arith.constant 0 : index
    %11 = vector.load %arg5[%c0_9, %c0_10] : memref<1x128xf32, #tpu.memory_space<vmem>>, vector<1x128xf32>
    %12 = vector.broadcast %11 : vector<1x128xf32> to vector<16x128xf32>
    %13 = arith.addf %10, %12 : vector<16x128xf32>
    %cst_11 = arith.constant 0.000000e+00 : f32
    %14 = vector.broadcast %cst_11 : f32 to vector<16x128xf32>
    %15 = arith.maximumf %13, %14 : vector<16x128xf32>
    %16 = arith.truncf %15 : vector<16x128xf32> to vector<16x128xbf16>
    %c0_12 = arith.constant 0 : index
    %c0_13 = arith.constant 0 : index
    %17 = vector.load %arg6[%c0_12, %c0_13] : memref<128x128xbf16, #tpu.memory_space<vmem>>, vector<128x128xbf16>
    %cst_14 = arith.constant dense<0.000000e+00> : vector<16x128xf32>
    %18 = tpu.matmul %16, %17, %cst_14 {dimension_numbers = #tpu.dot_dimension_numbers<[1], [0], [0], [1], [0, 0, 1, 1], [], []>} : vector<16x128xbf16>, vector<128x128xbf16>, vector<16x128xf32> -> vector<16x128xf32>
    %c0_15 = arith.constant 0 : index
    %c0_16 = arith.constant 0 : index
    %19 = vector.load %arg7[%c0_15, %c0_16] : memref<1x128xf32, #tpu.memory_space<vmem>>, vector<1x128xf32>
    %20 = vector.broadcast %19 : vector<1x128xf32> to vector<16x128xf32>
    %21 = arith.addf %18, %20 : vector<16x128xf32>
    %c0_17 = arith.constant 0 : index
    %c0_18 = arith.constant 0 : index
    %22 = vector.load %arg8[%c0_17, %c0_18] : memref<16x128xf32, #tpu.memory_space<vmem>>, vector<16x128xf32>
    tpu.vector_store %arg8[%c0_17, %c0_18], %21 {strides = array<i32>} : memref<16x128xf32, #tpu.memory_space<vmem>>, vector<16x128xf32>,
    return
  }
  func.func @transform_0(%arg0: i32) -> (i32, i32) {
    %c0_i32 = arith.constant 0 : i32
    %c0_i32_0 = arith.constant 0 : i32
    return %arg0, %c0_i32 : i32, i32
  }
  func.func @transform_1(%arg0: i32) -> (i32, i32) {
    %c0_i32 = arith.constant 0 : i32
    %c0_i32_0 = arith.constant 0 : i32
    %c0_i32_1 = arith.constant 0 : i32
    return %c0_i32, %c0_i32_0 : i32, i32
  }
  func.func @transform_2(%arg0: i32) -> (i32, i32) {
    %c0_i32 = arith.constant 0 : i32
    %c0_i32_0 = arith.constant 0 : i32
    %c0_i32_1 = arith.constant 0 : i32
    return %c0_i32, %c0_i32_0 : i32, i32
  }
  func.func @transform_3(%arg0: i32) -> (i32, i32) {
    %c0_i32 = arith.constant 0 : i32
    %c0_i32_0 = arith.constant 0 : i32
    %c0_i32_1 = arith.constant 0 : i32
    return %c0_i32, %c0_i32_0 : i32, i32
  }
  func.func @transform_4(%arg0: i32) -> (i32, i32) {
    %c0_i32 = arith.constant 0 : i32
    %c0_i32_0 = arith.constant 0 : i32
    %c0_i32_1 = arith.constant 0 : i32
    return %c0_i32, %c0_i32_0 : i32, i32
  }
  func.func @transform_5(%arg0: i32) -> (i32, i32) {
    %c0_i32 = arith.constant 0 : i32
    %c0_i32_0 = arith.constant 0 : i32
    %c0_i32_1 = arith.constant 0 : i32
    return %c0_i32, %c0_i32_0 : i32, i32
  }
  func.func @transform_6(%arg0: i32) -> (i32, i32) {
    %c0_i32 = arith.constant 0 : i32
    %c0_i32_0 = arith.constant 0 : i32
    %c0_i32_1 = arith.constant 0 : i32
    return %c0_i32, %c0_i32_0 : i32, i32
  }
  func.func @transform_7(%arg0: i32) -> (i32, i32) {
    %c0_i32 = arith.constant 0 : i32
    %c0_i32_0 = arith.constant 0 : i32
    return %arg0, %c0_i32 : i32, i32
  }
}

</mosaic_0001>

<bundles_post_ra>
// kernel: cnn2d_forward.3
= control target key start
LH: loop header
LB: loop body
LE: loop exit
PB: predicated region body
PF: predicated region fallthrough
CT: control target
= control target key end

     0   :  { %vm1418_vm0 = vcmask 523264   ;;  %vm2734_vm1 = vmmov 0   ;;  %s3552_s1 = inlined_call_operand.vmem [shape: bf16[1728,256], index: 1, kind: input, shape index: {}]   ;;  %s3553_s0 = inlined_call_operand.vmem [shape: bf16[16,1728], index: 0, kind: input, shape index: {}]   ;;  %s3554_s3 = inlined_call_operand.vmem [shape: bf16[256,128], index: 3, kind: input, shape index: {}]   ;;  %s3555_s5 = inlined_call_operand.vmem [shape: bf16[128,128], index: 5, kind: input, shape index: {}]   ;;  %s3556_s2 = inlined_call_operand.vmem [shape: f32[1,256], index: 2, kind: input, shape index: {}]   ;;  %s3557_s4 = inlined_call_operand.vmem [shape: f32[1,128], index: 4, kind: input, shape index: {}]   ;;  %s3558_s6 = inlined_call_operand.vmem [shape: f32[1,128], index: 6, kind: input, shape index: {}]   ;;  %s3559_s7 = inlined_call_operand.vmem [shape: f32[16,128], index: 7, kind: output, shape index: {}]  }
   0x1   :  { %v2364_v0 = vld [vmem:[%s3552_s1 + $0x4] ss:$8 sps:$4 sm:$0xff]   ;;  %v2368_v2 = vld [vmem:[%s3552_s1] ss:$8 sps:$4 sm:$0xff]   ;;  %v2370_v4 = vld [vmem:[%s3552_s1 + $0x14] ss:$8 sps:$4 sm:$0xff]  }
   0x2   :  { %v2366_v1 = vld [vmem:[%s3552_s1 + $0x304] ss:$8 sps:$4 sm:$0xff]   ;;  %1422 = vmatprep.subr.bf16.mxu1 %v2364_v0  ;;  %v2369_v3 = vld [vmem:[%s3552_s1 + $0x300] ss:$8 sps:$4 sm:$0xff]   ;;  %v2372_v5 = vld [vmem:[%s3552_s1 + $0x314] ss:$8 sps:$4 sm:$0xff]  }
   0x3   :  { %1551 = vmatprep.subr.bf16.mxu0 %v2366_v1  ;;  %1423 = vmatpush1.bf16.msra.mxu1 %v2368_v2  ;;  %v2374_v6 = vld [vmem:[%s3552_s1 + $0x10] ss:$8 sps:$4 sm:$0xff]   ;;  %v2376_v8 = vld [vmem:[%s3552_s1 + $0x24] ss:$8 sps:$4 sm:$0xff]   ;;  %v2380_v10 = vld [vmem:[%s3552_s1 + $0x20] ss:$8 sps:$4 sm:$0xff]  }
   0x4   :  { %1552 = vmatpush1.bf16.msra.mxu0 %v2369_v3  ;;  %1424 = vmatprep.subr.bf16.mxu1 %v2370_v4  ;;  %v2375_v7 = vld [vmem:[%s3552_s1 + $0x310] ss:$8 sps:$4 sm:$0xff]   ;;  %v2378_v9 = vld [vmem:[%s3552_s1 + $0x324] ss:$8 sps:$4 sm:$0xff]   ;;  %v2381_v11 = vld [vmem:[%s3552_s1 + $0x320] ss:$8 sps:$4 sm:$0xff]  }
   0x5   :  { %1553 = vmatprep.subr.bf16.mxu0 %v2372_v5  ;;  %v2382_v12 = vld [vmem:[%s3552_s1 + $0x34] ss:$8 sps:$4 sm:$0xff]   ;;  %v2386_v14 = vld [vmem:[%s3552_s1 + $0x30] ss:$8 sps:$4 sm:$0xff]   ;;  %v2388_v16 = vld [vmem:[%s3552_s1 + $0x44] ss:$8 sps:$4 sm:$0xff]  }
   0x6   :  { %v2384_v13 = vld [vmem:[%s3552_s1 + $0x334] ss:$8 sps:$4 sm:$0xff]   ;;  %v2387_v15 = vld [vmem:[%s3552_s1 + $0x330] ss:$8 sps:$4 sm:$0xff]   ;;  %v2390_v17 = vld [vmem:[%s3552_s1 + $0x344] ss:$8 sps:$4 sm:$0xff]  }
   0x7   :  { %1425 = vmatpush1.bf16.msra.mxu1 %v2374_v6  ;;  %v2392_v18 = vld [vmem:[%s3552_s1 + $0x40] ss:$8 sps:$4 sm:$0xff]   ;;  %v2394_v20 = vld [vmem:[%s3552_s1 + $0x54] ss:$8 sps:$4 sm:$0xff]   ;;  %v2398_v22 = vld [vmem:[%s3552_s1 + $0x50] ss:$8 sps:$4 sm:$0xff]  }
   0x8   :  { %1554 = vmatpush1.bf16.msra.mxu0 %v2375_v7  ;;  %1426 = vmatprep.subr.bf16.mxu1 %v2376_v8  ;;  %v2393_v19 = vld [vmem:[%s3552_s1 + $0x340] ss:$8 sps:$4 sm:$0xff]   ;;  %v2396_v21 = vld [vmem:[%s3552_s1 + $0x354] ss:$8 sps:$4 sm:$0xff]   ;;  %v2399_v23 = vld [vmem:[%s3552_s1 + $0x350] ss:$8 sps:$4 sm:$0xff]  }
   0x9   :  { %1555 = vmatprep.subr.bf16.mxu0 %v2378_v9  ;;  %v2400_v24 = vld [vmem:[%s3552_s1 + $0x64] ss:$8 sps:$4 sm:$0xff]   ;;  %v2404_v26 = vld [vmem:[%s3552_s1 + $0x60] ss:$8 sps:$4 sm:$0xff]   ;;  %v2406_v28 = vld [vmem:[%s3552_s1 + $0x74] ss:$8 sps:$4 sm:$0xff]  }
   0xa   :  { %v2402_v25 = vld [vmem:[%s3552_s1 + $0x364] ss:$8 sps:$4 sm:$0xff]   ;;  %v2405_v27 = vld [vmem:[%s3552_s1 + $0x360] ss:$8 sps:$4 sm:$0xff]   ;;  %v2408_v29 = vld [vmem:[%s3552_s1 + $0x374] ss:$8 sps:$4 sm:$0xff]  }
   0xb   :  { %1427 = vmatpush1.bf16.msra.mxu1 %v2380_v10  ;;  %v2410_v30 = vld [vmem:[%s3552_s1 + $0x70] ss:$8 sps:$4 sm:$0xff]   ;;  %v2412_v32 = vld [vmem:[%s3552_s1 + $0x84] ss:$8 sps:$4 sm:$0xff]   ;;  %v2416_v34 = vld [vmem:[%s3552_s1 + $0x80] ss:$8 sps:$4 sm:$0xff]  }
   0xc   :  { %1556 = vmatpush1.bf16.msra.mxu0 %v2381_v11  ;;  %1428 = vmatprep.subr.bf16.mxu1 %v2382_v12  ;;  %v2411_v31 = vld [vmem:[%s3552_s1 + $0x370] ss:$8 sps:$4 sm:$0xff]   ;;  %v2414_v33 = vld [vmem:[%s3552_s1 + $0x384] ss:$8 sps:$4 sm:$0xff]   ;;  %v2417_v35 = vld [vmem:[%s3552_s1 + $0x380] ss:$8 sps:$4 sm:$0xff]  }
   0xd   :  { %1557 = vmatprep.subr.bf16.mxu0 %v2384_v13  ;;  %v2418_v36 = vld [vmem:[%s3552_s1 + $0x94] ss:$8 sps:$4 sm:$0xff]   ;;  %v2422_v38 = vld [vmem:[%s3552_s1 + $0x90] ss:$8 sps:$4 sm:$0xff]   ;;  %v2424_v40 = vld [vmem:[%s3552_s1 + $0xa4] ss:$8 sps:$4 sm:$0xff]  }
   0xe   :  { %v2420_v37 = vld [vmem:[%s3552_s1 + $0x394] ss:$8 sps:$4 sm:$0xff]   ;;  %v2423_v39 = vld [vmem:[%s3552_s1 + $0x390] ss:$8 sps:$4 sm:$0xff]   ;;  %v2426_v41 = vld [vmem:[%s3552_s1 + $0x3a4] ss:$8 sps:$4 sm:$0xff]  }
   0xf   :  { %1429 = vmatpush1.bf16.msra.mxu1 %v2386_v14  ;;  %v2428_v42 = vld [vmem:[%s3552_s1 + $0xa0] ss:$8 sps:$4 sm:$0xff]   ;;  %v2430_v44 = vld [vmem:[%s3552_s1 + $0xb4] ss:$8 sps:$4 sm:$0xff]   ;;  %v2434_v46 = vld [vmem:[%s3552_s1 + $0xb0] ss:$8 sps:$4 sm:$0xff]  }
  0x10   :  { %1558 = vmatpush1.bf16.msra.mxu0 %v2387_v15  ;;  %1430 = vmatprep.subr.bf16.mxu1 %v2388_v16  ;;  %v2429_v43 = vld [vmem:[%s3552_s1 + $0x3a0] ss:$8 sps:$4 sm:$0xff]   ;;  %v2432_v45 = vld [vmem:[%s3552_s1 + $0x3b4] ss:$8 sps:$4 sm:$0xff]   ;;  %v2435_v47 = vld [vmem:[%s3552_s1 + $0x3b0] ss:$8 sps:$4 sm:$0xff]  }
  0x11   :  { %1559 = vmatprep.subr.bf16.mxu0 %v2390_v17  ;;  %v2462_v48 = vld [vmem:[%s3553_s0 + $0x4] ss:$56 sps:$4 sm:$0xff]   ;;  %v2440_v52 = vld [vmem:[%s3552_s1 + $0xc0] ss:$8 sps:$4 sm:$0xff]   ;;  %v2446_v56 = vld [vmem:[%s3552_s1 + $0xd0] ss:$8 sps:$4 sm:$0xff]  }
  0x12   :  { %v2436_v49 = vld [vmem:[%s3552_s1 + $0xc4] ss:$8 sps:$4 sm:$0xff]   ;;  %1454 = vmatprep.mubr.bf16.mxu1 %v2462_v48  ;;  %v2468_v51 = vld [vmem:[%s3553_s0 + $0x1c] ss:$56 sps:$4 sm:$0xff]   ;;  %v2441_v53 = vld [vmem:[%s3552_s1 + $0x3c0] ss:$8 sps:$4 sm:$0xff]  }
  0x13   :  { %1431 = vmatpush1.bf16.msra.mxu1 %v2392_v18  ;;  %v2438_v50 = vld [vmem:[%s3552_s1 + $0x3c4] ss:$8 sps:$4 sm:$0xff]   ;;  %v2442_v54 = vld [vmem:[%s3552_s1 + $0xd4] ss:$8 sps:$4 sm:$0xff]   ;;  %1583 = vmatprep.mubr.bf16.mxu0 %v2468_v51  ;;  %v2447_v57 = vld [vmem:[%s3552_s1 + $0x3d0] ss:$8 sps:$4 sm:$0xff]  }
  0x14   :  { %1560 = vmatpush1.bf16.msra.mxu0 %v2393_v19  ;;  %1432 = vmatprep.subr.bf16.mxu1 %v2394_v20  ;;  %v2444_v55 = vld [vmem:[%s3552_s1 + $0x3d4] ss:$8 sps:$4 sm:$0xff]   ;;  %v2448_v58 = vld [vmem:[%s3552_s1 + $0xe4] ss:$8 sps:$4 sm:$0xff]   ;;  %v2452_v60 = vld [vmem:[%s3552_s1 + $0xe0] ss:$8 sps:$4 sm:$0xff]  }
  0x15   :  { %1561 = vmatprep.subr.bf16.mxu0 %v2396_v21  ;;  %v2450_v59 = vld [vmem:[%s3552_s1 + $0x3e4] ss:$8 sps:$4 sm:$0xff]   ;;  %v2453_v61 = vld [vmem:[%s3552_s1 + $0x3e0] ss:$8 sps:$4 sm:$0xff]   ;;  %v2454_v62 = vld [vmem:[%s3552_s1 + $0xf4] ss:$8 sps:$4 sm:$0xff]  }
  0x16   :  { %v2456_v63 = vld [vmem:[%s3552_s1 + $0x3f4] ss:$8 sps:$4 sm:$0xff]   ;;  %v2458_v0 = vld [vmem:[%s3552_s1 + $0xf0] ss:$8 sps:$4 sm:$0xff]   ;;  %v2465_v2 = vld [vmem:[%s3552_s1 + $0x104] ss:$8 sps:$4 sm:$0xff]  }
  0x17   :  { %1433 = vmatpush1.bf16.msra.mxu1 %v2398_v22  ;;  %v2459_v1 = vld [vmem:[%s3552_s1 + $0x3f0] ss:$8 sps:$4 sm:$0xff]   ;;  %v2471_v3 = vld [vmem:[%s3552_s1 + $0x404] ss:$8 sps:$4 sm:$0xff]   ;;  %v2463_v5 = vld [vmem:[%s3552_s1 + $0x100] ss:$8 sps:$4 sm:$0xff]  }
  0x18   :  { %1562 = vmatpush1.bf16.msra.mxu0 %v2399_v23  ;;  %1434 = vmatprep.subr.bf16.mxu1 %v2400_v24  ;;  %v2460_v4 = vld [vmem:[%s3553_s0] ss:$56 sps:$4 sm:$0xff]   ;;  %v2474_v8 = vld [vmem:[%s3552_s1 + $0x114] ss:$8 sps:$4 sm:$0xff]   ;;  %v2480_v12 = vld [vmem:[%s3552_s1 + $0x124] ss:$8 sps:$4 sm:$0xff]  }
  0x19   :  { %1563 = vmatprep.subr.bf16.mxu0 %v2402_v25  ;;  %v2466_v6 = vld [vmem:[%s3553_s0 + $0x18] ss:$56 sps:$4 sm:$0xff]   ;;  %v2469_v7 = vld [vmem:[%s3552_s1 + $0x400] ss:$8 sps:$4 sm:$0xff]   ;;  %v2477_v9 = vld [vmem:[%s3552_s1 + $0x414] ss:$8 sps:$4 sm:$0xff]  }
  0x1a   :  { %v2472_v10 = vld [vmem:[%s3552_s1 + $0x110] ss:$8 sps:$4 sm:$0xff]   ;;  %v2483_v13 = vld [vmem:[%s3552_s1 + $0x424] ss:$8 sps:$4 sm:$0xff]   ;;  %v2478_v14 = vld [vmem:[%s3552_s1 + $0x120] ss:$8 sps:$4 sm:$0xff]  }
  0x1b   :  { %1435 = vmatpush1.bf16.msra.mxu1 %v2404_v26  ;;  %v2475_v11 = vld [vmem:[%s3552_s1 + $0x410] ss:$8 sps:$4 sm:$0xff]   ;;  %v2481_v15 = vld [vmem:[%s3552_s1 + $0x420] ss:$8 sps:$4 sm:$0xff]   ;;  %v2486_v16 = vld [vmem:[%s3552_s1 + $0x134] ss:$8 sps:$4 sm:$0xff]  }
  0x1c   :  { %1564 = vmatpush1.bf16.msra.mxu0 %v2405_v27  ;;  %1436 = vmatprep.subr.bf16.mxu1 %v2406_v28  ;;  %v2489_v17 = vld [vmem:[%s3552_s1 + $0x434] ss:$8 sps:$4 sm:$0xff]   ;;  %v2484_v18 = vld [vmem:[%s3552_s1 + $0x130] ss:$8 sps:$4 sm:$0xff]   ;;  %v2492_v20 = vld [vmem:[%s3552_s1 + $0x144] ss:$8 sps:$4 sm:$0xff]  }
  0x1d   :  { %1565 = vmatprep.subr.bf16.mxu0 %v2408_v29  ;;  %v2487_v19 = vld [vmem:[%s3552_s1 + $0x430] ss:$8 sps:$4 sm:$0xff]   ;;  %v2495_v21 = vld [vmem:[%s3552_s1 + $0x444] ss:$8 sps:$4 sm:$0xff]   ;;  %v2490_v22 = vld [vmem:[%s3552_s1 + $0x140] ss:$8 sps:$4 sm:$0xff]  }
  0x1e   :  { %v2493_v23 = vld [vmem:[%s3552_s1 + $0x440] ss:$8 sps:$4 sm:$0xff]   ;;  %v2498_v24 = vld [vmem:[%s3552_s1 + $0x154] ss:$8 sps:$4 sm:$0xff]   ;;  %v2496_v26 = vld [vmem:[%s3552_s1 + $0x150] ss:$8 sps:$4 sm:$0xff]  }
  0x1f   :  { %1437 = vmatpush1.bf16.msra.mxu1 %v2410_v30  ;;  %v2501_v25 = vld [vmem:[%s3552_s1 + $0x454] ss:$8 sps:$4 sm:$0xff]   ;;  %v2499_v27 = vld [vmem:[%s3552_s1 + $0x450] ss:$8 sps:$4 sm:$0xff]   ;;  %v2504_v28 = vld [vmem:[%s3552_s1 + $0x164] ss:$8 sps:$4 sm:$0xff]  }
  0x20   :  { %1566 = vmatpush1.bf16.msra.mxu0 %v2411_v31  ;;  %1438 = vmatprep.subr.bf16.mxu1 %v2412_v32  ;;  %v2507_v29 = vld [vmem:[%s3552_s1 + $0x464] ss:$8 sps:$4 sm:$0xff]   ;;  %v2502_v30 = vld [vmem:[%s3552_s1 + $0x160] ss:$8 sps:$4 sm:$0xff]   ;;  %v2510_v32 = vld [vmem:[%s3552_s1 + $0x174] ss:$8 sps:$4 sm:$0xff]  }
  0x21   :  { %1567 = vmatprep.subr.bf16.mxu0 %v2414_v33  ;;  %v2505_v31 = vld [vmem:[%s3552_s1 + $0x460] ss:$8 sps:$4 sm:$0xff]   ;;  %v2513_v33 = vld [vmem:[%s3552_s1 + $0x474] ss:$8 sps:$4 sm:$0xff]  }
  0x22   :  { %v2526_v48 = vld [vmem:[%s3552_s1 + $0x1a0] ss:$8 sps:$4 sm:$0xff]   ;;  %v2537_v51 = vld [vmem:[%s3552_s1 + $0x4b4] ss:$8 sps:$4 sm:$0xff]  }
  0x23   :  { %1439 = vmatpush1.bf16.msra.mxu1 %v2416_v34  ;;  %v2564_v34 = vld [vmem:[%s3553_s0 + $0xc] ss:$56 sps:$4 sm:$0xff]  }
  0x24   :  { %1568 = vmatpush1.bf16.msra.mxu0 %v2417_v35  ;;  %1440 = vmatprep.subr.bf16.mxu1 %v2418_v36  ;;  %v2508_v35 = vld [vmem:[%s3552_s1 + $0x170] ss:$8 sps:$4 sm:$0xff]  }
  0x25   :  { %1569 = vmatprep.subr.bf16.mxu0 %v2420_v37  ;;  %v2511_v36 = vld [vmem:[%s3552_s1 + $0x470] ss:$8 sps:$4 sm:$0xff]   ;;  %v2570_v37 = vld [vmem:[%s3553_s0 + $0x24] ss:$56 sps:$4 sm:$0xff]  }
  0x27   :  { %1441 = vmatpush1.bf16.msra.mxu1 %v2422_v38  ;;  %v2516_v38 = vld [vmem:[%s3552_s1 + $0x184] ss:$8 sps:$4 sm:$0xff]  }
  0x28   :  { %1570 = vmatpush1.bf16.msra.mxu0 %v2423_v39  ;;  %1442 = vmatprep.subr.bf16.mxu1 %v2424_v40  ;;  %v2519_v39 = vld [vmem:[%s3552_s1 + $0x484] ss:$8 sps:$4 sm:$0xff]   ;;  %v2514_v40 = vld [vmem:[%s3552_s1 + $0x180] ss:$8 sps:$4 sm:$0xff]  }
  0x29   :  { %1571 = vmatprep.subr.bf16.mxu0 %v2426_v41  ;;  %v2517_v41 = vld [vmem:[%s3552_s1 + $0x480] ss:$8 sps:$4 sm:$0xff]  }
  0x2b   :  { %1443 = vmatpush1.bf16.msra.mxu1 %v2428_v42  ;;  %v2522_v42 = vld [vmem:[%s3552_s1 + $0x194] ss:$8 sps:$4 sm:$0xff]  }
  0x2c   :  { %1572 = vmatpush1.bf16.msra.mxu0 %v2429_v43  ;;  %1444 = vmatprep.subr.bf16.mxu1 %v2430_v44  ;;  %v2525_v43 = vld [vmem:[%s3552_s1 + $0x494] ss:$8 sps:$4 sm:$0xff]   ;;  %v2520_v44 = vld [vmem:[%s3552_s1 + $0x190] ss:$8 sps:$4 sm:$0xff]  }
  0x2d   :  { %1573 = vmatprep.subr.bf16.mxu0 %v2432_v45  ;;  %v2523_v45 = vld [vmem:[%s3552_s1 + $0x490] ss:$8 sps:$4 sm:$0xff]  }
  0x2f   :  { %1445 = vmatpush1.bf16.msra.mxu1 %v2434_v46  ;;  %v2528_v46 = vld [vmem:[%s3552_s1 + $0x1a4] ss:$8 sps:$4 sm:$0xff]  }
  0x30   :  { %1574 = vmatpush1.bf16.msra.mxu0 %v2435_v47  ;;  %1446 = vmatprep.subr.bf16.mxu1 %v2436_v49  ;;  %v2531_v47 = vld [vmem:[%s3552_s1 + $0x4a4] ss:$8 sps:$4 sm:$0xff]   ;;  %v2529_v49 = vld [vmem:[%s3552_s1 + $0x4a0] ss:$8 sps:$4 sm:$0xff]  }
  0x31   :  { %1575 = vmatprep.subr.bf16.mxu0 %v2438_v50  ;;  %v2534_v50 = vld [vmem:[%s3552_s1 + $0x1b4] ss:$8 sps:$4 sm:$0xff]  }
  0x33   :  { %1447 = vmatpush1.bf16.msra.mxu1 %v2440_v52  ;;  %v2532_v52 = vld [vmem:[%s3552_s1 + $0x1b0] ss:$8 sps:$4 sm:$0xff]  }
  0x34   :  { %1576 = vmatpush1.bf16.msra.mxu0 %v2441_v53  ;;  %1448 = vmatprep.subr.bf16.mxu1 %v2442_v54  ;;  %v2535_v53 = vld [vmem:[%s3552_s1 + $0x4b0] ss:$8 sps:$4 sm:$0xff]   ;;  %v2540_v54 = vld [vmem:[%s3552_s1 + $0x1c4] ss:$8 sps:$4 sm:$0xff]  }
  0x35   :  { %1577 = vmatprep.subr.bf16.mxu0 %v2444_v55  ;;  %v2543_v55 = vld [vmem:[%s3552_s1 + $0x4c4] ss:$8 sps:$4 sm:$0xff]  }
  0x37   :  { %1449 = vmatpush1.bf16.msra.mxu1 %v2446_v56  ;;  %v2538_v56 = vld [vmem:[%s3552_s1 + $0x1c0] ss:$8 sps:$4 sm:$0xff]  }
  0x38   :  { %1578 = vmatpush1.bf16.msra.mxu0 %v2447_v57  ;;  %1450 = vmatprep.subr.bf16.mxu1 %v2448_v58  ;;  %v2541_v57 = vld [vmem:[%s3552_s1 + $0x4c0] ss:$8 sps:$4 sm:$0xff]   ;;  %v2546_v58 = vld [vmem:[%s3552_s1 + $0x1d4] ss:$8 sps:$4 sm:$0xff]  }
  0x39   :  { %1579 = vmatprep.subr.bf16.mxu0 %v2450_v59  ;;  %v2549_v59 = vld [vmem:[%s3552_s1 + $0x4d4] ss:$8 sps:$4 sm:$0xff]  }
  0x3b   :  { %1451 = vmatpush1.bf16.msra.mxu1 %v2452_v60  ;;  %v2544_v60 = vld [vmem:[%s3552_s1 + $0x1d0] ss:$8 sps:$4 sm:$0xff]  }
  0x3c   :  { %1580 = vmatpush1.bf16.msra.mxu0 %v2453_v61  ;;  %1452 = vmatprep.subr.bf16.mxu1 %v2454_v62  ;;  %v2547_v61 = vld [vmem:[%s3552_s1 + $0x4d0] ss:$8 sps:$4 sm:$0xff]   ;;  %v2552_v62 = vld [vmem:[%s3552_s1 + $0x1e4] ss:$8 sps:$4 sm:$0xff]  }
  0x3d   :  { %1581 = vmatprep.subr.bf16.mxu0 %v2456_v63  ;;  %v2555_v63 = vld [vmem:[%s3552_s1 + $0x4e4] ss:$8 sps:$4 sm:$0xff]  }
  0x3f   :  { %1453 = vmatpush1.bf16.msra.mxu1 %v2458_v0  ;;  %v2550_v0 = vld [vmem:[%s3552_s1 + $0x1e0] ss:$8 sps:$4 sm:$0xff]  }
  0x40   :  { %1582 = vmatpush1.bf16.msra.mxu0 %v2459_v1  ;;  %1465 = vmatprep.subr.bf16.mxu1 %v2465_v2  ;;  %v2553_v1 = vld [vmem:[%s3552_s1 + $0x4e0] ss:$8 sps:$4 sm:$0xff]   ;;  %v2558_v2 = vld [vmem:[%s3552_s1 + $0x1f4] ss:$8 sps:$4 sm:$0xff]  }
  0x41   :  { %1594 = vmatprep.subr.bf16.mxu0 %v2471_v3  ;;  %v2561_v3 = vld [vmem:[%s3552_s1 + $0x4f4] ss:$8 sps:$4 sm:$0xff]  }
  0x42   :  { %1455 = vmatmul.mubr.bf16.vlgmr.msra.gmra.mrb[0].mxu1 %v2460_v4  ;;  %v2556_v4 = vld [vmem:[%s3552_s1 + $0x1f0] ss:$8 sps:$4 sm:$0xff]  }
  0x43   :  { %1584 = vmatmul.mubr.bf16.vlgmr.msra.gmra.mrb[0].mxu0 %v2466_v6  ;;  %1466 = vmatpush1.bf16.msra.mxu1 %v2463_v5  ;;  %v2559_v5 = vld [vmem:[%s3552_s1 + $0x4f0] ss:$8 sps:$4 sm:$0xff]   ;;  %v2567_v6 = vld [vmem:[%s3552_s1 + $0x204] ss:$8 sps:$4 sm:$0xff]  }
  0x44   :  { %1595 = vmatpush1.bf16.msra.mxu0 %v2469_v7  ;;  %1467 = vmatprep.subr.bf16.mxu1 %v2474_v8  ;;  %v2573_v7 = vld [vmem:[%s3552_s1 + $0x504] ss:$8 sps:$4 sm:$0xff]   ;;  %v2562_v8 = vld [vmem:[%s3553_s0 + $0x8] ss:$56 sps:$4 sm:$0xff]  }
  0x45   :  { %1596 = vmatprep.subr.bf16.mxu0 %v2477_v9  ;;  %1497 = vmatprep.mubr.bf16.mxu1 %v2564_v34  ;;  %v2565_v9 = vld [vmem:[%s3552_s1 + $0x200] ss:$8 sps:$4 sm:$0xff]   ;;  %v2606_v34 = vld [vmem:[%s3552_s1 + $0x264] ss:$8 sps:$4 sm:$0xff]  }
  0x46   :  { %1626 = vmatprep.mubr.bf16.mxu0 %v2570_v37  ;;  %v2607_v37 = vld [vmem:[%s3552_s1 + $0x560] ss:$8 sps:$4 sm:$0xff]  }
  0x47   :  { %1468 = vmatpush1.bf16.msra.mxu1 %v2472_v10  ;;  %v2568_v10 = vld [vmem:[%s3553_s0 + $0x20] ss:$56 sps:$4 sm:$0xff]  }
  0x48   :  { %1597 = vmatpush1.bf16.msra.mxu0 %v2475_v11  ;;  %1469 = vmatprep.subr.bf16.mxu1 %v2480_v12  ;;  %v2571_v11 = vld [vmem:[%s3552_s1 + $0x500] ss:$8 sps:$4 sm:$0xff]   ;;  %v2576_v12 = vld [vmem:[%s3552_s1 + $0x214] ss:$8 sps:$4 sm:$0xff]  }
  0x49   :  { %1598 = vmatprep.subr.bf16.mxu0 %v2483_v13  ;;  %v2579_v13 = vld [vmem:[%s3552_s1 + $0x514] ss:$8 sps:$4 sm:$0xff]  }
  0x4b   :  { %1470 = vmatpush1.bf16.msra.mxu1 %v2478_v14  ;;  %v2574_v14 = vld [vmem:[%s3552_s1 + $0x210] ss:$8 sps:$4 sm:$0xff]  }
  0x4c   :  { %1599 = vmatpush1.bf16.msra.mxu0 %v2481_v15  ;;  %1471 = vmatprep.subr.bf16.mxu1 %v2486_v16  ;;  %v2577_v15 = vld [vmem:[%s3552_s1 + $0x510] ss:$8 sps:$4 sm:$0xff]   ;;  %v2582_v16 = vld [vmem:[%s3552_s1 + $0x224] ss:$8 sps:$4 sm:$0xff]  }
  0x4d   :  { %1600 = vmatprep.subr.bf16.mxu0 %v2489_v17  ;;  %v2585_v17 = vld [vmem:[%s3552_s1 + $0x524] ss:$8 sps:$4 sm:$0xff]  }
  0x4f   :  { %1472 = vmatpush1.bf16.msra.mxu1 %v2484_v18  ;;  %v2580_v18 = vld [vmem:[%s3552_s1 + $0x220] ss:$8 sps:$4 sm:$0xff]  }
  0x50   :  { %1601 = vmatpush1.bf16.msra.mxu0 %v2487_v19  ;;  %1473 = vmatprep.subr.bf16.mxu1 %v2492_v20  ;;  %v2666_v19 = vld [vmem:[%s3553_s0 + $0x14] ss:$56 sps:$4 sm:$0xff]   ;;  %v2583_v20 = vld [vmem:[%s3552_s1 + $0x520] ss:$8 sps:$4 sm:$0xff]  }
  0x51   :  { %1602 = vmatprep.subr.bf16.mxu0 %v2495_v21  ;;  %v2669_v21 = vld [vmem:[%s3553_s0 + $0x2c] ss:$56 sps:$4 sm:$0xff]  }
  0x53   :  { %1474 = vmatpush1.bf16.msra.mxu1 %v2490_v22  ;;  %v2588_v22 = vld [vmem:[%s3552_s1 + $0x234] ss:$8 sps:$4 sm:$0xff]  }
  0x54   :  { %1603 = vmatpush1.bf16.msra.mxu0 %v2493_v23  ;;  %1475 = vmatprep.subr.bf16.mxu1 %v2498_v24  ;;  %v2591_v23 = vld [vmem:[%s3552_s1 + $0x534] ss:$8 sps:$4 sm:$0xff]   ;;  %v2586_v24 = vld [vmem:[%s3552_s1 + $0x230] ss:$8 sps:$4 sm:$0xff]  }
  0x55   :  { %1604 = vmatprep.subr.bf16.mxu0 %v2501_v25  ;;  %v2589_v25 = vld [vmem:[%s3552_s1 + $0x530] ss:$8 sps:$4 sm:$0xff]  }
  0x57   :  { %1476 = vmatpush1.bf16.msra.mxu1 %v2496_v26  ;;  %v2594_v26 = vld [vmem:[%s3552_s1 + $0x244] ss:$8 sps:$4 sm:$0xff]  }
  0x58   :  { %1605 = vmatpush1.bf16.msra.mxu0 %v2499_v27  ;;  %1477 = vmatprep.subr.bf16.mxu1 %v2504_v28  ;;  %v2597_v27 = vld [vmem:[%s3552_s1 + $0x544] ss:$8 sps:$4 sm:$0xff]   ;;  %v2592_v28 = vld [vmem:[%s3552_s1 + $0x240] ss:$8 sps:$4 sm:$0xff]  }
  0x59   :  { %1606 = vmatprep.subr.bf16.mxu0 %v2507_v29  ;;  %v2595_v29 = vld [vmem:[%s3552_s1 + $0x540] ss:$8 sps:$4 sm:$0xff]  }
  0x5b   :  { %1478 = vmatpush1.bf16.msra.mxu1 %v2502_v30  ;;  %v2600_v30 = vld [vmem:[%s3552_s1 + $0x254] ss:$8 sps:$4 sm:$0xff]  }
  0x5c   :  { %1607 = vmatpush1.bf16.msra.mxu0 %v2505_v31  ;;  %1479 = vmatprep.subr.bf16.mxu1 %v2510_v32  ;;  %v2603_v31 = vld [vmem:[%s3552_s1 + $0x554] ss:$8 sps:$4 sm:$0xff]   ;;  %v2598_v32 = vld [vmem:[%s3552_s1 + $0x250] ss:$8 sps:$4 sm:$0xff]  }
  0x5d   :  { %1608 = vmatprep.subr.bf16.mxu0 %v2513_v33  ;;  %v2601_v33 = vld [vmem:[%s3552_s1 + $0x550] ss:$8 sps:$4 sm:$0xff]  }
  0x5f   :  { %1480 = vmatpush1.bf16.msra.mxu1 %v2508_v35  ;;  %v2609_v35 = vld [vmem:[%s3552_s1 + $0x564] ss:$8 sps:$4 sm:$0xff]  }
  0x60   :  { %1609 = vmatpush1.bf16.msra.mxu0 %v2511_v36  ;;  %1481 = vmatprep.subr.bf16.mxu1 %v2516_v38  ;;  %v2604_v36 = vld [vmem:[%s3552_s1 + $0x260] ss:$8 sps:$4 sm:$0xff]   ;;  %v2612_v38 = vld [vmem:[%s3552_s1 + $0x274] ss:$8 sps:$4 sm:$0xff]  }
  0x61   :  { %1610 = vmatprep.subr.bf16.mxu0 %v2519_v39  ;;  %v2615_v39 = vld [vmem:[%s3552_s1 + $0x574] ss:$8 sps:$4 sm:$0xff]  }
  0x63   :  { %1482 = vmatpush1.bf16.msra.mxu1 %v2514_v40  ;;  %v2610_v40 = vld [vmem:[%s3552_s1 + $0x270] ss:$8 sps:$4 sm:$0xff]  }
  0x64   :  { %1611 = vmatpush1.bf16.msra.mxu0 %v2517_v41  ;;  %1483 = vmatprep.subr.bf16.mxu1 %v2522_v42  ;;  %v2613_v41 = vld [vmem:[%s3552_s1 + $0x570] ss:$8 sps:$4 sm:$0xff]   ;;  %v2618_v42 = vld [vmem:[%s3552_s1 + $0x284] ss:$8 sps:$4 sm:$0xff]  }
  0x65   :  { %1612 = vmatprep.subr.bf16.mxu0 %v2525_v43  ;;  %v2621_v43 = vld [vmem:[%s3552_s1 + $0x584] ss:$8 sps:$4 sm:$0xff]  }
  0x67   :  { %1484 = vmatpush1.bf16.msra.mxu1 %v2520_v44  ;;  %v2616_v44 = vld [vmem:[%s3552_s1 + $0x280] ss:$8 sps:$4 sm:$0xff]  }
  0x68   :  { %1613 = vmatpush1.bf16.msra.mxu0 %v2523_v45  ;;  %1485 = vmatprep.subr.bf16.mxu1 %v2528_v46  ;;  %v2619_v45 = vld [vmem:[%s3552_s1 + $0x580] ss:$8 sps:$4 sm:$0xff]   ;;  %v2624_v46 = vld [vmem:[%s3552_s1 + $0x294] ss:$8 sps:$4 sm:$0xff]  }
  0x69   :  { %1614 = vmatprep.subr.bf16.mxu0 %v2531_v47  ;;  %v2627_v47 = vld [vmem:[%s3552_s1 + $0x594] ss:$8 sps:$4 sm:$0xff]  }
  0x6b   :  { %1486 = vmatpush1.bf16.msra.mxu1 %v2526_v48  ;;  %v2622_v48 = vld [vmem:[%s3552_s1 + $0x290] ss:$8 sps:$4 sm:$0xff]  }
  0x6c   :  { %1615 = vmatpush1.bf16.msra.mxu0 %v2529_v49  ;;  %1487 = vmatprep.subr.bf16.mxu1 %v2534_v50  ;;  %v2625_v49 = vld [vmem:[%s3552_s1 + $0x590] ss:$8 sps:$4 sm:$0xff]   ;;  %v2630_v50 = vld [vmem:[%s3552_s1 + $0x2a4] ss:$8 sps:$4 sm:$0xff]  }
  0x6d   :  { %1616 = vmatprep.subr.bf16.mxu0 %v2537_v51  ;;  %v2633_v51 = vld [vmem:[%s3552_s1 + $0x5a4] ss:$8 sps:$4 sm:$0xff]  }
  0x6f   :  { %1488 = vmatpush1.bf16.msra.mxu1 %v2532_v52  ;;  %v2628_v52 = vld [vmem:[%s3552_s1 + $0x2a0] ss:$8 sps:$4 sm:$0xff]  }
  0x70   :  { %1617 = vmatpush1.bf16.msra.mxu0 %v2535_v53  ;;  %1489 = vmatprep.subr.bf16.mxu1 %v2540_v54  ;;  %v2631_v53 = vld [vmem:[%s3552_s1 + $0x5a0] ss:$8 sps:$4 sm:$0xff]   ;;  %v2636_v54 = vld [vmem:[%s3552_s1 + $0x2b4] ss:$8 sps:$4 sm:$0xff]  }
  0x71   :  { %1618 = vmatprep.subr.bf16.mxu0 %v2543_v55  ;;  %v2639_v55 = vld [vmem:[%s3552_s1 + $0x5b4] ss:$8 sps:$4 sm:$0xff]  }
  0x73   :  { %1490 = vmatpush1.bf16.msra.mxu1 %v2538_v56  ;;  %v2634_v56 = vld [vmem:[%s3552_s1 + $0x2b0] ss:$8 sps:$4 sm:$0xff]  }
  0x74   :  { %1619 = vmatpush1.bf16.msra.mxu0 %v2541_v57  ;;  %1491 = vmatprep.subr.bf16.mxu1 %v2546_v58  ;;  %v2637_v57 = vld [vmem:[%s3552_s1 + $0x5b0] ss:$8 sps:$4 sm:$0xff]   ;;  %v2642_v58 = vld [vmem:[%s3552_s1 + $0x2c4] ss:$8 sps:$4 sm:$0xff]  }
  0x75   :  { %1620 = vmatprep.subr.bf16.mxu0 %v2549_v59  ;;  %v2645_v59 = vld [vmem:[%s3552_s1 + $0x5c4] ss:$8 sps:$4 sm:$0xff]  }
  0x77   :  { %1492 = vmatpush1.bf16.msra.mxu1 %v2544_v60  ;;  %v2640_v60 = vld [vmem:[%s3552_s1 + $0x2c0] ss:$8 sps:$4 sm:$0xff]  }
  0x78   :  { %1621 = vmatpush1.bf16.msra.mxu0 %v2547_v61  ;;  %1493 = vmatprep.subr.bf16.mxu1 %v2552_v62  ;;  %v2643_v61 = vld [vmem:[%s3552_s1 + $0x5c0] ss:$8 sps:$4 sm:$0xff]   ;;  %v2648_v62 = vld [vmem:[%s3552_s1 + $0x2d4] ss:$8 sps:$4 sm:$0xff]  }
  0x79   :  { %1622 = vmatprep.subr.bf16.mxu0 %v2555_v63  ;;  %v2651_v63 = vld [vmem:[%s3552_s1 + $0x5d4] ss:$8 sps:$4 sm:$0xff]  }
  0x7b   :  { %1494 = vmatpush1.bf16.msra.mxu1 %v2550_v0  ;;  %v2646_v0 = vld [vmem:[%s3552_s1 + $0x2d0] ss:$8 sps:$4 sm:$0xff]  }
  0x7c   :  { %1623 = vmatpush1.bf16.msra.mxu0 %v2553_v1  ;;  %1495 = vmatprep.subr.bf16.mxu1 %v2558_v2  ;;  %v2649_v1 = vld [vmem:[%s3552_s1 + $0x5d0] ss:$8 sps:$4 sm:$0xff]   ;;  %v2654_v2 = vld [vmem:[%s3552_s1 + $0x2e4] ss:$8 sps:$4 sm:$0xff]  }
  0x7d   :  { %1624 = vmatprep.subr.bf16.mxu0 %v2561_v3  ;;  %v2657_v3 = vld [vmem:[%s3552_s1 + $0x5e4] ss:$8 sps:$4 sm:$0xff]  }
  0x7f   :  { %1496 = vmatpush1.bf16.msra.mxu1 %v2556_v4  ;;  %v2652_v4 = vld [vmem:[%s3552_s1 + $0x2e0] ss:$8 sps:$4 sm:$0xff]  }
  0x80   :  { %1625 = vmatpush1.bf16.msra.mxu0 %v2559_v5  ;;  %1508 = vmatprep.subr.bf16.mxu1 %v2567_v6  ;;  %v2655_v5 = vld [vmem:[%s3552_s1 + $0x5e0] ss:$8 sps:$4 sm:$0xff]   ;;  %v2660_v6 = vld [vmem:[%s3552_s1 + $0x2f4] ss:$8 sps:$4 sm:$0xff]  }
  0x81   :  { %1637 = vmatprep.subr.bf16.mxu0 %v2573_v7  ;;  %v2663_v7 = vld [vmem:[%s3552_s1 + $0x5f4] ss:$8 sps:$4 sm:$0xff]  }
  0x82   :  { %1498 = vmatmul.mubr.bf16.vlgmr.msra.gmra.mrb[0].mxu1 %v2562_v8  ;;  %v2658_v8 = vld [vmem:[%s3552_s1 + $0x2f0] ss:$8 sps:$4 sm:$0xff]  }
  0x83   :  { %1627 = vmatmul.mubr.bf16.vlgmr.msra.gmra.mrb[0].mxu0 %v2568_v10  ;;  %1509 = vmatpush1.bf16.msra.mxu1 %v2565_v9  ;;  %v2661_v9 = vld [vmem:[%s3552_s1 + $0x5f0] ss:$8 sps:$4 sm:$0xff]   ;;  %v2672_v10 = vld [vmem:[%s3552_s1 + $0x604] ss:$8 sps:$4 sm:$0xff]  }
  0x84   :  { %1638 = vmatpush1.bf16.msra.mxu0 %v2571_v11  ;;  %1510 = vmatprep.subr.bf16.mxu1 %v2576_v12  ;;  %v2664_v11 = vld [vmem:[%s3553_s0 + $0x10] ss:$56 sps:$4 sm:$0xff]  }
  0x85   :  { %1639 = vmatprep.subr.bf16.mxu0 %v2579_v13  ;;  %1540 = vmatprep.mubr.bf16.mxu1 %v2666_v19  ;;  %v2667_v12 = vld [vmem:[%s3553_s0 + $0x28] ss:$56 sps:$4 sm:$0xff]   ;;  %v2681_v19 = vld [vmem:[%s3552_s1 + $0x634] ss:$8 sps:$4 sm:$0xff]  }
  0x86   :  { %1669 = vmatprep.mubr.bf16.mxu0 %v2669_v21  ;;  %v2670_v13 = vld [vmem:[%s3552_s1 + $0x600] ss:$8 sps:$4 sm:$0xff]   ;;  %v2684_v21 = vld [vmem:[%s3552_s1 + $0x644] ss:$8 sps:$4 sm:$0xff]  }
  0x87   :  { %1511 = vmatpush1.bf16.msra.mxu1 %v2574_v14  ;;  %v2706_v14 = vld [vmem:[%s3553_s0 + $0x34] ss:$56 sps:$4 sm:$0xff]  }
  0x88   :  { %1640 = vmatpush1.bf16.msra.mxu0 %v2577_v15  ;;  %1512 = vmatprep.subr.bf16.mxu1 %v2582_v16  ;;  %v2675_v15 = vld [vmem:[%s3552_s1 + $0x614] ss:$8 sps:$4 sm:$0xff]   ;;  %v2673_v16 = vld [vmem:[%s3552_s1 + $0x610] ss:$8 sps:$4 sm:$0xff]  }
  0x89   :  { %1641 = vmatprep.subr.bf16.mxu0 %v2585_v17  ;;  %v2678_v17 = vld [vmem:[%s3552_s1 + $0x624] ss:$8 sps:$4 sm:$0xff]  }
  0x8b   :  { %1513 = vmatpush1.bf16.msra.mxu1 %v2580_v18  ;;  %v2676_v18 = vld [vmem:[%s3552_s1 + $0x620] ss:$8 sps:$4 sm:$0xff]  }
  0x8c   :  { %1642 = vmatpush1.bf16.msra.mxu0 %v2583_v20  ;;  %1514 = vmatprep.subr.bf16.mxu1 %v2588_v22  ;;  %v2679_v20 = vld [vmem:[%s3552_s1 + $0x630] ss:$8 sps:$4 sm:$0xff]   ;;  %v2682_v22 = vld [vmem:[%s3552_s1 + $0x640] ss:$8 sps:$4 sm:$0xff]  }
  0x8d   :  { %1643 = vmatprep.subr.bf16.mxu0 %v2591_v23  ;;  %v2687_v23 = vld [vmem:[%s3552_s1 + $0x654] ss:$8 sps:$4 sm:$0xff]  }
  0x8f   :  { %1515 = vmatpush1.bf16.msra.mxu1 %v2586_v24  ;;  %v2685_v24 = vld [vmem:[%s3552_s1 + $0x650] ss:$8 sps:$4 sm:$0xff]  }
  0x90   :  { %1644 = vmatpush1.bf16.msra.mxu0 %v2589_v25  ;;  %1516 = vmatprep.subr.bf16.mxu1 %v2594_v26  ;;  %v2690_v25 = vld [vmem:[%s3552_s1 + $0x664] ss:$8 sps:$4 sm:$0xff]   ;;  %v2688_v26 = vld [vmem:[%s3552_s1 + $0x660] ss:$8 sps:$4 sm:$0xff]  }
  0x91   :  { %1645 = vmatprep.subr.bf16.mxu0 %v2597_v27  ;;  %v2693_v27 = vld [vmem:[%s3552_s1 + $0x674] ss:$8 sps:$4 sm:$0xff]  }
  0x93   :  { %1517 = vmatpush1.bf16.msra.mxu1 %v2592_v28  ;;  %v2691_v28 = vld [vmem:[%s3552_s1 + $0x670] ss:$8 sps:$4 sm:$0xff]  }
  0x94   :  { %1646 = vmatpush1.bf16.msra.mxu0 %v2595_v29  ;;  %1518 = vmatprep.subr.bf16.mxu1 %v2600_v30  ;;  %v2696_v29 = vld [vmem:[%s3552_s1 + $0x684] ss:$8 sps:$4 sm:$0xff]   ;;  %v2694_v30 = vld [vmem:[%s3552_s1 + $0x680] ss:$8 sps:$4 sm:$0xff]  }
  0x95   :  { %1647 = vmatprep.subr.bf16.mxu0 %v2603_v31  ;;  %v2699_v31 = vld [vmem:[%s3552_s1 + $0x694] ss:$8 sps:$4 sm:$0xff]  }
  0x97   :  { %1519 = vmatpush1.bf16.msra.mxu1 %v2598_v32  ;;  %v2697_v32 = vld [vmem:[%s3552_s1 + $0x690] ss:$8 sps:$4 sm:$0xff]  }
  0x98   :  { %1648 = vmatpush1.bf16.msra.mxu0 %v2601_v33  ;;  %1520 = vmatprep.subr.bf16.mxu1 %v2606_v34  ;;  %v2702_v33 = vld [vmem:[%s3552_s1 + $0x6a4] ss:$8 sps:$4 sm:$0xff]   ;;  %v2700_v34 = vld [vmem:[%s3552_s1 + $0x6a0] ss:$8 sps:$4 sm:$0xff]  }
  0x99   :  { %1649 = vmatprep.subr.bf16.mxu0 %v2609_v35  ;;  %v2705_v35 = vld [vmem:[%s3552_s1 + $0x6b4] ss:$8 sps:$4 sm:$0xff]  }
  0x9b   :  { %1521 = vmatpush1.bf16.msra.mxu1 %v2604_v36  ;;  %v2703_v36 = vld [vmem:[%s3552_s1 + $0x6b0] ss:$8 sps:$4 sm:$0xff]  }
  0x9c   :  { %1650 = vmatpush1.bf16.msra.mxu0 %v2607_v37  ;;  %1522 = vmatprep.subr.bf16.mxu1 %v2612_v38  ;;  %v2708_v37 = vld [vmem:[%s3553_s0 + $0x30] ss:$56 sps:$4 sm:$0xff]   ;;  %v2709_v38 = vld [vmem:[%s3554_s3 + $0x40] sm:$0xff]  }
  0x9d   :  { %1651 = vmatprep.subr.bf16.mxu0 %v2615_v39  ;;  %v2710_v39 = vld [vmem:[%s3554_s3] sm:$0xff]  }
  0x9f   :  { %1523 = vmatpush1.bf16.msra.mxu1 %v2610_v40  ;;  %v2711_v40 = vld [vmem:[%s3554_s3 + $0x48] sm:$0xff]  }
  0xa0   :  { %1652 = vmatpush1.bf16.msra.mxu0 %v2613_v41  ;;  %1524 = vmatprep.subr.bf16.mxu1 %v2618_v42  ;;  %v2712_v41 = vld [vmem:[%s3554_s3 + $0x8] sm:$0xff]   ;;  %v2713_v42 = vld [vmem:[%s3554_s3 + $0x50] sm:$0xff]  }
  0xa1   :  { %1653 = vmatprep.subr.bf16.mxu0 %v2621_v43  ;;  %v2714_v43 = vld [vmem:[%s3554_s3 + $0x10] sm:$0xff]  }
  0xa3   :  { %1525 = vmatpush1.bf16.msra.mxu1 %v2616_v44  ;;  %v2715_v44 = vld [vmem:[%s3554_s3 + $0x58] sm:$0xff]  }
  0xa4   :  { %1654 = vmatpush1.bf16.msra.mxu0 %v2619_v45  ;;  %1526 = vmatprep.subr.bf16.mxu1 %v2624_v46  ;;  %v2716_v45 = vld [vmem:[%s3554_s3 + $0x18] sm:$0xff]   ;;  %v2717_v46 = vld [vmem:[%s3554_s3 + $0x60] sm:$0xff]  }
  0xa5   :  { %1655 = vmatprep.subr.bf16.mxu0 %v2627_v47  ;;  %v2718_v47 = vld [vmem:[%s3554_s3 + $0x20] sm:$0xff]  }
  0xa7   :  { %1527 = vmatpush1.bf16.msra.mxu1 %v2622_v48  ;;  %v2719_v48 = vld [vmem:[%s3554_s3 + $0x68] sm:$0xff]  }
  0xa8   :  { %1656 = vmatpush1.bf16.msra.mxu0 %v2625_v49  ;;  %1528 = vmatprep.subr.bf16.mxu1 %v2630_v50  ;;  %v2720_v49 = vld [vmem:[%s3554_s3 + $0x28] sm:$0xff]   ;;  %v2721_v50 = vld [vmem:[%s3554_s3 + $0x70] sm:$0xff]  }
  0xa9   :  { %1657 = vmatprep.subr.bf16.mxu0 %v2633_v51  ;;  %v2722_v51 = vld [vmem:[%s3554_s3 + $0x30] sm:$0xff]  }
  0xab   :  { %1529 = vmatpush1.bf16.msra.mxu1 %v2628_v52  ;;  %v2723_v52 = vld [vmem:[%s3554_s3 + $0x78] sm:$0xff]  }
  0xac   :  { %1658 = vmatpush1.bf16.msra.mxu0 %v2631_v53  ;;  %1530 = vmatprep.subr.bf16.mxu1 %v2636_v54  ;;  %v2724_v53 = vld [vmem:[%s3554_s3 + $0x38] sm:$0xff]   ;;  %v2733_v54 = vmov 0.0  }
  0xad   :  { %1659 = vmatprep.subr.bf16.mxu0 %v2639_v55 }
  0xaf   :  { %1531 = vmatpush1.bf16.msra.mxu1 %v2634_v56 }
  0xb0   :  { %1660 = vmatpush1.bf16.msra.mxu0 %v2637_v57  ;;  %1532 = vmatprep.subr.bf16.mxu1 %v2642_v58 }
  0xb1   :  { %1661 = vmatprep.subr.bf16.mxu0 %v2645_v59  ;;  %v259_v59 = vlaneseq }
  0xb3   :  { %1533 = vmatpush1.bf16.msra.mxu1 %v2640_v60  ;;  %v260_v60 = vshrl.u32 %v259_v59, 7 }
  0xb4   :  { %1662 = vmatpush1.bf16.msra.mxu0 %v2643_v61  ;;  %1534 = vmatprep.subr.bf16.mxu1 %v2648_v62  ;;  %v257_v62 = vld [vmem:[%s3556_s2] sm:$0x3] }
  0xb5   :  { %1663 = vmatprep.subr.bf16.mxu0 %v2651_v63  ;;  %v261_v61 = vsub.s32 0, %v260_v60  ;;  %v265_v63 = vsub.s32 1, %v260_v60 }
  0xb7   :  { %1535 = vmatpush1.bf16.msra.mxu1 %v2646_v0  ;;  %v262_v0 = vrot.slane %v257_v62, %v261_v61 }
  0xb8   :  { %1664 = vmatpush1.bf16.msra.mxu0 %v2649_v1  ;;  %1536 = vmatprep.subr.bf16.mxu1 %v2654_v2  ;;  %v266_v1 = vrot.slane %v257_v62, %v265_v63 }
  0xb9   :  { %1665 = vmatprep.subr.bf16.mxu0 %v2657_v3 }
  0xbb   :  { %1537 = vmatpush1.bf16.msra.mxu1 %v2652_v4 }
  0xbc   :  { %1666 = vmatpush1.bf16.msra.mxu0 %v2655_v5  ;;  %1538 = vmatprep.subr.bf16.mxu1 %v2660_v6 }
  0xbd   :  { %1667 = vmatprep.subr.bf16.mxu0 %v2663_v7 }
  0xbf   :  { %1539 = vmatpush1.bf16.msra.mxu1 %v2658_v8 }
  0xc0   :  { %1668 = vmatpush1.bf16.msra.mxu0 %v2661_v9  ;;  %2283 = vmatprep.subr.bf16.mxu1 %v2709_v38 }
  0xc1   :  { %1680 = vmatprep.subr.bf16.mxu0 %v2672_v10 }
  0xc2   :  { %1541 = vmatmul.mubr.bf16.vlgmr.msra.gmra.mrb[0].mxu1 %v2664_v11 }
  0xc3   :  { %1670 = vmatmul.mubr.bf16.vlgmr.msra.gmra.mrb[0].mxu0 %v2667_v12  ;;  %2284 = vmatpush3.bf16.msra.mxu1 %v2710_v39 }
  0xc4   :  { %1681 = vmatpush1.bf16.msra.mxu0 %v2670_v13  ;;  %2256 = vmatprep.mubr.msk.bf16.mxu0 %vm1418_vm0, %v2706_v14 }
  0xc5   :  { %1682 = vmatprep.subr.bf16.mxu0 %v2675_v15  ;;  %2285 = vmatprep.subr.bf16.mxu1 %v2711_v40  ;;  %v2274_v40 = vld [vmem:[%s3558_s6] ss:$0 sm:$0xff] }
  0xc7   :  { %2286 = vmatpush3.bf16.msra.mxu1 %v2712_v41 }
  0xc8   :  { %1683 = vmatpush1.bf16.msra.mxu0 %v2673_v16  ;;  %2287 = vmatprep.subr.bf16.mxu1 %v2713_v42 }
  0xc9   :  { %1684 = vmatprep.subr.bf16.mxu0 %v2678_v17 }
  0xcb   :  { %2288 = vmatpush3.bf16.msra.mxu1 %v2714_v43 }
  0xcc   :  { %1685 = vmatpush1.bf16.msra.mxu0 %v2676_v18  ;;  %2289 = vmatprep.subr.bf16.mxu1 %v2715_v44 }
  0xcd   :  { %1686 = vmatprep.subr.bf16.mxu0 %v2681_v19 }
  0xcf   :  { %2290 = vmatpush3.bf16.msra.mxu1 %v2716_v45 }
  0xd0   :  { %1687 = vmatpush1.bf16.msra.mxu0 %v2679_v20  ;;  %2291 = vmatprep.subr.bf16.mxu1 %v2717_v46  ;;  %v2725_v20 = vld [vmem:[%s3555_s5] sm:$0xff]  }
  0xd1   :  { %1688 = vmatprep.subr.bf16.mxu0 %v2684_v21  ;;  %v2726_v21 = vld [vmem:[%s3555_s5 + $0x8] sm:$0xff]  }
  0xd3   :  { %2292 = vmatpush3.bf16.msra.mxu1 %v2718_v47 }
  0xd4   :  { %1689 = vmatpush1.bf16.msra.mxu0 %v2682_v22  ;;  %2293 = vmatprep.subr.bf16.mxu1 %v2719_v48  ;;  %v2727_v22 = vld [vmem:[%s3555_s5 + $0x10] sm:$0xff]  }
  0xd5   :  { %1690 = vmatprep.subr.bf16.mxu0 %v2687_v23  ;;  %v2728_v23 = vld [vmem:[%s3555_s5 + $0x18] sm:$0xff]  }
  0xd7   :  { %2294 = vmatpush3.bf16.msra.mxu1 %v2720_v49 }
  0xd8   :  { %1691 = vmatpush1.bf16.msra.mxu0 %v2685_v24  ;;  %2295 = vmatprep.subr.bf16.mxu1 %v2721_v50  ;;  %v2729_v24 = vld [vmem:[%s3555_s5 + $0x20] sm:$0xff]  }
  0xd9   :  { %1692 = vmatprep.subr.bf16.mxu0 %v2690_v25  ;;  %v2730_v25 = vld [vmem:[%s3555_s5 + $0x28] sm:$0xff]  }
  0xdb   :  { %2296 = vmatpush3.bf16.msra.mxu1 %v2722_v51 }
  0xdc   :  { %1693 = vmatpush1.bf16.msra.mxu0 %v2688_v26  ;;  %2297 = vmatprep.subr.bf16.mxu1 %v2723_v52  ;;  %v2731_v26 = vld [vmem:[%s3555_s5 + $0x30] sm:$0xff]  }
  0xdd   :  { %1694 = vmatprep.subr.bf16.mxu0 %v2693_v27  ;;  %v2732_v27 = vld [vmem:[%s3555_s5 + $0x38] sm:$0xff]  }
  0xdf   :  { %2298 = vmatpush3.bf16.msra.mxu1 %v2724_v53 }
  0xe0   :  { %1695 = vmatpush1.bf16.msra.mxu0 %v2691_v28  ;;  %2314 = vmatprep.subr.bf16.mxu1 %v2733_v54 }
  0xe1   :  { %1696 = vmatprep.subr.bf16.mxu0 %v2696_v29  ;;  %v2257_v29 = vld [vmem:[%s3557_s4] ss:$0 sm:$0xff] }
  0xe4   :  { %1697 = vmatpush1.bf16.msra.mxu0 %v2694_v30 }
  0xe5   :  { %1698 = vmatprep.subr.bf16.mxu0 %v2699_v31 }
  0xe8   :  { %1699 = vmatpush1.bf16.msra.mxu0 %v2697_v32 }
  0xe9   :  { %1700 = vmatprep.subr.bf16.mxu0 %v2702_v33 }
  0xec   :  { %1701 = vmatpush1.bf16.msra.mxu0 %v2700_v34 }
  0xed   :  { %1702 = vmatprep.subr.bf16.mxu0 %v2705_v35 }
  0xf0   :  { %1703 = vmatpush1.bf16.msra.mxu0 %v2703_v36 }
  0xf3   :  { %1713 = vmatmul.mubr.bf16.vlgmr.msra.gmra.mrb[0].mxu0 %v2708_v37 }
 0x195   :  { %v1542_v55 = vpop.f32.mrb[0].mxu1 }
 0x196   :  { %v1544_v56 = vpop.f32.mrb[1].mxu1  ;;  %v2334_v2 = vadd.f32 %v1542_v55, %v262_v0 }
 0x197   :  { %v1546_v57 = vpop.f32.mrb[2].mxu1  ;;  %v2336_v3 = vadd.f32 %v1544_v56, %v266_v1 }
 0x198   :  { %v1548_v58 = vpop.f32.mrb[3].mxu1  ;;  %v2338_v5 = vadd.f32 %v1546_v57, %v262_v0 }
 0x199   :  { %v2340_v8 = vadd.f32 %v1548_v58, %v266_v1 }
 0x1c6   :  { %v1714_v4 = vpop.f32.mrb[0].mxu0 }
 0x1c7   :  { %v2335_v6 = vadd.f32 %v2334_v2, %v1714_v4  ;;  %v1716_v7 = vpop.f32.mrb[1].mxu0 }
 0x1c8   :  { %v2337_v9 = vadd.f32 %v2336_v3, %v1716_v7  ;;  %v1718_v10 = vpop.f32.mrb[2].mxu0 }
 0x1c9   :  { %v2339_v11 = vadd.f32 %v2338_v5, %v1718_v10  ;;  %v1720_v12 = vpop.f32.mrb[3].mxu0  ;;  %v1723_v14 = vmax.f32 %v2335_v6, 0.0 }
 0x1ca   :  { %v2341_v13 = vadd.f32 %v2340_v8, %v1720_v12  ;;  %v1724_v16 = vmax.f32 %v2337_v9, 0.0 }
 0x1cb   :  { %v1725_v15 = vmax.f32 %v2339_v11, 0.0 }
 0x1cc   :  { %v1726_v17 = vmax.f32 %v2341_v13, 0.0 }
 0x1cd   :  { %v1727_v18 = vpack.c.bf16 %v1725_v15, %v1723_v14 }
 0x1ce   :  { %v1728_v19 = vpack.c.bf16 %v1726_v17, %v1724_v16 }
 0x1d0   :  { %1896 = vmatprep.mubr.bf16.mxu1 %v1728_v19 }
 0x1d1   :  { %1897 = vmatmul.mubr.bf16.vlgmr.msra.gmra.mrb[4].mxu1 %v1727_v18 }
 0x1d2   :  { %2315 = vmatpush3.bf16.msra.mxu1 %v2725_v20  ;;  %2330 = vmatprep.mubr.msk.bf16.mxu1 %vm2734_vm1, %v2733_v54 }
 0x1d3   :  { %2316 = vmatprep.subr.bf16.mxu1 %v2733_v54 }
 0x1d6   :  { %2317 = vmatpush3.bf16.msra.mxu1 %v2726_v21 }
 0x1d7   :  { %2318 = vmatprep.subr.bf16.mxu1 %v2733_v54 }
 0x1da   :  { %2319 = vmatpush3.bf16.msra.mxu1 %v2727_v22 }
 0x1db   :  { %2320 = vmatprep.subr.bf16.mxu1 %v2733_v54 }
 0x1de   :  { %2321 = vmatpush3.bf16.msra.mxu1 %v2728_v23 }
 0x1df   :  { %2322 = vmatprep.subr.bf16.mxu1 %v2733_v54 }
 0x1e2   :  { %2323 = vmatpush3.bf16.msra.mxu1 %v2729_v24 }
 0x1e3   :  { %2324 = vmatprep.subr.bf16.mxu1 %v2733_v54 }
 0x1e6   :  { %2325 = vmatpush3.bf16.msra.mxu1 %v2730_v25 }
 0x1e7   :  { %2326 = vmatprep.subr.bf16.mxu1 %v2733_v54 }
 0x1ea   :  { %2327 = vmatpush3.bf16.msra.mxu1 %v2731_v26 }
 0x1eb   :  { %2328 = vmatprep.subr.bf16.mxu1 %v2733_v54 }
 0x1ee   :  { %2329 = vmatpush3.bf16.msra.mxu1 %v2732_v27 }
 0x2a4   :  { %v2299_v28 = vpop.f32.mrb[4].mxu1 }
 0x2a5   :  { %v2300_v30 = vpop.f32.mrb[5].mxu1 }
 0x2a6   :  { %v2301_v31 = vadd.f32 %v2300_v30, %v2299_v28  ;;  %v2302_v32 = vpop.f32.mrb[6].mxu1 }
 0x2a7   :  { %v2303_v33 = vpop.f32.mrb[7].mxu1 }
 0x2a8   :  { %v1899_v34 = vadd.f32 %v2301_v31, %v2257_v29  ;;  %v2304_v35 = vadd.f32 %v2303_v33, %v2302_v32 }
 0x2aa   :  { %v1902_v36 = vadd.f32 %v2304_v35, %v2257_v29  ;;  %v1905_v37 = vmax.f32 %v1899_v34, 0.0 }
 0x2ac   :  { %v1906_v38 = vmax.f32 %v1902_v36, 0.0 }
 0x2ae   :  { %v1907_v39 = vpack.c.bf16 %v1906_v38, %v1905_v37 }
 0x2b0   :  { %2331 = vmatmul.mubr.bf16.vlgmr.msra.gmra.mrb[8].mxu1 %v1907_v39 }
 0x383   :  { %v2013_v41 = vpop.f32.mrb[8].mxu1 }
 0x384   :  { %v2014_v42 = vadd.f32 %v2274_v40, %v2013_v41  ;;  %v2332_v43 = vpop.f32.mrb[9].mxu1 }
 0x385   :  { %v2016_v44 = vpop.f32.mrb[10].mxu1 }
 0x386   :  { %2020 = vst [vmem:[%s3559_s7] sm:$0xff] %v2014_v42  ;;  %v2017_v45 = vadd.f32 %v2274_v40, %v2016_v44  ;;  %v2333_v46 = vpop.f32.mrb[11].mxu1 }
 0x388   :  { %2021 = vst [vmem:[%s3559_s7 + $0x8] sm:$0xff] %v2017_v45 }

// kernel: cnn2d_forward.2
= control target key start
LH: loop header
LB: loop body
LE: loop exit
PB: predicated region body
PF: predicated region fallthrough
CT: control target
= control target key end

     0   :  { %s8640_s18 = smov 0   ;;  %s11926_s0 = inlined_call_operand.vmem [shape: bf16[3136,25], index: 0, kind: input, shape index: {}]   ;;  %s11927_s1 = inlined_call_operand.vmem [shape: bf16[25,32], index: 1, kind: input, shape index: {}]   ;;  %s11928_s2 = inlined_call_operand.vmem [shape: f32[1,32], index: 2, kind: input, shape index: {}]   ;;  %s11929_s3 = inlined_call_operand.vmem [shape: bf16[288,48], index: 3, kind: input, shape index: {}]   ;;  %s11930_s4 = inlined_call_operand.vmem [shape: f32[1,48], index: 4, kind: input, shape index: {}]   ;;  %s11931_s5 = inlined_call_operand.vmem [shape: bf16[672,48], index: 5, kind: output, shape index: {}]  }
   0x1 LB: > { %s7109_s19 = sadd.s32 4294967295, %s8602_s18   ;;  %p7113_p0 = scmp.ge.s32.totalorder %s8602_s18, 1  ;;  %s8602_s18 = sphi %s8640_s18, %s15_s18  }
   0x2   : > { %p188_p1 = scmp.lt.s32.totalorder %s8602_s18, 3 }
   0x4   : > { %p189_p2 = pnand %p7113_p0, %p188_p1 }
   0x6   : > { %192 = sbr.rel (%p189_p2) target bundleno = 1026 (0x402), region = 40 }
   0xd   : > { %v8347_v0 = vld [vmem:[%s11927_s1] sm:$0xff]   ;;  %vm1232_vm0 = vcmask 1043456   ;;  %v8348_v1 = vld [vmem:[%s11927_s1 + $0x8] sm:$0x1f]   ;;  %vm1233_vm1 = vcmask 1044480   ;;  %s216_s24 = smul.u32 196, %s7109_s19 }
   0xe   : > { %8001 = vmatprep.subr.bf16.mxu0 %v8347_v0  ;;  %v8604_v2 = vmov 65535   ;;  %vm937_vm2 = vcmask 203776   ;;  %v8774_v61 = vld [vmem:[%s11928_s2] ss:$0 sm:$0xff]  ;;  %vm2483_vm3 = vsmask.f32 4352 }
   0xf   : > { %8002 = vmatpush3.bf16.msra.mxu0 %v8347_v0  ;;  %v1234_v3 = vsel %vm1232_vm0, 4294967295, %v8604_v2  ;;  %p217_p3 = scmp.lt.s32.totalorder %s216_s24, 391  ;;  %vm2350_vm4 = vsmask.f32 7424  ;;  %s8606_s17 = smov 96   ;;  %vm2412_vm5 = vcmask 1046528  }
  0x10   : > { %v1235_v4 = vsel %vm1233_vm1, %v1234_v3, 0  ;;  %vm2424_vm6 = vsmask.f32 6400  ;;  %vm2527_vm7 = vcmask 261120   ;;  %vm2534_vm8 = vcmask 523264   ;;  %s10966_s29 = smul.u32 42, %s7109_s19 }
  0x11   : > { %v1237_v5 = vand.u32 %v8348_v1, %v1235_v4  ;;  %s12040_s24 = smov (!%p217_p3, %s216_s24), 391  ;;  %vm2541_vm9 = vcmask 785408   ;;  %vm8609_vm10 = vmmov 0   ;;  %vm3160_vm11 = vcmask 1045504  }
  0x12   : > { %s7114_s25 = sshll.u32 %s12040_s24, 2  ;;  %s8605_s24 = smov 64   ;;  %vm4063_vm12 = vcmask 1041408   ;;  %vm2879_vm13 = vcmask 388096   ;;  %vm2885_vm14 = vcmask 385024  }
  0x13   : > { %8003 = vmatprep.subr.bf16.mxu0 %v1237_v5  ;;  %s8660_s28 = scalar_lea.vmem %s11926_s0, %s7114_s25  ;;  %s8607_s25 = smov 32   ;;  %vm2886_vm15 = vsmask.f32 256 }
  0x14   : > { %8004 = vmatpush3.bf16.msra.mxu0 %v1237_v5  ;;  %v8349_v6 = vld [vmem:[%s8660_s28] sm:$0xff]   ;;  %v8350_v7 = vld [vmem:[%s8660_s28 + $0x8] sm:$0xff]   ;;  %v8351_v8 = vld [vmem:[%s8660_s28 + $0x10] sm:$0xff]   ;;  %p223_p4 = scmp.lt.s32.totalorder %s10966_s29, 83 }
  0x15   : > { %8005 = vmatprep.mubr.msk.bf16.mxu0 %vm937_vm2, %v8349_v6  ;;  %v8352_v9 = vld [vmem:[%s8660_s28 + $0x18] sm:$0xff]   ;;  %v8353_v10 = vld [vmem:[%s8660_s28 + $0x20] sm:$0xff]   ;;  %v8354_v11 = vld [vmem:[%s8660_s28 + $0x28] sm:$0xff]  }
  0x16   : > { %v8355_v12 = vld [vmem:[%s8660_s28 + $0x30] sm:$0xff]   ;;  %v8356_v13 = vld [vmem:[%s8660_s28 + $0x38] sm:$0xff]   ;;  %v8357_v14 = vld [vmem:[%s8660_s28 + $0x40] sm:$0xff]   ;;  %s12042_s29 = smov (!%p223_p4, %s10966_s29), 83 }
  0x17   : > { %8006 = vmatmul.mubr.msk.bf16.vlgmr.msra.gmra.mrb[0].mxu0 %vm937_vm2, %v8350_v7  ;;  %v8358_v15 = vld [vmem:[%s8660_s28 + $0x48] sm:$0xff]   ;;  %v8359_v16 = vld [vmem:[%s8660_s28 + $0x50] sm:$0xff]   ;;  %v8360_v17 = vld [vmem:[%s8660_s28 + $0x58] sm:$0xff]   ;;  %s7115_s10 = sshll.u32 %s12042_s29, 2 }
  0x18   : > { %8009 = vmatprep.mubr.msk.bf16.mxu0 %vm937_vm2, %v8351_v8  ;;  %v8361_v18 = vld [vmem:[%s8660_s28 + $0x60] sm:$0xff]   ;;  %v8362_v19 = vld [vmem:[%s8660_s28 + $0x68] sm:$0xff]   ;;  %v8363_v20 = vld [vmem:[%s8660_s28 + $0x70] sm:$0xff]   ;;  %s11078_s13 = scalar_lea.vmem %s11931_s5, %s7115_s10 }
  0x19   : > { %v8364_v21 = vld [vmem:[%s8660_s28 + $0x78] sm:$0xff]   ;;  %v8365_v22 = vld [vmem:[%s8660_s28 + $0x80] sm:$0xff]   ;;  %v8366_v23 = vld [vmem:[%s8660_s28 + $0x88] sm:$0xff]  }
  0x1a   : > { %v8367_v24 = vld [vmem:[%s8660_s28 + $0x90] sm:$0xff]   ;;  %v8368_v25 = vld [vmem:[%s8660_s28 + $0x98] sm:$0xff]   ;;  %v8369_v26 = vld [vmem:[%s8660_s28 + $0xa0] sm:$0xff]  }
  0x1b   : > { %v8370_v27 = vld [vmem:[%s8660_s28 + $0xa8] sm:$0xff]   ;;  %v8371_v28 = vld [vmem:[%s8660_s28 + $0xb0] sm:$0xff]   ;;  %v8372_v29 = vld [vmem:[%s8660_s28 + $0xb8] sm:$0xff]  }
  0x1c   : > { %v8373_v30 = vld [vmem:[%s8660_s28 + $0xc0] sm:$0xff]   ;;  %v8374_v31 = vld [vmem:[%s8660_s28 + $0xc8] sm:$0xff]   ;;  %v8375_v32 = vld [vmem:[%s8660_s28 + $0xd0] sm:$0xff]  }
  0x1d   : > { %v8376_v33 = vld [vmem:[%s8660_s28 + $0xd8] sm:$0xff]   ;;  %v8377_v34 = vld [vmem:[%s8660_s28 + $0xe0] sm:$0xff]   ;;  %v8378_v35 = vld [vmem:[%s8660_s28 + $0xe8] sm:$0xff]  }
  0x1e   : > { %v8379_v36 = vld [vmem:[%s8660_s28 + $0xf0] sm:$0xff]   ;;  %v8380_v37 = vld [vmem:[%s8660_s28 + $0xf8] sm:$0xff]   ;;  %v8381_v38 = vld [vmem:[%s8660_s28 + $0x100] sm:$0xff]  }
  0x1f   : > { %8010 = vmatmul.mubr.msk.bf16.gmra.mrb[4].mxu0 %vm937_vm2, %v8352_v9  ;;  %v8382_v39 = vld [vmem:[%s8660_s28 + $0x108] sm:$0xff]   ;;  %v8383_v40 = vld [vmem:[%s8660_s28 + $0x110] sm:$0xff]   ;;  %v8384_v41 = vld [vmem:[%s8660_s28 + $0x118] sm:$0xff]  }
  0x20   : > { %8013 = vmatprep.mubr.msk.bf16.mxu0 %vm937_vm2, %v8353_v10  ;;  %v8385_v42 = vld [vmem:[%s8660_s28 + $0x120] sm:$0xff]   ;;  %v8386_v43 = vld [vmem:[%s8660_s28 + $0x128] sm:$0xff]   ;;  %v8387_v44 = vld [vmem:[%s8660_s28 + $0x130] sm:$0xff]  }
  0x21   : > { %v8388_v45 = vld [vmem:[%s8660_s28 + $0x138] sm:$0xff]   ;;  %v8389_v46 = vld [vmem:[%s8660_s28 + $0x140] sm:$0xff]   ;;  %v8390_v47 = vld [vmem:[%s8660_s28 + $0x148] sm:$0xff]  }
  0x22   : > { %v8391_v48 = vld [vmem:[%s8660_s28 + $0x150] sm:$0xff]   ;;  %v8392_v49 = vld [vmem:[%s8660_s28 + $0x158] sm:$0xff]   ;;  %v8393_v50 = vld [vmem:[%s8660_s28 + $0x160] sm:$0xff]  }
  0x23   : > { %v8394_v51 = vld [vmem:[%s8660_s28 + $0x168] sm:$0xff]   ;;  %v8395_v52 = vld [vmem:[%s8660_s28 + $0x170] sm:$0xff]   ;;  %v8396_v53 = vld [vmem:[%s8660_s28 + $0x178] sm:$0xff]  }
  0x24   : > { %v8397_v54 = vld [vmem:[%s8660_s28 + $0x180] sm:$0xff]   ;;  %v8398_v55 = vld [vmem:[%s8660_s28 + $0x188] sm:$0xff]   ;;  %v8399_v56 = vld [vmem:[%s8660_s28 + $0x190] sm:$0xff]  }
  0x25   : > { %v8400_v57 = vld [vmem:[%s8660_s28 + $0x198] sm:$0xff]   ;;  %v8401_v58 = vld [vmem:[%s8660_s28 + $0x1a0] sm:$0xff]   ;;  %v8402_v59 = vld [vmem:[%s8660_s28 + $0x1a8] sm:$0xff]  }
  0x26   : > { %v8403_v60 = vld [vmem:[%s8660_s28 + $0x1b0] sm:$0xff]   ;;  %v8404_v1 = vld [vmem:[%s8660_s28 + $0x1b8] sm:$0xff]   ;;  %v8405_v4 = vld [vmem:[%s8660_s28 + $0x1c0] sm:$0xff]  }
  0x27   : > { %8014 = vmatmul.mubr.msk.bf16.gmra.mrb[8].mxu0 %vm937_vm2, %v8354_v11  ;;  %v8435_v5 = vld [vmem:[%s11929_s3 + $0x40] sm:$0xff]   ;;  %vm11168_vm1 = vmand %vm2885_vm14, %vm2886_vm15  ;;  %vm3469_vm15 = vsmask.f32 1280 }
  0x28   : > { %8017 = vmatprep.mubr.msk.bf16.mxu0 %vm937_vm2, %v8355_v12  ;;  %v8436_v8 = vld [vmem:[%s11929_s3] sm:$0xff]   ;;  %7689 = vmatprep.subr.bf16.mxu1 %v8435_v5 }
  0x29   : > { %7690 = vmatpush3.bf16.msra.mxu1 %v8436_v8 }
  0x2f   : > { %8018 = vmatmul.mubr.msk.bf16.gmra.mrb[12].mxu0 %vm937_vm2, %v8356_v13 }
  0x30   : > { %8021 = vmatprep.mubr.msk.bf16.mxu0 %vm937_vm2, %v8357_v14  ;;  %v8438_v14 = vld [vmem:[%s11929_s3 + $0x48] sm:$0xff]  }
  0x31   : > { %7691 = vmatprep.subr.bf16.mxu1 %v8438_v14  ;;  %v8443_v14 = vld [vmem:[%s11929_s3 + $0x40] sm:$0xff]  }
  0x32   : > { %7962 = vmatprep.subr.bf16.mxu0 %v8443_v14  ;;  %v8413_v14 = vld [vmem:[%s8660_s28 + $0x200] sm:$0xff]  }
  0x37   : > { %8022 = vmatmul.mubr.msk.bf16.gmra.mrb[16].mxu0 %vm937_vm2, %v8358_v15 }
  0x38   : > { %8025 = vmatprep.mubr.msk.bf16.mxu0 %vm937_vm2, %v8359_v16  ;;  %v8440_v16 = vld [vmem:[%s11929_s3 + $0x8] sm:$0xff]  }
  0x39   : > { %7692 = vmatpush3.bf16.msra.mxu1 %v8440_v16  ;;  %v8452_v16 = vld [vmem:[%s11929_s3 + $0x68] sm:$0xff]  }
  0x3f   : > { %8026 = vmatmul.mubr.msk.bf16.gmra.mrb[20].mxu0 %vm937_vm2, %v8360_v17 }
  0x40   : > { %8029 = vmatprep.mubr.msk.bf16.mxu0 %vm937_vm2, %v8361_v18 }
  0x47   : > { %8030 = vmatmul.mubr.msk.bf16.gmra.mrb[24].mxu0 %vm937_vm2, %v8362_v19 }
  0x48   : > { %8033 = vmatprep.mubr.msk.bf16.mxu0 %vm937_vm2, %v8363_v20 }
  0x4f   : > { %8034 = vmatmul.mubr.msk.bf16.gmra.mrb[28].mxu0 %vm937_vm2, %v8364_v21  ;;  %v8406_v21 = vld [vmem:[%s8660_s28 + $0x1c8] sm:$0xff]  }
  0x50   : > { %8037 = vmatprep.mubr.msk.bf16.mxu0 %vm937_vm2, %v8365_v22 }
  0x57   : > { %8038 = vmatmul.mubr.msk.bf16.gmra.mrb[32].mxu0 %vm937_vm2, %v8366_v23 }
  0x58   : > { %8041 = vmatprep.mubr.msk.bf16.mxu0 %vm937_vm2, %v8367_v24 }
  0x5f   : > { %8042 = vmatmul.mubr.msk.bf16.gmra.mrb[36].mxu0 %vm937_vm2, %v8368_v25 }
  0x60   : > { %8045 = vmatprep.mubr.msk.bf16.mxu0 %vm937_vm2, %v8369_v26 }
  0x67   : > { %8046 = vmatmul.mubr.msk.bf16.gmra.mrb[40].mxu0 %vm937_vm2, %v8370_v27 }
  0x68   : > { %8049 = vmatprep.mubr.msk.bf16.mxu0 %vm937_vm2, %v8371_v28  ;;  %v8407_v28 = vld [vmem:[%s8660_s28 + $0x1d0] sm:$0xff]  }
  0x6f   : > { %8050 = vmatmul.mubr.msk.bf16.gmra.mrb[44].mxu0 %vm937_vm2, %v8372_v29  ;;  %v8441_v29 = vld [vmem:[%s11929_s3 + $0x50] sm:$0xff]  }
  0x70   : > { %8053 = vmatprep.mubr.msk.bf16.mxu0 %vm937_vm2, %v8373_v30  ;;  %7693 = vmatprep.subr.bf16.mxu1 %v8441_v29  ;;  %v8410_v29 = vld [vmem:[%s8660_s28 + $0x1e8] sm:$0xff]  }
  0x77   : > { %8054 = vmatmul.mubr.msk.bf16.gmra.mrb[48].mxu0 %vm937_vm2, %v8374_v31 }
  0x78   : > { %8057 = vmatprep.mubr.msk.bf16.mxu0 %vm937_vm2, %v8375_v32 }
  0x7f   : > { %8058 = vmatmul.mubr.msk.bf16.gmra.mrb[52].mxu0 %vm937_vm2, %v8376_v33 }
  0x80   : > { %8061 = vmatprep.mubr.msk.bf16.mxu0 %vm937_vm2, %v8377_v34  ;;  %v8442_v34 = vld [vmem:[%s11929_s3 + $0x10] sm:$0xff]  }
  0x81   : > { %7694 = vmatpush3.bf16.msra.mxu1 %v8442_v34 }
  0x87   : > { %8062 = vmatmul.mubr.msk.bf16.gmra.mrb[56].mxu0 %vm937_vm2, %v8378_v35 }
  0x88   : > { %8065 = vmatprep.mubr.msk.bf16.mxu0 %vm937_vm2, %v8379_v36 }
  0x8f   : > { %8066 = vmatmul.mubr.msk.bf16.gmra.mrb[60].mxu0 %vm937_vm2, %v8380_v37 }
  0x90   : > { %8069 = vmatprep.mubr.msk.bf16.mxu0 %vm937_vm2, %v8381_v38 }
  0x97   : > { %8070 = vmatmul.mubr.msk.bf16.gmra.mrb[64].mxu0 %vm937_vm2, %v8382_v39 }
  0x98   : > { %8073 = vmatprep.mubr.msk.bf16.mxu0 %vm937_vm2, %v8383_v40 }
  0x9f   : > { %8074 = vmatmul.mubr.msk.bf16.gmra.mrb[68].mxu0 %vm937_vm2, %v8384_v41 }
  0xa0   : > { %8077 = vmatprep.mubr.msk.bf16.mxu0 %vm937_vm2, %v8385_v42 }
  0xa7   : > { %8078 = vmatmul.mubr.msk.bf16.gmra.mrb[72].mxu0 %vm937_vm2, %v8386_v43 }
  0xa8   : > { %8081 = vmatprep.mubr.msk.bf16.mxu0 %vm937_vm2, %v8387_v44 }
  0xaf   : > { %8082 = vmatmul.mubr.msk.bf16.gmra.mrb[76].mxu0 %vm937_vm2, %v8388_v45  ;;  %v8446_v45 = vld [vmem:[%s11929_s3 + $0x58] sm:$0xff]  }
  0xb0   : > { %8085 = vmatprep.mubr.msk.bf16.mxu0 %vm937_vm2, %v8389_v46  ;;  %7695 = vmatprep.subr.bf16.mxu1 %v8446_v45 }
  0xb7   : > { %8086 = vmatmul.mubr.msk.bf16.gmra.mrb[80].mxu0 %vm937_vm2, %v8390_v47  ;;  %v8448_v47 = vld [vmem:[%s11929_s3 + $0x18] sm:$0xff]  }
  0xb8   : > { %8089 = vmatprep.mubr.msk.bf16.mxu0 %vm937_vm2, %v8391_v48  ;;  %7696 = vmatpush3.bf16.msra.mxu1 %v8448_v47 }
  0xbf   : > { %8090 = vmatmul.mubr.msk.bf16.gmra.mrb[84].mxu0 %vm937_vm2, %v8392_v49 }
  0xc0   : > { %8093 = vmatprep.mubr.msk.bf16.mxu0 %vm937_vm2, %v8393_v50 }
  0xc7   : > { %8094 = vmatmul.mubr.msk.bf16.gmra.mrb[88].mxu0 %vm937_vm2, %v8394_v51 }
  0xc8   : > { %8097 = vmatprep.mubr.msk.bf16.mxu0 %vm937_vm2, %v8395_v52 }
  0xcf   : > { %8098 = vmatmul.mubr.msk.bf16.gmra.mrb[92].mxu0 %vm937_vm2, %v8396_v53 }
  0xd0   : > { %8101 = vmatprep.mubr.msk.bf16.mxu0 %vm937_vm2, %v8397_v54  ;;  %v8408_v54 = vld [vmem:[%s8660_s28 + $0x1d8] sm:$0xff]  }
  0xd7   : > { %8102 = vmatmul.mubr.msk.bf16.gmra.mrb[96].mxu0 %vm937_vm2, %v8398_v55 }
  0xd8   : > { %8105 = vmatprep.mubr.msk.bf16.mxu0 %vm937_vm2, %v8399_v56 }
  0xdf   : > { %8106 = vmatmul.mubr.msk.bf16.gmra.mrb[100].mxu0 %vm937_vm2, %v8400_v57 }
  0xe0   : > { %8109 = vmatprep.mubr.msk.bf16.mxu0 %vm937_vm2, %v8401_v58 }
  0xe7   : > { %8110 = vmatmul.mubr.msk.bf16.gmra.mrb[104].mxu0 %vm937_vm2, %v8402_v59 }
  0xe8   : > { %8113 = vmatprep.mubr.msk.bf16.mxu0 %vm937_vm2, %v8403_v60  ;;  %v8409_v60 = vld [vmem:[%s8660_s28 + $0x1e0] sm:$0xff]  }
  0xea   : > { %v8007_v62 = vpop.f32.mrb[0].mxu0 }
  0xeb   : > { %v1282_v63 = vadd.f32 %v8007_v62, %v8774_v61  ;;  %v1273_v0 = vpop.f32.mrb[1].mxu0  ;;  %v8449_v62 = vld [vmem:[%s11929_s3 + $0x60] sm:$0xff]  }
  0xec   : > { %v1274_v2 = vadd.f32 %v8774_v61, %v1273_v0  ;;  %v8008_v3 = vpop.f32.mrb[2].mxu0  ;;  %7697 = vmatprep.subr.bf16.mxu1 %v8449_v62 }
  0xed   : > { %v1285_v6 = vadd.f32 %v8008_v3, %v8774_v61  ;;  %v1276_v7 = vpop.f32.mrb[3].mxu0  ;;  %v2058_v10 = vmax.f32 %v1282_v63, 0.0 }
  0xee   : > { %v1277_v9 = vadd.f32 %v8774_v61, %v1276_v7  ;;  %v2056_v12 = vmax.f32 %v1274_v2, 0.0  ;;  %v8450_v2 = vld [vmem:[%s11929_s3 + $0x20] sm:$0xff]  }
  0xef   : > { %v2059_v11 = vmax.f32 %v1285_v6, 0.0  ;;  %8114 = vmatmul.mubr.msk.bf16.gmra.mrb[108].mxu0 %vm937_vm2, %v8404_v1  ;;  %7698 = vmatpush3.bf16.msra.mxu1 %v8450_v2 }
  0xf0   : > { %v2057_v13 = vmax.f32 %v1277_v9, 0.0  ;;  %8117 = vmatprep.mubr.msk.bf16.mxu0 %vm937_vm2, %v8405_v4  ;;  %7699 = vmatprep.subr.bf16.mxu1 %v8452_v16 }
  0xf1   : > { %v8794_v15 = vpack.c.bf16 %v2059_v11, %v2058_v10 }
  0xf2   : > { %v8799_v17 = vpack.c.bf16 %v2057_v13, %v2056_v12  ;;  %v8011_v18 = vpop.f32.mrb[4].mxu0 }
  0xf3   : > { %v1298_v19 = vadd.f32 %v8011_v18, %v8774_v61  ;;  %v1289_v20 = vpop.f32.mrb[5].mxu0  ;;  %v2388_v22 = vshll.u32 %v8794_v15, 16  ;;  %v2392_v23 = vshrl.u32 %v8794_v15, 16 }
  0xf4   : > { %v1290_v24 = vadd.f32 %v8774_v61, %v1289_v20  ;;  %v8012_v25 = vpop.f32.mrb[6].mxu0  ;;  %v2381_v26 = vshrl.u32 %v8799_v17, 16  ;;  %v2383_v27 = vshll.u32 %v8799_v17, 16  ;;  %v8444_v20 = vld [vmem:[%s11929_s3] sm:$0xff]  }
  0xf5   : > { %v1301_v30 = vadd.f32 %v8012_v25, %v8774_v61  ;;  %v1292_v31 = vpop.f32.mrb[7].mxu0  ;;  %v2487_v32 = vrot.slane %v2392_v23, 3  ;;  %v2488_v33 = vrot.slane %v2388_v22, 4  ;;  %v2062_v38 = vmax.f32 %v1298_v19, 0.0  ;;  %7963 = vmatpush3.bf16.msra.mxu0 %v8444_v20 }
  0xf6   : > { %v1293_v35 = vadd.f32 %v8774_v61, %v1292_v31  ;;  %v2484_v36 = vrot.slane %v2381_v26, 3  ;;  %v2485_v37 = vrot.slane %v2383_v27, 4  ;;  %v2385_v41 = vrot.slane %v2383_v27, 1 }
  0xf7   : > { %v2063_v39 = vmax.f32 %v1301_v30, 0.0  ;;  %8118 = vmatmul.mubr.msk.bf16.gmra.mrb[112].mxu0 %vm937_vm2, %v8406_v21  ;;  %v2489_v40 = vor.u32 %v2488_v33, %v2487_v32  ;;  %v2060_v42 = vmax.f32 %v1290_v24, 0.0  ;;  %v2390_v57 = vrot.slane %v2388_v22, 1  ;;  %v8454_v21 = vld [vmem:[%s11929_s3 + $0x28] sm:$0xff]  }
  0xf8   : > { %v2061_v43 = vmax.f32 %v1293_v35, 0.0  ;;  %v2486_v44 = vor.u32 %v2485_v37, %v2484_v36  ;;  %8121 = vmatprep.mubr.msk.bf16.mxu0 %vm937_vm2, %v8407_v28  ;;  %v2386_v51 = vor.u32 %v2385_v41, %v2381_v26  ;;  %v8411_v37 = vld [vmem:[%s8660_s28 + $0x1f0] sm:$0xff]   ;;  %7700 = vmatpush3.bf16.msra.mxu1 %v8454_v21 }
  0xf9   : > { %v8824_v46 = vpack.c.bf16 %v2063_v39, %v2062_v38  ;;  %v2394_v13 = vor.u32 %v2392_v23, %v2390_v57  ;;  %v8455_v38 = vld [vmem:[%s11929_s3 + $0x70] sm:$0xff]  }
  0xfa   : > { %v8829_v48 = vpack.c.bf16 %v2061_v43, %v2060_v42  ;;  %v8015_v49 = vpop.f32.mrb[8].mxu0  ;;  %v2490_v50 = vsel %vm2483_vm3, %v2486_v44, %v2489_v40  ;;  %v2391_v4 = vsel %vm2350_vm4, %v2386_v51, %v2390_v57  ;;  %v8456_v42 = vld [vmem:[%s11929_s3 + $0x30] sm:$0xff]   ;;  %7701 = vmatprep.subr.bf16.mxu1 %v8455_v38  ;;  %v8458_v57 = vld [vmem:[%s11929_s3 + $0x78] sm:$0xff]  }
  0xfb   : > { %v1314_v52 = vadd.f32 %v8015_v49, %v8774_v61  ;;  %v1305_v53 = vpop.f32.mrb[9].mxu0  ;;  %2495 = vrot.lane.b32.xlu1 %v2490_v50, %s8605_s24  ;;  %v2354_v63 = vshll.u32 %v8824_v46, 16  ;;  %v2352_v26 = vshrl.u32 %v8824_v46, 16  ;;  %v11933_v34 = vrot.slane %v8824_v46, 4 }
  0xfc   : > { %v1306_v55 = vadd.f32 %v8774_v61, %v1305_v53  ;;  %v8016_v56 = vpop.f32.mrb[10].mxu0  ;;  %v2396_v58 = vshll.u32 %v8829_v48, 16  ;;  %v2400_v59 = vshrl.u32 %v8829_v48, 16  ;;  %7702 = vmatpush3.bf16.msra.mxu1 %v8456_v42  ;;  %v8414_v42 = vld [vmem:[%s8660_s28 + $0x208] sm:$0xff]  }
  0xfd   : > { %v1317_v0 = vadd.f32 %v8016_v56, %v8774_v61  ;;  %v1308_v1 = vpop.f32.mrb[11].mxu0  ;;  %v2066_v7 = vmax.f32 %v1314_v52, 0.0  ;;  %v2356_v18 = vrot.slane %v2354_v63, 1  ;;  %7703 = vmatprep.subr.bf16.mxu1 %v8458_v57 }
  0xfe   : > { %v1309_v3 = vadd.f32 %v8774_v61, %v1308_v1  ;;  %v2491_v5 = vrot.slane %v2400_v59, 3  ;;  %v2492_v6 = vrot.slane %v2396_v58, 4  ;;  %v8853_v9 = vrot.slane %v2396_v58, 1 }
  0xff   : > { %v2067_v8 = vmax.f32 %v1317_v0, 0.0  ;;  %8122 = vmatmul.mubr.msk.bf16.gmra.mrb[116].mxu0 %vm937_vm2, %v8408_v54  ;;  %2403 = vrot.lane.b32.xlu1 %v2391_v4, %s8605_s24  ;;  %v2064_v10 = vmax.f32 %v1306_v55, 0.0  ;;  %v2357_v41 = vor.u32 %v2356_v18, %v2352_v26 }
 0x100   : > { %v2065_v11 = vmax.f32 %v1309_v3, 0.0  ;;  %v8855_v12 = vor.u32 %v2492_v6, %v2491_v5  ;;  %8125 = vmatprep.mubr.msk.bf16.mxu0 %vm937_vm2, %v8409_v60  ;;  %v2399_v25 = vsel %vm2350_vm4, %v2394_v13, %v8853_v9  ;;  %v8460_v60 = vld [vmem:[%s11929_s3 + $0x38] sm:$0xff]  }
 0x101   : > { %v8866_v19 = vpack.c.bf16 %v2067_v8, %v2066_v7  ;;  %v8412_v5 = vld [vmem:[%s8660_s28 + $0x1f8] sm:$0xff]   ;;  %7704 = vmatpush3.bf16.msra.mxu1 %v8460_v60 }
 0x102   : > { %v2256_v22 = vpack.c.bf16 %v2065_v11, %v2064_v10  ;;  %v8019_v23 = vpop.f32.mrb[12].mxu0  ;;  %v2494_v24 = vsel %vm2483_vm3, %v2489_v40, %v8855_v12 }
 0x103   : > { %v1330_v27 = vadd.f32 %v8019_v23, %v8774_v61  ;;  %v1321_v28 = vpop.f32.mrb[13].mxu0  ;;  %2497 = vrot.lane.b32.xlu0 %v2494_v24, %s8605_s24  ;;  %2405 = vrot.lane.b32.xlu1 %v2399_v25, %s8605_s24  ;;  %v2367_v30 = vshll.u32 %v8866_v19, 16  ;;  %v2508_v31 = vrot.slane %v8866_v19, 4 }
 0x104   : > { %v1322_v32 = vadd.f32 %v8774_v61, %v1321_v28  ;;  %v8020_v33 = vpop.f32.mrb[14].mxu0  ;;  %v2506_v35 = vrot.slane %v2256_v22, 4  ;;  %v2359_v36 = vshll.u32 %v2256_v22, 16  ;;  %v2363_v43 = vshrl.u32 %v2256_v22, 16 }
 0x105   : > { %v1333_v39 = vadd.f32 %v8020_v33, %v8774_v61  ;;  %v1324_v40 = vpop.f32.mrb[15].mxu0  ;;  %v2070_v49 = vmax.f32 %v1330_v27, 0.0  ;;  %v8901_v51 = vrot.slane %v2367_v30, 1 }
 0x106   : > { %v1325_v44 = vadd.f32 %v8774_v61, %v1324_v40  ;;  %v2507_v45 = vsel %vm1232_vm0, %v11933_v34, %v2506_v35  ;;  %v2361_v47 = vrot.slane %v2359_v36, 1  ;;  %v8906_v52 = vsel %vm1232_vm0, %v2506_v35, %v2508_v31 }
 0x107   : > { %v2071_v50 = vmax.f32 %v1333_v39, 0.0  ;;  %8126 = vmatmul.mubr.msk.bf16.gmra.mrb[120].mxu0 %vm937_vm2, %v8410_v29  ;;  %2512 = vrot.lane.b32.xlu0 %v2507_v45, %s8606_s17  ;;  %v2068_v53 = vmax.f32 %v1322_v32, 0.0 }
 0x108   : > { %v2069_v54 = vmax.f32 %v1325_v44, 0.0  ;;  %v2362_v55 = vsel %vm2350_vm4, %v2357_v41, %v2361_v47  ;;  %v2365_v56 = vor.u32 %v2363_v43, %v2361_v47  ;;  %8129 = vmatprep.mubr.msk.bf16.mxu0 %vm937_vm2, %v8411_v37 }
 0x109   : > { %v8913_v58 = vpack.c.bf16 %v2071_v50, %v2070_v49 }
 0x10a   : > { %v2258_v62 = vpack.c.bf16 %v2069_v54, %v2068_v53  ;;  %v8023_v63 = vpop.f32.mrb[16].mxu0  ;;  %v2370_v0 = vsel %vm2350_vm4, %v2365_v56, %v8901_v51  ;;  %v2371_v53 = vshrl.u32 %v8866_v19, 16  ;;  %v8415_v54 = vld [vmem:[%s8660_s28 + $0x210] sm:$0xff]  }
 0x10b   : > { %v2460_v1 = vshrl.u32 %v8913_v58, 16  ;;  %v2463_v2 = vshll.u32 %v8913_v58, 16  ;;  %v1346_v3 = vadd.f32 %v8023_v63, %v8774_v61  ;;  %v1337_v4 = vpop.f32.mrb[17].mxu0  ;;  %2374 = vrot.lane.b32.xlu0 %v2362_v55, %s8607_s25  ;;  %2376 = vrot.lane.b32.xlu1 %v2370_v0, %s8607_s25  ;;  %v2414_v6 = vrot.slane %v8913_v58, 1 }
 0x10c   : > { %v1338_v7 = vadd.f32 %v8774_v61, %v1337_v4  ;;  %v8024_v8 = vpop.f32.mrb[18].mxu0  ;;  %v2413_v10 = vrot.slane %v2258_v62, 1  ;;  %v2452_v11 = vshrl.u32 %v2258_v62, 16  ;;  %v2455_v13 = vshll.u32 %v2258_v62, 16 }
 0x10d   : > { %v2462_v16 = vrot.slane %v2460_v1, 1  ;;  %v2465_v18 = vrot.slane %v2463_v2, 2  ;;  %v1349_v20 = vadd.f32 %v8024_v8, %v8774_v61  ;;  %v1340_v21 = vpop.f32.mrb[19].mxu0  ;;  %v2074_v22 = vmax.f32 %v1346_v3, 0.0 }
 0x10e   : > { %v1341_v23 = vadd.f32 %v8774_v61, %v1340_v21  ;;  %v2415_v24 = vsel %vm2412_vm5, %v2413_v10, %v2414_v6  ;;  %v2454_v25 = vrot.slane %v2452_v11, 1  ;;  %v2457_v27 = vrot.slane %v2455_v13, 2 }
 0x10f   : > { %v2075_v26 = vmax.f32 %v1349_v20, 0.0  ;;  %8130 = vmatmul.mubr.msk.bf16.gmra.mrb[124].mxu0 %vm937_vm2, %v8412_v5  ;;  %2418 = vrot.lane.b32.xlu1 %v2415_v24, %s8606_s17  ;;  %v2466_v28 = vor.u32 %v2465_v18, %v2462_v16  ;;  %v2510_v29 = vrot.slane %v2258_v62, 4  ;;  %v2072_v30 = vmax.f32 %v1338_v7, 0.0  ;;  %v8416_v16 = vld [vmem:[%s8660_s28 + $0x218] sm:$0xff]  }
 0x110   : > { %v2073_v32 = vmax.f32 %v1341_v23, 0.0  ;;  %8133 = vmatprep.mubr.msk.bf16.mxu0 %vm937_vm2, %v8413_v14  ;;  %v2458_v35 = vor.u32 %v2457_v27, %v2454_v25  ;;  %v11940_v4 = vmov 0.0   ;;  %v2373_v8 = vor.u32 %v2371_v53, %v8901_v51  ;;  %v8417_v27 = vld [vmem:[%s8660_s28 + $0x220] sm:$0xff]  }
 0x111   : > { %v2261_v33 = vpack.c.bf16 %v2075_v26, %v2074_v22  ;;  %v8938_v36 = vsel %vm1232_vm0, %v2508_v31, %v2510_v29  ;;  %8201 = vmatprep.subr.bf16.mxu1 %v11940_v4 }
 0x112   : > { %v8940_v37 = vpack.c.bf16 %v2073_v32, %v2072_v30  ;;  %v8027_v38 = vpop.f32.mrb[20].mxu0  ;;  %v2467_v41 = vsel %vm2424_vm6, %v2458_v35, %v2466_v28  ;;  %v2402_v32 = vor.u32 %v2400_v59, %v8853_v9 }
 0x113   : > { %v1362_v39 = vadd.f32 %v8027_v38, %v8774_v61  ;;  %v1353_v40 = vpop.f32.mrb[21].mxu0  ;;  %2477 = vrot.lane.b32.xlu0 %v2467_v41, %s8607_s25  ;;  %v2426_v55 = vshrl.u32 %v2261_v33, 16  ;;  %v2429_v0 = vshll.u32 %v2261_v33, 16 }
 0x114   : > { %v2469_v43 = vshrl.u32 %v8940_v37, 16  ;;  %v2472_v44 = vshll.u32 %v8940_v37, 16  ;;  %v1354_v45 = vadd.f32 %v8774_v61, %v1353_v40  ;;  %v8028_v31 = vpop.f32.mrb[22].mxu0  ;;  %v2416_v47 = vrot.slane %v8940_v37, 1 }
 0x115   : > { %v1365_v49 = vadd.f32 %v8028_v31, %v8774_v61  ;;  %v1356_v50 = vpop.f32.mrb[23].mxu0  ;;  %v2078_v60 = vmax.f32 %v1362_v39, 0.0  ;;  %v2428_v10 = vrot.slane %v2426_v55, 1  ;;  %v2431_v18 = vrot.slane %v2429_v0, 2 }
 0x116   : > { %v2471_v56 = vrot.slane %v2469_v43, 1  ;;  %v2474_v57 = vrot.slane %v2472_v44, 2  ;;  %v1357_v58 = vadd.f32 %v8774_v61, %v1356_v50  ;;  %v2417_v63 = vsel %vm2412_vm5, %v2414_v6, %v2416_v47  ;;  %v8418_v50 = vld [vmem:[%s8660_s28 + $0x228] sm:$0xff]  }
 0x117   : > { %v2079_v62 = vmax.f32 %v1365_v49, 0.0  ;;  %8134 = vmatmul.mubr.msk.bf16.gmra.mrb[128].mxu0 %vm937_vm2, %v8414_v42  ;;  %v2076_v1 = vmax.f32 %v1354_v45, 0.0  ;;  %2514 = vrot.lane.b32.xlu0 %v8906_v52, %s8606_s17  ;;  %v2432_v39 = vor.u32 %v2431_v18, %v2428_v10 }
 0x118   : > { %v2077_v2 = vmax.f32 %v1357_v58, 0.0  ;;  %2420 = vrot.lane.b32.xlu1 %v2417_v63, %s8606_s17  ;;  %v2475_v19 = vor.u32 %v2474_v57, %v2471_v56  ;;  %8137 = vmatprep.mubr.msk.bf16.mxu0 %vm937_vm2, %v8415_v54 }
 0x119   : > { %v2263_v3 = vpack.c.bf16 %v2079_v62, %v2078_v60  ;;  %v8419_v60 = vld [vmem:[%s8660_s28 + $0x230] sm:$0xff]  }
 0x11a   : > { %v2262_v5 = vpack.c.bf16 %v2077_v2, %v2076_v1  ;;  %v8031_v7 = vpop.f32.mrb[24].mxu0  ;;  %v2476_v6 = vsel %vm2424_vm6, %v2466_v28, %v2475_v19 }
 0x11b   : > { %v2443_v11 = vshrl.u32 %v2263_v3, 16  ;;  %v2446_v52 = vshll.u32 %v2263_v3, 16  ;;  %v1378_v13 = vadd.f32 %v8031_v7, %v8774_v61  ;;  %v1369_v14 = vpop.f32.mrb[25].mxu0  ;;  %2479 = vrot.lane.b32.xlu0 %v2476_v6, %s8607_s25 }
 0x11c   : > { %v2434_v20 = vshrl.u32 %v2262_v5, 16  ;;  %v2437_v21 = vshll.u32 %v2262_v5, 16  ;;  %v1370_v22 = vadd.f32 %v8774_v61, %v1369_v14  ;;  %2378 = vrot.lane.b32.xlu1 %v2373_v8, %s8607_s25  ;;  %v8032_v23 = vpop.f32.mrb[26].mxu0 }
 0x11d   : > { %v2445_v24 = vrot.slane %v2443_v11, 1  ;;  %v2448_v51 = vrot.slane %v2446_v52, 2  ;;  %v1381_v25 = vadd.f32 %v8032_v23, %v8774_v61  ;;  %v1372_v26 = vpop.f32.mrb[27].mxu0  ;;  %v2082_v35 = vmax.f32 %v1378_v13, 0.0 }
 0x11e   : > { %v2436_v28 = vrot.slane %v2434_v20, 1  ;;  %v2439_v29 = vrot.slane %v2437_v21, 2  ;;  %v1373_v30 = vadd.f32 %v8774_v61, %v1372_v26  ;;  %v2080_v41 = vmax.f32 %v1370_v22, 0.0  ;;  %v8420_v20 = vld [vmem:[%s8660_s28 + $0x238] sm:$0xff]  }
 0x11f   : > { %v8976_v33 = vor.u32 %v2448_v51, %v2445_v24  ;;  %v2083_v38 = vmax.f32 %v1381_v25, 0.0  ;;  %8138 = vmatmul.mubr.msk.bf16.gmra.mrb[132].mxu0 %vm937_vm2, %v8416_v16  ;;  %2481 = vrot.lane.b32.xlu0 %v2475_v19, %s8607_s25  ;;  %v8421_v51 = vld [vmem:[%s8660_s28 + $0x240] sm:$0xff]  }
 0x120   : > { %v2440_v40 = vor.u32 %v2439_v29, %v2436_v28  ;;  %v2081_v42 = vmax.f32 %v1373_v30, 0.0  ;;  %2407 = vrot.lane.b32.xlu1 %v2402_v32, %s8605_s24  ;;  %8141 = vmatprep.mubr.msk.bf16.mxu0 %vm937_vm2, %v8417_v27 }
 0x121   : > { %v8981_v43 = vpack.c.bf16 %v2083_v38, %v2082_v35 }
 0x122   : > { %v8984_v59 = vpack.c.bf16 %v2081_v42, %v2080_v41  ;;  %v8035_v9 = vpop.f32.mrb[28].mxu0  ;;  %v8987_v44 = vsel %vm2424_vm6, %v2432_v39, %v2440_v40  ;;  %v8991_v45 = vsel %vm2424_vm6, %v2440_v40, %v8976_v33  ;;  %v8468_v41 = vld [vmem:[%s11929_s3 + $0x48] sm:$0xff]  }
 0x123   : > { %v1394_v31 = vadd.f32 %v8035_v9, %v8774_v61  ;;  %v1385_v49 = vpop.f32.mrb[29].mxu0  ;;  %v2933_v53 = vshll.u32 %v8981_v43, 16  ;;  %v2937_v54 = vshrl.u32 %v8981_v43, 16  ;;  %2499 = vrot.lane.b32.xlu0 %v8855_v12, %s8605_s24  ;;  %7964 = vmatprep.subr.bf16.mxu0 %v8468_v41 }
 0x124   : > { %v1386_v55 = vadd.f32 %v8774_v61, %v1385_v49  ;;  %2422 = vrot.lane.b32.xlu1 %v2416_v47, %s8606_s17  ;;  %v8036_v56 = vpop.f32.mrb[30].mxu0  ;;  %v2926_v57 = vshrl.u32 %v8984_v59, 16  ;;  %v2928_v58 = vshll.u32 %v8984_v59, 16  ;;  %v8470_v49 = vld [vmem:[%s11929_s3 + $0x8] sm:$0xff]  }
 0x125   : > { %v1397_v62 = vadd.f32 %v8036_v56, %v8774_v61  ;;  %v1388_v63 = vpop.f32.mrb[31].mxu0  ;;  %v3029_v0 = vrot.slane %v2937_v54, 3  ;;  %v3030_v1 = vrot.slane %v2933_v53, 4  ;;  %v2086_v12 = vmax.f32 %v1394_v31, 0.0  ;;  %7965 = vmatpush3.bf16.msra.mxu0 %v8470_v49 }
 0x126   : > { %v1389_v2 = vadd.f32 %v8774_v61, %v1388_v63  ;;  %v3026_v19 = vrot.slane %v2926_v57, 3  ;;  %v3027_v3 = vrot.slane %v2928_v58, 4  ;;  %v2930_v47 = vrot.slane %v2928_v58, 1 }
 0x127   : > { %v2087_v5 = vmax.f32 %v1397_v62, 0.0  ;;  %8142 = vmatmul.mubr.msk.bf16.gmra.mrb[136].mxu0 %vm937_vm2, %v8418_v50  ;;  %v3031_v37 = vor.u32 %v3030_v1, %v3029_v0  ;;  %v2084_v7 = vmax.f32 %v1386_v55, 0.0  ;;  %2516 = vrot.lane.b32.xlu0 %v8938_v36, %s8606_s17  ;;  %v2935_v11 = vrot.slane %v2933_v53, 1  ;;  %v8422_v62 = vld [vmem:[%s8660_s28 + $0x248] sm:$0xff]  }
 0x128   : > { %v2085_v6 = vmax.f32 %v1389_v2, 0.0  ;;  %v3028_v8 = vor.u32 %v3027_v3, %v3026_v19  ;;  %8145 = vmatprep.mubr.msk.bf16.mxu0 %vm937_vm2, %v8419_v60  ;;  %v2931_v21 = vor.u32 %v2930_v47, %v2926_v57 }
 0x129   : > { %v9012_v10 = vpack.c.bf16 %v2087_v5, %v2086_v12  ;;  %v2939_v27 = vor.u32 %v2937_v54, %v2935_v11  ;;  %v8423_v5 = vld [vmem:[%s8660_s28 + $0x250] sm:$0xff]  }
 0x12a   : > { %v9014_v52 = vpack.c.bf16 %v2085_v6, %v2084_v7  ;;  %v8039_v13 = vpop.f32.mrb[32].mxu0  ;;  %v3032_v14 = vsel %vm2483_vm3, %v3028_v8, %v3031_v37  ;;  %v2936_v39 = vsel %vm2350_vm4, %v2931_v21, %v2935_v11 }
 0x12b   : > { %v1410_v16 = vadd.f32 %v8039_v13, %v8774_v61  ;;  %v1401_v18 = vpop.f32.mrb[33].mxu0  ;;  %3041 = vrot.lane.b32.xlu0 %v3032_v14, %s8605_s24  ;;  %v2899_v28 = vshll.u32 %v9012_v10, 16  ;;  %v2897_v57 = vshrl.u32 %v9012_v10, 16  ;;  %v11932_v63 = vrot.slane %v9012_v10, 4 }
 0x12c   : > { %v1402_v22 = vadd.f32 %v8774_v61, %v1401_v18  ;;  %v8040_v36 = vpop.f32.mrb[34].mxu0  ;;  %v2941_v23 = vshll.u32 %v9014_v52, 16  ;;  %v2945_v24 = vshrl.u32 %v9014_v52, 16 }
 0x12d   : > { %v1413_v25 = vadd.f32 %v8040_v36, %v8774_v61  ;;  %v1404_v26 = vpop.f32.mrb[35].mxu0  ;;  %v2090_v35 = vmax.f32 %v1410_v16, 0.0  ;;  %v2901_v56 = vrot.slane %v2899_v28, 1 }
 0x12e   : > { %v1405_v29 = vadd.f32 %v8774_v61, %v1404_v26  ;;  %v9027_v30 = vrot.slane %v2941_v23, 1  ;;  %v3033_v32 = vrot.slane %v2945_v24, 3  ;;  %v3034_v40 = vrot.slane %v2941_v23, 4 }
 0x12f   : > { %v2091_v38 = vmax.f32 %v1413_v25, 0.0  ;;  %8146 = vmatmul.mubr.msk.bf16.gmra.mrb[140].mxu0 %vm937_vm2, %v8420_v20  ;;  %v2088_v42 = vmax.f32 %v1402_v22, 0.0  ;;  %2948 = vrot.lane.b32.xlu0 %v2936_v39, %s8605_s24  ;;  %v2902_v13 = vor.u32 %v2901_v56, %v2897_v57 }
 0x130   : > { %v2089_v9 = vmax.f32 %v1405_v29, 0.0  ;;  %v2944_v31 = vsel %vm2350_vm4, %v2939_v27, %v9027_v30  ;;  %8149 = vmatprep.mubr.msk.bf16.mxu0 %vm937_vm2, %v8421_v51  ;;  %v9046_v53 = vor.u32 %v3034_v40, %v3033_v32  ;;  %v8424_v40 = vld [vmem:[%s8660_s28 + $0x258] sm:$0xff]  }
 0x131   : > { %v9043_v50 = vpack.c.bf16 %v2091_v38, %v2090_v35  ;;  %2950 = vrot.lane.b32.xlu1 %v2944_v31, %s8605_s24 }
 0x132   : > { %v2268_v54 = vpack.c.bf16 %v2089_v9, %v2088_v42  ;;  %v8043_v55 = vpop.f32.mrb[36].mxu0  ;;  %v3036_v19 = vsel %vm2483_vm3, %v3031_v37, %v9046_v53 }
 0x133   : > { %v1426_v58 = vadd.f32 %v8043_v55, %v8774_v61  ;;  %v1417_v60 = vpop.f32.mrb[37].mxu0  ;;  %v3053_v0 = vrot.slane %v9043_v50, 4  ;;  %v2912_v6 = vshll.u32 %v9043_v50, 16 }
 0x134   : > { %v1418_v1 = vadd.f32 %v8774_v61, %v1417_v60  ;;  %v8044_v2 = vpop.f32.mrb[38].mxu0  ;;  %v3051_v3 = vrot.slane %v2268_v54, 4  ;;  %v2904_v12 = vshll.u32 %v2268_v54, 16  ;;  %v2908_v14 = vshrl.u32 %v2268_v54, 16  ;;  %v8425_v54 = vld [vmem:[%s8660_s28 + $0x260] sm:$0xff]  }
 0x135   : > { %v1429_v47 = vadd.f32 %v8044_v2, %v8774_v61  ;;  %v1420_v7 = vpop.f32.mrb[39].mxu0  ;;  %3043 = vrot.lane.b32.xlu1 %v3036_v19, %s8605_s24  ;;  %v2094_v16 = vmax.f32 %v1426_v58, 0.0  ;;  %v9078_v25 = vrot.slane %v2912_v6, 1  ;;  %v3037_v6 = vrot.slane %v2897_v57, 3  ;;  %v8426_v57 = vld [vmem:[%s8660_s28 + $0x268] sm:$0xff]  }
 0x136   : > { %v1421_v8 = vadd.f32 %v8774_v61, %v1420_v7  ;;  %v3052_v11 = vsel %vm1232_vm0, %v11932_v63, %v3051_v3  ;;  %v3054_v37 = vsel %vm1232_vm0, %v3051_v3, %v3053_v0  ;;  %v2906_v20 = vrot.slane %v2904_v12, 1 }
 0x137   : > { %v2095_v18 = vmax.f32 %v1429_v47, 0.0  ;;  %8150 = vmatmul.mubr.msk.bf16.gmra.mrb[144].mxu0 %vm937_vm2, %v8422_v62  ;;  %3057 = vrot.lane.b32.xlu0 %v3052_v11, %s8606_s17  ;;  %v2092_v21 = vmax.f32 %v1418_v1, 0.0 }
 0x138   : > { %v2093_v22 = vmax.f32 %v1421_v8, 0.0  ;;  %8153 = vmatprep.mubr.msk.bf16.mxu0 %vm937_vm2, %v8423_v5  ;;  %v2907_v23 = vsel %vm2350_vm4, %v2902_v13, %v2906_v20  ;;  %v2910_v51 = vor.u32 %v2908_v14, %v2906_v20  ;;  %v3038_v8 = vrot.slane %v2899_v28, 4 }
 0x139   : > { %v9074_v36 = vpack.c.bf16 %v2095_v18, %v2094_v16  ;;  %3059 = vrot.lane.b32.xlu1 %v3054_v37, %s8606_s17 }
 0x13a   : > { %v2270_v26 = vpack.c.bf16 %v2093_v22, %v2092_v21  ;;  %v8047_v27 = vpop.f32.mrb[40].mxu0  ;;  %v2915_v39 = vsel %vm2350_vm4, %v2910_v51, %v9078_v25 }
 0x13b   : > { %v3003_v29 = vshrl.u32 %v9074_v36, 16  ;;  %v3006_v32 = vshll.u32 %v9074_v36, 16  ;;  %v1442_v35 = vadd.f32 %v8047_v27, %v8774_v61  ;;  %v1433_v38 = vpop.f32.mrb[41].mxu0  ;;  %2919 = vrot.lane.b32.xlu0 %v2907_v23, %s8607_s25  ;;  %v2958_v31 = vrot.slane %v9074_v36, 1  ;;  %v8427_v27 = vld [vmem:[%s8660_s28 + $0x270] sm:$0xff]  }
 0x13c   : > { %v1434_v41 = vadd.f32 %v8774_v61, %v1433_v38  ;;  %v8048_v42 = vpop.f32.mrb[42].mxu0  ;;  %v2957_v9 = vrot.slane %v2270_v26, 1  ;;  %v2995_v49 = vshrl.u32 %v2270_v26, 16  ;;  %v2998_v12 = vshll.u32 %v2270_v26, 16 }
 0x13d   : > { %v3005_v55 = vrot.slane %v3003_v29, 1  ;;  %v3008_v56 = vrot.slane %v3006_v32, 2  ;;  %v1445_v58 = vadd.f32 %v8048_v42, %v8774_v61  ;;  %v1436_v60 = vpop.f32.mrb[43].mxu0  ;;  %2921 = vrot.lane.b32.xlu1 %v2915_v39, %s8607_s25  ;;  %v2098_v62 = vmax.f32 %v1442_v35, 0.0 }
 0x13e   : > { %v1437_v1 = vadd.f32 %v8774_v61, %v1436_v60  ;;  %v2959_v2 = vsel %vm2412_vm5, %v2957_v9, %v2958_v31  ;;  %v2997_v3 = vrot.slane %v2995_v49, 1  ;;  %v3055_v5 = vrot.slane %v2270_v26, 4 }
 0x13f   : > { %v2099_v19 = vmax.f32 %v1445_v58, 0.0  ;;  %8154 = vmatmul.mubr.msk.bf16.gmra.mrb[148].mxu0 %vm937_vm2, %v8424_v40  ;;  %2962 = vrot.lane.b32.xlu0 %v2959_v2, %s8606_s17  ;;  %v2096_v47 = vmax.f32 %v1434_v41, 0.0  ;;  %v3000_v37 = vrot.slane %v2998_v12, 2  ;;  %v3009_v13 = vor.u32 %v3008_v56, %v3005_v55 }
 0x140   : > { %v2097_v7 = vmax.f32 %v1437_v1, 0.0  ;;  %8157 = vmatprep.mubr.msk.bf16.mxu0 %vm937_vm2, %v8425_v54  ;;  %v9104_v14 = vsel %vm1232_vm0, %v3053_v0, %v3055_v5  ;;  %v3039_v35 = vor.u32 %v3038_v8, %v3037_v6  ;;  %v2916_v2 = vshrl.u32 %v9043_v50, 16 }
 0x141   : > { %v2273_v11 = vpack.c.bf16 %v2099_v19, %v2098_v62  ;;  %v3001_v22 = vor.u32 %v3000_v37, %v2997_v3 }
 0x142   : > { %v9106_v16 = vpack.c.bf16 %v2097_v7, %v2096_v47  ;;  %v8051_v18 = vpop.f32.mrb[44].mxu0  ;;  %v8428_v7 = vld [vmem:[%s8660_s28 + $0x278] sm:$0xff]  }
 0x143   : > { %v1458_v20 = vadd.f32 %v8051_v18, %v8774_v61  ;;  %v1449_v21 = vpop.f32.mrb[45].mxu0  ;;  %v3010_v29 = vsel %vm2424_vm6, %v3001_v22, %v3009_v13  ;;  %v2969_v42 = vshrl.u32 %v2273_v11, 16  ;;  %v2972_v9 = vshll.u32 %v2273_v11, 16 }
 0x144   : > { %v1450_v36 = vadd.f32 %v8774_v61, %v1449_v21  ;;  %v8052_v28 = vpop.f32.mrb[46].mxu0  ;;  %v2960_v23 = vrot.slane %v9106_v16, 1  ;;  %v3012_v51 = vshrl.u32 %v9106_v16, 16  ;;  %v3015_v26 = vshll.u32 %v9106_v16, 16  ;;  %3020 = vrot.lane.b32.xlu0 %v3010_v29, %s8607_s25  ;;  %v9193_v16 = vld [vmem:[%s11928_s2] ss:$0 sm:$0xff] }
 0x145   : > { %v2102_v0 = vmax.f32 %v1458_v20, 0.0  ;;  %v1452_v32 = vpop.f32.mrb[47].mxu0  ;;  %v1461_v39 = vadd.f32 %v8052_v28, %v8774_v61  ;;  %v2971_v19 = vrot.slane %v2969_v42, 1  ;;  %v2974_v3 = vrot.slane %v2972_v9, 2 }
 0x146   : > { %v2100_v38 = vmax.f32 %v1450_v36, 0.0  ;;  %v1453_v40 = vadd.f32 %v8774_v61, %v1452_v32  ;;  %v2961_v41 = vsel %vm2412_vm5, %v2958_v31, %v2960_v23  ;;  %v3014_v49 = vrot.slane %v3012_v51, 1 }
 0x147   : > { %8158 = vmatmul.mubr.msk.bf16.gmra.mrb[152].mxu0 %vm937_vm2, %v8426_v57  ;;  %2964 = vrot.lane.b32.xlu1 %v2961_v41, %s8606_s17  ;;  %v3017_v54 = vrot.slane %v3015_v26, 2  ;;  %v2103_v55 = vmax.f32 %v1461_v39, 0.0  ;;  %v3040_v31 = vsel %vm2483_vm3, %v9046_v53, %v3039_v35  ;;  %v8429_v53 = vld [vmem:[%s8660_s28 + $0x280] sm:$0xff]   ;;  %v2918_v57 = vor.u32 %v2916_v2, %v9078_v25 }
 0x148   : > { %v2101_v56 = vmax.f32 %v1453_v40, 0.0  ;;  %8161 = vmatprep.mubr.msk.bf16.mxu0 %vm937_vm2, %v8427_v27  ;;  %v2975_v29 = vor.u32 %v2974_v3, %v2971_v19  ;;  %v2947_v40 = vor.u32 %v2945_v24, %v9027_v30 }
 0x149   : > { %v3018_v58 = vor.u32 %v3017_v54, %v3014_v49  ;;  %v2275_v60 = vpack.c.bf16 %v2103_v55, %v2102_v0  ;;  %v8430_v55 = vld [vmem:[%s8660_s28 + $0x288] sm:$0xff]  }
 0x14a   : > { %v2274_v62 = vpack.c.bf16 %v2101_v56, %v2100_v38  ;;  %v8055_v1 = vpop.f32.mrb[48].mxu0 }
 0x14b   : > { %v1474_v12 = vadd.f32 %v8055_v1, %v8774_v61  ;;  %3024 = vrot.lane.b32.xlu0 %v3018_v58, %s8607_s25  ;;  %v1465_v5 = vpop.f32.mrb[49].mxu0  ;;  %v3019_v47 = vsel %vm2424_vm6, %v3009_v13, %v3018_v58  ;;  %v2986_v6 = vshrl.u32 %v2275_v60, 16  ;;  %v2989_v8 = vshll.u32 %v2275_v60, 16  ;;  %v8431_v60 = vld [vmem:[%s8660_s28 + $0x290] sm:$0xff]  }
 0x14c   : > { %v2977_v11 = vshrl.u32 %v2274_v62, 16  ;;  %v2980_v37 = vshll.u32 %v2274_v62, 16  ;;  %3022 = vrot.lane.b32.xlu1 %v3019_v47, %s8607_s25  ;;  %v8056_v18 = vpop.f32.mrb[50].mxu0  ;;  %v1466_v50 = vadd.f32 %v8774_v61, %v1465_v5 }
 0x14d   : > { %v2106_v20 = vmax.f32 %v1474_v12, 0.0  ;;  %v1477_v21 = vadd.f32 %v8056_v18, %v8774_v61  ;;  %v1468_v22 = vpop.f32.mrb[51].mxu0  ;;  %v2988_v36 = vrot.slane %v2986_v6, 1  ;;  %v2991_v28 = vrot.slane %v2989_v8, 2 }
 0x14e   : > { %v2979_v13 = vrot.slane %v2977_v11, 1  ;;  %v2982_v51 = vrot.slane %v2980_v37, 2  ;;  %v2104_v26 = vmax.f32 %v1466_v50, 0.0  ;;  %v1469_v0 = vadd.f32 %v8774_v61, %v1468_v22  ;;  %v8487_v11 = vld [vmem:[%s11929_s3 + $0x50] sm:$0xff]  }
 0x14f   : > { %v2107_v27 = vmax.f32 %v1477_v21, 0.0  ;;  %3045 = vrot.lane.b32.xlu0 %v3040_v31, %s8605_s24  ;;  %8162 = vmatmul.mubr.msk.bf16.gmra.mrb[156].mxu0 %vm937_vm2, %v8428_v7  ;;  %v9142_v25 = vor.u32 %v2991_v28, %v2988_v36  ;;  %v8488_v37 = vld [vmem:[%s11929_s3 + $0x10] sm:$0xff]   ;;  %v8432_v28 = vld [vmem:[%s8660_s28 + $0x298] sm:$0xff]  }
 0x150   : > { %v2983_v32 = vor.u32 %v2982_v51, %v2979_v13  ;;  %2923 = vrot.lane.b32.xlu1 %v2918_v57, %s8607_s25  ;;  %8165 = vmatprep.mubr.msk.bf16.mxu0 %vm937_vm2, %v8429_v53  ;;  %v2105_v38 = vmax.f32 %v1469_v0, 0.0 }
 0x151   : > { %v9144_v35 = vpack.c.bf16 %v2107_v27, %v2106_v20  ;;  %7966 = vmatprep.subr.bf16.mxu0 %v8487_v11 }
 0x152   : > { %v8059_v39 = vpop.f32.mrb[52].mxu0  ;;  %v9150_v41 = vsel %vm2424_vm6, %v2975_v29, %v2983_v32  ;;  %v9154_v42 = vsel %vm2424_vm6, %v2983_v32, %v9142_v25  ;;  %v9156_v9 = vpack.c.bf16 %v2105_v38, %v2104_v26  ;;  %7967 = vmatpush3.bf16.msra.mxu0 %v8488_v37  ;;  %v8433_v32 = vld [vmem:[%s8660_s28 + $0x2a0] sm:$0xff]  }
 0x153   : > { %v1490_v49 = vadd.f32 %v8059_v39, %v8774_v61  ;;  %3061 = vrot.lane.b32.xlu0 %v9104_v14, %s8606_s17  ;;  %v1481_v54 = vpop.f32.mrb[53].mxu0  ;;  %v3526_v56 = vshll.u32 %v9144_v35, 16  ;;  %v3530_v58 = vshrl.u32 %v9144_v35, 16 }
 0x154   : > { %v1482_v24 = vadd.f32 %v8774_v61, %v1481_v54  ;;  %2952 = vrot.lane.b32.xlu1 %v2947_v40, %s8605_s24  ;;  %v8060_v30 = vpop.f32.mrb[54].mxu0  ;;  %v3519_v62 = vshrl.u32 %v9156_v9, 16  ;;  %v3521_v1 = vshll.u32 %v9156_v9, 16 }
 0x155   : > { %v2110_v31 = vmax.f32 %v1490_v49, 0.0  ;;  %v1493_v2 = vadd.f32 %v8060_v30, %v8774_v61  ;;  %v1484_v14 = vpop.f32.mrb[55].mxu0  ;;  %v3635_v12 = vrot.slane %v3530_v58, 3  ;;  %v3636_v5 = vrot.slane %v3526_v56, 4 }
 0x156   : > { %v2108_v19 = vmax.f32 %v1482_v24, 0.0  ;;  %v1485_v3 = vadd.f32 %v8774_v61, %v1484_v14  ;;  %v3523_v47 = vrot.slane %v3521_v1, 1  ;;  %v3634_v6 = vrot.slane %v3519_v62, 3 }
 0x157   : > { %v2111_v7 = vmax.f32 %v1493_v2, 0.0  ;;  %8166 = vmatmul.mubr.msk.bf16.gmra.mrb[160].mxu0 %vm937_vm2, %v8430_v55  ;;  %v3528_v8 = vrot.slane %v3526_v56, 1  ;;  %v3637_v61 = vor.u32 %v3636_v5, %v3635_v12 }
 0x158   : > { %v2109_v18 = vmax.f32 %v1485_v3, 0.0  ;;  %2966 = vrot.lane.b32.xlu1 %v2960_v23, %s8606_s17  ;;  %8169 = vmatprep.mubr.msk.bf16.mxu0 %vm937_vm2, %v8431_v60  ;;  %v3524_v20 = vor.u32 %v3523_v47, %v3519_v62 }
 0x159   : > { %v9182_v53 = vpack.c.bf16 %v2111_v7, %v2110_v31  ;;  %v3638_v22 = vsel %vm2483_vm3, %v3634_v6, %v3637_v61  ;;  %v3532_v13 = vor.u32 %v3530_v58, %v3528_v8 }
 0x15a   : > { %v9184_v50 = vpack.c.bf16 %v2109_v18, %v2108_v19  ;;  %v8063_v21 = vpop.f32.mrb[56].mxu0  ;;  %3647 = vrot.lane.b32.xlu0 %v3638_v22, %s8605_s24  ;;  %v3529_v27 = vsel %vm2350_vm4, %v3524_v20, %v3528_v8  ;;  %v8434_v8 = vld [vmem:[%s8660_s28 + $0x2a8] sm:$0xff]  }
 0x15b   : > { %v9188_v57 = vshrl.u32 %v9182_v53, 16  ;;  %v1506_v23 = vadd.f32 %v9193_v16, %v8063_v21  ;;  %v1497_v36 = vpop.f32.mrb[57].mxu0  ;;  %v3483_v29 = vshll.u32 %v9182_v53, 16 }
 0x15c   : > { %v1498_v51 = vadd.f32 %v9193_v16, %v1497_v36  ;;  %v8064_v26 = vpop.f32.mrb[58].mxu0  ;;  %v3534_v0 = vshll.u32 %v9184_v50, 16  ;;  %v3538_v49 = vshrl.u32 %v9184_v50, 16 }
 0x15d   : > { %v2114_v38 = vmax.f32 %v1506_v23, 0.0  ;;  %v1509_v39 = vadd.f32 %v9193_v16, %v8064_v26  ;;  %v1500_v40 = vpop.f32.mrb[59].mxu0  ;;  %v3643_v54 = vrot.slane %v9188_v57, 3  ;;  %v3644_v62 = vrot.slane %v3483_v29, 4  ;;  %v8437_v23 = vld [vmem:[%s8660_s28 + $0x2b0] sm:$0xff]  }
 0x15e   : > { %v2112_v55 = vmax.f32 %v1498_v51, 0.0  ;;  %v1501_v56 = vadd.f32 %v9193_v16, %v1500_v40  ;;  %v9207_v24 = vrot.slane %v3534_v0, 1  ;;  %v3640_v30 = vrot.slane %v3534_v0, 4  ;;  %3542 = vrot.lane.b32.xlu0 %v3529_v27, %s8605_s24 }
 0x15f   : > { %v2115_v58 = vmax.f32 %v1509_v39, 0.0  ;;  %8170 = vmatmul.mubr.msk.bf16.gmra.mrb[164].mxu0 %vm937_vm2, %v8432_v28  ;;  %v3639_v60 = vrot.slane %v3538_v49, 3  ;;  %v3645_v19 = vor.u32 %v3644_v62, %v3643_v54  ;;  %v9225_v11 = vrot.slane %v3483_v29, 1 }
 0x160   : > { %v2113_v1 = vmax.f32 %v1501_v56, 0.0  ;;  %v3537_v31 = vsel %vm2350_vm4, %v3532_v13, %v9207_v24  ;;  %8173 = vmatprep.mubr.msk.bf16.mxu0 %vm937_vm2, %v8433_v32 }
 0x161   : > { %v9216_v2 = vpack.c.bf16 %v2115_v58, %v2114_v38  ;;  %3544 = vrot.lane.b32.xlu1 %v3537_v31, %s8605_s24  ;;  %v3641_v14 = vor.u32 %v3640_v30, %v3639_v60 }
 0x162   : > { %v2280_v3 = vpack.c.bf16 %v2113_v1, %v2112_v55  ;;  %v8067_v12 = vpop.f32.mrb[60].mxu0  ;;  %v3486_v55 = vor.u32 %v9225_v11, %v9188_v57 }
 0x163   : > { %v1522_v5 = vadd.f32 %v9193_v16, %v8067_v12  ;;  %v1513_v47 = vpop.f32.mrb[61].mxu0  ;;  %v3646_v7 = vsel %vm2483_vm3, %v3641_v14, %v3645_v19  ;;  %v3642_v6 = vsel %vm2483_vm3, %v3637_v61, %v3641_v14  ;;  %v3658_v22 = vrot.slane %v9216_v2, 4 }
 0x164   : > { %v3492_v37 = vshrl.u32 %v2280_v3, 16  ;;  %v1514_v18 = vadd.f32 %v9193_v16, %v1513_v47  ;;  %3651 = vrot.lane.b32.xlu0 %v3646_v7, %s8605_s24  ;;  %v8068_v20 = vpop.f32.mrb[62].mxu0  ;;  %v3657_v21 = vrot.slane %v2280_v3, 4  ;;  %v3488_v61 = vshll.u32 %v2280_v3, 16 }
 0x165   : > { %v2118_v36 = vmax.f32 %v1522_v5, 0.0  ;;  %v1525_v28 = vadd.f32 %v9193_v16, %v8068_v20  ;;  %v1516_v13 = vpop.f32.mrb[63].mxu0  ;;  %3649 = vrot.lane.b32.xlu1 %v3642_v6, %s8605_s24  ;;  %v3496_v51 = vshll.u32 %v9216_v2, 16  ;;  %v3500_v26 = vshrl.u32 %v9216_v2, 16  ;;  %v8439_v5 = vld [vmem:[%s8660_s28 + $0x2b8] sm:$0xff]  }
 0x166   : > { %v2116_v27 = vmax.f32 %v1514_v18, 0.0  ;;  %v1517_v0 = vadd.f32 %v9193_v16, %v1516_v13  ;;  %v3659_v29 = vsel %vm1232_vm0, %v3657_v21, %v3658_v22  ;;  %v3490_v38 = vrot.slane %v3488_v61, 1  ;;  %v8445_v18 = vld [vmem:[%s8660_s28 + $0x2c0] sm:$0xff]  }
 0x167   : > { %v2119_v32 = vmax.f32 %v1525_v28, 0.0  ;;  %8174 = vmatmul.mubr.msk.bf16.gmra.mrb[168].mxu0 %vm937_vm2, %v8434_v8  ;;  %v3498_v39 = vrot.slane %v3496_v51, 1 }
 0x168   : > { %v2117_v40 = vmax.f32 %v1517_v0, 0.0  ;;  %3662 = vrot.lane.b32.xlu0 %v3657_v21, %s8606_s17  ;;  %8177 = vmatprep.mubr.msk.bf16.mxu0 %vm937_vm2, %v8437_v23  ;;  %v3494_v30 = vor.u32 %v3492_v37, %v3490_v38  ;;  %v3491_v62 = vsel %vm2350_vm4, %v3486_v55, %v3490_v38 }
 0x169   : > { %v9244_v56 = vpack.c.bf16 %v2119_v32, %v2118_v36  ;;  %3664 = vrot.lane.b32.xlu1 %v3659_v29, %s8606_s17  ;;  %v3502_v1 = vor.u32 %v3500_v26, %v3498_v39 }
 0x16a   : > { %v9247_v58 = vpack.c.bf16 %v2117_v40, %v2116_v27  ;;  %v8071_v60 = vpop.f32.mrb[64].mxu0  ;;  %v3499_v12 = vsel %vm2350_vm4, %v3494_v30, %v3498_v39 }
 0x16b   : > { %v3608_v31 = vshrl.u32 %v9244_v56, 16  ;;  %v3611_v14 = vshll.u32 %v9244_v56, 16  ;;  %v1538_v19 = vadd.f32 %v9193_v16, %v8071_v60  ;;  %v1529_v3 = vpop.f32.mrb[65].mxu0  ;;  %v3555_v8 = vrot.slane %v9244_v56, 1 }
 0x16c   : > { %v1530_v47 = vadd.f32 %v9193_v16, %v1529_v3  ;;  %3510 = vrot.lane.b32.xlu0 %v3491_v62, %s8607_s25  ;;  %v8072_v7 = vpop.f32.mrb[66].mxu0  ;;  %v3554_v6 = vrot.slane %v9247_v58, 1  ;;  %v3504_v37 = vshll.u32 %v9247_v58, 16  ;;  %v3508_v0 = vshrl.u32 %v9247_v58, 16 }
 0x16d   : > { %v3610_v20 = vrot.slane %v3608_v31, 1  ;;  %v3613_v21 = vrot.slane %v3611_v14, 2  ;;  %v2122_v23 = vmax.f32 %v1538_v19, 0.0  ;;  %v1541_v36 = vadd.f32 %v9193_v16, %v8072_v7  ;;  %v1532_v28 = vpop.f32.mrb[67].mxu0  ;;  %3512 = vrot.lane.b32.xlu1 %v3499_v12, %s8607_s25  ;;  %v9267_v38 = vpop.permute.xlu1 %2495 }
 0x16e   : > { %v2120_v13 = vmax.f32 %v1530_v47, 0.0  ;;  %v1533_v61 = vadd.f32 %v9193_v16, %v1532_v28  ;;  %v3556_v51 = vsel %vm2412_vm5, %v3554_v6, %v3555_v8  ;;  %v3506_v26 = vrot.slane %v3504_v37, 1 }
 0x16f   : > { %v2123_v27 = vmax.f32 %v1541_v36, 0.0  ;;  %8178 = vmatmul.mubr.msk.bf16.gmra.mrb[172].mxu0 %vm937_vm2, %v8439_v5  ;;  %v3605_v29 = vrot.slane %v3504_v37, 2  ;;  %v3660_v40 = vrot.slane %v9247_v58, 4  ;;  %v3604_v56 = vrot.slane %v3508_v0, 1  ;;  %v8447_v5 = vld [vmem:[%s8660_s28 + $0x2c8] sm:$0xff]  }
 0x170   : > { %v2121_v32 = vmax.f32 %v1533_v61, 0.0  ;;  %3561 = vrot.lane.b32.xlu0 %v3556_v51, %s8606_s17  ;;  %v3507_v39 = vsel %vm2350_vm4, %v3502_v1, %v3506_v26  ;;  %8181 = vmatprep.mubr.msk.bf16.mxu0 %vm937_vm2, %v8445_v18  ;;  %v3614_v30 = vor.u32 %v3613_v21, %v3610_v20  ;;  %v8451_v20 = vld [vmem:[%s8660_s28 + $0x2d0] sm:$0xff]  }
 0x171   : > { %v9273_v55 = vpack.c.bf16 %v2123_v27, %v2122_v23  ;;  %3514 = vrot.lane.b32.xlu1 %v3507_v39, %s8607_s25  ;;  %v3661_v1 = vsel %vm1232_vm0, %v3658_v22, %v3660_v40  ;;  %v3606_v12 = vor.u32 %v3605_v29, %v3604_v56  ;;  %v9294_v51 = vpop.permute.xlu1 %2403 }
 0x172   : > { %v2284_v60 = vpack.c.bf16 %v2121_v32, %v2120_v13  ;;  %v8075_v62 = vpop.f32.mrb[68].mxu0 }
 0x173   : > { %v3570_v31 = vshrl.u32 %v9273_v55, 16  ;;  %v3573_v14 = vshll.u32 %v9273_v55, 16  ;;  %v1554_v19 = vadd.f32 %v9193_v16, %v8075_v62  ;;  %v1545_v3 = vpop.f32.mrb[69].mxu0  ;;  %v3615_v23 = vsel %vm2424_vm6, %v3606_v12, %v3614_v30 }
 0x174   : > { %v3617_v47 = vshrl.u32 %v2284_v60, 16  ;;  %v3620_v7 = vshll.u32 %v2284_v60, 16  ;;  %v1546_v6 = vadd.f32 %v9193_v16, %v1545_v3  ;;  %v8076_v37 = vpop.f32.mrb[70].mxu0  ;;  %v3557_v18 = vrot.slane %v2284_v60, 1  ;;  %3626 = vrot.lane.b32.xlu0 %v3615_v23, %s8607_s25 }
 0x175   : > { %v9289_v21 = vrot.slane %v3570_v31, 1  ;;  %v3575_v2 = vrot.slane %v3573_v14, 2  ;;  %v2126_v22 = vmax.f32 %v1554_v19, 0.0  ;;  %v1548_v36 = vpop.f32.mrb[71].mxu0  ;;  %v9292_v28 = vpop.permute.xlu0 %2497  ;;  %v1557_v27 = vadd.f32 %v9193_v16, %v8076_v37  ;;  %v8453_v37 = vld [vmem:[%s8660_s28 + $0x2d8] sm:$0xff]  }
 0x176   : > { %v3619_v13 = vrot.slane %v3617_v47, 1  ;;  %v3622_v61 = vrot.slane %v3620_v7, 2  ;;  %v2124_v26 = vmax.f32 %v1546_v6, 0.0  ;;  %v1549_v29 = vadd.f32 %v9193_v16, %v1548_v36 }
 0x177   : > { %8182 = vmatmul.mubr.msk.bf16.gmra.mrb[176].mxu0 %vm937_vm2, %v8447_v5  ;;  %v3558_v32 = vsel %vm2412_vm5, %v3555_v8, %v3557_v18  ;;  %v9302_v39 = vor.u32 %v3575_v2, %v9289_v21  ;;  %v3559_v56 = vrot.slane %v9273_v55, 1  ;;  %v2127_v60 = vmax.f32 %v1557_v27, 0.0  ;;  %v9321_v2 = vpop.permute.xlu1 %2405 }
 0x178   : > { %3563 = vrot.lane.b32.xlu1 %v3558_v32, %s8606_s17  ;;  %v3623_v62 = vor.u32 %v3622_v61, %v3619_v13  ;;  %8185 = vmatprep.mubr.msk.bf16.mxu0 %vm937_vm2, %v8451_v20  ;;  %v2125_v31 = vmax.f32 %v1549_v29, 0.0 }
 0x179   : > { %v3560_v14 = vsel %vm2412_vm5, %v3557_v18, %v3559_v56  ;;  %v2287_v19 = vpack.c.bf16 %v2127_v60, %v2126_v22  ;;  %3666 = vrot.lane.b32.xlu0 %v3661_v1, %s8606_s17  ;;  %v9311_v8 = vpop.permute.xlu0 %2512  ;;  %v3540_v18 = vor.u32 %v3538_v49, %v9207_v24 }
 0x17a   : > { %v3625_v3 = vsel %vm2424_vm6, %v3623_v62, %v9302_v39  ;;  %v3624_v12 = vsel %vm2424_vm6, %v3614_v30, %v3623_v62  ;;  %v8079_v5 = vpop.f32.mrb[72].mxu0  ;;  %v2286_v47 = vpack.c.bf16 %v2125_v31, %v2124_v26  ;;  %v8457_v30 = vld [vmem:[%s8660_s28 + $0x2e0] sm:$0xff]  }
 0x17b   : > { %v1570_v7 = vadd.f32 %v9193_v16, %v8079_v5  ;;  %v1561_v6 = vpop.f32.mrb[73].mxu0  ;;  %v3587_v20 = vshrl.u32 %v2287_v19, 16  ;;  %v3590_v1 = vshll.u32 %v2287_v19, 16  ;;  %v3541_v62 = vsel %vm2350_vm4, %v3540_v18, %v9225_v11 }
 0x17c   : > { %3628 = vrot.lane.b32.xlu1 %v3624_v12, %s8607_s25  ;;  %v1562_v22 = vadd.f32 %v9193_v16, %v1561_v6  ;;  %v8080_v23 = vpop.f32.mrb[74].mxu0  ;;  %v3578_v36 = vshrl.u32 %v2286_v47, 16  ;;  %v3581_v13 = vshll.u32 %v2286_v47, 16 }
 0x17d   : > { %v2130_v61 = vmax.f32 %v1570_v7, 0.0  ;;  %v1573_v26 = vadd.f32 %v9193_v16, %v8080_v23  ;;  %v3589_v27 = vrot.slane %v3587_v20, 1  ;;  %v3592_v29 = vrot.slane %v3590_v1, 2  ;;  %3630 = vrot.lane.b32.xlu0 %v3625_v3, %s8607_s25  ;;  %v1564_v49 = vpop.f32.mrb[75].mxu0  ;;  %v2375_v12 = vpop.permute.xlu0 %2374  ;;  %v8459_v1 = vld [vmem:[%s8660_s28 + $0x2e8] sm:$0xff]  }
 0x17e   : > { %v3580_v24 = vrot.slane %v3578_v36, 1  ;;  %v3583_v32 = vrot.slane %v3581_v13, 2  ;;  %v2128_v19 = vmax.f32 %v1562_v22, 0.0  ;;  %v9333_v5 = vpop.permute.xlu1 %2376  ;;  %v1565_v3 = vadd.f32 %v9193_v16, %v1564_v49  ;;  %v8461_v13 = vld [vmem:[%s8660_s28 + $0x2f0] sm:$0xff]  }
 0x17f   : > { %v2131_v60 = vmax.f32 %v1573_v26, 0.0  ;;  %8186 = vmatmul.mubr.msk.bf16.gmra.mrb[180].mxu0 %vm937_vm2, %v8453_v37  ;;  %v9331_v31 = vor.u32 %v3592_v29, %v3589_v27  ;;  %v2529_v37 = vsel %vm2527_vm7, %v8799_v17, %v2375_v12  ;;  %v2531_v58 = vsel %vm2527_vm7, %v8794_v15, %v9333_v5 }
 0x180   : > { %3546 = vrot.lane.b32.xlu1 %v3541_v62, %s8605_s24  ;;  %8189 = vmatprep.mubr.msk.bf16.mxu0 %vm937_vm2, %v8457_v30  ;;  %v3584_v47 = vor.u32 %v3583_v32, %v3580_v24  ;;  %v2129_v11 = vmax.f32 %v1565_v3, 0.0 }
 0x181   : > { %v9338_v7 = vpack.c.bf16 %v2131_v60, %v2130_v61  ;;  %3632 = vrot.lane.b32.xlu0 %v9289_v21, %s8607_s25 }
 0x182   : > { %v8083_v6 = vpop.f32.mrb[76].mxu0  ;;  %v9348_v30 = vpack.c.bf16 %v2129_v11, %v2128_v19  ;;  %v9355_v61 = vsel %vm2424_vm6, %v9302_v39, %v3584_v47  ;;  %v9359_v26 = vsel %vm2424_vm6, %v3584_v47, %v9331_v31  ;;  %v2419_v62 = vpop.permute.xlu1 %2418  ;;  %v2536_v11 = vsel %vm2534_vm8, %v2529_v37, %v9294_v51  ;;  %v8506_v51 = vld [vmem:[%s11929_s3 + $0x58] sm:$0xff]  }
 0x183   : > { %v1586_v18 = vadd.f32 %v9193_v16, %v8083_v6  ;;  %v1577_v20 = vpop.f32.mrb[77].mxu0  ;;  %v4148_v22 = vshll.u32 %v9338_v7, 16  ;;  %v4152_v23 = vshrl.u32 %v9338_v7, 16  ;;  %7968 = vmatprep.subr.bf16.mxu0 %v8506_v51 }
 0x184   : > { %v1578_v36 = vadd.f32 %v9193_v16, %v1577_v20  ;;  %3565 = vrot.lane.b32.xlu1 %v3560_v14, %s8606_s17  ;;  %v8084_v21 = vpop.f32.mrb[78].mxu0  ;;  %v3596_v14 = vshrl.u32 %v9348_v30, 16  ;;  %v3599_v60 = vshll.u32 %v9348_v30, 16 }
 0x185   : > { %v2134_v27 = vmax.f32 %v1586_v18, 0.0  ;;  %v1589_v29 = vadd.f32 %v9193_v16, %v8084_v21  ;;  %v1580_v49 = vpop.f32.mrb[79].mxu0  ;;  %v4254_v24 = vrot.slane %v4152_v23, 3  ;;  %v4255_v32 = vrot.slane %v4148_v22, 4  ;;  %3653 = vrot.lane.b32.xlu0 %v3643_v54, %s8605_s24  ;;  %v2478_v12 = vpop.permute.xlu0 %2477 }
 0x186   : > { %v2132_v19 = vmax.f32 %v1578_v36, 0.0  ;;  %v1581_v39 = vadd.f32 %v9193_v16, %v1580_v49  ;;  %v2553_v47 = vsel %vm2527_vm7, %v8987_v44, %v2478_v12  ;;  %v9375_v6 = vrot.slane %v3596_v14, 1  ;;  %v8463_v44 = vld [vmem:[%s11929_s3 + $0x80] sm:$0xff]   ;;  %v8507_v12 = vld [vmem:[%s11929_s3 + $0x18] sm:$0xff]  }
 0x187   : > { %v2135_v3 = vmax.f32 %v1589_v29, 0.0  ;;  %8190 = vmatmul.mubr.msk.bf16.gmra.mrb[184].mxu0 %vm937_vm2, %v8459_v1  ;;  %v9377_v18 = vrot.slane %v3599_v60, 2  ;;  %v2561_v54 = vsel %vm2534_vm8, %v2553_v47, %v9267_v38  ;;  %v4145_v36 = vrot.slane %v3599_v60, 1 }
 0x188   : > { %v2133_v20 = vmax.f32 %v1581_v39, 0.0  ;;  %3516 = vrot.lane.b32.xlu1 %v3508_v0, %s8607_s25  ;;  %8193 = vmatprep.mubr.msk.bf16.mxu0 %vm937_vm2, %v8461_v13  ;;  %v2567_v1 = vsel %vm2541_vm9, %v2561_v54, %v9311_v8  ;;  %v2543_v0 = vsel %vm2541_vm9, %v2536_v11, %v2419_v62  ;;  %v9401_v29 = vor.u32 %v4255_v32, %v4254_v24  ;;  %v8462_v62 = vld [vmem:[%s8660_s28 + $0x2f8] sm:$0xff]  }
 0x189   : > { %v9391_v37 = vpack.c.bf16 %v2135_v3, %v2134_v27  ;;  %3668 = vrot.lane.b32.xlu0 %v3660_v40, %s8606_s17  ;;  %v2515_v21 = vpop.permute.xlu0 %2514  ;;  %2767 = vmatprep.mubr.bf16.mxu1 %v2567_v1  ;;  %v3602_v27 = vor.u32 %v9377_v18, %v9375_v6  ;;  %v2522_v49 = vrot.slane %v8794_v15, 4  ;;  %v4146_v60 = vor.u32 %v4145_v36, %v3596_v14  ;;  %v8465_v18 = vld [vmem:[%s8660_s28 + $0x300] sm:$0xff]   ;;  %v8475_v15 = vld [vmem:[%s11929_s3 + $0x58] sm:$0xff]  }
 0x18a   : > { %v9396_v38 = vpack.c.bf16 %v2133_v20, %v2132_v19  ;;  %v2421_v13 = vpop.permute.xlu1 %2420  ;;  %2768 = vmatmul.mubr.bf16.vlgmr.msra.gmra.mrb[0].mxu1 %v2543_v0  ;;  %v8087_v8 = vpop.f32.mrb[80].mxu0  ;;  %v4150_v19 = vrot.slane %v4148_v22, 1  ;;  %v8464_v22 = vld [vmem:[%s11929_s3 + $0x88] sm:$0xff]   ;;  %v8467_v20 = vld [vmem:[%s11929_s3 + $0x40] sm:$0xff]   ;;  %7969 = vmatpush3.bf16.msra.mxu0 %v8507_v12 }
 0x18b   : > { %v4107_v39 = vshrl.u32 %v9391_v37, 16  ;;  %v1602_v40 = vadd.f32 %v9193_v16, %v8087_v8  ;;  %v1593_v24 = vpop.f32.mrb[81].mxu0  ;;  %8202 = vmatpush3.bf16.msra.mxu1 %v8463_v44  ;;  %v4109_v32 = vshll.u32 %v9391_v37, 16 }
 0x18c   : > { %3548 = vrot.lane.b32.xlu1 %v9188_v57, %s8605_s24  ;;  %v4156_v14 = vshll.u32 %v9396_v38, 16  ;;  %v1594_v5 = vadd.f32 %v9193_v16, %v1593_v24  ;;  %v8088_v3 = vpop.f32.mrb[82].mxu0  ;;  %v4160_v47 = vshrl.u32 %v9396_v38, 16  ;;  %v4154_v11 = vor.u32 %v4152_v23, %v4150_v19  ;;  %8203 = vmatprep.subr.bf16.mxu1 %v11940_v4 }
 0x18d   : > { %v4261_v57 = vrot.slane %v4107_v39, 3  ;;  %v2138_v54 = vmax.f32 %v1602_v40, 0.0  ;;  %4265 = vrot.lane.b32.xlu0 %v9401_v29, %s8605_s24  ;;  %v1605_v44 = vadd.f32 %v9193_v16, %v8088_v3  ;;  %v2480_v51 = vpop.permute.xlu0 %2479  ;;  %v4262_v36 = vrot.slane %v4109_v32, 4  ;;  %v1596_v24 = vpop.f32.mrb[83].mxu0 }
 0x18e   : > { %v2379_v1 = vpop.permute.xlu1 %2378  ;;  %v4258_v0 = vrot.slane %v4156_v14, 4  ;;  %v2136_v8 = vmax.f32 %v1594_v5, 0.0  ;;  %v2556_v23 = vsel %vm2527_vm7, %v8991_v45, %v2480_v51  ;;  %v4151_v63 = vsel %vm2350_vm4, %v4146_v60, %v4150_v19 }
 0x18f   : > { %8194 = vmatmul.mubr.msk.bf16.gmra.mrb[188].mxu0 %vm937_vm2, %v8462_v62  ;;  %v4257_v40 = vrot.slane %v4160_v47, 3  ;;  %v2139_v34 = vmax.f32 %v1605_v44, 0.0  ;;  %v1597_v3 = vadd.f32 %v9193_v16, %v1596_v24  ;;  %v2563_v12 = vsel %vm2534_vm8, %v2556_v23, %v9292_v28  ;;  %8204 = vmatpush3.bf16.msra.mxu1 %v8464_v22 }
 0x190   : > { %3567 = vrot.lane.b32.xlu1 %v3559_v56, %s8606_s17  ;;  %v9448_v5 = vor.u32 %v4262_v36, %v4261_v57  ;;  %v2570_v45 = vsel %vm2541_vm9, %v2563_v12, %v2515_v21  ;;  %v2538_v62 = vsel %vm2534_vm8, %v2531_v58, %v9321_v2  ;;  %v9453_v19 = vrot.slane %v4156_v14, 1  ;;  %8197 = vmatprep.mubr.msk.bf16.mxu0 %vm937_vm2, %v8465_v18  ;;  %v8466_v18 = vld [vmem:[%s8660_s28 + $0x308] sm:$0xff]  }
 0x191   : > { %v4259_v60 = vor.u32 %v4258_v0, %v4257_v40  ;;  %7728 = vmatprep.subr.bf16.mxu1 %v8467_v20  ;;  %v9456_v55 = vpack.c.bf16 %v2139_v34, %v2138_v54  ;;  %v2137_v56 = vmax.f32 %v1597_v3, 0.0  ;;  %4164 = vrot.lane.b32.xlu0 %v4151_v63, %s8605_s24  ;;  %v2482_v28 = vpop.permute.xlu0 %2481  ;;  %v2546_v21 = vsel %vm2541_vm9, %v2538_v62, %v2421_v13 }
 0x192   : > { %2775 = vmatprep.mubr.bf16.mxu1 %v2570_v45  ;;  %v2408_v22 = vpop.permute.xlu1 %2407  ;;  %v9462_v2 = vsel %vm2424_vm6, %v9331_v31, %v3602_v27  ;;  %v2521_v58 = vrot.slane %v8799_v17, 4  ;;  %v8091_v14 = vpop.f32.mrb[84].mxu0  ;;  %v4159_v57 = vsel %vm2350_vm4, %v4154_v11, %v9453_v19  ;;  %v9469_v63 = vrot.slane %v4109_v32, 1 }
 0x193   : > { %2776 = vmatmul.mubr.bf16.gmra.mrb[4].mxu1 %v2546_v21  ;;  %v4264_v34 = vsel %vm2483_vm3, %v4259_v60, %v9448_v5  ;;  %v2533_v13 = vsel %vm2527_vm7, %v8829_v48, %v2379_v1  ;;  %v2292_v20 = vpack.c.bf16 %v2137_v56, %v2136_v8  ;;  %v1618_v31 = vadd.f32 %v9193_v16, %v8091_v14  ;;  %v1609_v27 = vpop.f32.mrb[85].mxu0 }
 0x194   : > { %4166 = vrot.lane.b32.xlu1 %v4159_v57, %s8605_s24  ;;  %v1610_v54 = vadd.f32 %v9193_v16, %v1609_v27  ;;  %v8092_v44 = vpop.f32.mrb[86].mxu0  ;;  %v4260_v51 = vsel %vm2483_vm3, %v9401_v29, %v4259_v60  ;;  %v4276_v11 = vrot.slane %v9456_v55, 4  ;;  %v4122_v32 = vshll.u32 %v9456_v55, 16 }
 0x195   : > { %v4126_v0 = vshrl.u32 %v9456_v55, 16  ;;  %v2142_v36 = vmax.f32 %v1618_v31, 0.0  ;;  %4269 = vrot.lane.b32.xlu0 %v4264_v34, %s8605_s24  ;;  %v1621_v1 = vadd.f32 %v9193_v16, %v8092_v44  ;;  %v1612_v8 = vpop.f32.mrb[87].mxu0  ;;  %v2500_v23 = vpop.permute.xlu0 %2499  ;;  %v4275_v24 = vrot.slane %v2292_v20, 4 }
 0x196   : > { %v2140_v40 = vmax.f32 %v1610_v54, 0.0  ;;  %v1613_v3 = vadd.f32 %v9193_v16, %v1612_v8  ;;  %v2423_v12 = vpop.permute.xlu1 %2422  ;;  %v9488_v29 = vor.u32 %v9469_v63, %v4107_v39  ;;  %v4114_v45 = vshll.u32 %v2292_v20, 16 }
 0x197   : > { %8198 = vmatmul.mubr.msk.bf16.gmra.mrb[192].mxu0 %vm937_vm2, %v8466_v18  ;;  %v2559_v62 = vsel %vm2527_vm7, %v8976_v33, %v2482_v28  ;;  %v2143_v60 = vmax.f32 %v1621_v1, 0.0  ;;  %v4277_v56 = vsel %vm1232_vm0, %v4275_v24, %v4276_v11  ;;  %v4124_v21 = vrot.slane %v4122_v32, 1 }
 0x198   : > { %4267 = vrot.lane.b32.xlu1 %v4260_v51, %s8605_s24  ;;  %v4118_v14 = vshrl.u32 %v2292_v20, 16  ;;  %v2540_v34 = vsel %vm2534_vm8, %v2533_v13, %v2408_v22  ;;  %v2141_v57 = vmax.f32 %v1613_v3, 0.0  ;;  %v4116_v39 = vrot.slane %v4114_v45, 1 }
 0x199   : > { %v9498_v31 = vpack.c.bf16 %v2143_v60, %v2142_v36  ;;  %v2565_v18 = vsel %vm2534_vm8, %v2559_v62, %v2500_v23  ;;  %4280 = vrot.lane.b32.xlu0 %v4275_v24, %s8606_s17  ;;  %v2517_v33 = vpop.permute.xlu0 %2516  ;;  %v2549_v27 = vsel %vm2541_vm9, %v2540_v34, %v2423_v12  ;;  %v4128_v54 = vor.u32 %v4126_v0, %v4124_v21 }
 0x19a   : > { %v8095_v28 = vpop.f32.mrb[88].mxu0  ;;  %v9503_v44 = vpack.c.bf16 %v2141_v57, %v2140_v40  ;;  %v4117_v22 = vsel %vm2350_vm4, %v9488_v29, %v4116_v39  ;;  %v2573_v13 = vsel %vm2541_vm9, %v2565_v18, %v2517_v33  ;;  %v4120_v12 = vor.u32 %v4118_v14, %v4116_v39 }
 0x19b   : > { %v1634_v51 = vadd.f32 %v9193_v16, %v8095_v28  ;;  %v1625_v20 = vpop.f32.mrb[89].mxu0  ;;  %v4224_v32 = vshrl.u32 %v9498_v31, 16  ;;  %v4227_v36 = vshll.u32 %v9498_v31, 16  ;;  %2783 = vmatprep.mubr.bf16.mxu1 %v2573_v13  ;;  %v4177_v8 = vrot.slane %v9498_v31, 1 }
 0x19c   : > { %v1626_v1 = vadd.f32 %v9193_v16, %v1625_v20  ;;  %4282 = vrot.lane.b32.xlu1 %v4277_v56, %s8606_s17  ;;  %v8096_v0 = vpop.f32.mrb[90].mxu0  ;;  %2784 = vmatmul.mubr.bf16.gmra.mrb[8].mxu1 %v2549_v27  ;;  %v4176_v3 = vrot.slane %v9503_v44, 1  ;;  %v4125_v14 = vsel %vm2350_vm4, %v4120_v12, %v4124_v21  ;;  %v11935_v39 = vshrl.u32 %v9503_v44, 16 }
 0x19d   : > { %v2146_v23 = vmax.f32 %v1634_v51, 0.0  ;;  %v1637_v24 = vadd.f32 %v9193_v16, %v8096_v0  ;;  %v1628_v40 = vpop.f32.mrb[91].mxu0  ;;  %v4226_v45 = vrot.slane %v4224_v32, 1  ;;  %v4229_v62 = vrot.slane %v4227_v36, 2  ;;  %4137 = vrot.lane.b32.xlu0 %v4117_v22, %s8607_s25  ;;  %8205 = vmatprep.mubr.msk.bf16.mxu1 %vm8609_vm10, %v11940_v4  ;;  %v9520_v57 = vpop.permute.xlu0 %3041 }
 0x19e   : > { %v2144_v60 = vmax.f32 %v1626_v1, 0.0  ;;  %v1629_v34 = vadd.f32 %v9193_v16, %v1628_v40  ;;  %v4178_v18 = vsel %vm2412_vm5, %v4176_v3, %v4177_v8  ;;  %v4130_v27 = vshll.u32 %v9503_v44, 16  ;;  %v8469_v1 = vld [vmem:[%s11929_s3] sm:$0xff]  }
 0x19f   : > { %v2147_v56 = vmax.f32 %v1637_v24, 0.0  ;;  %v4230_v28 = vor.u32 %v4229_v62, %v4226_v45  ;;  %v11934_v51 = vrot.slane %v9503_v44, 4  ;;  %v4222_v22 = vrot.slane %v11935_v39, 1  ;;  %v8471_v45 = vld [vmem:[%s11929_s3 + $0x48] sm:$0xff]  }
 0x1a0   : > { %v2145_v33 = vmax.f32 %v1629_v34, 0.0  ;;  %4139 = vrot.lane.b32.xlu1 %v4125_v14, %s8607_s25  ;;  %v2523_v21 = vsel %vm1232_vm0, %v2521_v58, %v2522_v49  ;;  %v9540_v36 = vrot.slane %v4130_v27, 1  ;;  %v2524_v17 = vrot.slane %v8829_v48, 4  ;;  %v8478_v48 = vld [vmem:[%s11929_s3 + $0x20] sm:$0xff]  }
 0x1a1   : > { %v9530_v20 = vpack.c.bf16 %v2147_v56, %v2146_v23  ;;  %4183 = vrot.lane.b32.xlu0 %v4178_v18, %s8606_s17  ;;  %v4279_v0 = vsel %vm1232_vm0, %v4276_v11, %v11934_v51  ;;  %v4231_v40 = vsel %vm2424_vm6, %v4222_v22, %v4230_v28  ;;  %v9565_v14 = vpop.permute.xlu0 %2948  ;;  %vm2891_vm2 = vsmask.f32 7938 }
 0x1a2   : > { %v2296_v13 = vpack.c.bf16 %v2145_v33, %v2144_v60  ;;  %v8099_v32 = vpop.f32.mrb[92].mxu0  ;;  %v4133_v11 = vsel %vm2350_vm4, %v4128_v54, %v9540_v36 }
 0x1a3   : > { %v4192_v58 = vshrl.u32 %v9530_v20, 16  ;;  %v4241_v23 = vshll.u32 %v9530_v20, 16  ;;  %v1650_v24 = vadd.f32 %v9193_v16, %v8099_v32  ;;  %v9555_v3 = vpop.permute.xlu1 %2950  ;;  %v1641_v12 = vpop.f32.mrb[93].mxu0 }
 0x1a4   : > { %v4233_v55 = vshrl.u32 %v2296_v13, 16  ;;  %v4236_v62 = vshll.u32 %v2296_v13, 16  ;;  %v1642_v60 = vadd.f32 %v9193_v16, %v1641_v12  ;;  %v8100_v34 = vpop.f32.mrb[94].mxu0  ;;  %4141 = vrot.lane.b32.xlu1 %v4133_v11, %s8607_s25  ;;  %8206 = vmatmul.mubr.msk.bf16.vlgmr.msra.gmra.mrb[12].mxu1 %vm2527_vm7, %v2523_v21  ;;  %v8472_v21 = vld [vmem:[%s11929_s3 + $0x8] sm:$0xff]  }
 0x1a5   : > { %v9563_v56 = vrot.slane %v4192_v58, 1  ;;  %v4243_v18 = vrot.slane %v4241_v23, 2  ;;  %v2150_v33 = vmax.f32 %v1650_v24, 0.0  ;;  %v1653_v27 = vadd.f32 %v9193_v16, %v8100_v34  ;;  %v1644_v22 = vpop.f32.mrb[95].mxu0  ;;  %4246 = vrot.lane.b32.xlu0 %v4231_v40, %s8607_s25  ;;  %7729 = vmatpush3.bf16.msra.mxu1 %v8469_v1 }
 0x1a6   : > { %v4235_v32 = vrot.slane %v4233_v55, 1  ;;  %v4238_v51 = vrot.slane %v4236_v62, 2  ;;  %v2148_v54 = vmax.f32 %v1642_v60, 0.0  ;;  %v1645_v12 = vadd.f32 %v9193_v16, %v1644_v22  ;;  %7730 = vmatprep.subr.bf16.mxu1 %v8471_v45  ;;  %8209 = vmatprep.mubr.msk.bf16.mxu1 %vm8609_vm10, %v11940_v4 }
 0x1a7   : > { %v2151_v58 = vmax.f32 %v1653_v27, 0.0  ;;  %v4179_v23 = vrot.slane %v2296_v13, 1  ;;  %v9572_v39 = vpop.permute.xlu1 %3043  ;;  %v4244_v24 = vor.u32 %v4243_v18, %v9563_v56  ;;  %v4181_v40 = vrot.slane %v9530_v20, 1  ;;  %v8473_v13 = vld [vmem:[%s11929_s3 + $0x50] sm:$0xff]   ;;  %v8485_v20 = vld [vmem:[%s11929_s3 + $0x80] sm:$0xff]  }
 0x1a8   : > { %v2149_v55 = vmax.f32 %v1645_v12, 0.0  ;;  %v4239_v62 = vor.u32 %v4238_v51, %v4235_v32  ;;  %v2525_v22 = vsel %vm1232_vm0, %v2522_v49, %v2524_v17 }
 0x1a9   : > { %v2299_v1 = vpack.c.bf16 %v2151_v58, %v2150_v33  ;;  %v4180_v45 = vsel %vm2412_vm5, %v4177_v8, %v4179_v23  ;;  %v9587_v11 = vpop.permute.xlu0 %3057  ;;  %v9592_v60 = vsel %vm2412_vm5, %v4179_v23, %v4181_v40  ;;  %4284 = vrot.lane.b32.xlu0 %v4279_v0, %s8606_s17  ;;  %7731 = vmatpush3.bf16.msra.mxu1 %v8472_v21  ;;  %v8474_v0 = vld [vmem:[%s11929_s3 + $0x10] sm:$0xff]  }
 0x1aa   : > { %v2298_v34 = vpack.c.bf16 %v2149_v55, %v2148_v54  ;;  %4185 = vrot.lane.b32.xlu1 %v4180_v45, %s8606_s17  ;;  %v4245_v51 = vsel %vm2424_vm6, %v4239_v62, %v4244_v24  ;;  %v4240_v18 = vsel %vm2424_vm6, %v4230_v28, %v4239_v62  ;;  %v8103_v33 = vpop.f32.mrb[96].mxu0  ;;  %7732 = vmatprep.subr.bf16.mxu1 %v8473_v13 }
 0x1ab   : > { %v4205_v31 = vshrl.u32 %v2299_v1, 16  ;;  %v4208_v27 = vshll.u32 %v2299_v1, 16  ;;  %v9598_v8 = vpop.permute.xlu1 %3059  ;;  %v1666_v32 = vadd.f32 %v9193_v16, %v8103_v33  ;;  %v1657_v54 = vpop.f32.mrb[97].mxu0  ;;  %v4162_v58 = vor.u32 %v4160_v47, %v9453_v19 }
 0x1ac   : > { %v4196_v28 = vshrl.u32 %v2298_v34, 16  ;;  %v4199_v12 = vshll.u32 %v2298_v34, 16  ;;  %v1658_v23 = vadd.f32 %v9193_v16, %v1657_v54  ;;  %v8104_v49 = vpop.f32.mrb[98].mxu0  ;;  %8210 = vmatmul.mubr.msk.bf16.gmra.mrb[16].mxu1 %vm2527_vm7, %v2525_v22 }
 0x1ad   : > { %v4207_v21 = vrot.slane %v4205_v31, 1  ;;  %v4210_v55 = vrot.slane %v4208_v27, 2  ;;  %v2920_v62 = vpop.permute.xlu0 %2919  ;;  %v2154_v1 = vmax.f32 %v1666_v32, 0.0  ;;  %v1669_v45 = vadd.f32 %v9193_v16, %v8104_v49  ;;  %v1660_v13 = vpop.f32.mrb[99].mxu0  ;;  %4250 = vrot.lane.b32.xlu0 %v4245_v51, %s8607_s25  ;;  %7733 = vmatpush3.bf16.msra.mxu1 %v8474_v0  ;;  %v8476_v31 = vld [vmem:[%s11929_s3 + $0x18] sm:$0xff]   ;;  %v8477_v51 = vld [vmem:[%s11929_s3 + $0x60] sm:$0xff]  }
 0x1ae   : > { %v4198_v34 = vrot.slane %v4196_v28, 1  ;;  %v4201_v33 = vrot.slane %v4199_v12, 2  ;;  %4248 = vrot.lane.b32.xlu1 %v4240_v18, %s8607_s25  ;;  %v2152_v19 = vmax.f32 %v1658_v23, 0.0  ;;  %v1661_v27 = vadd.f32 %v9193_v16, %v1660_v13  ;;  %8213 = vmatprep.mubr.msk.bf16.mxu1 %vm8609_vm10, %v11940_v4 }
 0x1af   : > { %v9620_v47 = vor.u32 %v4210_v55, %v4207_v21  ;;  %v2155_v54 = vmax.f32 %v1669_v45, 0.0  ;;  %7734 = vmatprep.subr.bf16.mxu1 %v8475_v15  ;;  %v3073_v18 = vsel %vm2527_vm7, %v8984_v59, %v2920_v62  ;;  %v4163_v0 = vsel %vm2350_vm4, %v4162_v58, %v9469_v63  ;;  %v2922_v32 = vpop.permute.xlu1 %2921 }
 0x1b0   : > { %v4202_v22 = vor.u32 %v4201_v33, %v4198_v34  ;;  %v2153_v12 = vmax.f32 %v1661_v27, 0.0  ;;  %v11967_v49 = vrot.slane %v8824_v46, 4  ;;  %v3066_v58 = vrot.slane %v8984_v59, 4  ;;  %v8479_v34 = vld [vmem:[%s11929_s3 + $0x68] sm:$0xff]  }
 0x1b1   : > { %v9635_v28 = vpack.c.bf16 %v2155_v54, %v2154_v1  ;;  %4252 = vrot.lane.b32.xlu0 %v4244_v24, %s8607_s25  ;;  %v2963_v23 = vpop.permute.xlu0 %2962  ;;  %v3067_v24 = vrot.slane %v8981_v43, 4  ;;  %7735 = vmatpush3.bf16.msra.mxu1 %v8476_v31 }
 0x1b2   : > { %4168 = vrot.lane.b32.xlu1 %v4163_v0, %s8605_s24  ;;  %v8107_v15 = vpop.f32.mrb[100].mxu0  ;;  %v2526_v21 = vsel %vm1232_vm0, %v2524_v17, %v11967_v49  ;;  %v9646_v55 = vsel %vm2424_vm6, %v9563_v56, %v4202_v22  ;;  %v9650_v63 = vsel %vm2424_vm6, %v4202_v22, %v9620_v47  ;;  %v2300_v62 = vpack.c.bf16 %v2153_v12, %v2152_v19 }
 0x1b3   : > { %v1682_v46 = vadd.f32 %v9193_v16, %v8107_v15  ;;  %v1673_v1 = vpop.f32.mrb[101].mxu0  ;;  %v3075_v17 = vsel %vm2527_vm7, %v8981_v43, %v2922_v32  ;;  %v3079_v56 = vsel %vm2534_vm8, %v3073_v18, %v9565_v14  ;;  %7736 = vmatprep.subr.bf16.mxu1 %v8477_v51  ;;  %v4756_v33 = vshll.u32 %v9635_v28, 16 }
 0x1b4   : > { %v1674_v45 = vadd.f32 %v9193_v16, %v1673_v1  ;;  %v8108_v13 = vpop.f32.mrb[102].mxu0  ;;  %v9668_v19 = vsel %vm2541_vm9, %v3079_v56, %v2963_v23  ;;  %v4214_v54 = vshrl.u32 %v2300_v62, 16  ;;  %8214 = vmatmul.mubr.msk.bf16.gmra.mrb[20].mxu1 %vm2527_vm7, %v2526_v21  ;;  %v4217_v22 = vshll.u32 %v2300_v62, 16 }
 0x1b5   : > { %v2158_v31 = vmax.f32 %v1682_v46, 0.0  ;;  %v1685_v27 = vadd.f32 %v9193_v16, %v8108_v13  ;;  %v1676_v14 = vpop.f32.mrb[103].mxu0  ;;  %4271 = vrot.lane.b32.xlu0 %v9448_v5, %s8605_s24  ;;  %v4754_v0 = vshrl.u32 %v9635_v28, 16  ;;  %v3069_v32 = vrot.slane %v9014_v52, 4  ;;  %7737 = vmatpush3.bf16.msra.mxu1 %v8478_v48  ;;  %v8480_v5 = vld [vmem:[%s11929_s3 + $0x28] sm:$0xff]  }
 0x1b6   : > { %4187 = vrot.lane.b32.xlu1 %v9592_v60, %s8606_s17  ;;  %v2156_v51 = vmax.f32 %v1674_v45, 0.0  ;;  %v1677_v18 = vadd.f32 %v9193_v16, %v1676_v14  ;;  %v11968_v23 = vshrl.u32 %v9503_v44, 16  ;;  %v3081_v49 = vsel %vm2534_vm8, %v3075_v17, %v9555_v3  ;;  %v3021_v60 = vpop.permute.xlu0 %3020  ;;  %7738 = vmatprep.subr.bf16.mxu1 %v8479_v34  ;;  %v8481_v16 = vld [vmem:[%s11929_s3 + $0x70] sm:$0xff]  }
 0x1b7   : > { %v2159_v12 = vmax.f32 %v1685_v27, 0.0  ;;  %v4758_v62 = vrot.slane %v4756_v33, 1  ;;  %v9690_v46 = vrot.slane %v4754_v0, 3  ;;  %v9692_v1 = vrot.slane %v4756_v33, 4  ;;  %v9728_v27 = vld [vmem:[%s11928_s2] ss:$0 sm:$0xff] }
 0x1b8   : > { %v4136_v15 = vor.u32 %v11968_v23, %v9540_v36  ;;  %v2157_v21 = vmax.f32 %v1677_v18, 0.0  ;;  %v3161_v36 = vrot.slane %v9668_v19, 2  ;;  %v9695_v48 = vrot.slane %v4214_v54, 1  ;;  %v8526_v54 = vld [vmem:[%s11929_s3 + $0x60] sm:$0xff]   ;;  %v8483_v23 = vld [vmem:[%s11929_s3 + $0x78] sm:$0xff]  }
 0x1b9   : > { %v3092_v3 = vsel %vm2527_vm7, %v9150_v41, %v3021_v60  ;;  %v9699_v17 = vpack.c.bf16 %v2159_v12, %v2158_v31  ;;  %v2965_v56 = vpop.permute.xlu1 %2964  ;;  %v9701_v45 = vrot.slane %v4217_v22, 2  ;;  %v11969_v33 = vrot.slane %v9503_v44, 4  ;;  %7739 = vmatpush3.bf16.msra.mxu1 %v8480_v5  ;;  %7970 = vmatprep.subr.bf16.mxu0 %v8526_v54 }
 0x1ba   : > { %v3100_v13 = vsel %vm2534_vm8, %v3092_v3, %v9520_v57  ;;  %v9705_v34 = vpack.c.bf16 %v2157_v21, %v2156_v51  ;;  %4143 = vrot.lane.b32.xlu1 %v4136_v15, %s8607_s25  ;;  %v9712_v19 = vsel %vm2541_vm9, %v3081_v49, %v2965_v56  ;;  %v8111_v41 = vpop.f32.mrb[104].mxu0  ;;  %v8527_v57 = vld [vmem:[%s11929_s3 + $0x20] sm:$0xff]   ;;  %v8482_v51 = vld [vmem:[%s11929_s3 + $0x30] sm:$0xff]   ;;  %7740 = vmatprep.subr.bf16.mxu1 %v8481_v16 }
 0x1bb   : > { %4286 = vrot.lane.b32.xlu0 %v11969_v33, %s8606_s17  ;;  %v9722_v31 = vsel %vm2541_vm9, %v3100_v13, %v9587_v11  ;;  %v3162_v44 = vrot.slane %v9712_v19, 2  ;;  %v1698_v14 = vadd.f32 %v9728_v27, %v8111_v41  ;;  %v1689_v22 = vpop.f32.mrb[105].mxu0  ;;  %v4769_v18 = vshll.u32 %v9699_v17, 16  ;;  %7971 = vmatpush3.bf16.msra.mxu0 %v8527_v57  ;;  %v8484_v57 = vld [vmem:[%s11929_s3 + $0x38] sm:$0xff]  }
 0x1bc   : > { %v1690_v11 = vadd.f32 %v9728_v27, %v1689_v22  ;;  %v8112_v12 = vpop.f32.mrb[106].mxu0  ;;  %v4759_v15 = vor.u32 %v4758_v62, %v4754_v0  ;;  %v4761_v49 = vshll.u32 %v9705_v34, 16  ;;  %v4856_v5 = vor.u32 %v9692_v1, %v9690_v46 }
 0x1bd   : > { %v2162_v60 = vmax.f32 %v1698_v14, 0.0  ;;  %v1701_v21 = vadd.f32 %v9728_v27, %v8112_v12  ;;  %v3025_v3 = vpop.permute.xlu0 %3024  ;;  %v1692_v56 = vpop.f32.mrb[107].mxu0  ;;  %v3164_v13 = vrot.slane %v9722_v31, 2  ;;  %v4765_v16 = vshrl.u32 %v9705_v34, 16  ;;  %7741 = vmatpush3.bf16.msra.mxu1 %v8482_v51 }
 0x1be   : > { %v2160_v33 = vmax.f32 %v1690_v11, 0.0  ;;  %4170 = vrot.lane.b32.xlu1 %v9488_v29, %s8605_s24  ;;  %v1693_v0 = vadd.f32 %v9728_v27, %v1692_v56  ;;  %v3023_v62 = vpop.permute.xlu1 %3022  ;;  %v4763_v41 = vrot.slane %v4761_v49, 1  ;;  %v3163_v46 = vsel %vm3160_vm11, %v3161_v36, %v3162_v44  ;;  %7742 = vmatprep.subr.bf16.mxu1 %v8483_v23 }
 0x1bf   : > { %v2163_v1 = vmax.f32 %v1701_v21, 0.0  ;;  %v3095_v54 = vsel %vm2527_vm7, %v9154_v42, %v3023_v62  ;;  %v9758_v29 = vrot.slane %v4769_v18, 1  ;;  %v4857_v31 = vrot.slane %v4765_v16, 3 }
 0x1c0   : > { %v3098_v14 = vsel %vm2527_vm7, %v9142_v25, %v3025_v3  ;;  %v2161_v22 = vmax.f32 %v1693_v0, 0.0  ;;  %v3102_v36 = vsel %vm2534_vm8, %v3095_v54, %v9572_v39  ;;  %v4767_v11 = vor.u32 %v4765_v16, %v4763_v41 }
 0x1c1   : > { %v9764_v42 = vpack.c.bf16 %v2163_v1, %v2162_v60  ;;  %v3108_v51 = vsel %vm2541_vm9, %v3102_v36, %v9598_v8  ;;  %v3046_v12 = vpop.permute.xlu0 %3045  ;;  %v4764_v21 = vsel %vm2350_vm4, %v4759_v15, %v4763_v41  ;;  %v4858_v56 = vrot.slane %v4761_v49, 4  ;;  %7743 = vmatpush3.bf16.msra.mxu1 %v8484_v57 }
 0x1c2   : > { %v9769_v62 = vpack.c.bf16 %v2161_v22, %v2160_v33  ;;  %4189 = vrot.lane.b32.xlu1 %v4181_v40, %s8606_s17  ;;  %v3104_v25 = vsel %vm2534_vm8, %v3098_v14, %v3046_v12  ;;  %v2924_v39 = vpop.permute.xlu1 %2923  ;;  %v8115_v23 = vpop.f32.mrb[108].mxu0  ;;  %v3165_v3 = vrot.slane %v3108_v51, 2  ;;  %v4773_v60 = vshrl.u32 %v9699_v17, 16  ;;  %8217 = vmatprep.subr.bf16.mxu1 %v11940_v4 }
 0x1c3   : > { %v4736_v16 = vshrl.u32 %v9764_v42, 16  ;;  %v1714_v8 = vadd.f32 %v9728_v27, %v8115_v23  ;;  %v1705_v15 = vpop.f32.mrb[109].mxu0  ;;  %v4772_v49 = vsel %vm2350_vm4, %v4767_v11, %v9758_v29  ;;  %v4859_v40 = vor.u32 %v4858_v56, %v4857_v31 }
 0x1c4   : > { %v4725_v33 = vshrl.u32 %v9769_v62, 16  ;;  %v4727_v0 = vshll.u32 %v9769_v62, 16  ;;  %v1706_v41 = vadd.f32 %v9728_v27, %v1705_v15  ;;  %v8116_v1 = vpop.f32.mrb[110].mxu0  ;;  %v3166_v54 = vsel %vm3160_vm11, %v3164_v13, %v3165_v3 }
 0x1c5   : > { %v2166_v57 = vmax.f32 %v1714_v8, 0.0  ;;  %v1717_v14 = vadd.f32 %v9728_v27, %v8116_v1  ;;  %v3062_v22 = vpop.permute.xlu0 %3061  ;;  %3331 = vmatprep.mubr.bf16.mxu1 %v3166_v54  ;;  %v1708_v36 = vpop.f32.mrb[111].mxu0  ;;  %v4860_v11 = vsel %vm2483_vm3, %v4856_v5, %v4859_v40  ;;  %v4732_v31 = vshll.u32 %v9764_v42, 16 }
 0x1c6   : > { %v4729_v51 = vrot.slane %v4727_v0, 1  ;;  %v2164_v12 = vmax.f32 %v1706_v41, 0.0  ;;  %4776 = vrot.lane.b32.xlu1 %v4764_v21, %s8605_s24  ;;  %v3110_v56 = vsel %vm2541_vm9, %v3104_v25, %v3062_v22  ;;  %v1709_v13 = vadd.f32 %v9728_v27, %v1708_v36  ;;  %3332 = vmatmul.mubr.bf16.vlgmr.msra.gmra.mrb[24].mxu1 %v3163_v46  ;;  %v2953_v23 = vpop.permute.xlu1 %2952  ;;  %v8486_v0 = vld [vmem:[%s11929_s3 + $0x88] sm:$0xff]  }
 0x1c7   : > { %v3077_v8 = vsel %vm2527_vm7, %v9014_v52, %v2924_v39  ;;  %v2167_v15 = vmax.f32 %v1717_v14, 0.0  ;;  %v3172_v1 = vrot.slane %v3110_v56, 2  ;;  %8218 = vmatpush3.bf16.msra.mxu1 %v8485_v20  ;;  %4865 = vrot.lane.b32.xlu0 %v4860_v11, %s8605_s24  ;;  %v4734_v5 = vrot.slane %v4732_v31, 1  ;;  %v8489_v39 = vld [vmem:[%s11929_s3 + $0x40] sm:$0xff]  }
 0x1c8   : > { %v2165_v21 = vmax.f32 %v1709_v13, 0.0  ;;  %v4730_v41 = vor.u32 %v4729_v51, %v4725_v33  ;;  %8219 = vmatprep.subr.bf16.mxu1 %v11940_v4  ;;  %v4861_v46 = vrot.slane %v4773_v60, 3  ;;  %v4862_v25 = vrot.slane %v4769_v18, 4 }
 0x1c9   : > { %v9808_v20 = vpack.c.bf16 %v2167_v15, %v2166_v57  ;;  %v3083_v54 = vsel %vm2534_vm8, %v3077_v8, %v2953_v23  ;;  %v3173_v14 = vsel %vm3160_vm11, %v3165_v3, %v3172_v1  ;;  %v4738_v22 = vor.u32 %v4736_v16, %v4734_v5 }
 0x1ca   : > { %v9812_v33 = vpack.c.bf16 %v2165_v21, %v2164_v12  ;;  %4778 = vrot.lane.b32.xlu1 %v4772_v49, %s8605_s24  ;;  %3339 = vmatprep.mubr.bf16.mxu1 %v3173_v14  ;;  %v2967_v36 = vpop.permute.xlu1 %2966  ;;  %v8119_v11 = vpop.f32.mrb[112].mxu0  ;;  %v4735_v18 = vsel %vm2350_vm4, %v4730_v41, %v4734_v5  ;;  %v9816_v31 = vor.u32 %v4862_v25, %v4861_v46  ;;  %v4875_v51 = vrot.slane %v9764_v42, 4 }
 0x1cb   : > { %v9820_v57 = vsel %vm2541_vm9, %v3083_v54, %v2967_v36  ;;  %v1730_v56 = vadd.f32 %v9728_v27, %v8119_v11  ;;  %v1721_v3 = vpop.f32.mrb[113].mxu0  ;;  %8220 = vmatpush3.bf16.msra.mxu1 %v8486_v0  ;;  %v11936_v16 = vrot.slane %v9769_v62, 4  ;;  %v4823_v49 = vshrl.u32 %v9808_v20, 16 }
 0x1cc   : > { %v3170_v12 = vrot.slane %v9820_v57, 2  ;;  %v1722_v13 = vadd.f32 %v9728_v27, %v1721_v3  ;;  %v8120_v23 = vpop.f32.mrb[114].mxu0  ;;  %v4740_v8 = vshll.u32 %v9812_v33, 16  ;;  %v4864_v42 = vsel %vm2483_vm3, %v4859_v40, %v9816_v31  ;;  %7767 = vmatprep.subr.bf16.mxu1 %v8489_v39  ;;  %v9835_v21 = vpop.permute.xlu0 %3647 }
 0x1cd   : > { %v9832_v15 = vor.u32 %v9701_v45, %v9695_v48  ;;  %v2170_v5 = vmax.f32 %v1730_v56, 0.0  ;;  %v1733_v0 = vadd.f32 %v9728_v27, %v8120_v23  ;;  %v1724_v41 = vpop.f32.mrb[115].mxu0  ;;  %4867 = vrot.lane.b32.xlu0 %v4864_v42, %s8605_s24  ;;  %v4876_v46 = vsel %vm1232_vm0, %v11936_v16, %v4875_v51 }
 0x1ce   : > { %v2168_v25 = vmax.f32 %v1722_v13, 0.0  ;;  %4747 = vrot.lane.b32.xlu1 %v4735_v18, %s8607_s25  ;;  %v1725_v40 = vadd.f32 %v9728_v27, %v1724_v41  ;;  %v3171_v48 = vsel %vm3160_vm11, %v3162_v44, %v3170_v12  ;;  %v9846_v45 = vrot.slane %v4740_v8, 1 }
 0x1cf   : > { %v2171_v39 = vmax.f32 %v1733_v0, 0.0  ;;  %3340 = vmatmul.mubr.bf16.gmra.mrb[28].mxu1 %v3171_v48  ;;  %v4825_v54 = vrot.slane %v4823_v49, 1  ;;  %v4826_v14 = vshll.u32 %v9808_v20, 16  ;;  %v4877_v36 = vrot.slane %v9812_v33, 4 }
 0x1d0   : > { %v2169_v11 = vmax.f32 %v1725_v40, 0.0  ;;  %3347 = vmatprep.mubr.bf16.mxu1 %v3172_v1  ;;  %v4743_v18 = vsel %vm2350_vm4, %v4738_v22, %v9846_v45  ;;  %v9857_v19 = vsel %vm1232_vm0, %v3066_v58, %v3067_v24  ;;  %v4879_v44 = vrot.slane %v9808_v20, 4  ;;  %v9862_v56 = vpop.permute.xlu0 %3542 }
 0x1d1   : > { %v9860_v57 = vpack.c.bf16 %v2171_v39, %v2170_v5  ;;  %4881 = vrot.lane.b32.xlu0 %v4876_v46, %s8606_s17  ;;  %v4828_v3 = vrot.slane %v4826_v14, 2  ;;  %v9870_v1 = vsel %vm1232_vm0, %v3067_v24, %v3069_v32  ;;  %v9873_v59 = vsel %vm1232_vm0, %v4875_v51, %v4877_v36 }
 0x1d2   : > { %v2308_v58 = vpack.c.bf16 %v2169_v11, %v2168_v25  ;;  %4749 = vrot.lane.b32.xlu1 %v4743_v18, %s8607_s25  ;;  %v4785_v22 = vrot.slane %v9808_v20, 1  ;;  %v8123_v49 = vpop.f32.mrb[116].mxu0  ;;  %v9878_v13 = vsel %vm1232_vm0, %v4877_v36, %v4879_v44  ;;  %v9883_v23 = vsel %vm2424_vm6, %v9620_v47, %v9832_v15 }
 0x1d3   : > { %v4840_v43 = vshrl.u32 %v9860_v57, 16  ;;  %v4843_v24 = vshll.u32 %v9860_v57, 16  ;;  %v9887_v51 = vpop.permute.xlu1 %3544  ;;  %v4829_v8 = vor.u32 %v4828_v3, %v4825_v54  ;;  %v4788_v42 = vrot.slane %v9860_v57, 1  ;;  %v1737_v5 = vpop.f32.mrb[117].mxu0  ;;  %v8497_v57 = vld [vmem:[%s11929_s3 + $0x60] sm:$0xff]  }
 0x1d4   : > { %v4831_v20 = vshrl.u32 %v2308_v58, 16  ;;  %v4834_v0 = vshll.u32 %v2308_v58, 16  ;;  %v4786_v41 = vrot.slane %v2308_v58, 1  ;;  %v1746_v46 = vadd.f32 %v9728_v27, %v8123_v49  ;;  %v8124_v25 = vpop.f32.mrb[118].mxu0 }
 0x1d5   : > { %v4842_v40 = vrot.slane %v4840_v43, 1  ;;  %v4845_v48 = vrot.slane %v4843_v24, 2  ;;  %v1738_v47 = vadd.f32 %v9728_v27, %v1737_v5  ;;  %v1749_v39 = vadd.f32 %v9728_v27, %v8124_v25  ;;  %v1740_v14 = vpop.f32.mrb[119].mxu0 }
 0x1d6   : > { %v4833_v36 = vrot.slane %v4831_v20, 1  ;;  %v4836_v11 = vrot.slane %v4834_v0, 2  ;;  %v9893_v18 = vpop.permute.xlu0 %3651  ;;  %v4787_v54 = vsel %vm2412_vm5, %v4785_v22, %v4786_v41  ;;  %v4789_v44 = vsel %vm2412_vm5, %v4786_v41, %v4788_v42 }
 0x1d7   : > { %3348 = vmatmul.mubr.bf16.gmra.mrb[32].mxu1 %v3170_v12  ;;  %4790 = vrot.lane.b32.xlu1 %v4787_v54, %s8606_s17  ;;  %v9900_v3 = vpop.permute.xlu1 %3649  ;;  %v2174_v58 = vmax.f32 %v1746_v46, 0.0  ;;  %v2172_v49 = vmax.f32 %v1738_v47, 0.0  ;;  %v2175_v43 = vmax.f32 %v1749_v39, 0.0  ;;  %v1741_v24 = vadd.f32 %v9728_v27, %v1740_v14 }
 0x1d8   : > { %v4837_v5 = vor.u32 %v4836_v11, %v4833_v36  ;;  %8221 = vmatprep.mubr.msk.bf16.mxu1 %vm8609_vm10, %v11940_v4  ;;  %v3168_v22 = vrot.slane %v9870_v1, 2  ;;  %v4744_v20 = vshrl.u32 %v9812_v33, 16  ;;  %v9907_v0 = vor.u32 %v4845_v48, %v4842_v40 }
 0x1d9   : > { %v2311_v12 = vpack.c.bf16 %v2175_v43, %v2174_v58  ;;  %v2173_v41 = vmax.f32 %v1741_v24, 0.0  ;;  %v3167_v47 = vrot.slane %v9857_v19, 2  ;;  %v11970_v24 = vrot.slane %v9012_v10, 4 }
 0x1da   : > { %v9909_v25 = vpop.permute.xlu0 %3662  ;;  %v4838_v46 = vsel %vm2424_vm6, %v4829_v8, %v4837_v5  ;;  %v8127_v39 = vpop.f32.mrb[120].mxu0  ;;  %v4847_v14 = vsel %vm2424_vm6, %v4837_v5, %v9907_v0  ;;  %v8490_v8 = vld [vmem:[%s11929_s3] sm:$0xff]   ;;  %v4746_v58 = vor.u32 %v4744_v20, %v9846_v45 }
 0x1db   : > { %4848 = vrot.lane.b32.xlu0 %v4838_v46, %s8607_s25  ;;  %4792 = vrot.lane.b32.xlu1 %v4789_v44, %s8606_s17  ;;  %v9917_v36 = vpop.permute.xlu1 %3664  ;;  %v4805_v33 = vshrl.u32 %v2311_v12, 16  ;;  %v4808_v40 = vshll.u32 %v2311_v12, 16  ;;  %v2310_v48 = vpack.c.bf16 %v2173_v41, %v2172_v49  ;;  %v1762_v11 = vadd.f32 %v9728_v27, %v8127_v39  ;;  %v1753_v54 = vpop.f32.mrb[121].mxu0 }
 0x1dc   : > { %v3169_v19 = vsel %vm3160_vm11, %v3167_v47, %v3168_v22  ;;  %v1754_v44 = vadd.f32 %v9728_v27, %v1753_v54  ;;  %v8128_v43 = vpop.f32.mrb[122].mxu0  ;;  %v9933_v49 = vsel %vm1232_vm0, %v3069_v32, %v11970_v24  ;;  %v8491_v47 = vld [vmem:[%s11929_s3 + $0x48] sm:$0xff]   ;;  %v3674_v24 = vrot.slane %v9184_v50, 4 }
 0x1dd   : > { %v4807_v5 = vrot.slane %v4805_v33, 1  ;;  %v4810_v12 = vrot.slane %v4808_v40, 2  ;;  %v4797_v41 = vshrl.u32 %v2310_v48, 16  ;;  %v4800_v46 = vshll.u32 %v2310_v48, 16  ;;  %v1756_v39 = vpop.f32.mrb[123].mxu0 }
 0x1de   : > { %v3511_v45 = vpop.permute.xlu0 %3510  ;;  %v2178_v20 = vmax.f32 %v1762_v11, 0.0  ;;  %v2176_v54 = vmax.f32 %v1754_v44, 0.0  ;;  %v1765_v16 = vadd.f32 %v9728_v27, %v8128_v43  ;;  %v1757_v10 = vadd.f32 %v9728_v27, %v1756_v39  ;;  %v8492_v11 = vld [vmem:[%s11929_s3 + $0x8] sm:$0xff]  }
 0x1df   : > { %v9940_v52 = vor.u32 %v4810_v12, %v4807_v5  ;;  %8222 = vmatmul.mubr.msk.bf16.vlgmr.msra.gmra.mrb[36].mxu1 %vm2527_vm7, %v3169_v19  ;;  %v4799_v32 = vrot.slane %v4797_v41, 1  ;;  %v4802_v33 = vrot.slane %v4800_v46, 2  ;;  %4883 = vrot.lane.b32.xlu0 %v9873_v59, %s8606_s17  ;;  %v3513_v40 = vpop.permute.xlu1 %3512  ;;  %v3174_v43 = vrot.slane %v9933_v49, 2  ;;  %v8493_v59 = vld [vmem:[%s11929_s3 + $0x50] sm:$0xff]   ;;  %v8545_v49 = vld [vmem:[%s11929_s3 + $0x68] sm:$0xff]  }
 0x1e0   : > { %7768 = vmatpush3.bf16.msra.mxu1 %v8490_v8  ;;  %4751 = vrot.lane.b32.xlu1 %v4746_v58, %s8607_s25  ;;  %v2179_v48 = vmax.f32 %v1765_v16, 0.0  ;;  %v2177_v44 = vmax.f32 %v1757_v10, 0.0  ;;  %v3679_v16 = vsel %vm2527_vm7, %v9156_v9, %v3511_v45  ;;  %v4775_v12 = vor.u32 %v4773_v60, %v9758_v29 }
 0x1e1   : > { %v4803_v19 = vor.u32 %v4802_v33, %v4799_v32  ;;  %7769 = vmatprep.subr.bf16.mxu1 %v8491_v47  ;;  %8225 = vmatprep.mubr.msk.bf16.mxu1 %vm8609_vm10, %v11940_v4  ;;  %v3673_v46 = vrot.slane %v9144_v35, 4  ;;  %v11937_v9 = vrot.slane %v9182_v53, 4  ;;  %v3175_v60 = vsel %vm3160_vm11, %v3168_v22, %v3174_v43 }
 0x1e2   : > { %v3562_v8 = vpop.permute.xlu0 %3561  ;;  %v9958_v58 = vpack.c.bf16 %v2179_v48, %v2178_v20  ;;  %v2312_v5 = vpack.c.bf16 %v2177_v44, %v2176_v54  ;;  %v8131_v41 = vpop.f32.mrb[124].mxu0  ;;  %v3687_v54 = vsel %vm2534_vm8, %v3679_v16, %v9862_v56  ;;  %7972 = vmatprep.subr.bf16.mxu0 %v8545_v49 }
 0x1e3   : > { %4850 = vrot.lane.b32.xlu0 %v4847_v14, %s8607_s25  ;;  %v1778_v47 = vadd.f32 %v9728_v27, %v8131_v41  ;;  %v1769_v39 = vpop.f32.mrb[125].mxu0  ;;  %v9968_v10 = vsel %vm2424_vm6, %v4803_v19, %v9940_v52  ;;  %v8494_v14 = vld [vmem:[%s11929_s3 + $0x10] sm:$0xff]   ;;  %v9990_v1 = vsel %vm1232_vm0, %v3673_v46, %v3674_v24  ;;  %v3515_v44 = vpop.permute.xlu1 %3514  ;;  %v9997_v16 = vsel %vm2541_vm9, %v3687_v54, %v3562_v8 }
 0x1e4   : > { %v5288_v45 = vshll.u32 %v9958_v58, 16  ;;  %7770 = vmatpush3.bf16.msra.mxu1 %v8492_v11  ;;  %v4814_v20 = vshrl.u32 %v2312_v5, 16  ;;  %4780 = vrot.lane.b32.xlu1 %v4775_v12, %s8605_s24  ;;  %v8132_v29 = vpop.f32.mrb[126].mxu0  ;;  %v4817_v32 = vshll.u32 %v2312_v5, 16  ;;  %v1770_v33 = vadd.f32 %v9728_v27, %v1769_v39  ;;  %v8495_v11 = vld [vmem:[%s11929_s3 + $0x58] sm:$0xff]  }
 0x1e5   : > { %7771 = vmatprep.subr.bf16.mxu1 %v8493_v59  ;;  %v1772_v48 = vpop.f32.mrb[127].mxu0  ;;  %v2182_v19 = vmax.f32 %v1778_v47, 0.0  ;;  %v1781_v12 = vadd.f32 %v9728_v27, %v8132_v29  ;;  %v3681_v59 = vsel %vm2527_vm7, %v9144_v35, %v3513_v40  ;;  %v8496_v35 = vld [vmem:[%s11929_s3 + $0x18] sm:$0xff]   ;;  %v5286_v40 = vshrl.u32 %v9958_v58, 16 }
 0x1e6   : > { %v4816_v22 = vrot.slane %v4814_v20, 1  ;;  %v1773_v56 = vadd.f32 %v9728_v27, %v1772_v48  ;;  %v4819_v5 = vrot.slane %v4817_v32, 2  ;;  %v2180_v41 = vmax.f32 %v1770_v33, 0.0  ;;  %v3627_v39 = vpop.permute.xlu0 %3626 }
 0x1e7   : > { %8226 = vmatmul.mubr.msk.bf16.gmra.mrb[40].mxu1 %vm2527_vm7, %v3175_v60  ;;  %4852 = vrot.lane.b32.xlu0 %v9907_v0, %s8607_s25  ;;  %v2183_v20 = vmax.f32 %v1781_v12, 0.0  ;;  %v5290_v8 = vrot.slane %v5288_v45, 1  ;;  %v3704_v0 = vsel %vm2527_vm7, %v9355_v61, %v3627_v39  ;;  %v10032_v48 = vsel %vm1232_vm0, %v3674_v24, %v11937_v9 }
 0x1e8   : > { %7772 = vmatpush3.bf16.msra.mxu1 %v8494_v14  ;;  %v2181_v47 = vmax.f32 %v1773_v56, 0.0  ;;  %4794 = vrot.lane.b32.xlu1 %v4788_v42, %s8606_s17  ;;  %v10009_v29 = vor.u32 %v4819_v5, %v4816_v22  ;;  %v10018_v42 = vrot.slane %v3673_v46, 4  ;;  %v3715_v14 = vsel %vm2534_vm8, %v3704_v0, %v9835_v21 }
 0x1e9   : > { %7773 = vmatprep.subr.bf16.mxu1 %v8495_v11  ;;  %8229 = vmatprep.mubr.msk.bf16.mxu1 %vm8609_vm10, %v11940_v4  ;;  %v10023_v54 = vpack.c.bf16 %v2183_v20, %v2182_v19  ;;  %v3781_v46 = vrot.slane %v9997_v16, 4  ;;  %v3689_v11 = vsel %vm2534_vm8, %v3681_v59, %v9887_v51  ;;  %v10047_v24 = vsel %vm2527_vm7, %v9184_v50, %v3515_v44  ;;  %v8498_v51 = vld [vmem:[%s11929_s3 + $0x20] sm:$0xff]   ;;  %v8499_v20 = vld [vmem:[%s11929_s3 + $0x68] sm:$0xff]  }
 0x1ea   : > { %v10025_v32 = vpack.c.bf16 %v2181_v47, %v2180_v41  ;;  %v3564_v61 = vpop.permute.xlu1 %3563  ;;  %v8135_v33 = vpop.f32.mrb[128].mxu0  ;;  %v10043_v19 = vsel %vm2424_vm6, %v9940_v52, %v10009_v29  ;;  %v10052_v59 = vrot.slane %v5286_v40, 3  ;;  %v10054_v5 = vrot.slane %v5288_v45, 4 }
 0x1eb   : > { %11971 = vst [vmem:[#allocation2_spill] sm:$0xff] %v10023_v54  ;;  %4869 = vrot.lane.b32.xlu0 %v9816_v31, %s8605_s24  ;;  %v1794_v21 = vadd.f32 %v9728_v27, %v8135_v33  ;;  %v1785_v22 = vpop.f32.mrb[129].mxu0  ;;  %v3667_v12 = vpop.permute.xlu0 %3666  ;;  %v5291_v31 = vor.u32 %v5290_v8, %v5286_v40  ;;  %v10058_v52 = vsel %vm2541_vm9, %v3715_v14, %v9909_v25  ;;  %v5301_v41 = vshll.u32 %v10023_v54, 16 }
 0x1ec   : > { %11972 = vst [vmem:[#allocation3_spill] sm:$0xff] %v10025_v32  ;;  %7774 = vmatpush3.bf16.msra.mxu1 %v8496_v35  ;;  %v8136_v56 = vpop.f32.mrb[130].mxu0  ;;  %v10062_v50 = vsel %vm2541_vm9, %v3689_v11, %v3564_v61  ;;  %v1786_v44 = vadd.f32 %v9728_v27, %v1785_v22  ;;  %v5293_v40 = vshll.u32 %v10025_v32, 16  ;;  %v11938_v8 = vshrl.u32 %v10023_v54, 16  ;;  %v8500_v22 = vld [vmem:[%s11929_s3 + $0x28] sm:$0xff]  }
 0x1ed   : > { %7775 = vmatprep.subr.bf16.mxu1 %v8497_v57  ;;  %v1788_v39 = vpop.f32.mrb[131].mxu0  ;;  %v2186_v45 = vmax.f32 %v1794_v21, 0.0  ;;  %v1797_v35 = vadd.f32 %v9728_v27, %v8136_v56  ;;  %v5297_v0 = vshrl.u32 %v10025_v32, 16  ;;  %v8501_v56 = vld [vmem:[%s11929_s3 + $0x70] sm:$0xff]  }
 0x1ee   : > { %v3629_v47 = vpop.permute.xlu1 %3628  ;;  %v1789_v25 = vadd.f32 %v9728_v27, %v1788_v39  ;;  %v2184_v14 = vmax.f32 %v1786_v44, 0.0  ;;  %v5388_v44 = vor.u32 %v10054_v5, %v10052_v59  ;;  %v3784_v59 = vrot.slane %v10058_v52, 4 }
 0x1ef   : > { %v3707_v57 = vsel %vm2527_vm7, %v9359_v26, %v3629_v47  ;;  %8230 = vmatmul.mubr.msk.bf16.gmra.mrb[44].mxu1 %vm2527_vm7, %v3174_v43  ;;  %4885 = vrot.lane.b32.xlu0 %v9878_v13, %s8606_s17  ;;  %v3631_v61 = vpop.permute.xlu0 %3630  ;;  %v2187_v11 = vmax.f32 %v1797_v35, 0.0  ;;  %v10085_v26 = vrot.slane %v5293_v40, 1  ;;  %v8546_v13 = vld [vmem:[%s11929_s3 + $0x28] sm:$0xff]   ;;  %v3782_v43 = vrot.slane %v10062_v50, 4 }
 0x1f0   : > { %v3717_v33 = vsel %vm2534_vm8, %v3707_v57, %v9900_v3  ;;  %7776 = vmatpush3.bf16.msra.mxu1 %v8498_v51  ;;  %v2185_v21 = vmax.f32 %v1789_v25, 0.0  ;;  %v3710_v3 = vsel %vm2527_vm7, %v9462_v2, %v3631_v61  ;;  %7973 = vmatpush3.bf16.msra.mxu0 %v8546_v13  ;;  %v8502_v61 = vld [vmem:[%s11929_s3 + $0x30] sm:$0xff]   ;;  %v5393_v52 = vrot.slane %v11938_v8, 3 }
 0x1f1   : > { %v10098_v51 = vsel %vm2541_vm9, %v3717_v33, %v9917_v36  ;;  %7777 = vmatprep.subr.bf16.mxu1 %v8499_v20  ;;  %v3719_v39 = vsel %vm2534_vm8, %v3710_v3, %v9893_v18  ;;  %v10107_v47 = vpack.c.bf16 %v2187_v11, %v2186_v45  ;;  %v5296_v36 = vsel %vm2350_vm4, %v5291_v31, %v10085_v26 }
 0x1f2   : > { %v10109_v35 = vpack.c.bf16 %v2185_v21, %v2184_v14  ;;  %v3547_v2 = vpop.permute.xlu1 %3546  ;;  %v8139_v25 = vpop.f32.mrb[132].mxu0  ;;  %v3785_v5 = vrot.slane %v10098_v51, 4  ;;  %v5389_v18 = vrot.slane %v5297_v0, 3  ;;  %v10120_v45 = vsel %vm2541_vm9, %v3719_v39, %v3667_v12 }
 0x1f3   : > { %v1810_v20 = vadd.f32 %v9728_v27, %v8139_v25  ;;  %v1801_v57 = vpop.f32.mrb[133].mxu0  ;;  %5308 = vrot.lane.b32.xlu0 %v5296_v36, %s8605_s24  ;;  %v3633_v14 = vpop.permute.xlu0 %3632  ;;  %v5390_v33 = vrot.slane %v5293_v40, 4  ;;  %v5394_v11 = vrot.slane %v5301_v41, 4  ;;  %v8503_v40 = vld [vmem:[%s11929_s3 + $0x78] sm:$0xff]   ;;  %v5411_v8 = vrot.slane %v10107_v47, 4 }
 0x1f4   : > { %11973 = vst [vmem:[#allocation4_spill] sm:$0xff] %v10109_v35  ;;  %7778 = vmatpush3.bf16.msra.mxu1 %v8500_v22  ;;  %v8140_v31 = vpop.f32.mrb[134].mxu0  ;;  %v5259_v12 = vshll.u32 %v10109_v35, 16  ;;  %v3691_v22 = vsel %vm2534_vm8, %v10047_v24, %v3547_v2  ;;  %v1802_v39 = vadd.f32 %v9728_v27, %v1801_v57  ;;  %v3786_v36 = vsel %vm1232_vm0, %v3784_v59, %v3785_v5  ;;  %v8504_v59 = vld [vmem:[%s11929_s3 + $0x38] sm:$0xff]  }
 0x1f5   : > { %v1804_v13 = vpop.f32.mrb[135].mxu0  ;;  %7779 = vmatprep.subr.bf16.mxu1 %v8501_v56  ;;  %v2190_v3 = vmax.f32 %v1810_v20, 0.0  ;;  %v1813_v25 = vadd.f32 %v9728_v27, %v8140_v31  ;;  %v11939_v56 = vrot.slane %v10109_v35, 4  ;;  %3957 = vmatprep.mubr.bf16.mxu1 %v3786_v36  ;;  %v5391_v31 = vor.u32 %v5390_v33, %v5389_v18 }
 0x1f6   : > { %v3566_v9 = vpop.permute.xlu1 %3565  ;;  %v1805_v2 = vadd.f32 %v9728_v27, %v1804_v13  ;;  %v2188_v60 = vmax.f32 %v1802_v39, 0.0  ;;  %v5261_v24 = vrot.slane %v5259_v12, 1  ;;  %v3713_v36 = vsel %vm2527_vm7, %v9375_v6, %v3633_v14 }
 0x1f7   : > { %v2191_v20 = vmax.f32 %v1813_v25, 0.0  ;;  %v3654_v49 = vpop.permute.xlu0 %3653  ;;  %v10147_v57 = vsel %vm2541_vm9, %v3691_v22, %v3566_v9  ;;  %v10156_v13 = vor.u32 %v5394_v11, %v5393_v52  ;;  %v5392_v9 = vsel %vm2483_vm3, %v5388_v44, %v5391_v31 }
 0x1f8   : > { %7780 = vmatpush3.bf16.msra.mxu1 %v8502_v61  ;;  %v2189_v21 = vmax.f32 %v1805_v2, 0.0  ;;  %v5299_v33 = vor.u32 %v5297_v0, %v10085_v26  ;;  %v10166_v22 = vrot.slane %v5301_v41, 1  ;;  %v11942_v6 = vrot.slane %v10147_v57, 4  ;;  %5401 = vrot.lane.b32.xlu0 %v5392_v9, %s8605_s24 }
 0x1f9   : > { %7781 = vmatprep.subr.bf16.mxu1 %v8503_v40  ;;  %v10158_v39 = vpack.c.bf16 %v2191_v20, %v2190_v3  ;;  %v5396_v14 = vsel %vm2483_vm3, %v5391_v31, %v10156_v13  ;;  %v3721_v11 = vsel %vm2534_vm8, %v3713_v36, %v3654_v49  ;;  %v8505_v31 = vld [vmem:[%s11929_s3 + $0x80] sm:$0xff]   ;;  %v3783_v9 = vsel %vm1232_vm0, %v3781_v46, %v3782_v43 }
 0x1fa   : > { %v3517_v61 = vpop.permute.xlu1 %3516  ;;  %v8143_v18 = vpop.f32.mrb[136].mxu0  ;;  %v10168_v25 = vpack.c.bf16 %v2189_v21, %v2188_v60  ;;  %5403 = vrot.lane.b32.xlu1 %v5396_v14, %s8605_s24  ;;  %v5412_v60 = vsel %vm1232_vm0, %v11939_v56, %v5411_v8  ;;  %v3792_v21 = vrot.slane %v10120_v45, 4  ;;  %v5304_v49 = vsel %vm2350_vm4, %v5299_v33, %v10166_v22 }
 0x1fb   : > { %v1826_v44 = vadd.f32 %v9728_v27, %v8143_v18  ;;  %v1817_v52 = vpop.f32.mrb[137].mxu0  ;;  %v3669_v0 = vpop.permute.xlu0 %3668  ;;  %v11975_v46 = vshrl.u32 %v10109_v35, 16  ;;  %v3685_v51 = vsel %vm2527_vm7, %v9182_v53, %v3517_v61 }
 0x1fc   : > { %7782 = vmatpush3.bf16.msra.mxu1 %v8504_v59  ;;  %v1818_v41 = vadd.f32 %v9728_v27, %v1817_v52  ;;  %v8144_v26 = vpop.f32.mrb[138].mxu0  ;;  %v5272_v40 = vshll.u32 %v10168_v25, 16  ;;  %v5413_v3 = vrot.slane %v10168_v25, 4  ;;  %v3729_v2 = vsel %vm2541_vm9, %v3721_v11, %v3669_v0  ;;  %5417 = vrot.lane.b32.xlu0 %v5412_v60, %s8606_s17 }
 0x1fd   : > { %v1820_v20 = vpop.f32.mrb[139].mxu0  ;;  %8233 = vmatprep.subr.bf16.mxu1 %v11940_v4  ;;  %v3798_v59 = vrot.slane %v3729_v2, 4  ;;  %v2194_v36 = vmax.f32 %v1826_v44, 0.0  ;;  %v1829_v45 = vadd.f32 %v9728_v27, %v8144_v26  ;;  %v3793_v52 = vsel %vm1232_vm0, %v3785_v5, %v3792_v21 }
 0x1fe   : > { %v3549_v18 = vpop.permute.xlu1 %3548  ;;  %v2192_v14 = vmax.f32 %v1818_v41, 0.0  ;;  %v1821_v33 = vadd.f32 %v9728_v27, %v1820_v20  ;;  %v11974_v44 = vshll.u32 %v10107_v47, 16  ;;  %5310 = vrot.lane.b32.xlu1 %v5304_v49, %s8605_s24  ;;  %v5262_v41 = vor.u32 %v5261_v24, %v11975_v46  ;;  %v8508_v24 = vld [vmem:[%s11929_s3 + $0x88] sm:$0xff]  }
 0x1ff   : > { %3958 = vmatmul.mubr.bf16.vlgmr.msra.gmra.mrb[48].mxu1 %v3783_v9  ;;  %v2195_v0 = vmax.f32 %v1829_v45, 0.0  ;;  %v10205_v16 = vpop.permute.xlu0 %4265  ;;  %v5414_v60 = vsel %vm1232_vm0, %v5411_v8, %v5413_v3  ;;  %v10212_v26 = vrot.slane %v5272_v40, 1  ;;  %v11976_v2 = vshrl.u32 %v10107_v47, 16 }
 0x200   : > { %v5266_v11 = vrot.slane %v11974_v44, 1  ;;  %3965 = vmatprep.mubr.bf16.mxu1 %v3793_v52  ;;  %v2193_v5 = vmax.f32 %v1821_v33, 0.0  ;;  %8234 = vmatpush3.bf16.msra.mxu1 %v8505_v31  ;;  %v3799_v20 = vsel %vm1232_vm0, %v3792_v21, %v3798_v59  ;;  %v3693_v8 = vsel %vm2534_vm8, %v3685_v51, %v3549_v18  ;;  %v8509_v21 = vld [vmem:[%s11929_s3 + $0x40] sm:$0xff]  }
 0x201   : > { %v10222_v45 = vpack.c.bf16 %v2195_v0, %v2194_v36  ;;  %v3791_v47 = vsel %vm1232_vm0, %v3782_v43, %v11942_v6  ;;  %8235 = vmatprep.subr.bf16.mxu1 %v11940_v4  ;;  %v5317_v36 = vrot.slane %v10158_v39, 1 }
 0x202   : > { %v5270_v49 = vor.u32 %v11976_v2, %v5266_v11  ;;  %v5267_v40 = vsel %vm2350_vm4, %v5262_v41, %v5266_v11  ;;  %v3568_v9 = vpop.permute.xlu1 %3567  ;;  %v8147_v61 = vpop.f32.mrb[140].mxu0  ;;  %v2320_v31 = vpack.c.bf16 %v2193_v5, %v2192_v14  ;;  %5419 = vrot.lane.b32.xlu1 %v5414_v60, %s8606_s17  ;;  %v5355_v14 = vshrl.u32 %v10158_v39, 16 }
 0x203   : > { %5279 = vrot.lane.b32.xlu0 %v5267_v40, %s8607_s25  ;;  %v1842_v18 = vadd.f32 %v9728_v27, %v8147_v61  ;;  %v1833_v50 = vpop.f32.mrb[141].mxu0  ;;  %v11943_v43 = vrot.slane %v10222_v45, 1  ;;  %v5372_v33 = vshrl.u32 %v10222_v45, 16  ;;  %v5375_v52 = vshll.u32 %v10222_v45, 16  ;;  %v10244_v44 = vpop.permute.xlu0 %4164 }
 0x204   : > { %v5275_v59 = vsel %vm2350_vm4, %v5270_v49, %v10212_v26  ;;  %v8148_v11 = vpop.f32.mrb[142].mxu0  ;;  %v5318_v0 = vrot.slane %v2320_v31, 1  ;;  %v5363_v46 = vshrl.u32 %v2320_v31, 16  ;;  %v5366_v41 = vshll.u32 %v2320_v31, 16  ;;  %8236 = vmatpush3.bf16.msra.mxu1 %v8508_v24 }
 0x205   : > { %v3701_v51 = vsel %vm2541_vm9, %v3693_v8, %v3568_v9  ;;  %v1836_v5 = vpop.f32.mrb[143].mxu0  ;;  %v5374_v2 = vrot.slane %v5372_v33, 1  ;;  %v5377_v49 = vrot.slane %v5375_v52, 2  ;;  %v2198_v61 = vmax.f32 %v1842_v18, 0.0  ;;  %7806 = vmatprep.subr.bf16.mxu1 %v8509_v21 }
 0x206   : > { %v10248_v40 = vpop.permute.xlu1 %4166  ;;  %v1834_v56 = vadd.f32 %v9728_v27, %v1833_v50  ;;  %v5365_v60 = vrot.slane %v5363_v46, 1  ;;  %v5368_v4 = vrot.slane %v5366_v41, 2  ;;  %v5319_v6 = vsel %vm2412_vm5, %v5317_v36, %v5318_v0  ;;  %5281 = vrot.lane.b32.xlu1 %v5275_v59, %s8607_s25 }
 0x207   : > { %3966 = vmatmul.mubr.bf16.gmra.mrb[52].mxu1 %v3791_v47  ;;  %v5321_v31 = vsel %vm2412_vm5, %v5318_v0, %v11943_v43  ;;  %v10256_v24 = vpop.permute.xlu0 %4269  ;;  %v5357_v8 = vrot.slane %v5355_v14, 1  ;;  %v5358_v9 = vshll.u32 %v10158_v39, 16  ;;  %v5378_v18 = vor.u32 %v5377_v49, %v5374_v2  ;;  %5322 = vrot.lane.b32.xlu0 %v5319_v6, %s8606_s17 }
 0x208   : > { %3973 = vmatprep.mubr.bf16.mxu1 %v3799_v20  ;;  %v1845_v21 = vadd.f32 %v9728_v27, %v8148_v11  ;;  %v11977_v50 = vshrl.u32 %v10109_v35, 16  ;;  %v2196_v36 = vmax.f32 %v1834_v56, 0.0  ;;  %v5369_v33 = vor.u32 %v5368_v4, %v5365_v60 }
 0x209   : > { %v1837_v52 = vadd.f32 %v9728_v27, %v1836_v5  ;;  %v10268_v59 = vrot.slane %v5259_v12, 4  ;;  %v3796_v20 = vrot.slane %v3701_v51, 4  ;;  %v5360_v0 = vrot.slane %v5358_v9, 2 }
 0x20a   : > { %v10262_v47 = vrot.slane %v11977_v50, 3  ;;  %v10270_v14 = vpop.permute.xlu1 %4267  ;;  %v2199_v46 = vmax.f32 %v1845_v21, 0.0  ;;  %v8151_v11 = vpop.f32.mrb[144].mxu0  ;;  %v5379_v41 = vsel %vm2424_vm6, %v5369_v33, %v5378_v18  ;;  %v5415_v4 = vrot.slane %v10158_v39, 4  ;;  %5324 = vrot.lane.b32.xlu1 %v5321_v31, %s8606_s17 }
 0x20b   : > { %v2197_v2 = vmax.f32 %v1837_v52, 0.0  ;;  %v1858_v49 = vadd.f32 %v9728_v27, %v8151_v11  ;;  %v1849_v6 = vpop.f32.mrb[145].mxu0  ;;  %v5276_v56 = vshrl.u32 %v10168_v25, 16  ;;  %v10277_v12 = vpop.permute.xlu0 %4280  ;;  %v5361_v51 = vor.u32 %v5360_v0, %v5357_v8  ;;  %v10296_v25 = vld [vmem:[%s11928_s2] ss:$0 sm:$0xff] }
 0x20c   : > { %v2323_v5 = vpack.c.bf16 %v2199_v46, %v2198_v61  ;;  %v1850_v60 = vadd.f32 %v9728_v27, %v1849_v6  ;;  %v8152_v9 = vpop.f32.mrb[146].mxu0  ;;  %v10284_v39 = vsel %vm1232_vm0, %v5413_v3, %v5415_v4  ;;  %v11978_v8 = vrot.slane %v10147_v57, 4 }
 0x20d   : > { %v2322_v21 = vpack.c.bf16 %v2197_v2, %v2196_v36  ;;  %v2202_v50 = vmax.f32 %v1858_v49, 0.0  ;;  %v1861_v52 = vadd.f32 %v9728_v27, %v8152_v9  ;;  %v1852_v43 = vpop.f32.mrb[147].mxu0  ;;  %v5370_v11 = vsel %vm2424_vm6, %v5361_v51, %v5369_v33 }
 0x20e   : > { %v5337_v31 = vshrl.u32 %v2323_v5, 16  ;;  %v5340_v35 = vshll.u32 %v2323_v5, 16  ;;  %v3797_v61 = vsel %vm1232_vm0, %v11978_v8, %v3796_v20  ;;  %v10290_v0 = vpop.permute.xlu1 %4282  ;;  %5380 = vrot.lane.b32.xlu0 %v5370_v11, %s8607_s25  ;;  %v1853_v3 = vadd.f32 %v10296_v25, %v1852_v43  ;;  %5382 = vrot.lane.b32.xlu1 %v5379_v41, %s8607_s25 }
 0x20f   : > { %v5329_v36 = vshrl.u32 %v2322_v21, 16  ;;  %v5332_v27 = vshll.u32 %v2322_v21, 16  ;;  %3974 = vmatmul.mubr.bf16.gmra.mrb[56].mxu1 %v3797_v61  ;;  %v2203_v46 = vmax.f32 %v1861_v52, 0.0  ;;  %v4138_v20 = vpop.permute.xlu0 %4137  ;;  %v2200_v2 = vmax.f32 %v1850_v60, 0.0 }
 0x210   : > { %v5339_v57 = vrot.slane %v5337_v31, 1  ;;  %v5342_v33 = vrot.slane %v5340_v35, 2  ;;  %v5278_v49 = vor.u32 %v5276_v56, %v10212_v26  ;;  %v11979_v6 = vmov 0.0  }
 0x211   : > { %8237 = vmatprep.mubr.msk.bf16.mxu1 %vm8609_vm10, %v11979_v6  ;;  %v5331_v4 = vrot.slane %v5329_v36, 1  ;;  %v5334_v51 = vrot.slane %v5332_v27, 2  ;;  %v10303_v5 = vpack.c.bf16 %v2203_v46, %v2202_v50  ;;  %v5399_v9 = vor.u32 %v10268_v59, %v10262_v47 }
 0x212   : > { %v2201_v21 = vmax.f32 %v1853_v3, 0.0  ;;  %v4140_v43 = vpop.permute.xlu1 %4139  ;;  %v8155_v52 = vpop.f32.mrb[148].mxu0  ;;  %v11981_v41 = vrot.slane %v9990_v1, 4  ;;  %v10311_v60 = vor.u32 %v5342_v33, %v5339_v57  ;;  %v4297_v26 = vsel %vm2527_vm7, %v9348_v30, %v4138_v20  ;;  %5384 = vrot.lane.b32.xlu0 %v5378_v18, %s8607_s25  ;;  %5283 = vrot.lane.b32.xlu1 %v5278_v49, %s8607_s25  ;;  %v8510_v30 = vld [vmem:[%s11929_s3] sm:$0xff]   ;;  %v8511_v3 = vld [vmem:[%s11929_s3 + $0x48] sm:$0xff]  }
 0x213   : > { %11980 = vst [vmem:[#allocation5_spill] sm:$0xff] %v10303_v5  ;;  %v5870_v56 = vshll.u32 %v10303_v5, 16  ;;  %v1865_v50 = vpop.f32.mrb[149].mxu0  ;;  %v3794_v47 = vrot.slane %v10032_v48, 4  ;;  %v5335_v59 = vor.u32 %v5334_v51, %v5331_v4  ;;  %v4184_v31 = vpop.permute.xlu0 %4183  ;;  %v1874_v8 = vadd.f32 %v10296_v25, %v8155_v52  ;;  %v8513_v1 = vld [vmem:[%s11929_s3 + $0x50] sm:$0xff]  }
 0x214   : > { %v3789_v35 = vsel %vm1232_vm0, %v10018_v42, %v11981_v41  ;;  %v2324_v11 = vpack.c.bf16 %v2201_v21, %v2200_v2  ;;  %v1866_v42 = vadd.f32 %v10296_v25, %v1865_v50  ;;  %v8156_v61 = vpop.f32.mrb[150].mxu0  ;;  %v5400_v18 = vsel %vm2483_vm3, %v10156_v13, %v5399_v9 }
 0x215   : > { %v11982_v48 = vshrl.u32 %v10023_v54, 16  ;;  %v1877_v27 = vadd.f32 %v10296_v25, %v8156_v61  ;;  %v1868_v46 = vpop.f32.mrb[151].mxu0  ;;  %v11983_v57 = vrot.slane %v9182_v53, 4  ;;  %v5868_v20 = vshrl.u32 %v10303_v5, 16 }
 0x216   : > { %v4305_v2 = vsel %vm2534_vm8, %v4297_v26, %v10244_v44  ;;  %v4299_v13 = vsel %vm2527_vm7, %v9338_v7, %v4140_v43  ;;  %v2206_v49 = vmax.f32 %v1874_v8, 0.0  ;;  %v2204_v4 = vmax.f32 %v1866_v42, 0.0  ;;  %5405 = vrot.lane.b32.xlu0 %v5400_v18, %s8605_s24  ;;  %v10343_v53 = vpop.permute.xlu1 %4141  ;;  %v8512_v43 = vld [vmem:[%s11929_s3 + $0x8] sm:$0xff]  }
 0x217   : > { %v5307_v36 = vor.u32 %v11982_v48, %v10166_v22  ;;  %v3800_v33 = vrot.slane %v11983_v57, 4  ;;  %v5872_v22 = vrot.slane %v5870_v56, 1  ;;  %v2207_v51 = vmax.f32 %v1877_v27, 0.0  ;;  %8238 = vmatmul.mubr.msk.bf16.vlgmr.msra.gmra.mrb[60].mxu1 %vm2527_vm7, %v3789_v35  ;;  %v4247_v44 = vpop.permute.xlu0 %4246 }
 0x218   : > { %v1869_v9 = vadd.f32 %v10296_v25, %v1868_v46  ;;  %v5346_v21 = vshrl.u32 %v2324_v11, 16  ;;  %v10346_v52 = vsel %vm2541_vm9, %v4305_v2, %v4184_v31  ;;  %7807 = vmatpush3.bf16.msra.mxu1 %v8510_v30  ;;  %v3795_v26 = vsel %vm1232_vm0, %v11981_v41, %v3794_v47  ;;  %8241 = vmatprep.mubr.msk.bf16.mxu1 %vm8609_vm10, %v11979_v6 }
 0x219   : > { %5312 = vrot.lane.b32.xlu1 %v5307_v36, %s8605_s24  ;;  %v10357_v35 = vsel %vm2424_vm6, %v5335_v59, %v10311_v60  ;;  %v5349_v56 = vshll.u32 %v2324_v11, 16  ;;  %v10359_v50 = vpack.c.bf16 %v2207_v51, %v2206_v49  ;;  %v4322_v8 = vsel %vm2527_vm7, %v9646_v55, %v4247_v44  ;;  %7808 = vmatprep.subr.bf16.mxu1 %v8511_v3  ;;  %v8515_v49 = vld [vmem:[%s11929_s3 + $0x58] sm:$0xff]  }
 0x21a   : > { %v2205_v31 = vmax.f32 %v1869_v9, 0.0  ;;  %v4291_v42 = vrot.slane %v9338_v7, 4  ;;  %v4307_v59 = vsel %vm2534_vm8, %v4299_v13, %v10248_v40  ;;  %v8159_v11 = vpop.f32.mrb[152].mxu0  ;;  %v10371_v61 = vrot.slane %v5868_v20, 3  ;;  %5421 = vrot.lane.b32.xlu0 %v10284_v39, %s8606_s17 }
 0x21b   : > { %11984 = vst [vmem:[#allocation6_spill] sm:$0xff] %v10359_v50  ;;  %v10374_v30 = vsel %vm1232_vm0, %v3794_v47, %v3800_v33  ;;  %v4399_v55 = vrot.slane %v10346_v52, 6  ;;  %v4333_v48 = vsel %vm2534_vm8, %v4322_v8, %v10205_v16  ;;  %v1881_v36 = vpop.f32.mrb[153].mxu0  ;;  %v5873_v27 = vor.u32 %v5872_v22, %v5868_v20  ;;  %v10388_v3 = vpop.permute.xlu0 %4284  ;;  %v8514_v16 = vld [vmem:[%s11929_s3 + $0x10] sm:$0xff]  }
 0x21c   : > { %v10377_v18 = vpack.c.bf16 %v2205_v31, %v2204_v4  ;;  %v5883_v40 = vshll.u32 %v10359_v50, 16  ;;  %v5887_v46 = vshrl.u32 %v10359_v50, 16  ;;  %v11986_v47 = vrot.slane %v10222_v45, 1  ;;  %7809 = vmatpush3.bf16.msra.mxu1 %v8512_v43  ;;  %v4186_v57 = vpop.permute.xlu1 %4185  ;;  %v8160_v45 = vpop.f32.mrb[154].mxu0  ;;  %v8562_v8 = vld [vmem:[%s11929_s3 + $0x70] sm:$0xff]  }
 0x21d   : > { %v1890_v39 = vadd.f32 %v10296_v25, %v8159_v11  ;;  %v1882_v33 = vadd.f32 %v10296_v25, %v1881_v36  ;;  %v10395_v20 = vrot.slane %v5346_v21, 1  ;;  %v10397_v2 = vrot.slane %v5349_v56, 2  ;;  %7810 = vmatprep.subr.bf16.mxu1 %v8513_v1  ;;  %v1884_v44 = vpop.f32.mrb[155].mxu0  ;;  %v8516_v36 = vld [vmem:[%s11929_s3 + $0x18] sm:$0xff]   ;;  %7974 = vmatprep.subr.bf16.mxu0 %v8562_v8 }
 0x21e   : > { %11985 = vst [vmem:[#allocation7_spill] sm:$0xff] %v10377_v18  ;;  %5326 = vrot.lane.b32.xlu1 %v11986_v47, %s8606_s17  ;;  %v5879_v13 = vshrl.u32 %v10377_v18, 16  ;;  %v5875_v22 = vshll.u32 %v10377_v18, 16  ;;  %v4341_v4 = vsel %vm2541_vm9, %v4333_v48, %v10277_v12  ;;  %v1893_v21 = vadd.f32 %v10296_v25, %v8160_v45  ;;  %v8563_v12 = vld [vmem:[%s11929_s3 + $0x30] sm:$0xff]   ;;  %v8517_v45 = vld [vmem:[%s11929_s3 + $0x60] sm:$0xff]  }
 0x21f   : > { %v2210_v51 = vmax.f32 %v1890_v39, 0.0  ;;  %v2208_v9 = vmax.f32 %v1882_v33, 0.0  ;;  %8242 = vmatmul.mubr.msk.bf16.gmra.mrb[64].mxu1 %vm2527_vm7, %v3795_v26  ;;  %v1885_v41 = vadd.f32 %v10296_v25, %v1884_v44  ;;  %v10418_v1 = vsel %vm2541_vm9, %v4307_v59, %v4186_v57  ;;  %v4251_v11 = vpop.permute.xlu0 %4250  ;;  %7975 = vmatpush3.bf16.msra.mxu0 %v8563_v12 }
 0x220   : > { %v5877_v43 = vrot.slane %v5875_v22, 1  ;;  %v5984_v56 = vrot.slane %v5879_v13, 3  ;;  %v5985_v31 = vrot.slane %v5875_v22, 4  ;;  %7811 = vmatpush3.bf16.msra.mxu1 %v8514_v16  ;;  %v4249_v26 = vpop.permute.xlu1 %4248  ;;  %v2211_v48 = vmax.f32 %v1893_v21, 0.0  ;;  %8245 = vmatprep.mubr.msk.bf16.mxu1 %vm8609_vm10, %v11979_v6 }
 0x221   : > { %v5988_v47 = vrot.slane %v5887_v46, 3  ;;  %v5989_v39 = vrot.slane %v5883_v40, 4  ;;  %v4328_v59 = vsel %vm2527_vm7, %v9883_v23, %v4251_v11  ;;  %v4325_v57 = vsel %vm2527_vm7, %v9650_v63, %v4249_v26  ;;  %7812 = vmatprep.subr.bf16.mxu1 %v8515_v49 }
 0x222   : > { %v5878_v16 = vsel %vm2350_vm4, %v5873_v27, %v5877_v43  ;;  %v2209_v33 = vmax.f32 %v1885_v41, 0.0  ;;  %v4337_v22 = vsel %vm2534_vm8, %v4328_v59, %v10256_v24  ;;  %v4335_v21 = vsel %vm2534_vm8, %v4325_v57, %v10270_v14  ;;  %v8163_v23 = vpop.f32.mrb[156].mxu0 }
 0x223   : > { %v10441_v44 = vpack.c.bf16 %v2211_v48, %v2210_v51  ;;  %5891 = vrot.lane.b32.xlu0 %v5878_v16, %s8605_s24  ;;  %v5986_v63 = vor.u32 %v5985_v31, %v5984_v56  ;;  %v4301_v27 = vsel %vm2527_vm7, %v9396_v38, %v10343_v53  ;;  %v10449_v49 = vsel %vm2541_vm9, %v4335_v21, %v10290_v0  ;;  %v1897_v8 = vpop.f32.mrb[157].mxu0  ;;  %v4253_v51 = vpop.permute.xlu0 %4252  ;;  %v8518_v53 = vld [vmem:[%s11929_s3 + $0x20] sm:$0xff]  }
 0x224   : > { %v10451_v41 = vpack.c.bf16 %v2209_v33, %v2208_v9  ;;  %v10453_v24 = vor.u32 %v5989_v39, %v5988_v47  ;;  %v4400_v14 = vrot.slane %v10418_v1, 6  ;;  %7813 = vmatpush3.bf16.msra.mxu1 %v8516_v36  ;;  %v4169_v56 = vpop.permute.xlu1 %4168  ;;  %v4402_v0 = vrot.slane %v4341_v4, 6  ;;  %v8164_v36 = vpop.f32.mrb[158].mxu0 }
 0x225   : > { %v5987_v31 = vsel %vm2483_vm3, %v10371_v61, %v5986_v63  ;;  %v4403_v9 = vrot.slane %v10449_v49, 6  ;;  %v10464_v11 = vsel %vm2541_vm9, %v4337_v22, %v10388_v3  ;;  %v5837_v12 = vshll.u32 %v10441_v44, 16  ;;  %7814 = vmatprep.subr.bf16.mxu1 %v8517_v45  ;;  %v8519_v61 = vld [vmem:[%s11929_s3 + $0x68] sm:$0xff]   ;;  %v1900_v59 = vpop.f32.mrb[159].mxu0  ;;  %v8525_v49 = vld [vmem:[%s11929_s3 + $0x80] sm:$0xff]  }
 0x226   : > { %11987 = vst [vmem:[#allocation8_spill] sm:$0xff] %v10451_v41  ;;  %v5841_v26 = vshrl.u32 %v10441_v44, 16  ;;  %v5991_v48 = vsel %vm2483_vm3, %v5986_v63, %v10453_v24  ;;  %v5881_v4 = vor.u32 %v5879_v13, %v5877_v43  ;;  %v5885_v47 = vrot.slane %v5883_v40, 1 }
 0x227   : > { %5998 = vrot.lane.b32.xlu1 %v5991_v48, %s8605_s24  ;;  %5996 = vrot.lane.b32.xlu0 %v5987_v31, %s8605_s24  ;;  %v4404_v3 = vsel %vm4063_vm12, %v4402_v0, %v4403_v9  ;;  %v1906_v39 = vadd.f32 %v10296_v25, %v8163_v23  ;;  %v1898_v57 = vadd.f32 %v10296_v25, %v1897_v8  ;;  %v6006_v16 = vrot.slane %v10441_v44, 4  ;;  %v4272_v22 = vpop.permute.xlu0 %4271  ;;  %v8521_v0 = vld [vmem:[%s11929_s3 + $0x70] sm:$0xff]  }
 0x228   : > { %8246 = vmatmul.mubr.msk.bf16.gmra.mrb[68].mxu1 %vm2527_vm7, %v10374_v30  ;;  %v1909_v33 = vadd.f32 %v10296_v25, %v8164_v36  ;;  %v10489_v45 = vshrl.u32 %v10451_v41, 16  ;;  %v4188_v13 = vpop.permute.xlu1 %4187  ;;  %v5886_v40 = vsel %vm2350_vm4, %v5881_v4, %v5885_v47  ;;  %v8520_v30 = vld [vmem:[%s11929_s3 + $0x28] sm:$0xff]   ;;  %v1901_v21 = vadd.f32 %v10296_v25, %v1900_v59 }
 0x229   : > { %7815 = vmatpush3.bf16.msra.mxu1 %v8518_v53  ;;  %4575 = vmatprep.mubr.bf16.mxu1 %v4404_v3  ;;  %v2214_v43 = vmax.f32 %v1906_v39, 0.0  ;;  %v5832_v63 = vshll.u32 %v10451_v41, 16  ;;  %v4331_v23 = vsel %vm2527_vm7, %v9832_v15, %v4253_v51  ;;  %v4309_v8 = vsel %vm2534_vm8, %v4301_v27, %v4169_v56 }
 0x22a   : > { %7816 = vmatprep.subr.bf16.mxu1 %v8519_v61  ;;  %v2212_v31 = vmax.f32 %v1898_v57, 0.0  ;;  %v2215_v53 = vmax.f32 %v1909_v33, 0.0  ;;  %v10504_v48 = vsel %vm2541_vm9, %v4309_v8, %v4188_v13  ;;  %v2213_v36 = vmax.f32 %v1901_v21, 0.0  ;;  %v8167_v51 = vpop.f32.mrb[160].mxu0 }
 0x22b   : > { %5893 = vrot.lane.b32.xlu1 %v5886_v40, %s8605_s24  ;;  %6011 = vrot.lane.b32.xlu0 %v6006_v16, %s8606_s17  ;;  %v5992_v15 = vrot.slane %v10489_v45, 3  ;;  %v5834_v27 = vrot.slane %v5832_v63, 1  ;;  %v5889_v61 = vor.u32 %v5887_v46, %v5885_v47  ;;  %v5839_v3 = vrot.slane %v5837_v12, 1  ;;  %v1913_v39 = vpop.f32.mrb[161].mxu0  ;;  %v8522_v40 = vld [vmem:[%s11929_s3 + $0x30] sm:$0xff]  }
 0x22c   : > { %v10511_v56 = vpack.c.bf16 %v2215_v53, %v2214_v43  ;;  %v1922_v4 = vadd.f32 %v10296_v25, %v8167_v51  ;;  %v4339_v59 = vsel %vm2534_vm8, %v4331_v23, %v4272_v22  ;;  %v4144_v33 = vpop.permute.xlu1 %4143  ;;  %v10517_v13 = vpack.c.bf16 %v2213_v36, %v2212_v31  ;;  %v8523_v22 = vld [vmem:[%s11929_s3 + $0x78] sm:$0xff]  }
 0x22d   : > { %v4287_v57 = vpop.permute.xlu0 %4286  ;;  %7817 = vmatpush3.bf16.msra.mxu1 %v8520_v30  ;;  %v5835_v43 = vor.u32 %v5834_v27, %v10489_v45  ;;  %v1914_v21 = vadd.f32 %v10296_v25, %v1913_v39  ;;  %v4408_v46 = vrot.slane %v10504_v48, 6  ;;  %v4303_v47 = vsel %vm2527_vm7, %v9391_v37, %v4144_v33  ;;  %v8168_v30 = vpop.f32.mrb[162].mxu0 }
 0x22e   : > { %v10526_v12 = vsel %vm2541_vm9, %v4339_v59, %v4287_v57  ;;  %7818 = vmatprep.subr.bf16.mxu1 %v8521_v0  ;;  %v4401_v23 = vsel %vm4063_vm12, %v4399_v55, %v4400_v14  ;;  %v6007_v31 = vrot.slane %v10517_v13, 4  ;;  %v5890_v53 = vsel %vm2350_vm4, %v5889_v61, %v5834_v27  ;;  %v1916_v36 = vpop.f32.mrb[163].mxu0 }
 0x22f   : > { %v4416_v8 = vrot.slane %v10526_v12, 6  ;;  %5897 = vrot.lane.b32.xlu1 %v10489_v45, %s8605_s24  ;;  %6002 = vrot.lane.b32.xlu0 %v5992_v15, %s8605_s24  ;;  %v2218_v0 = vmax.f32 %v1922_v4, 0.0  ;;  %v5845_v51 = vshll.u32 %v10517_v13, 16  ;;  %v5840_v39 = vsel %vm2350_vm4, %v5835_v43, %v5839_v3  ;;  %v8524_v45 = vld [vmem:[%s11929_s3 + $0x38] sm:$0xff]  }
 0x230   : > { %v2216_v52 = vmax.f32 %v1914_v21, 0.0  ;;  %v1925_v55 = vadd.f32 %v10296_v25, %v8168_v30  ;;  %v4171_v59 = vpop.permute.xlu1 %4170  ;;  %v1917_v57 = vadd.f32 %v10296_v25, %v1916_v36  ;;  %v5993_v33 = vrot.slane %v5832_v63, 4 }
 0x231   : > { %7819 = vmatpush3.bf16.msra.mxu1 %v8522_v40  ;;  %v4410_v27 = vrot.slane %v10464_v11, 6  ;;  %v6008_v61 = vsel %vm1232_vm0, %v6006_v16, %v6007_v31  ;;  %v5849_v4 = vshrl.u32 %v10517_v13, 16  ;;  %v4311_v43 = vsel %vm2534_vm8, %v4303_v47, %v4171_v59 }
 0x232   : > { %7820 = vmatprep.subr.bf16.mxu1 %v8523_v22  ;;  %v5857_v40 = vshrl.u32 %v10511_v56, 16  ;;  %v2219_v21 = vmax.f32 %v1925_v55, 0.0  ;;  %v2217_v30 = vmax.f32 %v1917_v57, 0.0  ;;  %v5994_v63 = vor.u32 %v5993_v33, %v5992_v15  ;;  %v8171_v36 = vpop.f32.mrb[164].mxu0 }
 0x233   : > { %5895 = vrot.lane.b32.xlu1 %v5890_v53, %s8605_s24  ;;  %5859 = vrot.lane.b32.xlu0 %v5840_v39, %s8607_s25  ;;  %v4411_v11 = vsel %vm4063_vm12, %v4403_v9, %v4410_v27  ;;  %v6009_v16 = vrot.slane %v10511_v56, 4  ;;  %v1938_v22 = vadd.f32 %v10296_v25, %v8171_v36  ;;  %v1929_v55 = vpop.f32.mrb[165].mxu0  ;;  %v5843_v53 = vor.u32 %v5841_v26, %v5839_v3 }
 0x234   : > { %v10564_v13 = vrot.slane %v5857_v40, 1  ;;  %v10566_v47 = vpack.c.bf16 %v2219_v21, %v2218_v0  ;;  %v4190_v39 = vpop.permute.xlu1 %4189  ;;  %v2332_v15 = vpack.c.bf16 %v2217_v30, %v2216_v52  ;;  %v1930_v9 = vadd.f32 %v10296_v25, %v1929_v55  ;;  %v8172_v57 = vpop.f32.mrb[166].mxu0  ;;  %v8528_v55 = vld [vmem:[%s11929_s3 + $0x88] sm:$0xff]  }
 0x235   : > { %7821 = vmatpush3.bf16.msra.mxu1 %v8524_v45  ;;  %v5847_v59 = vrot.slane %v5845_v51, 1  ;;  %v6010_v0 = vsel %vm1232_vm0, %v6007_v31, %v6009_v16  ;;  %v10577_v33 = vsel %vm2541_vm9, %v4311_v43, %v4190_v39  ;;  %v5995_v44 = vsel %vm2483_vm3, %v10453_v24, %v5994_v63  ;;  %v1932_v3 = vpop.f32.mrb[167].mxu0 }
 0x236   : > { %v5966_v21 = vshrl.u32 %v10566_v47, 16  ;;  %8249 = vmatprep.subr.bf16.mxu1 %v11979_v6  ;;  %v4409_v26 = vsel %vm4063_vm12, %v4400_v14, %v4408_v46  ;;  %v5906_v31 = vrot.slane %v10566_v47, 1  ;;  %v5969_v51 = vshll.u32 %v10566_v47, 16 }
 0x237   : > { %5865 = vrot.lane.b32.xlu1 %v5857_v40, %s8607_s25  ;;  %v5957_v52 = vshrl.u32 %v2332_v15, 16  ;;  %v5960_v45 = vshll.u32 %v2332_v15, 16  ;;  %6000 = vrot.lane.b32.xlu0 %v5995_v44, %s8605_s24  ;;  %v5904_v24 = vrot.slane %v2332_v15, 1  ;;  %v2222_v30 = vmax.f32 %v1938_v22, 0.0 }
 0x238   : > { %v5968_v43 = vrot.slane %v5966_v21, 1  ;;  %4576 = vmatmul.mubr.bf16.vlgmr.msra.gmra.mrb[72].mxu1 %v4401_v23  ;;  %v2220_v63 = vmax.f32 %v1930_v9, 0.0  ;;  %v5848_v14 = vsel %vm2350_vm4, %v5843_v53, %v5847_v59  ;;  %v1941_v40 = vadd.f32 %v10296_v25, %v8172_v57 }
 0x239   : > { %v5959_v36 = vrot.slane %v5957_v52, 1  ;;  %v5962_v1 = vrot.slane %v5960_v45, 2  ;;  %4583 = vmatprep.mubr.bf16.mxu1 %v4411_v11  ;;  %8250 = vmatpush3.bf16.msra.mxu1 %v8525_v49  ;;  %v1933_v39 = vadd.f32 %v10296_v25, %v1932_v3  ;;  %v4417_v23 = vsel %vm4063_vm12, %v4410_v27, %v4416_v8  ;;  %v8529_v11 = vld [vmem:[%s11929_s3 + $0x40] sm:$0xff]   ;;  %v10619_v52 = vpop.permute.xlu0 %4865 }
 0x23a   : > { %v5851_v22 = vor.u32 %v5849_v4, %v5847_v59  ;;  %v5853_v15 = vshll.u32 %v10511_v56, 16  ;;  %8251 = vmatprep.subr.bf16.mxu1 %v11979_v6  ;;  %v5971_v53 = vrot.slane %v5969_v51, 2  ;;  %v2223_v49 = vmax.f32 %v1941_v40, 0.0  ;;  %v8175_v9 = vpop.f32.mrb[168].mxu0 }
 0x23b   : > { %6013 = vrot.lane.b32.xlu1 %v6008_v61, %s8606_s17  ;;  %6017 = vrot.lane.b32.xlu0 %v6009_v16, %s8606_s17  ;;  %v5903_v12 = vrot.slane %v10511_v56, 1  ;;  %v10612_v8 = vsel %vm2412_vm5, %v5904_v24, %v5906_v31  ;;  %v2221_v27 = vmax.f32 %v1933_v39, 0.0  ;;  %v1954_v4 = vadd.f32 %v10296_v25, %v8175_v9  ;;  %v1945_v59 = vpop.f32.mrb[169].mxu0 }
 0x23c   : > { %v5855_v57 = vrot.slane %v5853_v15, 1  ;;  %v5954_v21 = vrot.slane %v5853_v15, 2  ;;  %v2335_v44 = vpack.c.bf16 %v2223_v49, %v2222_v30  ;;  %v1946_v61 = vadd.f32 %v10296_v25, %v1945_v59  ;;  %v8176_v3 = vpop.f32.mrb[170].mxu0  ;;  %v10623_v15 = vpop.permute.xlu1 %4776 }
 0x23d   : > { %v5905_v16 = vsel %vm2412_vm5, %v5903_v12, %v5904_v24  ;;  %8252 = vmatpush3.bf16.msra.mxu1 %v8528_v55  ;;  %v5963_v51 = vor.u32 %v5962_v1, %v5959_v36  ;;  %v10617_v56 = vpack.c.bf16 %v2221_v27, %v2220_v63  ;;  %v2226_v45 = vmax.f32 %v1954_v4, 0.0  ;;  %v1948_v9 = vpop.f32.mrb[171].mxu0 }
 0x23e   : > { %v5856_v40 = vsel %vm2350_vm4, %v5851_v22, %v5855_v57  ;;  %v1957_v39 = vadd.f32 %v10296_v25, %v8176_v3  ;;  %7845 = vmatprep.subr.bf16.mxu1 %v8529_v11  ;;  %v5927_v30 = vshrl.u32 %v2335_v44, 16  ;;  %v5930_v49 = vshll.u32 %v2335_v44, 16 }
 0x23f   : > { %5861 = vrot.lane.b32.xlu1 %v5848_v14, %s8607_s25  ;;  %6015 = vrot.lane.b32.xlu0 %v6010_v0, %s8606_s17  ;;  %v2224_v24 = vmax.f32 %v1946_v61, 0.0  ;;  %v1949_v63 = vadd.f32 %v10296_v25, %v1948_v9  ;;  %v5919_v36 = vshrl.u32 %v10617_v56, 16  ;;  %v5922_v1 = vshll.u32 %v10617_v56, 16  ;;  %v10636_v57 = vpop.permute.xlu0 %4867 }
 0x240   : > { %4584 = vmatmul.mubr.bf16.gmra.mrb[76].mxu1 %v4409_v26  ;;  %v2227_v55 = vmax.f32 %v1957_v39, 0.0  ;;  %v5955_v22 = vor.u32 %v5954_v21, %v10564_v13  ;;  %v4292_v11 = vrot.slane %v9396_v38, 4  ;;  %v4414_v12 = vrot.slane %v10577_v33, 6 }
 0x241   : > { %4591 = vmatprep.mubr.bf16.mxu1 %v4417_v23  ;;  %v2225_v14 = vmax.f32 %v1949_v63, 0.0  ;;  %v5972_v27 = vor.u32 %v5971_v53, %v5968_v43  ;;  %v5929_v4 = vrot.slane %v5927_v30, 1  ;;  %v5932_v0 = vrot.slane %v5930_v49, 2 }
 0x242   : > { %v10633_v59 = vpack.c.bf16 %v2227_v55, %v2226_v45  ;;  %v5964_v26 = vsel %vm2424_vm6, %v5955_v22, %v5963_v51  ;;  %v4294_v44 = vrot.slane %v9391_v37, 4  ;;  %v8179_v38 = vpop.f32.mrb[172].mxu0  ;;  %v4405_v43 = vrot.slane %v4291_v42, 6  ;;  %v10649_v45 = vpop.permute.xlu1 %4778 }
 0x243   : > { %5863 = vrot.lane.b32.xlu1 %v5856_v40, %s8607_s25  ;;  %v2336_v13 = vpack.c.bf16 %v2225_v14, %v2224_v24  ;;  %5910 = vrot.lane.b32.xlu0 %v5905_v16, %s8606_s17  ;;  %v5973_v33 = vsel %vm2424_vm6, %v5963_v51, %v5972_v27  ;;  %v10646_v23 = vor.u32 %v10397_v2, %v10395_v20  ;;  %v5924_v53 = vrot.slane %v5922_v1, 2  ;;  %v1961_v61 = vpop.f32.mrb[173].mxu0 }
 0x244   : > { %11988 = vst [vmem:[#allocation9_spill] sm:$0xff] %v10633_v59  ;;  %v1970_v21 = vadd.f32 %v10296_v25, %v8179_v38  ;;  %v5921_v3 = vrot.slane %v5919_v36, 1  ;;  %v1962_v16 = vadd.f32 %v10296_v25, %v1961_v61  ;;  %v8180_v9 = vpop.f32.mrb[174].mxu0  ;;  %v5908_v51 = vrot.slane %v10617_v56, 1 }
 0x245   : > { %v5936_v40 = vshrl.u32 %v2336_v13, 16  ;;  %v5939_v39 = vshll.u32 %v2336_v13, 16  ;;  %v5933_v30 = vor.u32 %v5932_v0, %v5929_v4  ;;  %v11947_v49 = vshll.u32 %v10633_v59, 16  ;;  %v1964_v2 = vpop.f32.mrb[175].mxu0 }
 0x246   : > { %v4415_v20 = vsel %vm4063_vm12, %v4408_v46, %v4414_v12  ;;  %v10660_v24 = vsel %vm1232_vm0, %v4291_v42, %v4292_v11  ;;  %v2230_v1 = vmax.f32 %v1970_v21, 0.0  ;;  %v1973_v56 = vadd.f32 %v10296_v25, %v8180_v9  ;;  %v10667_v46 = vpop.permute.xlu0 %4881 }
 0x247   : > { %v5938_v63 = vrot.slane %v5936_v40, 1  ;;  %v5941_v36 = vrot.slane %v5939_v39, 2  ;;  %5912 = vrot.lane.b32.xlu1 %v10612_v8, %s8606_s17  ;;  %5975 = vrot.lane.b32.xlu0 %v5964_v26, %s8607_s25  ;;  %v2228_v55 = vmax.f32 %v1962_v16, 0.0  ;;  %v1965_v48 = vadd.f32 %v10296_v25, %v1964_v2 }
 0x248   : > { %4592 = vmatmul.mubr.bf16.gmra.mrb[80].mxu1 %v4415_v20  ;;  %v5925_v7 = vor.u32 %v5924_v53, %v5921_v3  ;;  %v5909_v42 = vsel %vm2412_vm5, %v5906_v31, %v5908_v51  ;;  %v2231_v12 = vmax.f32 %v1973_v56, 0.0  ;;  %v4406_v8 = vrot.slane %v10660_v24, 6  ;;  %v10688_v31 = vpop.permute.xlu1 %4747 }
 0x249   : > { %v10672_v22 = vor.u32 %v5941_v36, %v5938_v63  ;;  %8253 = vmatprep.mubr.msk.bf16.mxu1 %vm8609_vm10, %v11979_v6  ;;  %v10680_v14 = vsel %vm2424_vm6, %v10311_v60, %v10646_v23  ;;  %v2229_v4 = vmax.f32 %v1965_v48, 0.0  ;;  %v10686_v47 = vsel %vm1232_vm0, %v4292_v11, %v4294_v44  ;;  %v8531_v36 = vld [vmem:[%s11929_s3 + $0x48] sm:$0xff]  }
 0x24a   : > { %v5974_v0 = vsel %vm2424_vm6, %v5972_v27, %v5925_v7  ;;  %v11946_v26 = vshrl.u32 %v10633_v59, 16  ;;  %v6484_v13 = vrot.slane %v11947_v49, 1  ;;  %v10693_v38 = vpack.c.bf16 %v2231_v12, %v2230_v1  ;;  %v8183_v60 = vpop.f32.mrb[176].mxu0 }
 0x24b   : > { %5977 = vrot.lane.b32.xlu1 %v5973_v33, %s8607_s25  ;;  %5981 = vrot.lane.b32.xlu0 %v5921_v3, %s8607_s25  ;;  %v10698_v27 = vsel %vm2424_vm6, %v5925_v7, %v5933_v30  ;;  %v10700_v53 = vpack.c.bf16 %v2229_v4, %v2228_v55  ;;  %v1986_v11 = vadd.f32 %v10296_v25, %v8183_v60  ;;  %v1977_v21 = vpop.f32.mrb[177].mxu0  ;;  %v8530_v3 = vld [vmem:[%s11929_s3] sm:$0xff]   ;;  %v4412_v1 = vrot.slane %v10686_v47, 6 }
 0x24c   : > { %11989 = vst [vmem:[#allocation10_spill] sm:$0xff] %v10698_v27  ;;  %v10705_v61 = vsel %vm2424_vm6, %v5933_v30, %v10672_v22  ;;  %v6495_v40 = vshll.u32 %v10693_v38, 16  ;;  %v11945_v39 = vshrl.u32 %v10693_v38, 16  ;;  %v4407_v33 = vsel %vm4063_vm12, %v4405_v43, %v4406_v8  ;;  %v8184_v9 = vpop.f32.mrb[178].mxu0  ;;  %v10722_v43 = vpop.permute.xlu1 %4749 }
 0x24d   : > { %11990 = vst [vmem:[#allocation11_spill] sm:$0xff] %v10700_v53  ;;  %11991 = vst [vmem:[#allocation12_spill] sm:$0xff] %v10705_v61  ;;  %v1978_v16 = vadd.f32 %v10296_v25, %v1977_v21  ;;  %v6491_v20 = vshrl.u32 %v10700_v53, 16  ;;  %v2234_v2 = vmax.f32 %v1986_v11, 0.0  ;;  %v4849_v30 = vpop.permute.xlu0 %4848  ;;  %v1989_v63 = vadd.f32 %v10296_v25, %v8184_v9  ;;  %v1980_v55 = vpop.f32.mrb[179].mxu0 }
 0x24e   : > { %v6485_v48 = vor.u32 %v6484_v13, %v11946_v26  ;;  %v6487_v7 = vshll.u32 %v10700_v53, 16  ;;  %v6596_v12 = vrot.slane %v11945_v39, 3  ;;  %v1981_v60 = vadd.f32 %v10296_v25, %v1980_v55 }
 0x24f   : > { %5916 = vrot.lane.b32.xlu1 %v5908_v51, %s8606_s17  ;;  %v2232_v56 = vmax.f32 %v1978_v16, 0.0  ;;  %5979 = vrot.lane.b32.xlu0 %v5974_v0, %s8607_s25  ;;  %v2235_v4 = vmax.f32 %v1989_v63, 0.0  ;;  %v6593_v11 = vrot.slane %v6491_v20, 3  ;;  %v6597_v21 = vrot.slane %v6495_v40, 4  ;;  %v8532_v51 = vld [vmem:[%s11929_s3 + $0x8] sm:$0xff]   ;;  %v8533_v63 = vld [vmem:[%s11929_s3 + $0x50] sm:$0xff]  }
 0x250   : > { %8254 = vmatmul.mubr.msk.bf16.vlgmr.msra.gmra.mrb[84].mxu1 %vm2527_vm7, %v4407_v33  ;;  %v6489_v0 = vrot.slane %v6487_v7, 1  ;;  %v6594_v13 = vrot.slane %v6487_v7, 4  ;;  %v2233_v9 = vmax.f32 %v1981_v60, 0.0  ;;  %v10747_v55 = vpop.permute.xlu1 %4790 }
 0x251   : > { %7846 = vmatpush3.bf16.msra.mxu1 %v8530_v3  ;;  %8257 = vmatprep.mubr.msk.bf16.mxu1 %vm8609_vm10, %v11979_v6  ;;  %v10738_v16 = vpack.c.bf16 %v2235_v4, %v2234_v2  ;;  %v10740_v33 = vpop.permute.xlu0 %4883  ;;  %v10745_v3 = vor.u32 %v6597_v21, %v6596_v12  ;;  %v4418_v2 = vrot.slane %v4294_v44, 6  ;;  %v4413_v12 = vsel %vm4063_vm12, %v4406_v8, %v4412_v1 }
 0x252   : > { %7847 = vmatprep.subr.bf16.mxu1 %v8531_v36  ;;  %v6490_v39 = vsel %vm2350_vm4, %v6485_v48, %v6489_v0  ;;  %v8187_v26 = vpop.f32.mrb[180].mxu0  ;;  %v6595_v7 = vor.u32 %v6594_v13, %v6593_v11  ;;  %v10753_v36 = vpack.c.bf16 %v2233_v9, %v2232_v56  ;;  %v6493_v60 = vor.u32 %v6491_v20, %v6489_v0 }
 0x253   : > { %5914 = vrot.lane.b32.xlu1 %v5909_v42, %s8606_s17  ;;  %6503 = vrot.lane.b32.xlu0 %v6490_v39, %s8605_s24  ;;  %v1993_v4 = vpop.f32.mrb[181].mxu0  ;;  %v10761_v42 = vrot.slane %v6495_v40, 1  ;;  %v6453_v48 = vshll.u32 %v10738_v16, 16  ;;  %v2002_v37 = vadd.f32 %v10296_v25, %v8187_v26  ;;  %v8534_v39 = vld [vmem:[%s11929_s3 + $0x10] sm:$0xff]   ;;  %v4919_v8 = vsel %vm2527_vm7, %v9968_v10, %v4849_v30 }
 0x254   : > { %11992 = vst [vmem:[#allocation13_spill] sm:$0xff] %v10753_v36  ;;  %v1994_v44 = vadd.f32 %v10296_v25, %v1993_v4  ;;  %v8188_v56 = vpop.f32.mrb[182].mxu0  ;;  %v6599_v24 = vsel %vm2483_vm3, %v6595_v7, %v10745_v3  ;;  %v6457_v40 = vshrl.u32 %v10738_v16, 16  ;;  %v6448_v20 = vshll.u32 %v10753_v36, 16 }
 0x255   : > { %7848 = vmatpush3.bf16.msra.mxu1 %v8532_v51  ;;  %v2005_v26 = vadd.f32 %v10296_v25, %v8188_v56  ;;  %v1996_v11 = vpop.f32.mrb[183].mxu0  ;;  %v4851_v21 = vpop.permute.xlu0 %4850  ;;  %v8535_v51 = vld [vmem:[%s11929_s3 + $0x58] sm:$0xff]   ;;  %v2238_v0 = vmax.f32 %v2002_v37, 0.0  ;;  %v6614_v10 = vrot.slane %v10738_v16, 4  ;;  %v6446_v4 = vshrl.u32 %v10753_v36, 16 }
 0x256   : > { %7849 = vmatprep.subr.bf16.mxu1 %v8533_v63  ;;  %v2236_v13 = vmax.f32 %v1994_v44, 0.0  ;;  %v1997_v9 = vadd.f32 %v10296_v25, %v1996_v11  ;;  %v6498_v63 = vsel %vm2350_vm4, %v6493_v60, %v10761_v42  ;;  %v10787_v56 = vrot.slane %v6448_v20, 1  ;;  %v10789_v37 = vpop.permute.xlu1 %4792  ;;  %v8536_v16 = vld [vmem:[%s11929_s3 + $0x18] sm:$0xff]  }
 0x257   : > { %6606 = vrot.lane.b32.xlu1 %v6599_v24, %s8605_s24  ;;  %v2239_v30 = vmax.f32 %v2005_v26, 0.0  ;;  %6604 = vrot.lane.b32.xlu0 %v6595_v7, %s8605_s24  ;;  %v4927_v7 = vsel %vm2534_vm8, %v4919_v8, %v10619_v52  ;;  %v6601_v60 = vrot.slane %v6448_v20, 4  ;;  %v4419_v20 = vsel %vm4063_vm12, %v4412_v1, %v4418_v2 }
 0x258   : > { %8258 = vmatmul.mubr.msk.bf16.gmra.mrb[88].mxu1 %vm2527_vm7, %v4413_v12  ;;  %v2237_v44 = vmax.f32 %v1997_v9, 0.0  ;;  %v6455_v12 = vrot.slane %v6453_v48, 1  ;;  %v10806_v11 = vor.u32 %v10787_v56, %v6446_v4  ;;  %v6600_v9 = vrot.slane %v6446_v4, 3 }
 0x259   : > { %7850 = vmatpush3.bf16.msra.mxu1 %v8534_v39  ;;  %8261 = vmatprep.mubr.msk.bf16.mxu1 %vm8609_vm10, %v11979_v6  ;;  %v10798_v24 = vpack.c.bf16 %v2239_v30, %v2238_v0  ;;  %v10800_v26 = vpop.permute.xlu0 %4852  ;;  %v8537_v39 = vld [vmem:[%s11929_s3 + $0x60] sm:$0xff]   ;;  %v10811_v48 = vsel %vm2527_vm7, %v9635_v28, %v10688_v31  ;;  %v8580_v0 = vld [vmem:[%s11929_s3 + $0x38] sm:$0xff]   ;;  %v4933_v47 = vsel %vm2541_vm9, %v4927_v7, %v10667_v46 }
 0x25a   : > { %7851 = vmatprep.subr.bf16.mxu1 %v8535_v51  ;;  %v10813_v52 = vpack.c.bf16 %v2237_v44, %v2236_v13  ;;  %v8191_v8 = vpop.f32.mrb[184].mxu0  ;;  %v8579_v51 = vld [vmem:[%s11929_s3 + $0x78] sm:$0xff]   ;;  %v6456_v30 = vsel %vm2350_vm4, %v10806_v11, %v6455_v12  ;;  %v6459_v1 = vor.u32 %v6457_v40, %v6455_v12  ;;  %v10837_v49 = vor.u32 %v6601_v60, %v6600_v9 }
 0x25b   : > { %6505 = vrot.lane.b32.xlu1 %v6498_v63, %s8605_s24  ;;  %6619 = vrot.lane.b32.xlu0 %v6614_v10, %s8606_s17  ;;  %v2018_v31 = vadd.f32 %v10296_v25, %v8191_v8  ;;  %v2009_v13 = vpop.f32.mrb[185].mxu0  ;;  %v8538_v8 = vld [vmem:[%s11929_s3 + $0x20] sm:$0xff]   ;;  %v6469_v7 = vshll.u32 %v10798_v24, 16  ;;  %v10851_v60 = vsel %vm2527_vm7, %v10043_v19, %v4851_v21  ;;  %v6515_v53 = vrot.slane %v10798_v24, 1 }
 0x25c   : > { %v6461_v2 = vshll.u32 %v10813_v52, 16  ;;  %v6615_v63 = vrot.slane %v10813_v52, 4  ;;  %v2010_v4 = vadd.f32 %v10296_v25, %v2009_v13  ;;  %v8192_v44 = vpop.f32.mrb[186].mxu0  ;;  %7976 = vmatprep.subr.bf16.mxu0 %v8579_v51  ;;  %v6465_v36 = vshrl.u32 %v10813_v52, 16  ;;  %v10847_v13 = vpop.permute.xlu1 %4751 }
 0x25d   : > { %7852 = vmatpush3.bf16.msra.mxu1 %v8536_v16  ;;  %v2242_v41 = vmax.f32 %v2018_v31, 0.0  ;;  %v2021_v46 = vadd.f32 %v10296_v25, %v8192_v44  ;;  %v2012_v40 = vpop.f32.mrb[187].mxu0  ;;  %v10841_v12 = vpop.permute.xlu0 %4869  ;;  %v8539_v16 = vld [vmem:[%s11929_s3 + $0x68] sm:$0xff]   ;;  %7977 = vmatpush3.bf16.msra.mxu0 %v8580_v0  ;;  %v11955_v19 = vshrl.u32 %v10798_v24, 16 }
 0x25e   : > { %7853 = vmatprep.subr.bf16.mxu1 %v8537_v39  ;;  %v2240_v9 = vmax.f32 %v2010_v4, 0.0  ;;  %v2013_v39 = vadd.f32 %v10296_v25, %v2012_v40  ;;  %v7705_v52 = vpop.f32.mrb[0].mxu1  ;;  %v6616_v51 = vsel %vm1232_vm0, %v6614_v10, %v6615_v63  ;;  %8313 = vmatprep.subr.bf16.mxu0 %v11979_v6  ;;  %v6463_v44 = vrot.slane %v6461_v2, 1  ;;  %v8540_v10 = vld [vmem:[%s11929_s3 + $0x28] sm:$0xff]   ;;  %v8541_v40 = vld [vmem:[%s11929_s3 + $0x70] sm:$0xff]  }
 0x25f   : > { %v2243_v31 = vmax.f32 %v2021_v46, 0.0  ;;  %6476 = vrot.lane.b32.xlu0 %v6456_v30, %s8607_s25  ;;  %v7706_v0 = vpop.f32.mrb[1].mxu1  ;;  %v11954_v30 = vrot.slane %v10798_v24, 4  ;;  %6621 = vrot.lane.b32.xlu1 %v6616_v51, %s8606_s17  ;;  %v6561_v51 = vrot.slane %v11955_v19, 1 }
 0x260   : > { %8262 = vmatmul.mubr.msk.bf16.gmra.mrb[92].mxu1 %vm2527_vm7, %v4419_v20  ;;  %v2241_v21 = vmax.f32 %v2013_v39, 0.0  ;;  %v10860_v25 = vadd.f32 %v7706_v0, %v7705_v52  ;;  %v7708_v4 = vpop.f32.mrb[2].mxu1  ;;  %v6603_v20 = vsel %vm2483_vm3, %v10745_v3, %v10837_v49  ;;  %v6464_v46 = vsel %vm2350_vm4, %v6459_v1, %v6463_v44  ;;  %v8542_v1 = vld [vmem:[%s11929_s3 + $0x30] sm:$0xff]   ;;  %vm11206_vm3 = vmand %vm2885_vm14, %vm2891_vm2 }
 0x261   : > { %7854 = vmatpush3.bf16.msra.mxu1 %v8538_v8  ;;  %5133 = vmatprep.mubr.bf16.mxu1 %v4933_v47  ;;  %v10869_v2 = vpack.c.bf16 %v2243_v31, %v2242_v41  ;;  %v7709_v8 = vpop.f32.mrb[3].mxu1  ;;  %v10872_v47 = vpop.permute.xlu0 %4885  ;;  %v6467_v39 = vor.u32 %v6465_v36, %v6463_v44  ;;  %v10878_v52 = vrot.slane %v6469_v7, 1  ;;  %v10895_v7 = vld [vmem:[%s11928_s2] ss:$0 sm:$0xff] }
 0x262   : > { %7855 = vmatprep.subr.bf16.mxu1 %v8539_v16  ;;  %v2344_v3 = vpack.c.bf16 %v2241_v21, %v2240_v9  ;;  %v10880_v0 = vadd.f32 %v7709_v8, %v7708_v4  ;;  %v8195_v41 = vpop.f32.mrb[188].mxu0  ;;  %v10887_v16 = vsel %vm1232_vm0, %v6615_v63, %v11954_v30  ;;  %v10899_v21 = vpop.permute.xlu1 %4780 }
 0x263   : > { %v6572_v31 = vshrl.u32 %v10869_v2, 16  ;;  %v6575_v36 = vshll.u32 %v10869_v2, 16  ;;  %v2034_v9 = vadd.f32 %v10895_v7, %v8195_v41  ;;  %v2025_v44 = vpop.f32.mrb[189].mxu0  ;;  %6608 = vrot.lane.b32.xlu0 %v6603_v20, %s8605_s24  ;;  %6478 = vrot.lane.b32.xlu1 %v6464_v46, %s8607_s25 }
 0x264   : > { %v6516_v63 = vrot.slane %v2344_v3, 1  ;;  %v6563_v4 = vshrl.u32 %v2344_v3, 16  ;;  %v6566_v8 = vshll.u32 %v2344_v3, 16  ;;  %v2026_v30 = vadd.f32 %v10895_v7, %v2025_v44  ;;  %v8196_v19 = vpop.f32.mrb[190].mxu0 }
 0x265   : > { %7856 = vmatpush3.bf16.msra.mxu1 %v8540_v10  ;;  %v6574_v50 = vrot.slane %v6572_v31, 1  ;;  %v6577_v5 = vrot.slane %v6575_v36, 2  ;;  %v2246_v18 = vmax.f32 %v2034_v9, 0.0  ;;  %v2037_v20 = vadd.f32 %v10895_v7, %v8196_v19  ;;  %v2028_v41 = vpop.f32.mrb[191].mxu0  ;;  %v8543_v10 = vld [vmem:[%s11929_s3 + $0x78] sm:$0xff]   ;;  %v10911_v31 = vpop.permute.xlu0 %5308 }
 0x266   : > { %7857 = vmatprep.subr.bf16.mxu1 %v8541_v40  ;;  %v6565_v3 = vrot.slane %v6563_v4, 1  ;;  %v6568_v44 = vrot.slane %v6566_v8, 2  ;;  %v2244_v61 = vmax.f32 %v2026_v30, 0.0  ;;  %v2029_v27 = vadd.f32 %v10895_v7, %v2028_v41  ;;  %v7711_v54 = vpop.f32.mrb[4].mxu1  ;;  %11993 = vst [vmem:[#allocation14_spill] sm:$0xff] %v10911_v31 }
 0x267   : > { %v2247_v32 = vmax.f32 %v2037_v20, 0.0  ;;  %v7712_v36 = vpop.f32.mrb[5].mxu1  ;;  %v6517_v46 = vsel %vm2412_vm5, %v6515_v53, %v6516_v63  ;;  %v6472_v19 = vsel %vm2350_vm4, %v6467_v39, %v10878_v52  ;;  %v11994_v40 = vrot.slane %v10869_v2, 1  ;;  %v8544_v20 = vld [vmem:[%s11929_s3 + $0x38] sm:$0xff]  }
 0x268   : > { %v2245_v4 = vmax.f32 %v2029_v27, 0.0  ;;  %v10919_v8 = vadd.f32 %v7712_v36, %v7711_v54  ;;  %6522 = vrot.lane.b32.xlu0 %v6517_v46, %s8606_s17  ;;  %v7714_v30 = vpop.f32.mrb[6].mxu1  ;;  %v6569_v41 = vor.u32 %v6568_v44, %v6565_v3  ;;  %v10925_v53 = vor.u32 %v6577_v5, %v6574_v50  ;;  %6480 = vrot.lane.b32.xlu1 %v6472_v19, %s8607_s25 }
 0x269   : > { %v6519_v9 = vsel %vm2412_vm5, %v6516_v63, %v11994_v40  ;;  %7858 = vmatpush3.bf16.msra.mxu1 %v8542_v1  ;;  %v11995_v39 = vshll.u32 %v10633_v59, 16  ;;  %v4903_v27 = vsel %vm2534_vm8, %v10811_v48, %v10623_v15  ;;  %v2347_v54 = vpack.c.bf16 %v2247_v32, %v2246_v18  ;;  %v7715_v1 = vpop.f32.mrb[7].mxu1  ;;  %v10935_v63 = vpop.permute.xlu1 %4794 }
 0x26a   : > { %7859 = vmatprep.subr.bf16.mxu1 %v8543_v10  ;;  %v10937_v36 = vpack.c.bf16 %v2245_v4, %v2244_v61  ;;  %v10939_v3 = vadd.f32 %v7715_v1, %v7714_v30  ;;  %v6570_v5 = vsel %vm2424_vm6, %v6561_v51, %v6569_v41  ;;  %v6579_v50 = vsel %vm2424_vm6, %v6569_v41, %v10925_v53  ;;  %v8199_v44 = vpop.f32.mrb[192].mxu0  ;;  %v8547_v10 = vld [vmem:[%s11929_s3 + $0x80] sm:$0xff]   ;;  %v10959_v4 = vpop.permute.xlu0 %5401 }
 0x26b   : > { %v10929_v31 = vrot.slane %v11995_v39, 2  ;;  %v6535_v46 = vshrl.u32 %v2347_v54, 16  ;;  %v6538_v40 = vshll.u32 %v2347_v54, 16  ;;  %v4929_v32 = vsel %vm2534_vm8, %v10851_v60, %v10636_v57  ;;  %v2041_v15 = vpop.f32.mrb[193].mxu0 }
 0x26c   : > { %v2050_v18 = vadd.f32 %v10895_v7, %v8199_v44  ;;  %v6520_v61 = vrot.slane %v10937_v36, 1  ;;  %v6531_v48 = vshrl.u32 %v10937_v36, 16  ;;  %v6580_v51 = vshll.u32 %v10937_v36, 16  ;;  %6585 = vrot.lane.b32.xlu0 %v6570_v5, %s8607_s25  ;;  %v8200_v57 = vpop.f32.mrb[194].mxu0  ;;  %6524 = vrot.lane.b32.xlu1 %v6519_v9, %s8606_s17 }
 0x26d   : > { %7860 = vmatpush3.bf16.msra.mxu1 %v8544_v20  ;;  %v2042_v19 = vadd.f32 %v10895_v7, %v2041_v15  ;;  %v4899_v60 = vsel %vm2527_vm7, %v9705_v34, %v10722_v43  ;;  %v2053_v20 = vadd.f32 %v10895_v7, %v8200_v57  ;;  %v2044_v41 = vpop.f32.mrb[195].mxu0  ;;  %v11996_v39 = vshrl.u32 %v10633_v59, 16  ;;  %v10976_v9 = vpop.permute.xlu1 %5403 }
 0x26e   : > { %8265 = vmatprep.subr.bf16.mxu1 %v11979_v6  ;;  %v2250_v30 = vmax.f32 %v2050_v18, 0.0  ;;  %v4909_v43 = vsel %vm2541_vm9, %v4903_v27, %v10747_v55  ;;  %v10974_v1 = vrot.slane %v6531_v48, 1  ;;  %v6582_v5 = vrot.slane %v6580_v51, 2 }
 0x26f   : > { %v10970_v54 = vrot.slane %v11996_v39, 1  ;;  %v11997_v44 = vrot.slane %v10869_v2, 1  ;;  %v4936_v15 = vsel %vm2541_vm9, %v4929_v32, %v10740_v33  ;;  %v2248_v57 = vmax.f32 %v2042_v19, 0.0  ;;  %v7717_v51 = vpop.f32.mrb[8].mxu1  ;;  %v8548_v33 = vld [vmem:[%s11929_s3 + $0x88] sm:$0xff]   ;;  %v10995_v32 = vpop.permute.xlu0 %5417 }
 0x270   : > { %5134 = vmatmul.mubr.bf16.vlgmr.msra.gmra.mrb[96].mxu1 %v4909_v43  ;;  %v2251_v39 = vmax.f32 %v2053_v20, 0.0  ;;  %v2045_v55 = vadd.f32 %v10895_v7, %v2044_v41  ;;  %v6537_v27 = vrot.slane %v6535_v46, 1  ;;  %v6540_v48 = vrot.slane %v6538_v40, 2  ;;  %6623 = vrot.lane.b32.xlu0 %v10887_v16, %s8606_s17  ;;  %v7718_v7 = vpop.f32.mrb[9].mxu1 }
 0x271   : > { %v10983_v18 = vsel %vm2412_vm5, %v11997_v44, %v6520_v61  ;;  %5141 = vmatprep.mubr.bf16.mxu1 %v4936_v15  ;;  %8266 = vmatpush3.bf16.msra.mxu1 %v8547_v10  ;;  %v6583_v59 = vor.u32 %v6582_v5, %v10974_v1  ;;  %v11998_v2 = vshrl.u32 %v10693_v38, 16  ;;  %v5951_v10 = vor.u32 %v10929_v31, %v10970_v54  ;;  %v11003_v19 = vpop.permute.xlu1 %5310  ;;  %v7720_v20 = vpop.f32.mrb[10].mxu1 }
 0x272   : > { %6587 = vrot.lane.b32.xlu1 %v6579_v50, %s8607_s25  ;;  %v2349_v46 = vpack.c.bf16 %v2251_v39, %v2250_v30  ;;  %v2249_v40 = vmax.f32 %v2045_v55, 0.0  ;;  %v4905_v16 = vsel %vm2534_vm8, %v4899_v60, %v10649_v45  ;;  %8267 = vmatprep.subr.bf16.mxu1 %v11979_v6  ;;  %v8549_v50 = vld [vmem:[%s11929_s3 + $0x40] sm:$0xff]   ;;  %v7721_v31 = vpop.f32.mrb[11].mxu1  ;;  %v4925_v45 = vsel %vm2527_vm7, %v10009_v29, %v10800_v26 }
 0x273   : > { %v6501_v44 = vor.u32 %v11998_v2, %v10761_v42  ;;  %v11005_v42 = vadd.f32 %v7718_v7, %v7717_v51  ;;  %v6584_v41 = vsel %vm2424_vm6, %v10925_v53, %v6583_v59  ;;  %v11017_v15 = vsel %vm2424_vm6, %v10672_v22, %v5951_v10  ;;  %v11029_v55 = vld [vmem:[%s11930_s4] ss:$0 sm:$0xff] }
 0x274   : > { %v6553_v30 = vshrl.u32 %v2349_v46, 16  ;;  %v6556_v43 = vshll.u32 %v2349_v46, 16  ;;  %v2348_v5 = vpack.c.bf16 %v2249_v40, %v2248_v57  ;;  %v6541_v53 = vor.u32 %v6540_v48, %v6537_v27  ;;  %6589 = vrot.lane.b32.xlu0 %v6584_v41, %s8607_s25 }
 0x275   : > { %v11022_v60 = vadd.f32 %v7721_v31, %v7720_v20  ;;  %v6502_v39 = vsel %vm2350_vm4, %v6501_v44, %v10787_v56  ;;  %8268 = vmatpush3.bf16.msra.mxu1 %v8548_v33  ;;  %v4931_v56 = vsel %vm2534_vm8, %v4925_v45, %v10841_v12  ;;  %v11040_v27 = vpop.permute.xlu1 %5419  ;;  %v4912_v48 = vsel %vm2541_vm9, %v4905_v16, %v10789_v37  ;;  %v11044_v51 = vpop.permute.xlu0 %5279 }
 0x276   : > { %6507 = vrot.lane.b32.xlu1 %v6502_v39, %s8605_s24  ;;  %v6555_v22 = vrot.slane %v6553_v30, 1  ;;  %v6558_v57 = vrot.slane %v6556_v43, 2  ;;  %v6544_v29 = vshrl.u32 %v2348_v5, 16  ;;  %v6547_v26 = vshll.u32 %v2348_v5, 16  ;;  %7884 = vmatprep.subr.bf16.mxu1 %v8549_v50 }
 0x277   : > { %v4939_v2 = vsel %vm2541_vm9, %v4931_v56, %v10872_v47  ;;  %v2770_v44 = vadd.f32 %v10860_v25, %v11029_v55  ;;  %v2826_v12 = vpop.f32.mrb[12].mxu1  ;;  %v11054_v40 = vsel %vm2424_vm6, %v10974_v1, %v6541_v53  ;;  %v2773_v25 = vadd.f32 %v10880_v0, %v11029_v55 }
 0x278   : > { %5142 = vmatmul.mubr.bf16.gmra.mrb[100].mxu1 %v4912_v48  ;;  %v6546_v33 = vrot.slane %v6544_v29, 1  ;;  %v6549_v7 = vrot.slane %v6547_v26, 2  ;;  %v11050_v46 = vor.u32 %v6558_v57, %v6555_v22  ;;  %6591 = vrot.lane.b32.xlu0 %v6583_v59, %s8607_s25  ;;  %v8207_v10 = vpop.f32.mrb[13].mxu1  ;;  %v11999_v59 = vshrl.u32 %v10798_v24, 16 }
 0x279   : > { %5149 = vmatprep.mubr.bf16.mxu1 %v4939_v2  ;;  %v2827_v37 = vadd.f32 %v2826_v12, %v2770_v44  ;;  %v11062_v20 = vpop.permute.xlu1 %5281  ;;  %v2829_v41 = vpop.f32.mrb[14].mxu1  ;;  %v2778_v22 = vadd.f32 %v10919_v8, %v11029_v55  ;;  %v12000_v57 = vrot.slane %v10798_v24, 4  ;;  %v2781_v26 = vadd.f32 %v10939_v3, %v11029_v55 }
 0x27a   : > { %6526 = vrot.lane.b32.xlu1 %v10983_v18, %s8606_s17  ;;  %v6550_v47 = vor.u32 %v6549_v7, %v6546_v33  ;;  %v11064_v50 = vpop.permute.xlu0 %5322  ;;  %v2830_v1 = vadd.f32 %v2829_v41, %v2773_v25  ;;  %v8208_v31 = vpop.f32.mrb[15].mxu1  ;;  %v6475_v30 = vor.u32 %v11999_v59, %v10878_v52  ;;  %v4901_v18 = vsel %vm2527_vm7, %v9699_v17, %v10847_v13 }
 0x27b   : > { %v2849_v16 = vmax.f32 %v2827_v37, 0.0  ;;  %v4907_v52 = vsel %vm2534_vm8, %v4901_v18, %v10899_v21  ;;  %v4890_v8 = vrot.slane %v9635_v28, 4  ;;  %v4891_v56 = vrot.slane %v9705_v34, 4 }
 0x27c   : > { %v11070_v43 = vsel %vm2424_vm6, %v6541_v53, %v6550_v47  ;;  %v11082_v0 = vsel %vm2424_vm6, %v6550_v47, %v11050_v46  ;;  %v2850_v45 = vmax.f32 %v2830_v1, 0.0  ;;  %6610 = vrot.lane.b32.xlu0 %v10837_v49, %s8605_s24  ;;  %v4915_v53 = vsel %vm2541_vm9, %v4907_v52, %v10935_v63 }
 0x27d   : > { %v7541_v5 = vpack.c.bf16 %v2849_v16, %v2849_v16  ;;  %v11089_v13 = vpop.permute.xlu1 %5324  ;;  %v4892_v47 = vsel %vm1232_vm0, %v4890_v8, %v4891_v56  ;;  %v4893_v52 = vrot.slane %v9699_v17, 4  ;;  %vm3462_vm4 = vcmask 388097  }
 0x27e   : > { %6482 = vrot.lane.b32.xlu1 %v6475_v30, %s8607_s25  ;;  %v7542_v39 = vpack.c.bf16 %v2850_v45, %v2850_v45  ;;  %v8553_v30 = vld [vmem:[%s11929_s3 + $0x50] sm:$0xff]   ;;  %vm3437_vm5 = vcmask 1040384   ;;  %vm3438_vm6 = vcmask 1044484  }
 0x27f   : > { %2880 = vst.msk [vmem:[%s11078_s13] sm:$0xf] %vm2879_vm13, %v7541_v5  ;;  %v2834_v21 = vpop.f32.mrb[16].mxu1  ;;  %v4894_v8 = vsel %vm1232_vm0, %v4891_v56, %v4893_v52  ;;  %v8557_v56 = vld [vmem:[%s11929_s3 + $0x60] sm:$0xff]   ;;  %vm11329_vm14 = vmor %vm3437_vm5, %vm3438_vm6  ;;  %vm3474_vm5 = vcmask 386049  }
 0x280   : > { %5150 = vmatmul.mubr.bf16.gmra.mrb[104].mxu1 %v4915_v53  ;;  %2881 = vst.msk [vmem:[%s11078_s13 + $0x4] sm:$0xf] %vm2879_vm13, %v7542_v39  ;;  %v5381_v49 = vpop.permute.xlu0 %5380  ;;  %6625 = vrot.lane.b32.xlu0 %v12000_v57, %s8606_s17  ;;  %v2835_v29 = vadd.f32 %v2834_v21, %v2778_v22  ;;  %v8211_v63 = vpop.f32.mrb[17].mxu1  ;;  %v8555_v57 = vld [vmem:[%s11929_s3 + $0x58] sm:$0xff]   ;;  %vm3475_vm6 = vsmask.f32 7942 }
 0x281   : > { %8269 = vmatprep.mubr.msk.bf16.mxu1 %vm8609_vm10, %v11979_v6  ;;  %v5452_v48 = vsel %vm2527_vm7, %v10357_v35, %v5381_v49  ;;  %v5383_v2 = vpop.permute.xlu1 %5382  ;;  %v2837_v44 = vpop.f32.mrb[18].mxu1  ;;  %v8550_v35 = vld [vmem:[%s11929_s3] sm:$0xff]  }
 0x282   : > { %6509 = vrot.lane.b32.xlu1 %v10806_v11, %s8605_s24  ;;  %v5460_v24 = vsel %vm2534_vm8, %v5452_v48, %v10959_v4  ;;  %v5455_v33 = vsel %vm2527_vm7, %v10680_v14, %v5383_v2  ;;  %v2851_v11 = vmax.f32 %v2835_v29, 0.0  ;;  %v2838_v7 = vadd.f32 %v2837_v44, %v2781_v26  ;;  %v8212_v12 = vpop.f32.mrb[19].mxu1  ;;  %v2888_v26 = vld [vmem:[%s11078_s13 + $0x14] sm:$0x1]  ;;  %v8556_v44 = vld [vmem:[%s11929_s3 + $0x18] sm:$0xff]  }
 0x283   : > { %v5466_v28 = vsel %vm2541_vm9, %v5460_v24, %v10995_v32  ;;  %v5462_v34 = vsel %vm2534_vm8, %v5455_v33, %v10976_v9  ;;  %v8551_v32 = vld [vmem:[%s11929_s3 + $0x48] sm:$0xff]   ;;  %v8558_v12 = vld [vmem:[%s11929_s3 + $0x20] sm:$0xff]  }
 0x284   : > { %v5468_v3 = vsel %vm2541_vm9, %v5462_v34, %v11040_v27  ;;  %v7543_v4 = vpack.c.bf16 %v2851_v11, %v2851_v11  ;;  %v5385_v37 = vpop.permute.xlu0 %5384  ;;  %v2852_v14 = vmax.f32 %v2838_v7, 0.0  ;;  %v5523_v9 = vrot.slane %v5466_v28, 2  ;;  %v8559_v28 = vld [vmem:[%s11929_s3 + $0x68] sm:$0xff]  }
 0x285   : > { %v5524_v10 = vrot.slane %v5468_v3, 2  ;;  %v2786_v27 = vadd.f32 %v11005_v42, %v11029_v55  ;;  %v11137_v41 = vpop.permute.xlu1 %5283  ;;  %v2789_v42 = vadd.f32 %v11022_v60, %v11029_v55  ;;  %v5458_v39 = vsel %vm2527_vm7, %v10646_v23, %v5385_v37  ;;  %v8554_v60 = vld [vmem:[%s11929_s3 + $0x10] sm:$0xff]  }
 0x286   : > { %6528 = vrot.lane.b32.xlu1 %v6520_v61, %s8606_s17  ;;  %2882 = vst.msk [vmem:[%s11078_s13 + $0x8] sm:$0xf] %vm2879_vm13, %v7543_v4  ;;  %v7544_v25 = vpack.c.bf16 %v2852_v14, %v2852_v14  ;;  %v8552_v61 = vld [vmem:[%s11929_s3 + $0x8] sm:$0xff]   ;;  %v12003_v34 = vrot.slane %v9769_v62, 4 }
 0x287   : > { %v2842_v36 = vpop.f32.mrb[20].mxu1  ;;  %v5525_v16 = vsel %vm3160_vm11, %v5523_v9, %v5524_v10  ;;  %v8560_v62 = vld [vmem:[%s11929_s3 + $0x28] sm:$0xff]   ;;  %v8561_v9 = vld [vmem:[%s11929_s3 + $0x70] sm:$0xff]  }
 0x288   : > { %8270 = vmatmul.mubr.msk.bf16.vlgmr.msra.gmra.mrb[108].mxu1 %vm2527_vm7, %v4892_v47  ;;  %2883 = vst.msk [vmem:[%s11078_s13 + $0xc] sm:$0xf] %vm2879_vm13, %v7544_v25  ;;  %v5406_v1 = vpop.permute.xlu0 %5405  ;;  %v2843_v31 = vadd.f32 %v2842_v36, %v2786_v27  ;;  %v8215_v59 = vpop.f32.mrb[21].mxu1  ;;  %v5433_v25 = vsel %vm2527_vm7, %v9958_v58, %v11044_v51  ;;  %v12006_v27 = vld [vmem:[#allocation3_spill] sm:$0xff]  ;;  %v8565_v51 = vld [vmem:[%s11929_s3 + $0x78] sm:$0xff]  }
 0x289   : > { %7885 = vmatpush3.bf16.msra.mxu1 %v8550_v35  ;;  %8273 = vmatprep.mubr.msk.bf16.mxu1 %vm8609_vm10, %v11979_v6  ;;  %v2845_v18 = vpop.f32.mrb[22].mxu1  ;;  %v5464_v22 = vsel %vm2534_vm8, %v5458_v39, %v5406_v1  ;;  %v4895_v35 = vsel %vm1232_vm0, %v4893_v52, %v12003_v34  ;;  %v5435_v36 = vsel %vm2527_vm7, %v12006_v27, %v11062_v20  ;;  %v8564_v59 = vld [vmem:[%s11929_s3 + $0x30] sm:$0xff]  }
 0x28a   : > { %7886 = vmatprep.subr.bf16.mxu1 %v8551_v32  ;;  %v2853_v5 = vmax.f32 %v2843_v31, 0.0  ;;  %v2846_v45 = vadd.f32 %v2845_v18, %v2789_v42  ;;  %v8216_v53 = vpop.f32.mrb[23].mxu1  ;;  %v5441_v18 = vsel %vm2534_vm8, %v5435_v36, %v11003_v19 }
 0x28b   : > { %v11162_v29 = vpop.permute.xlu1 %5312 }
 0x28c   : > { %v7545_v21 = vpack.c.bf16 %v2853_v5, %v2853_v5  ;;  %v5422_v49 = vpop.permute.xlu0 %5421  ;;  %v2854_v17 = vmax.f32 %v2846_v45, 0.0  ;;  %v5447_v45 = vsel %vm2541_vm9, %v5441_v18, %v11089_v13  ;;  %v5427_v18 = vrot.slane %v12006_v27, 4 }
 0x28d   : > { %7887 = vmatpush3.bf16.msra.mxu1 %v8552_v61  ;;  %v11165_v23 = vsel %vm2541_vm9, %v5464_v22, %v5422_v49 }
 0x28e   : > { %7888 = vmatprep.subr.bf16.mxu1 %v8553_v30  ;;  %2884 = vst.msk [vmem:[%s11078_s13 + $0x10] sm:$0xf] %vm2879_vm13, %v7545_v21  ;;  %v5531_v48 = vrot.slane %v11165_v23, 2  ;;  %v7546_v2 = vpack.c.bf16 %v2854_v17, %v2854_v17  ;;  %v12007_v30 = vld [vmem:[#allocation14_spill] sm:$0xff]  ;;  %v5521_v21 = vrot.slane %v5447_v45, 2 }
 0x28f   : > { %v5439_v20 = vsel %vm2534_vm8, %v5433_v25, %v12007_v30  ;;  %v5426_v30 = vrot.slane %v9958_v58, 4 }
 0x290   : > { %8274 = vmatmul.mubr.msk.bf16.gmra.mrb[112].mxu1 %vm2527_vm7, %v4894_v8  ;;  %v2889_v24 = vsel %vm11168_vm1, %v7546_v2, %v2888_v26  ;;  %v11191_v33 = vsel %vm3160_vm11, %v5524_v10, %v5531_v48  ;;  %v5327_v11 = vpop.permute.xlu1 %5326  ;;  %v5445_v5 = vsel %vm2541_vm9, %v5439_v20, %v11064_v50  ;;  %v12008_v26 = vld [vmem:[#allocation2_spill] sm:$0xff] }
 0x291   : > { %7889 = vmatpush3.bf16.msra.mxu1 %v8554_v60  ;;  %8277 = vmatprep.mubr.msk.bf16.mxu1 %vm8609_vm10, %v11979_v6  ;;  %2890 = vst [vmem:[%s11078_s13 + $0x14] sm:$0x1] %v2889_v24  ;;  %v8566_v60 = vld [vmem:[%s11929_s3 + $0x38] sm:$0xff]   ;;  %v5520_v22 = vrot.slane %v5445_v5, 2  ;;  %v5437_v8 = vsel %vm2527_vm7, %v12008_v26, %v11137_v41  ;;  %v5429_v20 = vrot.slane %v12008_v26, 4  ;;  %v5428_v58 = vsel %vm1232_vm0, %v5426_v30, %v5427_v18  ;;  %v12012_v30 = vld [vmem:[#allocation4_spill] sm:$0xff] }
 0x292   : > { %7890 = vmatprep.subr.bf16.mxu1 %v8555_v57  ;;  %v8567_v57 = vld [vmem:[%s11929_s3 + $0x80] sm:$0xff]  }
 0x293   : > { %v5522_v24 = vsel %vm3160_vm11, %v5520_v22, %v5521_v21 }
 0x295   : > { %7891 = vmatpush3.bf16.msra.mxu1 %v8556_v44  ;;  %v11194_v7 = vpop.permute.xlu0 %5891  ;;  %v5443_v44 = vsel %vm2534_vm8, %v5437_v8, %v11162_v29  ;;  %v8569_v29 = vld [vmem:[%s11929_s3 + $0x40] sm:$0xff]  }
 0x296   : > { %7892 = vmatprep.subr.bf16.mxu1 %v8557_v56 }
 0x298   : > { %8278 = vmatmul.mubr.msk.bf16.gmra.mrb[116].mxu1 %vm2527_vm7, %v4895_v35  ;;  %v2893_v14 = vld [vmem:[%s11078_s13 + $0x14] sm:$0x1]  ;;  %v8568_v35 = vld [vmem:[%s11929_s3 + $0x88] sm:$0xff]  }
 0x299   : > { %7893 = vmatpush3.bf16.msra.mxu1 %v8558_v12  ;;  %5690 = vmatprep.mubr.bf16.mxu1 %v5525_v16  ;;  %v11211_v4 = vpop.permute.xlu1 %5998  ;;  %v11213_v37 = vpop.permute.xlu0 %5996  ;;  %v2894_v47 = vsel %vm11206_vm3, 0, %v2893_v14  ;;  %v5449_v12 = vsel %vm2541_vm9, %v5443_v44, %v5327_v11 }
 0x29a   : > { %7894 = vmatprep.subr.bf16.mxu1 %v8559_v28  ;;  %v7744_v32 = vpop.f32.mrb[24].mxu1  ;;  %2895 = vst [vmem:[%s11078_s13 + $0x14] sm:$0x1] %v2894_v47  ;;  %v5529_v11 = vrot.slane %v5449_v12, 2 }
 0x29b   : > { %v7745_v10 = vpop.f32.mrb[25].mxu1 }
 0x29c   : > { %v7746_v61 = vadd.f32 %v7745_v10, %v7744_v32  ;;  %v7747_v16 = vpop.f32.mrb[26].mxu1  ;;  %v5530_v10 = vsel %vm3160_vm11, %v5521_v21, %v5529_v11 }
 0x29d   : > { %7895 = vmatpush3.bf16.msra.mxu1 %v8560_v62  ;;  %v11231_v1 = vpop.permute.xlu1 %5893  ;;  %v11233_v31 = vpop.permute.xlu0 %6011 }
 0x29e   : > { %7896 = vmatprep.subr.bf16.mxu1 %v8561_v9  ;;  %v7748_v42 = vpop.f32.mrb[27].mxu1 }
 0x29f   : > { %v7749_v52 = vadd.f32 %v7748_v42, %v7747_v16  ;;  %v3334_v42 = vadd.f32 %v7746_v61, %v11029_v55 }
 0x2a1   : > { %7897 = vmatpush3.bf16.msra.mxu1 %v8564_v59  ;;  %v11249_v53 = vpop.permute.xlu1 %5897  ;;  %v11251_v39 = vpop.permute.xlu0 %6002  ;;  %v3337_v23 = vadd.f32 %v7749_v52, %v11029_v55 }
 0x2a2   : > { %7898 = vmatprep.subr.bf16.mxu1 %v8565_v51  ;;  %v7750_v19 = vpop.f32.mrb[28].mxu1 }
 0x2a3   : > { %v7751_v49 = vpop.f32.mrb[29].mxu1 }
 0x2a4   : > { %v11258_v50 = vadd.f32 %v7751_v49, %v7750_v19  ;;  %v7753_v2 = vpop.f32.mrb[30].mxu1 }
 0x2a5   : > { %7899 = vmatpush3.bf16.msra.mxu1 %v8566_v60  ;;  %v11256_v17 = vpop.permute.xlu1 %5895  ;;  %v11260_v13 = vpop.permute.xlu0 %5859 }
 0x2a6   : > { %8281 = vmatprep.subr.bf16.mxu1 %v11979_v6  ;;  %v7754_v56 = vpop.f32.mrb[31].mxu1 }
 0x2a7   : > { %v11273_v28 = vadd.f32 %v7754_v56, %v7753_v2  ;;  %v12009_v2 = vld [vmem:[#allocation10_spill] sm:$0xff] }
 0x2a8   : > { %5691 = vmatmul.mubr.bf16.vlgmr.msra.gmra.mrb[120].mxu1 %v5522_v24  ;;  %v3342_v24 = vadd.f32 %v11258_v50, %v11029_v55 }
 0x2a9   : > { %5698 = vmatprep.mubr.bf16.mxu1 %v11191_v33  ;;  %8282 = vmatpush3.bf16.msra.mxu1 %v8567_v57  ;;  %v11276_v34 = vpop.permute.xlu1 %5865  ;;  %v11278_v41 = vpop.permute.xlu0 %6000  ;;  %v11313_v57 = vsel %vm1232_vm0, %v5427_v18, %v5429_v20  ;;  %v12013_v18 = vrot.slane %v12012_v30, 4 }
 0x2aa   : > { %8283 = vmatprep.subr.bf16.mxu1 %v11979_v6  ;;  %v7756_v62 = vpop.f32.mrb[32].mxu1 }
 0x2ab   : > { %v7757_v14 = vpop.f32.mrb[33].mxu1 }
 0x2ac   : > { %v11289_v33 = vadd.f32 %v7757_v14, %v7756_v62  ;;  %v7759_v47 = vpop.f32.mrb[34].mxu1 }
 0x2ad   : > { %v11287_v32 = vpop.permute.xlu1 %6013  ;;  %v11291_v9 = vpop.permute.xlu0 %6017  ;;  %8284 = vmatpush3.bf16.msra.mxu1 %v8568_v35 }
 0x2ae   : > { %7923 = vmatprep.subr.bf16.mxu1 %v8569_v29  ;;  %v7760_v25 = vpop.f32.mrb[35].mxu1  ;;  %v5526_v29 = vrot.slane %v5428_v58, 2 }
 0x2af   : > { %v11294_v36 = vadd.f32 %v7760_v25, %v7759_v47 }
 0x2b0   : > { %5699 = vmatmul.mubr.bf16.gmra.mrb[124].mxu1 %v5530_v10 }
 0x2b1   : > { %5706 = vmatprep.mubr.bf16.mxu1 %v5531_v48  ;;  %v11298_v16 = vpop.permute.xlu1 %5861  ;;  %v11300_v59 = vpop.permute.xlu0 %6015 }
 0x2b2   : > { %v3390_v51 = vpop.f32.mrb[36].mxu1 }
 0x2b3   : > { %v3391_v5 = vadd.f32 %v3390_v51, %v3334_v42  ;;  %v8223_v45 = vpop.f32.mrb[37].mxu1  ;;  %v3345_v51 = vadd.f32 %v11273_v28, %v11029_v55  ;;  %v8571_v28 = vld [vmem:[%s11929_s3 + $0x48] sm:$0xff]  }
 0x2b4   : > { %v3393_v21 = vpop.f32.mrb[38].mxu1 }
 0x2b5   : > { %v11306_v60 = vpop.permute.xlu1 %5863  ;;  %v11308_v22 = vpop.permute.xlu0 %5910  ;;  %v3413_v48 = vmax.f32 %v3391_v5, 0.0  ;;  %v3394_v19 = vadd.f32 %v3393_v21, %v3337_v23  ;;  %v11341_v5 = vsel %vm1232_vm0, %v5429_v20, %v12013_v18 }
 0x2b6   : > { %v8224_v49 = vpop.f32.mrb[39].mxu1 }
 0x2b7   : > { %v7547_v61 = vpack.c.bf16 %v3413_v48, %v3413_v48  ;;  %v3414_v27 = vmax.f32 %v3394_v19, 0.0  ;;  %v12014_v48 = vld [vmem:[#allocation12_spill] sm:$0xff] }
 0x2b8   : > { %5707 = vmatmul.mubr.bf16.gmra.mrb[128].mxu1 %v5529_v11  ;;  %v5527_v11 = vrot.slane %v11313_v57, 2  ;;  %v8576_v57 = vld [vmem:[%s11929_s3 + $0x18] sm:$0xff]  }
 0x2b9   : > { %v11315_v26 = vpop.permute.xlu1 %5912  ;;  %v5976_v8 = vpop.permute.xlu0 %5975  ;;  %8285 = vmatprep.mubr.msk.bf16.mxu1 %vm8609_vm10, %v11979_v6  ;;  %v3440_v52 = vrot.slane %v7547_v61, 7  ;;  %v7548_v56 = vpack.c.bf16 %v3414_v27, %v3414_v27 }
 0x2ba   : > { %v6053_v44 = vsel %vm2527_vm7, %v12009_v2, %v5976_v8  ;;  %v3398_v35 = vpop.f32.mrb[40].mxu1 }
 0x2bb   : > { %v6064_v12 = vsel %vm2534_vm8, %v6053_v44, %v11213_v37  ;;  %v3441_v62 = vrot.slane %v3440_v52, 4  ;;  %3463 = vst.msk [vmem:[%s11078_s13 + $0x14] sm:$0xe] %vm3462_vm4, %v3440_v52  ;;  %v3399_v47 = vadd.f32 %v3398_v35, %v3342_v24  ;;  %v8227_v10 = vpop.f32.mrb[41].mxu1  ;;  %v3442_v25 = vrot.slane %v7548_v56, 7  ;;  %v8570_v37 = vld [vmem:[%s11929_s3] sm:$0xff]  }
 0x2bc   : > { %v6072_v45 = vsel %vm2541_vm9, %v6064_v12, %v11233_v31  ;;  %v3401_v49 = vpop.f32.mrb[42].mxu1  ;;  %v5528_v31 = vsel %vm3160_vm11, %v5526_v29, %v5527_v11  ;;  %v8572_v44 = vld [vmem:[%s11929_s3 + $0x8] sm:$0xff]  }
 0x2bd   : > { %v5978_v50 = vpop.permute.xlu1 %5977  ;;  %v5982_v42 = vpop.permute.xlu0 %5981  ;;  %v3415_v23 = vmax.f32 %v3399_v47, 0.0  ;;  %v3443_v61 = vsel %vm11329_vm14, %v3441_v62, %v3442_v25  ;;  %v3402_v52 = vadd.f32 %v3401_v49, %v3345_v51  ;;  %v3444_v2 = vrot.slane %v3442_v25, 4  ;;  %v8573_v47 = vld [vmem:[%s11929_s3 + $0x50] sm:$0xff]   ;;  %v8575_v49 = vld [vmem:[%s11929_s3 + $0x58] sm:$0xff]  }
 0x2be   : > { %v6056_v21 = vsel %vm2527_vm7, %v12014_v48, %v5978_v50  ;;  %v6062_v19 = vsel %vm2527_vm7, %v10970_v54, %v5982_v42  ;;  %v8228_v27 = vpop.f32.mrb[43].mxu1  ;;  %3464 = vst.msk [vmem:[%s11078_s13 + $0x18] sm:$0xf] %vm2879_vm13, %v3443_v61  ;;  %v6133_v56 = vrot.slane %v6072_v45, 4  ;;  %v3350_v25 = vadd.f32 %v11289_v33, %v11029_v55 }
 0x2bf   : > { %v6066_v20 = vsel %vm2534_vm8, %v6056_v21, %v11211_v4  ;;  %v6070_v58 = vsel %vm2534_vm8, %v6062_v19, %v11251_v39  ;;  %v7549_v54 = vpack.c.bf16 %v3415_v23, %v3415_v23  ;;  %v5533_v39 = vrot.slane %v11341_v5, 2  ;;  %v12017_v5 = vld [vmem:[#allocation7_spill] sm:$0xff] }
 0x2c0   : > { %v6074_v8 = vsel %vm2541_vm9, %v6066_v20, %v11287_v32  ;;  %8286 = vmatmul.mubr.msk.bf16.vlgmr.msra.gmra.mrb[132].mxu1 %vm2527_vm7, %v5528_v31  ;;  %v6078_v35 = vsel %vm2541_vm9, %v6070_v58, %v11291_v9  ;;  %v3416_v29 = vmax.f32 %v3402_v52, 0.0 }
 0x2c1   : > { %7924 = vmatpush3.bf16.msra.mxu1 %v8570_v37  ;;  %v11366_v4 = vpop.permute.xlu1 %5916  ;;  %v5980_v24 = vpop.permute.xlu0 %5979  ;;  %8289 = vmatprep.mubr.msk.bf16.mxu1 %vm8609_vm10, %v11979_v6  ;;  %v6134_v12 = vrot.slane %v6074_v8, 4  ;;  %v3445_v32 = vrot.slane %v7549_v54, 7  ;;  %v3353_v37 = vadd.f32 %v11294_v36, %v11029_v55  ;;  %v8574_v55 = vld [vmem:[%s11929_s3 + $0x10] sm:$0xff]   ;;  %v6147_v23 = vrot.slane %v6078_v35, 4 }
 0x2c2   : > { %7925 = vmatprep.subr.bf16.mxu1 %v8571_v28  ;;  %v6059_v62 = vsel %vm2527_vm7, %v11017_v15, %v5980_v24  ;;  %v3406_v50 = vpop.f32.mrb[44].mxu1  ;;  %v7550_v51 = vpack.c.bf16 %v3416_v29, %v3416_v29  ;;  %v5534_v61 = vsel %vm3160_vm11, %v5527_v11, %v5533_v39  ;;  %vm3468_vm11 = vcmask 386048   ;;  %v3471_v29 = vld [vmem:[%s11078_s13 + $0x28] sm:$0x3] }
 0x2c3   : > { %v6068_v10 = vsel %vm2534_vm8, %v6059_v62, %v11278_v41  ;;  %v6135_v9 = vsel %vm1232_vm0, %v6133_v56, %v6134_v12  ;;  %v3446_v42 = vsel %vm11329_vm14, %v3444_v2, %v3445_v32  ;;  %v3447_v15 = vrot.slane %v3445_v32, 4  ;;  %v8231_v18 = vpop.f32.mrb[45].mxu1  ;;  %v8577_v2 = vld [vmem:[%s11929_s3 + $0x60] sm:$0xff]   ;;  %vm11434_vm2 = vmand %vm3468_vm11, %vm3469_vm15 }
 0x2c4   : > { %v6076_v30 = vsel %vm2541_vm9, %v6068_v10, %v11300_v59  ;;  %3465 = vst.msk [vmem:[%s11078_s13 + $0x1c] sm:$0xf] %vm2879_vm13, %v3446_v42  ;;  %v3407_v41 = vadd.f32 %v3406_v50, %v3350_v25  ;;  %v3409_v36 = vpop.f32.mrb[46].mxu1  ;;  %v3448_v48 = vrot.slane %v7550_v51, 7  ;;  %v8578_v62 = vld [vmem:[%s11929_s3 + $0x20] sm:$0xff]   ;;  %v8581_v10 = vld [vmem:[%s11929_s3 + $0x68] sm:$0xff]   ;;  %vm11478_vm11 = vmand %vm3474_vm5, %vm3475_vm6 }
 0x2c5   : > { %7926 = vmatpush3.bf16.msra.mxu1 %v8572_v44  ;;  %v11394_v33 = vpop.permute.xlu1 %5914  ;;  %v6141_v45 = vrot.slane %v6076_v30, 4  ;;  %v11399_v21 = vpop.permute.xlu0 %6503  ;;  %v3410_v59 = vadd.f32 %v3409_v36, %v3353_v37  ;;  %v8582_v42 = vld [vmem:[%s11929_s3 + $0x28] sm:$0xff]   ;;  %v8583_v51 = vld [vmem:[%s11929_s3 + $0x70] sm:$0xff]   ;;  %vm4064_vm15 = vcmask 1045508   ;;  %vm11966_vm5 = vcmask 388098  }
 0x2c6   : > { %7927 = vmatprep.subr.bf16.mxu1 %v8573_v47  ;;  %v8232_v19 = vpop.f32.mrb[47].mxu1  ;;  %v3417_v28 = vmax.f32 %v3407_v41, 0.0  ;;  %v3449_v58 = vsel %vm11329_vm14, %v3447_v15, %v3448_v48  ;;  %v3450_v44 = vrot.slane %v3448_v48, 4  ;;  %v8584_v36 = vld [vmem:[%s11929_s3 + $0x30] sm:$0xff]   ;;  %vm11633_vm6 = vmor %vm4063_vm12, %vm4064_vm15 }
 0x2c7   : > { %v11410_v20 = vsel %vm1232_vm0, %v6134_v12, %v6141_v45  ;;  %v11413_v31 = vsel %vm1232_vm0, %v6141_v45, %v6147_v23  ;;  %v3418_v27 = vmax.f32 %v3410_v59, 0.0  ;;  %3466 = vst.msk [vmem:[%s11078_s13 + $0x20] sm:$0xf] %vm2879_vm13, %v3449_v58  ;;  %v12018_v45 = vld [vmem:[#allocation5_spill] sm:$0xff] }
 0x2c8   : > { %8290 = vmatmul.mubr.msk.bf16.gmra.mrb[136].mxu1 %vm2527_vm7, %v5534_v61  ;;  %v7551_v54 = vpack.c.bf16 %v3417_v28, %v3417_v28  ;;  %v6028_v23 = vsel %vm2527_vm7, %v12018_v45, %v11260_v13  ;;  %v8585_v19 = vld [vmem:[%s11929_s3 + $0x78] sm:$0xff]  }
 0x2c9   : > { %7928 = vmatpush3.bf16.msra.mxu1 %v8574_v55  ;;  %8293 = vmatprep.mubr.msk.bf16.mxu1 %vm8609_vm10, %v11979_v6  ;;  %v11425_v11 = vpop.permute.xlu1 %6606  ;;  %v7552_v8 = vpack.c.bf16 %v3418_v27, %v3418_v27  ;;  %v11427_v52 = vpop.permute.xlu0 %6604  ;;  %v6036_v27 = vsel %vm2534_vm8, %v6028_v23, %v11194_v7 }
 0x2ca   : > { %7929 = vmatprep.subr.bf16.mxu1 %v8575_v49  ;;  %v3451_v24 = vrot.slane %v7551_v54, 7 }
 0x2cb   : > { %v3454_v56 = vrot.slane %v7552_v8, 7 }
 0x2cc   : > { %v3452_v12 = vsel %vm11329_vm14, %v3450_v44, %v3451_v24  ;;  %v3453_v32 = vrot.slane %v3451_v24, 4  ;;  %v12021_v44 = vld [vmem:[#allocation6_spill] sm:$0xff] }
 0x2cd   : > { %7930 = vmatpush3.bf16.msra.mxu1 %v8576_v57  ;;  %3467 = vst.msk [vmem:[%s11078_s13 + $0x24] sm:$0xf] %vm2879_vm13, %v3452_v12  ;;  %v11444_v47 = vpop.permute.xlu0 %6619  ;;  %v11449_v25 = vpop.permute.xlu1 %6505  ;;  %v8586_v57 = vld [vmem:[%s11929_s3 + $0x38] sm:$0xff]   ;;  %v6032_v7 = vsel %vm2527_vm7, %v12021_v44, %v11306_v60 }
 0x2ce   : > { %7931 = vmatprep.subr.bf16.mxu1 %v8577_v2  ;;  %v3455_v50 = vsel %vm11329_vm14, %v3453_v32, %v3454_v56 }
 0x2cf   : > { %v3472_v37 = vsel %vm11434_vm2, %v3455_v50, %v3471_v29 }
 0x2d0   : > { %8294 = vmatmul.mubr.msk.bf16.gmra.mrb[140].mxu1 %vm2527_vm7, %v5533_v39  ;;  %3473 = vst [vmem:[%s11078_s13 + $0x28] sm:$0x3] %v3472_v37  ;;  %v6030_v39 = vsel %vm2527_vm7, %v12017_v5, %v11298_v16 }
 0x2d1   : > { %7932 = vmatpush3.bf16.msra.mxu1 %v8578_v62  ;;  %6306 = vmatprep.mubr.bf16.mxu1 %v6135_v9  ;;  %v6477_v15 = vpop.permute.xlu0 %6476  ;;  %v11468_v9 = vpop.permute.xlu1 %6621  ;;  %v6038_v49 = vsel %vm2534_vm8, %v6030_v39, %v11231_v1  ;;  %v6044_v1 = vsel %vm2541_vm9, %v6036_v27, %v11308_v22  ;;  %v8587_v22 = vld [vmem:[%s11929_s3 + $0x80] sm:$0xff]   ;;  %v12022_v39 = vld [vmem:[#allocation11_spill] sm:$0xff] }
 0x2d2   : > { %7933 = vmatprep.subr.bf16.mxu1 %v8581_v10  ;;  %v7783_v30 = vpop.f32.mrb[48].mxu1  ;;  %v6046_v13 = vsel %vm2541_vm9, %v6038_v49, %v11315_v26  ;;  %v6130_v12 = vrot.slane %v6044_v1, 4  ;;  %v6040_v10 = vsel %vm2534_vm8, %v6032_v7, %v11256_v17  ;;  %v8588_v17 = vld [vmem:[%s11929_s3 + $0x88] sm:$0xff]  }
 0x2d3   : > { %v7784_v18 = vpop.f32.mrb[49].mxu1  ;;  %v6131_v8 = vrot.slane %v6046_v13, 4 }
 0x2d4   : > { %v11470_v41 = vadd.f32 %v7784_v18, %v7783_v30  ;;  %v7786_v55 = vpop.f32.mrb[50].mxu1 }
 0x2d5   : > { %7934 = vmatpush3.bf16.msra.mxu1 %v8582_v42  ;;  %v7787_v16 = vpop.f32.mrb[51].mxu1  ;;  %v11482_v59 = vpop.permute.xlu0 %6608  ;;  %v6132_v60 = vsel %vm1232_vm0, %v6130_v12, %v6131_v8  ;;  %v11522_v42 = vsel %vm2541_vm9, %v6040_v10, %v11394_v33 }
 0x2d6   : > { %7935 = vmatprep.subr.bf16.mxu1 %v8583_v51  ;;  %v11489_v28 = vadd.f32 %v7787_v16, %v7786_v55  ;;  %v6479_v58 = vpop.permute.xlu1 %6478  ;;  %v6139_v33 = vrot.slane %v11522_v42, 4  ;;  %v12023_v55 = vld [vmem:[#allocation9_spill] sm:$0xff] }
 0x2d7   : > { %v3477_v61 = vld [vmem:[%s11078_s13 + $0x28] sm:$0x2]  ;;  %v6638_v18 = vsel %vm2527_vm7, %v12022_v39, %v6479_v58  ;;  %v12024_v58 = vld [vmem:[#allocation8_spill] sm:$0xff] }
 0x2d8   : > { %v3478_v54 = vsel %vm11478_vm11, 0, %v3477_v61  ;;  %v6646_v23 = vsel %vm2534_vm8, %v6638_v18, %v11449_v25  ;;  %v6140_v1 = vsel %vm1232_vm0, %v6131_v8, %v6139_v33 }
 0x2d9   : > { %7936 = vmatpush3.bf16.msra.mxu1 %v8584_v36  ;;  %3479 = vst [vmem:[%s11078_s13 + $0x28] sm:$0x2] %v3478_v54  ;;  %v6636_v36 = vsel %vm2527_vm7, %v12023_v55, %v6477_v15  ;;  %v6034_v15 = vsel %vm2527_vm7, %v12024_v58, %v11276_v34 }
 0x2da   : > { %7937 = vmatprep.subr.bf16.mxu1 %v8585_v19  ;;  %v7789_v26 = vpop.f32.mrb[52].mxu1  ;;  %v6523_v2 = vpop.permute.xlu0 %6522  ;;  %v6042_v8 = vsel %vm2534_vm8, %v6034_v15, %v11249_v53  ;;  %v11586_v53 = vld [vmem:[%s11929_s3 + $0x80] sm:$0xff]  }
 0x2db   : > { %v7790_v24 = vpop.f32.mrb[53].mxu1  ;;  %v11507_v56 = vpop.permute.xlu1 %6480 }
 0x2dc   : > { %v11509_v32 = vadd.f32 %v7790_v24, %v7789_v26  ;;  %v7792_v29 = vpop.f32.mrb[54].mxu1 }
 0x2dd   : > { %7938 = vmatpush3.bf16.msra.mxu1 %v8586_v57  ;;  %v7793_v62 = vpop.f32.mrb[55].mxu1 }
 0x2de   : > { %8297 = vmatprep.subr.bf16.mxu1 %v11979_v6  ;;  %v11518_v50 = vadd.f32 %v7793_v62, %v7792_v29  ;;  %v6586_v37 = vpop.permute.xlu0 %6585 }
 0x2df   : > { %v6661_v51 = vsel %vm2527_vm7, %v11054_v40, %v6586_v37  ;;  %v6525_v30 = vpop.permute.xlu1 %6524 }
 0x2e0   : > { %6307 = vmatmul.mubr.bf16.vlgmr.msra.gmra.mrb[144].mxu1 %v6132_v60  ;;  %v6672_v40 = vsel %vm2534_vm8, %v6661_v51, %v11427_v52  ;;  %v11541_v19 = vsel %vm2541_vm9, %v6646_v23, %v6525_v30  ;;  %v6644_v52 = vsel %vm2534_vm8, %v6636_v36, %v11399_v21  ;;  %v11566_v21 = vld [vmem:[%s11930_s4] ss:$0 sm:$0xff] }
 0x2e1   : > { %6314 = vmatprep.mubr.bf16.mxu1 %v11410_v20  ;;  %8298 = vmatpush3.bf16.msra.mxu1 %v8587_v22  ;;  %v6680_v25 = vsel %vm2541_vm9, %v6672_v40, %v11444_v47  ;;  %v6652_v57 = vsel %vm2541_vm9, %v6644_v52, %v6523_v2  ;;  %v6739_v47 = vrot.slane %v11541_v19, 6  ;;  %v6050_v22 = vsel %vm2541_vm9, %v6042_v8, %v11366_v4 }
 0x2e2   : > { %8299 = vmatprep.subr.bf16.mxu1 %v11979_v6  ;;  %v7795_v45 = vpop.f32.mrb[56].mxu1  ;;  %v6624_v20 = vpop.permute.xlu0 %6623  ;;  %v6741_v12 = vrot.slane %v6680_v25, 6  ;;  %v6738_v62 = vrot.slane %v6652_v57, 6  ;;  %v3963_v37 = vadd.f32 %v11489_v28, %v11566_v21 }
 0x2e3   : > { %v7796_v16 = vpop.f32.mrb[57].mxu1 }
 0x2e4   : > { %v11543_v49 = vadd.f32 %v7796_v16, %v7795_v45  ;;  %v6588_v13 = vpop.permute.xlu1 %6587  ;;  %v7798_v61 = vpop.f32.mrb[58].mxu1  ;;  %v11611_v16 = vld [vmem:[%s11929_s3 + $0x88] sm:$0xff]  }
 0x2e5   : > { %8300 = vmatpush3.bf16.msra.mxu1 %v8588_v17  ;;  %v6664_v27 = vsel %vm2527_vm7, %v11070_v43, %v6588_v13  ;;  %v7799_v54 = vpop.f32.mrb[59].mxu1  ;;  %v6023_v43 = vrot.slane %v12021_v44, 4  ;;  %v6145_v17 = vrot.slane %v6050_v22, 4 }
 0x2e6   : > { %8329 = vmatprep.subr.bf16.mxu1 %v11979_v6  ;;  %v6674_v34 = vsel %vm2534_vm8, %v6664_v27, %v11425_v11  ;;  %v11561_v26 = vadd.f32 %v7799_v54, %v7798_v61  ;;  %v6590_v7 = vpop.permute.xlu0 %6589  ;;  %v3976_v44 = vadd.f32 %v11543_v49, %v11566_v21 }
 0x2e7   : > { %v6682_v2 = vsel %vm2541_vm9, %v6674_v34, %v11468_v9  ;;  %v6667_v11 = vsel %vm2527_vm7, %v11082_v0, %v6590_v7  ;;  %v3960_v9 = vadd.f32 %v11470_v41, %v11566_v21  ;;  %v6022_v0 = vrot.slane %v12017_v5, 4  ;;  %v8595_v34 = vld [vmem:[%s11930_s4] ss:$0 sm:$0xff] }
 0x2e8   : > { %6315 = vmatmul.mubr.bf16.gmra.mrb[148].mxu1 %v6140_v1  ;;  %v6508_v24 = vpop.permute.xlu1 %6507  ;;  %v6742_v29 = vrot.slane %v6682_v2, 6  ;;  %v6676_v10 = vsel %vm2534_vm8, %v6667_v11, %v11482_v59  ;;  %v6640_v41 = vsel %vm2527_vm7, %v10693_v38, %v11507_v56  ;;  %v6740_v5 = vsel %vm4063_vm12, %v6738_v62, %v6739_v47 }
 0x2e9   : > { %6322 = vmatprep.mubr.bf16.mxu1 %v11413_v31  ;;  %v11590_v31 = vsel %vm2541_vm9, %v6676_v10, %v6624_v20  ;;  %v6648_v55 = vsel %vm2534_vm8, %v6640_v41, %v6508_v24  ;;  %v6146_v13 = vsel %vm1232_vm0, %v6139_v33, %v6145_v17  ;;  %v11619_v61 = vsel %vm1232_vm0, %v6022_v0, %v6023_v43 }
 0x2ea   : > { %v4016_v60 = vpop.f32.mrb[60].mxu1  ;;  %v6743_v4 = vsel %vm4063_vm12, %v6741_v12, %v6742_v29  ;;  %v6592_v51 = vpop.permute.xlu0 %6591  ;;  %v6749_v18 = vrot.slane %v11590_v31, 6  ;;  %v3968_v1 = vadd.f32 %v11509_v32, %v11566_v21  ;;  %v6136_v8 = vrot.slane %v6022_v0, 4 }
 0x2eb   : > { %v4017_v59 = vadd.f32 %v4016_v60, %v3960_v9  ;;  %6914 = vmatprep.mubr.bf16.mxu0 %v6743_v4  ;;  %v8239_v30 = vpop.f32.mrb[61].mxu1  ;;  %v6670_v52 = vsel %vm2527_vm7, %v11050_v46, %v6592_v51  ;;  %v6025_v46 = vrot.slane %v12024_v58, 4  ;;  %v6137_v11 = vrot.slane %v11619_v61, 4 }
 0x2ec   : > { %6915 = vmatmul.mubr.bf16.vlgmr.msra.gmra.mrb[196].mxu0 %v6740_v5  ;;  %v6527_v36 = vpop.permute.xlu1 %6526  ;;  %v4019_v28 = vpop.f32.mrb[62].mxu1  ;;  %v6750_v20 = vsel %vm4063_vm12, %v6742_v29, %v6749_v18  ;;  %v3971_v0 = vadd.f32 %v11518_v50, %v11566_v21  ;;  %v6631_v17 = vrot.slane %v10693_v38, 4 }
 0x2ed   : > { %v4039_v40 = vmax.f32 %v4017_v59, 0.0  ;;  %v11604_v45 = vsel %vm2541_vm9, %v6648_v55, %v6527_v36  ;;  %v4020_v56 = vadd.f32 %v4019_v28, %v3963_v37  ;;  %v8240_v23 = vpop.f32.mrb[63].mxu1  ;;  %8314 = vmatpush3.bf16.msra.mxu0 %v11586_v53  ;;  %6922 = vmatprep.mubr.bf16.mxu0 %v6750_v20  ;;  %v6138_v19 = vsel %vm1232_vm0, %v6136_v8, %v6137_v11 }
 0x2ee   : > { %8315 = vmatprep.subr.bf16.mxu0 %v11979_v6  ;;  %v6747_v25 = vrot.slane %v11604_v45, 6  ;;  %v6611_v42 = vpop.permute.xlu0 %6610  ;;  %v6026_v5 = vsel %vm1232_vm0, %v6023_v43, %v6025_v46  ;;  %v6630_v55 = vrot.slane %v12022_v39, 4 }
 0x2ef   : > { %v7553_v15 = vpack.c.bf16 %v4039_v40, %v4039_v40  ;;  %v4040_v27 = vmax.f32 %v4020_v56, 0.0  ;;  %v6678_v2 = vsel %vm2534_vm8, %v6670_v52, %v6611_v42 }
 0x2f0   : > { %6323 = vmatmul.mubr.bf16.gmra.mrb[152].mxu1 %v6146_v13  ;;  %v6483_v33 = vpop.permute.xlu1 %6482  ;;  %v6748_v62 = vsel %vm4063_vm12, %v6739_v47, %v6747_v25  ;;  %v12027_v47 = vld [vmem:[#allocation13_spill] sm:$0xff]  ;;  %v6143_v13 = vrot.slane %v6026_v5, 4 }
 0x2f1   : > { %8301 = vmatprep.mubr.msk.bf16.mxu1 %vm8609_vm10, %v11979_v6  ;;  %v4066_v54 = vrot.slane %v7553_v15, 6  ;;  %v7554_v57 = vpack.c.bf16 %v4040_v27, %v4040_v27  ;;  %8316 = vmatpush3.bf16.msra.mxu0 %v11611_v16  ;;  %v6642_v51 = vsel %vm2527_vm7, %v12027_v47, %v6483_v33  ;;  %v3979_v27 = vadd.f32 %v11561_v26, %v11566_v21 }
 0x2f2   : > { %v4024_v7 = vpop.f32.mrb[64].mxu1  ;;  %v6626_v29 = vpop.permute.xlu0 %6625 }
 0x2f3   : > { %v4067_v24 = vrot.slane %v4066_v54, 4  ;;  %4089 = vst.msk [vmem:[%s11078_s13 + $0x28] sm:$0xc] %vm11966_vm5, %v4066_v54  ;;  %v4068_v32 = vrot.slane %v7554_v57, 6  ;;  %v4025_v12 = vadd.f32 %v4024_v7, %v3968_v1  ;;  %v8243_v22 = vpop.f32.mrb[65].mxu1  ;;  %v6686_v10 = vsel %vm2541_vm9, %v6678_v2, %v6626_v29 }
 0x2f4   : > { %6923 = vmatmul.mubr.bf16.gmra.mrb[200].mxu0 %v6748_v62  ;;  %v6510_v9 = vpop.permute.xlu1 %6509  ;;  %v4027_v31 = vpop.f32.mrb[66].mxu1  ;;  %v6755_v37 = vrot.slane %v6686_v10, 6  ;;  %v6632_v2 = vsel %vm1232_vm0, %v6630_v55, %v6631_v17  ;;  %v6144_v7 = vsel %vm1232_vm0, %v6137_v11, %v6143_v13  ;;  %v6633_v29 = vrot.slane %v12027_v47, 4 }
 0x2f5   : > { %v4069_v60 = vsel %vm11633_vm6, %v4067_v24, %v4068_v32  ;;  %v4041_v4 = vmax.f32 %v4025_v12, 0.0  ;;  %v8244_v41 = vpop.f32.mrb[67].mxu1  ;;  %v4028_v59 = vadd.f32 %v4027_v31, %v3971_v0  ;;  %v6650_v36 = vsel %vm2534_vm8, %v6642_v51, %v6510_v9  ;;  %v4097_v0 = vld [vmem:[%s11078_s13 + $0x3c] sm:$0x7] }
 0x2f6   : > { %4090 = vst.msk [vmem:[%s11078_s13 + $0x2c] sm:$0xf] %vm2879_vm13, %v4069_v60  ;;  %v6756_v50 = vsel %vm4063_vm12, %v6749_v18, %v6755_v37  ;;  %v4070_v56 = vrot.slane %v4068_v32, 4  ;;  %vm4094_vm8 = vcmask 387072   ;;  %v6745_v8 = vrot.slane %v6632_v2, 6 }
 0x2f7   : > { %v7555_v30 = vpack.c.bf16 %v4041_v4, %v4041_v4  ;;  %v4042_v28 = vmax.f32 %v4028_v59, 0.0  ;;  %6930 = vmatprep.mubr.bf16.mxu0 %v6756_v50  ;;  %v6149_v12 = vrot.slane %v6025_v46, 4  ;;  %v6634_v4 = vsel %vm1232_vm0, %v6631_v17, %v6633_v29 }
 0x2f8   : > { %8302 = vmatmul.mubr.msk.bf16.vlgmr.msra.gmra.mrb[156].mxu1 %vm2527_vm7, %v6138_v19  ;;  %v6529_v40 = vpop.permute.xlu1 %6528  ;;  %v6751_v41 = vrot.slane %v6634_v4, 6 }
 0x2f9   : > { %8331 = vmatpush3.bf16.msra.mxu1 %v11586_v53  ;;  %v4071_v18 = vrot.slane %v7555_v30, 6  ;;  %v6658_v23 = vsel %vm2541_vm9, %v6650_v36, %v6529_v40  ;;  %8305 = vmatprep.mubr.msk.bf16.mxu1 %vm8609_vm10, %v11979_v6  ;;  %v7556_v39 = vpack.c.bf16 %v4042_v28, %v4042_v28  ;;  %vm4095_vm9 = vsmask.f32 2304 }
 0x2fa   : > { %8330 = vmatprep.subr.bf16.mxu1 %v11979_v6  ;;  %v6753_v43 = vrot.slane %v6658_v23, 6  ;;  %vm11701_vm15 = vmand %vm4094_vm8, %vm4095_vm9  ;;  %v6150_v60 = vsel %vm1232_vm0, %v6143_v13, %v6149_v12  ;;  %vm4100_vm8 = vcmask 387074   ;;  %vm4101_vm9 = vsmask.f32 7946 }
 0x2fb   : > { %v4032_v20 = vpop.f32.mrb[68].mxu1  ;;  %v4072_v53 = vsel %vm11633_vm6, %v4070_v56, %v4071_v18  ;;  %v4073_v61 = vrot.slane %v4071_v18, 4  ;;  %v4074_v49 = vrot.slane %v7556_v39, 6  ;;  %vm11722_vm5 = vmand %vm4100_vm8, %vm4101_vm9  ;;  %v6752_v38 = vsel %vm4063_vm12, %v6745_v8, %v6751_v41 }
 0x2fc   : > { %v4033_v15 = vadd.f32 %v4032_v20, %v3976_v44  ;;  %v8247_v52 = vpop.f32.mrb[69].mxu1  ;;  %4091 = vst.msk [vmem:[%s11078_s13 + $0x30] sm:$0xf] %vm2879_vm13, %v4072_v53  ;;  %v6754_v33 = vsel %vm4063_vm12, %v6747_v25, %v6753_v43  ;;  %v6744_v25 = vrot.slane %v6630_v55, 6  ;;  %v6757_v36 = vrot.slane %v6633_v29, 6 }
 0x2fd   : > { %v4035_v42 = vpop.f32.mrb[70].mxu1  ;;  %8332 = vmatpush3.bf16.msra.mxu1 %v11611_v16  ;;  %6931 = vmatmul.mubr.bf16.gmra.mrb[204].mxu0 %v6754_v33  ;;  %v4075_v26 = vsel %vm11633_vm6, %v4073_v61, %v4074_v49  ;;  %v4076_v24 = vrot.slane %v4074_v49, 4  ;;  %vm4681_vm0 = vcmask 1042432   ;;  %vm4713_vm8 = vsmask.f32 3328 }
 0x2fe   : > { %v4043_v54 = vmax.f32 %v4033_v15, 0.0  ;;  %v4036_v57 = vadd.f32 %v4035_v42, %v3979_v27  ;;  %v8248_v1 = vpop.f32.mrb[71].mxu1  ;;  %8317 = vmatprep.mubr.msk.bf16.mxu0 %vm8609_vm10, %v11979_v6  ;;  %4092 = vst.msk [vmem:[%s11078_s13 + $0x34] sm:$0xf] %vm2879_vm13, %v4075_v26  ;;  %v6746_v31 = vsel %vm4063_vm12, %v6744_v25, %v6745_v8  ;;  %v6758_v23 = vsel %vm4063_vm12, %v6751_v41, %v6757_v36  ;;  %vm11763_vm9 = vmand %vm2879_vm13, %vm4713_vm8 }
 0x300   : > { %v7557_v45 = vpack.c.bf16 %v4043_v54, %v4043_v54  ;;  %8306 = vmatmul.mubr.msk.bf16.gmra.mrb[160].mxu1 %vm2527_vm7, %v6144_v7  ;;  %v4044_v16 = vmax.f32 %v4036_v57, 0.0 }
 0x301   : > { %8309 = vmatprep.mubr.msk.bf16.mxu1 %vm8609_vm10, %v11979_v6 }
 0x302   : > { %v4077_v11 = vrot.slane %v7557_v45, 6  ;;  %v7558_v32 = vpack.c.bf16 %v4044_v16, %v4044_v16 }
 0x304   : > { %v4078_v22 = vsel %vm11633_vm6, %v4076_v24, %v4077_v11  ;;  %v4079_v62 = vrot.slane %v4077_v11, 4  ;;  %v4080_v10 = vrot.slane %v7558_v32, 6 }
 0x305   : > { %4093 = vst.msk [vmem:[%s11078_s13 + $0x38] sm:$0xf] %vm2879_vm13, %v4078_v22  ;;  %8318 = vmatmul.mubr.msk.bf16.vlgmr.msra.gmra.mrb[208].mxu0 %vm2527_vm7, %v6746_v31 }
 0x306   : > { %v4081_v58 = vsel %vm11633_vm6, %v4079_v62, %v4080_v10 }
 0x307   : > { %v4098_v46 = vsel %vm11701_vm15, %v4081_v58, %v4097_v0 }
 0x308   : > { %4099 = vst [vmem:[%s11078_s13 + $0x3c] sm:$0x7] %v4098_v46  ;;  %8310 = vmatmul.mubr.msk.bf16.gmra.mrb[164].mxu1 %vm2527_vm7, %v6150_v60 }
 0x309   : > { %8321 = vmatprep.mubr.msk.bf16.mxu1 %vm8609_vm10, %v11979_v6 }
 0x30b   : > { %v7822_v37 = vpop.f32.mrb[72].mxu1 }
 0x30c   : > { %v7823_v19 = vpop.f32.mrb[73].mxu1 }
 0x30d   : > { %v7824_v47 = vadd.f32 %v7823_v19, %v7822_v37  ;;  %v7825_v51 = vpop.f32.mrb[74].mxu1 }
 0x30e   : > { %v7826_v30 = vpop.f32.mrb[75].mxu1 }
 0x30f   : > { %v4103_v50 = vld [vmem:[%s11078_s13 + $0x3c] sm:$0x4]  ;;  %v7827_v5 = vadd.f32 %v7826_v30, %v7825_v51  ;;  %v4578_v15 = vadd.f32 %v7824_v47, %v11566_v21 }
 0x310   : > { %v4104_v17 = vsel %vm11722_vm5, 0, %v4103_v50  ;;  %8322 = vmatmul.mubr.msk.bf16.vlgmr.msra.gmra.mrb[168].mxu1 %vm2527_vm7, %v6752_v38 }
 0x311   : > { %4105 = vst [vmem:[%s11078_s13 + $0x3c] sm:$0x4] %v4104_v17  ;;  %8325 = vmatprep.mubr.msk.bf16.mxu1 %vm8609_vm10, %v11979_v6  ;;  %v4581_v49 = vadd.f32 %v7827_v5, %v11566_v21  ;;  %vm4706_vm10 = vcmask 388099  }
 0x313   : > { %v7828_v55 = vpop.f32.mrb[76].mxu1 }
 0x314   : > { %v7829_v28 = vpop.f32.mrb[77].mxu1 }
 0x315   : > { %v7830_v40 = vadd.f32 %v7829_v28, %v7828_v55  ;;  %v7831_v56 = vpop.f32.mrb[78].mxu1 }
 0x316   : > { %v7832_v18 = vpop.f32.mrb[79].mxu1 }
 0x317   : > { %v7833_v44 = vadd.f32 %v7832_v18, %v7831_v56  ;;  %v4586_v45 = vadd.f32 %v7830_v40, %v11566_v21 }
 0x318   : > { %8326 = vmatmul.mubr.msk.bf16.gmra.mrb[172].mxu1 %vm2527_vm7, %v6758_v23  ;;  %vm4682_vm7 = vcmask 1046532  }
 0x319   : > { %vm11739_vm12 = vmor %vm4681_vm0, %vm4682_vm7  ;;  %v4589_v12 = vadd.f32 %v7833_v44, %v11566_v21  ;;  %vm4719_vm0 = vsmask.f32 7950 }
 0x31a   : > { %vm11776_vm7 = vmand %vm4706_vm10, %vm4719_vm0 }
 0x31b   : > { %v7834_v39 = vpop.f32.mrb[80].mxu1 }
 0x31c   : > { %v7835_v43 = vpop.f32.mrb[81].mxu1 }
 0x31d   : > { %v7836_v20 = vadd.f32 %v7835_v43, %v7834_v39  ;;  %v7837_v13 = vpop.f32.mrb[82].mxu1 }
 0x31e   : > { %v7838_v53 = vpop.f32.mrb[83].mxu1 }
 0x31f   : > { %v7839_v61 = vadd.f32 %v7838_v53, %v7837_v13  ;;  %v4594_v37 = vadd.f32 %v7836_v20, %v11566_v21  ;;  %v4715_v53 = vld [vmem:[%s11078_s13 + $0x50] sm:$0xf] }
 0x321   : > { %v4597_v19 = vadd.f32 %v7839_v61, %v11566_v21 }
 0x323   : > { %v4634_v6 = vpop.f32.mrb[84].mxu1 }
 0x324   : > { %v4635_v52 = vadd.f32 %v4634_v6, %v4578_v15  ;;  %v8255_v27 = vpop.f32.mrb[85].mxu1 }
 0x325   : > { %v4637_v42 = vpop.f32.mrb[86].mxu1 }
 0x326   : > { %v4657_v33 = vmax.f32 %v4635_v52, 0.0  ;;  %v4638_v54 = vadd.f32 %v4637_v42, %v4581_v49  ;;  %v8256_v57 = vpop.f32.mrb[87].mxu1 }
 0x328   : > { %v7559_v1 = vpack.c.bf16 %v4657_v33, %v4657_v33  ;;  %v4658_v2 = vmax.f32 %v4638_v54, 0.0 }
 0x32a   : > { %v4684_v26 = vrot.slane %v7559_v1, 5  ;;  %v7560_v7 = vpack.c.bf16 %v4658_v2, %v4658_v2 }
 0x32b   : > { %v4642_v25 = vpop.f32.mrb[88].mxu1 }
 0x32c   : > { %v4685_v8 = vrot.slane %v4684_v26, 4  ;;  %4707 = vst.msk [vmem:[%s11078_s13 + $0x3c] sm:$0x8] %vm4706_vm10, %v4684_v26  ;;  %v4686_v24 = vrot.slane %v7560_v7, 5  ;;  %v4643_v11 = vadd.f32 %v4642_v25, %v4586_v45  ;;  %v8259_v32 = vpop.f32.mrb[89].mxu1 }
 0x32d   : > { %v4645_v29 = vpop.f32.mrb[90].mxu1 }
 0x32e   : > { %v4687_v22 = vsel %vm11739_vm12, %v4685_v8, %v4686_v24  ;;  %v4659_v62 = vmax.f32 %v4643_v11, 0.0  ;;  %v4646_v10 = vadd.f32 %v4645_v29, %v4589_v12  ;;  %v8260_v0 = vpop.f32.mrb[91].mxu1  ;;  %v4688_v46 = vrot.slane %v4686_v24, 4 }
 0x32f   : > { %4708 = vst.msk [vmem:[%s11078_s13 + $0x40] sm:$0xf] %vm2879_vm13, %v4687_v22 }
 0x330   : > { %v7561_v31 = vpack.c.bf16 %v4659_v62, %v4659_v62  ;;  %v4660_v58 = vmax.f32 %v4646_v10, 0.0 }
 0x332   : > { %v4689_v60 = vrot.slane %v7561_v31, 5  ;;  %v7562_v4 = vpack.c.bf16 %v4660_v58, %v4660_v58 }
 0x333   : > { %v4650_v41 = vpop.f32.mrb[92].mxu1 }
 0x334   : > { %v4690_v47 = vsel %vm11739_vm12, %v4688_v46, %v4689_v60  ;;  %v4691_v51 = vrot.slane %v4689_v60, 4  ;;  %v4692_v30 = vrot.slane %v7562_v4, 5  ;;  %v4651_v50 = vadd.f32 %v4650_v41, %v4594_v37  ;;  %v8263_v38 = vpop.f32.mrb[93].mxu1 }
 0x335   : > { %4709 = vst.msk [vmem:[%s11078_s13 + $0x44] sm:$0xf] %vm2879_vm13, %v4690_v47  ;;  %v4653_v5 = vpop.f32.mrb[94].mxu1 }
 0x336   : > { %v4693_v17 = vsel %vm11739_vm12, %v4691_v51, %v4692_v30  ;;  %v4661_v55 = vmax.f32 %v4651_v50, 0.0  ;;  %v4654_v36 = vadd.f32 %v4653_v5, %v4597_v19  ;;  %v8264_v28 = vpop.f32.mrb[95].mxu1  ;;  %v4694_v18 = vrot.slane %v4692_v30, 4 }
 0x337   : > { %4710 = vst.msk [vmem:[%s11078_s13 + $0x48] sm:$0xf] %vm2879_vm13, %v4693_v17 }
 0x338   : > { %v7563_v40 = vpack.c.bf16 %v4661_v55, %v4661_v55  ;;  %v4662_v56 = vmax.f32 %v4654_v36, 0.0 }
 0x33a   : > { %v4695_v23 = vrot.slane %v7563_v40, 5  ;;  %v7564_v44 = vpack.c.bf16 %v4662_v56, %v4662_v56 }
 0x33c   : > { %v4696_v39 = vsel %vm11739_vm12, %v4694_v18, %v4695_v23  ;;  %v4697_v43 = vrot.slane %v4695_v23, 4  ;;  %v4698_v20 = vrot.slane %v7564_v44, 5 }
 0x33d   : > { %4711 = vst.msk [vmem:[%s11078_s13 + $0x4c] sm:$0xf] %vm2879_vm13, %v4696_v39 }
 0x33e   : > { %v4699_v61 = vsel %vm11739_vm12, %v4697_v43, %v4698_v20 }
 0x33f   : > { %v4716_v15 = vsel %vm11763_vm9, %v4699_v61, %v4715_v53 }
 0x340   : > { %4717 = vst [vmem:[%s11078_s13 + $0x50] sm:$0xf] %v4716_v15 }
 0x343   : > { %v7861_v6 = vpop.f32.mrb[96].mxu1 }
 0x344   : > { %v7862_v52 = vpop.f32.mrb[97].mxu1 }
 0x345   : > { %v7863_v49 = vadd.f32 %v7862_v52, %v7861_v6  ;;  %v7864_v42 = vpop.f32.mrb[98].mxu1 }
 0x346   : > { %v7865_v33 = vpop.f32.mrb[99].mxu1 }
 0x347   : > { %v4721_v54 = vld [vmem:[%s11078_s13 + $0x50] sm:$0x8]  ;;  %v7866_v57 = vadd.f32 %v7865_v33, %v7864_v42  ;;  %v5136_v62 = vadd.f32 %v7863_v49, %v11566_v21  ;;  %v5250_v42 = vld [vmem:[%s11078_s13 + $0x68] sm:$0x1] }
 0x348   : > { %v4722_v1 = vsel %vm11776_vm7, 0, %v4721_v54 }
 0x349   : > { %4723 = vst [vmem:[%s11078_s13 + $0x50] sm:$0x8] %v4722_v1  ;;  %v5139_v58 = vadd.f32 %v7866_v57, %v11566_v21 }
 0x34b   : > { %v7867_v2 = vpop.f32.mrb[100].mxu1 }
 0x34c   : > { %v7868_v26 = vpop.f32.mrb[101].mxu1 }
 0x34d   : > { %v7869_v7 = vadd.f32 %v7868_v26, %v7867_v2  ;;  %v7870_v45 = vpop.f32.mrb[102].mxu1 }
 0x34e   : > { %v7871_v25 = vpop.f32.mrb[103].mxu1 }
 0x34f   : > { %v7872_v8 = vadd.f32 %v7871_v25, %v7870_v45  ;;  %v5144_v51 = vadd.f32 %v7869_v7, %v11566_v21 }
 0x351   : > { %v5147_v5 = vadd.f32 %v7872_v8, %v11566_v21 }
 0x353   : > { %v7873_v24 = vpop.f32.mrb[104].mxu1 }
 0x354   : > { %v7874_v11 = vpop.f32.mrb[105].mxu1 }
 0x355   : > { %v7875_v32 = vadd.f32 %v7874_v11, %v7873_v24  ;;  %v7876_v12 = vpop.f32.mrb[106].mxu1 }
 0x356   : > { %v7877_v29 = vpop.f32.mrb[107].mxu1 }
 0x357   : > { %v7878_v22 = vadd.f32 %v7877_v29, %v7876_v12  ;;  %v5152_v23 = vadd.f32 %v7875_v32, %v11566_v21 }
 0x359   : > { %v5155_v20 = vadd.f32 %v7878_v22, %v11566_v21 }
 0x35b   : > { %v5192_v10 = vpop.f32.mrb[108].mxu1 }
 0x35c   : > { %v5193_v0 = vadd.f32 %v5192_v10, %v5136_v62  ;;  %v8271_v31 = vpop.f32.mrb[109].mxu1 }
 0x35d   : > { %v5195_v46 = vpop.f32.mrb[110].mxu1 }
 0x35e   : > { %v5215_v60 = vmax.f32 %v5193_v0, 0.0  ;;  %v5196_v4 = vadd.f32 %v5195_v46, %v5139_v58  ;;  %v8272_v37 = vpop.f32.mrb[111].mxu1 }
 0x360   : > { %v7565_v41 = vpack.c.bf16 %v5215_v60, %v5215_v60  ;;  %v5216_v19 = vmax.f32 %v5196_v4, 0.0 }
 0x362   : > { %5245 = vst.msk [vmem:[%s11078_s13 + $0x54] sm:$0xf] %vm2879_vm13, %v7565_v41  ;;  %v7566_v47 = vpack.c.bf16 %v5216_v19, %v5216_v19 }
 0x363   : > { %v5200_v30 = vpop.f32.mrb[112].mxu1 }
 0x364   : > { %5246 = vst.msk [vmem:[%s11078_s13 + $0x58] sm:$0xf] %vm2879_vm13, %v7566_v47  ;;  %v5201_v50 = vadd.f32 %v5200_v30, %v5144_v51  ;;  %v8275_v38 = vpop.f32.mrb[113].mxu1 }
 0x365   : > { %v5203_v17 = vpop.f32.mrb[114].mxu1 }
 0x366   : > { %v5217_v55 = vmax.f32 %v5201_v50, 0.0  ;;  %v5204_v36 = vadd.f32 %v5203_v17, %v5147_v5  ;;  %v8276_v28 = vpop.f32.mrb[115].mxu1 }
 0x368   : > { %v7567_v40 = vpack.c.bf16 %v5217_v55, %v5217_v55  ;;  %v5218_v56 = vmax.f32 %v5204_v36, 0.0 }
 0x36a   : > { %5247 = vst.msk [vmem:[%s11078_s13 + $0x5c] sm:$0xf] %vm2879_vm13, %v7567_v40  ;;  %v7568_v18 = vpack.c.bf16 %v5218_v56, %v5218_v56 }
 0x36b   : > { %v5208_v44 = vpop.f32.mrb[116].mxu1 }
 0x36c   : > { %5248 = vst.msk [vmem:[%s11078_s13 + $0x60] sm:$0xf] %vm2879_vm13, %v7568_v18  ;;  %v5209_v39 = vadd.f32 %v5208_v44, %v5152_v23  ;;  %v8279_v43 = vpop.f32.mrb[117].mxu1 }
 0x36d   : > { %v5211_v53 = vpop.f32.mrb[118].mxu1 }
 0x36e   : > { %v5219_v61 = vmax.f32 %v5209_v39, 0.0  ;;  %v5212_v15 = vadd.f32 %v5211_v53, %v5155_v20  ;;  %v8280_v6 = vpop.f32.mrb[119].mxu1 }
 0x370   : > { %v7569_v52 = vpack.c.bf16 %v5219_v61, %v5219_v61  ;;  %v5220_v49 = vmax.f32 %v5212_v15, 0.0 }
 0x372   : > { %5249 = vst.msk [vmem:[%s11078_s13 + $0x64] sm:$0xf] %vm2879_vm13, %v7569_v52  ;;  %v7570_v33 = vpack.c.bf16 %v5220_v49, %v5220_v49 }
 0x374   : > { %v5251_v54 = vsel %vm11168_vm1, %v7570_v33, %v5250_v42  ;;  %vm12038_vm1 = vcmask 388098  }
 0x375   : > { %5252 = vst [vmem:[%s11078_s13 + $0x68] sm:$0x1] %v5251_v54 }
 0x37b   : > { %v7900_v57 = vpop.f32.mrb[120].mxu1 }
 0x37c   : > { %v5253_v1 = vld [vmem:[%s11078_s13 + $0x68] sm:$0x1]  ;;  %v7901_v2 = vpop.f32.mrb[121].mxu1 }
 0x37d   : > { %v5254_v26 = vsel %vm11206_vm3, 0, %v5253_v1  ;;  %v7902_v7 = vadd.f32 %v7901_v2, %v7900_v57  ;;  %v7903_v45 = vpop.f32.mrb[122].mxu1 }
 0x37e   : > { %5255 = vst [vmem:[%s11078_s13 + $0x68] sm:$0x1] %v5254_v26  ;;  %v7904_v25 = vpop.f32.mrb[123].mxu1 }
 0x37f   : > { %v7905_v8 = vadd.f32 %v7904_v25, %v7903_v45  ;;  %v5693_v3 = vadd.f32 %v7902_v7, %v11566_v21 }
 0x381   : > { %v5696_v37 = vadd.f32 %v7905_v8, %v11566_v21 }
 0x383   : > { %v7906_v24 = vpop.f32.mrb[124].mxu1 }
 0x384   : > { %v7907_v11 = vpop.f32.mrb[125].mxu1 }
 0x385   : > { %v7908_v32 = vadd.f32 %v7907_v11, %v7906_v24  ;;  %v7909_v12 = vpop.f32.mrb[126].mxu1 }
 0x386   : > { %v7910_v29 = vpop.f32.mrb[127].mxu1 }
 0x387   : > { %v7911_v22 = vadd.f32 %v7910_v29, %v7909_v12  ;;  %v5701_v17 = vadd.f32 %v7908_v32, %v11566_v21 }
 0x389   : > { %v5704_v18 = vadd.f32 %v7911_v22, %v11566_v21 }
 0x38b   : > { %v7912_v63 = vpop.f32.mrb[128].mxu1 }
 0x38c   : > { %v7913_v62 = vpop.f32.mrb[129].mxu1 }
 0x38d   : > { %v7914_v10 = vadd.f32 %v7913_v62, %v7912_v63  ;;  %v7915_v0 = vpop.f32.mrb[130].mxu1 }
 0x38e   : > { %v7916_v31 = vpop.f32.mrb[131].mxu1 }
 0x38f   : > { %v7917_v58 = vadd.f32 %v7916_v31, %v7915_v0  ;;  %v5709_v49 = vadd.f32 %v7914_v10, %v11566_v21  ;;  %v5823_v0 = vld [vmem:[%s11078_s13 + $0x7c] sm:$0x3] }
 0x391   : > { %v5712_v33 = vadd.f32 %v7917_v58, %v11566_v21 }
 0x393   : > { %v5749_v46 = vpop.f32.mrb[132].mxu1 }
 0x394   : > { %v5750_v60 = vadd.f32 %v5749_v46, %v5693_v3  ;;  %v8287_v4 = vpop.f32.mrb[133].mxu1 }
 0x395   : > { %v5752_v41 = vpop.f32.mrb[134].mxu1 }
 0x396   : > { %v5772_v19 = vmax.f32 %v5750_v60, 0.0  ;;  %v5753_v47 = vadd.f32 %v5752_v41, %v5696_v37  ;;  %v8288_v51 = vpop.f32.mrb[135].mxu1 }
 0x398   : > { %v7571_v30 = vpack.c.bf16 %v5772_v19, %v5772_v19  ;;  %v5773_v50 = vmax.f32 %v5753_v47, 0.0 }
 0x39a   : > { %v5796_v38 = vrot.slane %v7571_v30, 7  ;;  %v7572_v5 = vpack.c.bf16 %v5773_v50, %v5773_v50 }
 0x39b   : > { %v5757_v55 = vpop.f32.mrb[136].mxu1 }
 0x39c   : > { %v5797_v36 = vrot.slane %v5796_v38, 4  ;;  %5818 = vst.msk [vmem:[%s11078_s13 + $0x68] sm:$0xe] %vm3462_vm4, %v5796_v38  ;;  %v5798_v28 = vrot.slane %v7572_v5, 7  ;;  %v5758_v40 = vadd.f32 %v5757_v55, %v5701_v17  ;;  %v8291_v56 = vpop.f32.mrb[137].mxu1 }
 0x39d   : > { %v5760_v23 = vpop.f32.mrb[138].mxu1 }
 0x39e   : > { %v5799_v44 = vsel %vm11329_vm14, %v5797_v36, %v5798_v28  ;;  %v5774_v39 = vmax.f32 %v5758_v40, 0.0  ;;  %v5761_v43 = vadd.f32 %v5760_v23, %v5704_v18  ;;  %v8292_v20 = vpop.f32.mrb[139].mxu1  ;;  %v5800_v15 = vrot.slane %v5798_v28, 4 }
 0x39f   : > { %5819 = vst.msk [vmem:[%s11078_s13 + $0x6c] sm:$0xf] %vm2879_vm13, %v5799_v44 }
 0x3a0   : > { %v7573_v53 = vpack.c.bf16 %v5774_v39, %v5774_v39  ;;  %v5775_v61 = vmax.f32 %v5761_v43, 0.0 }
 0x3a2   : > { %v5801_v6 = vrot.slane %v7573_v53, 7  ;;  %v7574_v52 = vpack.c.bf16 %v5775_v61, %v5775_v61 }
 0x3a3   : > { %v5765_v42 = vpop.f32.mrb[140].mxu1 }
 0x3a4   : > { %v5802_v54 = vsel %vm11329_vm14, %v5800_v15, %v5801_v6  ;;  %v5803_v57 = vrot.slane %v5801_v6, 4  ;;  %v5804_v1 = vrot.slane %v7574_v52, 7  ;;  %v5766_v2 = vadd.f32 %v5765_v42, %v5709_v49  ;;  %v8295_v26 = vpop.f32.mrb[141].mxu1 }
 0x3a5   : > { %5820 = vst.msk [vmem:[%s11078_s13 + $0x70] sm:$0xf] %vm2879_vm13, %v5802_v54  ;;  %v5768_v7 = vpop.f32.mrb[142].mxu1 }
 0x3a6   : > { %v5805_v45 = vsel %vm11329_vm14, %v5803_v57, %v5804_v1  ;;  %v5776_v25 = vmax.f32 %v5766_v2, 0.0  ;;  %v5769_v8 = vadd.f32 %v5768_v7, %v5712_v33  ;;  %v8296_v24 = vpop.f32.mrb[143].mxu1  ;;  %v5806_v12 = vrot.slane %v5804_v1, 4 }
 0x3a7   : > { %5821 = vst.msk [vmem:[%s11078_s13 + $0x74] sm:$0xf] %vm2879_vm13, %v5805_v45 }
 0x3a8   : > { %v7575_v11 = vpack.c.bf16 %v5776_v25, %v5776_v25  ;;  %v5777_v32 = vmax.f32 %v5769_v8, 0.0 }
 0x3aa   : > { %v5807_v29 = vrot.slane %v7575_v11, 7  ;;  %v7576_v22 = vpack.c.bf16 %v5777_v32, %v5777_v32 }
 0x3ac   : > { %v5808_v63 = vsel %vm11329_vm14, %v5806_v12, %v5807_v29  ;;  %v5809_v62 = vrot.slane %v5807_v29, 4  ;;  %v5810_v10 = vrot.slane %v7576_v22, 7 }
 0x3ad   : > { %5822 = vst.msk [vmem:[%s11078_s13 + $0x78] sm:$0xf] %vm2879_vm13, %v5808_v63 }
 0x3ae   : > { %v5811_v31 = vsel %vm11329_vm14, %v5809_v62, %v5810_v10 }
 0x3af   : > { %v5824_v58 = vsel %vm11434_vm2, %v5811_v31, %v5823_v0 }
 0x3b0   : > { %5825 = vst [vmem:[%s11078_s13 + $0x7c] sm:$0x3] %v5824_v58 }
 0x3b3   : > { %v7939_v3 = vpop.f32.mrb[144].mxu1 }
 0x3b4   : > { %v7940_v46 = vpop.f32.mrb[145].mxu1 }
 0x3b5   : > { %v7941_v60 = vadd.f32 %v7940_v46, %v7939_v3  ;;  %v7942_v4 = vpop.f32.mrb[146].mxu1 }
 0x3b6   : > { %v7943_v37 = vpop.f32.mrb[147].mxu1 }
 0x3b7   : > { %v5826_v41 = vld [vmem:[%s11078_s13 + $0x7c] sm:$0x2]  ;;  %v7944_v19 = vadd.f32 %v7943_v37, %v7942_v4  ;;  %v6309_v53 = vadd.f32 %v7941_v60, %v11566_v21 }
 0x3b8   : > { %v5827_v47 = vsel %vm11478_vm11, 0, %v5826_v41 }
 0x3b9   : > { %5828 = vst [vmem:[%s11078_s13 + $0x7c] sm:$0x2] %v5827_v47  ;;  %v6312_v33 = vadd.f32 %v7944_v19, %v11566_v21 }
 0x3bb   : > { %v7945_v51 = vpop.f32.mrb[148].mxu1 }
 0x3bc   : > { %v7946_v30 = vpop.f32.mrb[149].mxu1 }
 0x3bd   : > { %v7947_v50 = vadd.f32 %v7946_v30, %v7945_v51  ;;  %v7948_v14 = vpop.f32.mrb[150].mxu1 }
 0x3be   : > { %v7949_v38 = vpop.f32.mrb[151].mxu1 }
 0x3bf   : > { %v7950_v5 = vadd.f32 %v7949_v38, %v7948_v14  ;;  %v7978_v35 = vpop.f32.mrb[196].mxu0  ;;  %v6317_v11 = vadd.f32 %v7947_v50, %v11566_v21 }
 0x3c0   : > { %v7979_v17 = vpop.f32.mrb[197].mxu0 }
 0x3c1   : > { %v7980_v55 = vadd.f32 %v7979_v17, %v7978_v35  ;;  %v7981_v36 = vpop.f32.mrb[198].mxu0  ;;  %v6320_v31 = vadd.f32 %v7950_v5, %v11566_v21 }
 0x3c2   : > { %v7982_v40 = vpop.f32.mrb[199].mxu0 }
 0x3c3   : > { %v7951_v28 = vpop.f32.mrb[152].mxu1  ;;  %v7983_v18 = vadd.f32 %v7982_v40, %v7981_v36  ;;  %v6917_v51 = vadd.f32 %v7980_v55, %v11566_v21 }
 0x3c4   : > { %v7952_v56 = vpop.f32.mrb[153].mxu1 }
 0x3c5   : > { %v7953_v23 = vadd.f32 %v7952_v56, %v7951_v28  ;;  %v7954_v44 = vpop.f32.mrb[154].mxu1  ;;  %v6920_v40 = vadd.f32 %v7983_v18, %v11566_v21 }
 0x3c6   : > { %v7955_v39 = vpop.f32.mrb[155].mxu1 }
 0x3c7   : > { %v7956_v48 = vadd.f32 %v7955_v39, %v7954_v44  ;;  %v7984_v43 = vpop.f32.mrb[200].mxu0  ;;  %v6325_v30 = vadd.f32 %v7953_v23, %v11566_v21 }
 0x3c8   : > { %v7985_v20 = vpop.f32.mrb[201].mxu0 }
 0x3c9   : > { %v11843_v61 = vadd.f32 %v7985_v20, %v7984_v43  ;;  %v7987_v15 = vpop.f32.mrb[202].mxu0  ;;  %v6328_v28 = vadd.f32 %v7956_v48, %v11566_v21 }
 0x3ca   : > { %v7988_v52 = vpop.f32.mrb[203].mxu0 }
 0x3cb   : > { %v6365_v6 = vpop.f32.mrb[156].mxu1  ;;  %v11846_v54 = vadd.f32 %v7988_v52, %v7987_v15 }
 0x3cc   : > { %v6366_v49 = vadd.f32 %v6365_v6, %v6309_v53  ;;  %v8303_v42 = vpop.f32.mrb[157].mxu1 }
 0x3cd   : > { %v6368_v57 = vpop.f32.mrb[158].mxu1 }
 0x3ce   : > { %v6388_v1 = vmax.f32 %v6366_v49, 0.0  ;;  %v6369_v2 = vadd.f32 %v6368_v57, %v6312_v33  ;;  %v8304_v26 = vpop.f32.mrb[159].mxu1 }
 0x3d0   : > { %v7577_v7 = vpack.c.bf16 %v6388_v1, %v6388_v1  ;;  %v6389_v45 = vmax.f32 %v6369_v2, 0.0  ;;  %v7990_v25 = vpop.f32.mrb[204].mxu0 }
 0x3d1   : > { %v7991_v32 = vpop.f32.mrb[205].mxu0 }
 0x3d2   : > { %v6412_v8 = vrot.slane %v7577_v7, 6  ;;  %v7578_v24 = vpack.c.bf16 %v6389_v45, %v6389_v45  ;;  %v11849_v29 = vadd.f32 %v7991_v32, %v7990_v25  ;;  %v7993_v22 = vpop.f32.mrb[206].mxu0 }
 0x3d3   : > { %v6373_v12 = vpop.f32.mrb[160].mxu1  ;;  %v7994_v58 = vpop.f32.mrb[207].mxu0 }
 0x3d4   : > { %v6413_v63 = vrot.slane %v6412_v8, 4  ;;  %6434 = vst.msk [vmem:[%s11078_s13 + $0x7c] sm:$0xc] %vm12038_vm1, %v6412_v8  ;;  %v6414_v62 = vrot.slane %v7578_v24, 6  ;;  %v6374_v10 = vadd.f32 %v6373_v12, %v6317_v11  ;;  %v8307_v0 = vpop.f32.mrb[161].mxu1  ;;  %v11854_v46 = vadd.f32 %v7994_v58, %v7993_v22 }
 0x3d5   : > { %v6376_v3 = vpop.f32.mrb[162].mxu1  ;;  %v6925_v8 = vadd.f32 %v11843_v61, %v11566_v21  ;;  %v6928_v12 = vadd.f32 %v11846_v54, %v11566_v21 }
 0x3d6   : > { %v6415_v60 = vsel %vm11633_vm6, %v6413_v63, %v6414_v62  ;;  %v6390_v4 = vmax.f32 %v6374_v10, 0.0  ;;  %v6377_v37 = vadd.f32 %v6376_v3, %v6320_v31  ;;  %v8308_v41 = vpop.f32.mrb[163].mxu1  ;;  %v6416_v14 = vrot.slane %v6414_v62, 4  ;;  %v6439_v10 = vld [vmem:[%s11078_s13 + $0x90] sm:$0x7] }
 0x3d7   : > { %6435 = vst.msk [vmem:[%s11078_s13 + $0x80] sm:$0xf] %vm2879_vm13, %v6415_v60 }
 0x3d8   : > { %v7579_v19 = vpack.c.bf16 %v6390_v4, %v6390_v4  ;;  %v6391_v47 = vmax.f32 %v6377_v37, 0.0  ;;  %v6973_v50 = vpop.f32.mrb[208].mxu0 }
 0x3d9   : > { %v6974_v35 = vadd.f32 %v6973_v50, %v6917_v51  ;;  %v8319_v17 = vpop.f32.mrb[209].mxu0 }
 0x3da   : > { %v6417_v38 = vrot.slane %v7579_v19, 6  ;;  %v7580_v5 = vpack.c.bf16 %v6391_v47, %v6391_v47  ;;  %v6976_v56 = vpop.f32.mrb[210].mxu0 }
 0x3db   : > { %v6381_v36 = vpop.f32.mrb[164].mxu1  ;;  %v8320_v20 = vpop.f32.mrb[211].mxu0  ;;  %v6996_v53 = vmax.f32 %v6974_v35, 0.0  ;;  %v6977_v6 = vadd.f32 %v6976_v56, %v6920_v40 }
 0x3dc   : > { %v6418_v44 = vsel %vm11633_vm6, %v6416_v14, %v6417_v38  ;;  %v6419_v55 = vrot.slane %v6417_v38, 4  ;;  %v6420_v39 = vrot.slane %v7580_v5, 6  ;;  %v6382_v23 = vadd.f32 %v6381_v36, %v6325_v30  ;;  %v8311_v43 = vpop.f32.mrb[165].mxu1 }
 0x3dd   : > { %6436 = vst.msk [vmem:[%s11078_s13 + $0x84] sm:$0xf] %vm2879_vm13, %v6418_v44  ;;  %v6384_v15 = vpop.f32.mrb[166].mxu1  ;;  %v7583_v42 = vpack.c.bf16 %v6996_v53, %v6996_v53  ;;  %v6997_v33 = vmax.f32 %v6977_v6, 0.0  ;;  %v6933_v30 = vadd.f32 %v8595_v34, %v11849_v29  ;;  %v6936_v14 = vadd.f32 %v8595_v34, %v11854_v46 }
 0x3de   : > { %v6421_v48 = vsel %vm11633_vm6, %v6419_v55, %v6420_v39  ;;  %v6392_v18 = vmax.f32 %v6382_v23, 0.0  ;;  %v6385_v52 = vadd.f32 %v6384_v15, %v6328_v28  ;;  %v8312_v49 = vpop.f32.mrb[167].mxu1  ;;  %v6422_v7 = vrot.slane %v6420_v39, 4 }
 0x3df   : > { %6437 = vst.msk [vmem:[%s11078_s13 + $0x88] sm:$0xf] %vm2879_vm13, %v6421_v48  ;;  %v7020_v2 = vrot.slane %v7583_v42, 5  ;;  %v7584_v26 = vpack.c.bf16 %v6997_v33, %v6997_v33  ;;  %v7047_v48 = vld [vmem:[%s11078_s13 + $0xa4] sm:$0xf] }
 0x3e0   : > { %v7581_v57 = vpack.c.bf16 %v6392_v18, %v6392_v18  ;;  %v6393_v1 = vmax.f32 %v6385_v52, 0.0 }
 0x3e1   : > { %v7021_v24 = vrot.slane %v7020_v2, 4  ;;  %7042 = vst.msk [vmem:[%s11078_s13 + $0x90] sm:$0x8] %vm4706_vm10, %v7020_v2  ;;  %v7022_v11 = vrot.slane %v7584_v26, 5 }
 0x3e2   : > { %v6423_v45 = vrot.slane %v7581_v57, 6  ;;  %v7582_v25 = vpack.c.bf16 %v6393_v1, %v6393_v1 }
 0x3e3   : > { %v6981_v32 = vpop.f32.mrb[168].mxu1  ;;  %v7023_v61 = vsel %vm11739_vm12, %v7021_v24, %v7022_v11  ;;  %v7024_v19 = vrot.slane %v7022_v11, 4 }
 0x3e4   : > { %v6424_v22 = vsel %vm11633_vm6, %v6422_v7, %v6423_v45  ;;  %v6425_v63 = vrot.slane %v6423_v45, 4  ;;  %v6426_v62 = vrot.slane %v7582_v25, 6  ;;  %v6982_v0 = vadd.f32 %v6981_v32, %v6925_v8  ;;  %v8323_v31 = vpop.f32.mrb[169].mxu1  ;;  %7043 = vst.msk [vmem:[%s11078_s13 + $0x94] sm:$0xf] %vm2879_vm13, %v7023_v61 }
 0x3e5   : > { %6438 = vst.msk [vmem:[%s11078_s13 + $0x8c] sm:$0xf] %vm2879_vm13, %v6424_v22  ;;  %v6984_v58 = vpop.f32.mrb[170].mxu1 }
 0x3e6   : > { %v6427_v3 = vsel %vm11633_vm6, %v6425_v63, %v6426_v62  ;;  %v6998_v21 = vmax.f32 %v6982_v0, 0.0  ;;  %v6985_v54 = vadd.f32 %v6984_v58, %v6928_v12  ;;  %v8324_v60 = vpop.f32.mrb[171].mxu1 }
 0x3e7   : > { %v6440_v4 = vsel %vm11701_vm15, %v6427_v3, %v6439_v10 }
 0x3e8   : > { %6441 = vst [vmem:[%s11078_s13 + $0x90] sm:$0x7] %v6440_v4  ;;  %v7585_v37 = vpack.c.bf16 %v6998_v21, %v6998_v21  ;;  %v6999_v41 = vmax.f32 %v6985_v54, 0.0 }
 0x3ea   : > { %v7025_v47 = vrot.slane %v7585_v37, 5  ;;  %v7586_v51 = vpack.c.bf16 %v6999_v41, %v6999_v41 }
 0x3eb   : > { %v6989_v50 = vpop.f32.mrb[172].mxu1 }
 0x3ec   : > { %v7026_v9 = vsel %vm11739_vm12, %v7024_v19, %v7025_v47  ;;  %v7027_v38 = vrot.slane %v7025_v47, 4  ;;  %v7028_v5 = vrot.slane %v7586_v51, 5  ;;  %v6990_v35 = vadd.f32 %v6989_v50, %v6933_v30  ;;  %v8327_v17 = vpop.f32.mrb[173].mxu1 }
 0x3ed   : > { %7044 = vst.msk [vmem:[%s11078_s13 + $0x98] sm:$0xf] %vm2879_vm13, %v7026_v9  ;;  %v6992_v36 = vpop.f32.mrb[174].mxu1 }
 0x3ee   : > { %v7029_v28 = vsel %vm11739_vm12, %v7027_v38, %v7028_v5  ;;  %v7000_v40 = vmax.f32 %v6990_v35, 0.0  ;;  %v6993_v29 = vadd.f32 %v6992_v36, %v6936_v14  ;;  %v8328_v56 = vpop.f32.mrb[175].mxu1  ;;  %v7030_v23 = vrot.slane %v7028_v5, 4 }
 0x3ef   : > { %v6442_v46 = vld [vmem:[%s11078_s13 + $0x90] sm:$0x4]  ;;  %7045 = vst.msk [vmem:[%s11078_s13 + $0x9c] sm:$0xf] %vm2879_vm13, %v7029_v28 }
 0x3f0   : > { %v6443_v44 = vsel %vm11722_vm5, 0, %v6442_v46  ;;  %v7587_v55 = vpack.c.bf16 %v7000_v40, %v7000_v40  ;;  %v7001_v39 = vmax.f32 %v6993_v29, 0.0 }
 0x3f1   : > { %6444 = vst [vmem:[%s11078_s13 + $0x90] sm:$0x4] %v6443_v44 }
 0x3f2   : > { %v7031_v43 = vrot.slane %v7587_v55, 5  ;;  %v7588_v20 = vpack.c.bf16 %v7001_v39, %v7001_v39 }
 0x3f4   : > { %v7032_v53 = vsel %vm11739_vm12, %v7030_v23, %v7031_v43  ;;  %v7033_v15 = vrot.slane %v7031_v43, 4  ;;  %v7034_v6 = vrot.slane %v7588_v20, 5 }
 0x3f5   : > { %7046 = vst.msk [vmem:[%s11078_s13 + $0xa0] sm:$0xf] %vm2879_vm13, %v7032_v53 }
 0x3f6   : > { %v7035_v59 = vsel %vm11739_vm12, %v7033_v15, %v7034_v6 }
 0x3f7   : > { %v7048_v18 = vsel %vm11763_vm9, %v7035_v59, %v7047_v48 }
 0x3f8   : > { %7049 = vst [vmem:[%s11078_s13 + $0xa4] sm:$0xf] %v7048_v18 }
 0x3ff   : > { %v7050_v52 = vld [vmem:[%s11078_s13 + $0xa4] sm:$0x8] }
 0x400   : > { %v7051_v49 = vsel %vm11776_vm7, 0, %v7050_v52 }
 0x401   : > { %7052 = vst [vmem:[%s11078_s13 + $0xa4] sm:$0x8] %v7051_v49 }
 0x402 PF: > { %s15_s18 = sadd.s32 1, %s8602_s18  }
 0x403   : > { %p12_p5 = scmp.ge.s32.totalorder %s15_s18, 4  }
 0x405   :  { %14 = sbr.rel (!%p12_p5) target bundleno = 1 (0x1), region = 70 }

</bundles_post_ra>
